<compile_context>
chip_gen: v7x
topology: tpu7x:2x2x1
jax: 0.10.0
libtpu: 0.0.40
codegen_flags: <defaults>
</compile_context>

<pallas_src>
import jax
import jax.numpy as jnp
from jax import lax
from jax.experimental import pallas as pl
from jax.experimental.pallas import tpu as pltpu

NUM_GROUPS = 32
EPS = 1e-6
F32 = jnp.float32
BF16 = jnp.bfloat16


# ----------------------------------------------------------------------------
# in-kernel building blocks (all on channels-last (S, C) slabs)
# ----------------------------------------------------------------------------
def _swish(h):
    # x * sigmoid(x); exp goes to the EUP slot
    return h * (1.0 / (1.0 + jnp.exp(-h)))


def _group_norm(x, m, gamma, beta):
    """Two-pass GroupNorm(32, C, eps=1e-6, affine) on an (S, C) f32 slab.

    m is the (C, C) 0/1 group-membership matrix so the per-group reductions are a
    (1, C) @ (C, C) dot (no lane-dim reshape). Two-pass (subtract mean first)
    avoids the E[x^2]-E[x]^2 cancellation issue.
    """
    S, C = x.shape
    n = float((C // NUM_GROUPS) * S)
    csum = jnp.sum(x, axis=0, keepdims=True)                            # (1, C)
    mean = jnp.dot(csum, m, preferred_element_type=jnp.float32) / n     # group mean per channel
    d = x - mean
    ssq = jnp.sum(d * d, axis=0, keepdims=True)                         # (1, C)
    var = jnp.dot(ssq, m, preferred_element_type=jnp.float32) / n
    inv = lax.rsqrt(var + EPS)
    return d * (inv * gamma) + beta


def _shift_down(t):
    """result[s] = t[s-1]; row 0 zeroed (zero padding). Sublane roll on the XLU."""
    row = lax.broadcasted_iota(jnp.int32, t.shape, 0)
    return jnp.where(row > 0, pltpu.roll(t, 1, axis=0), 0.0)


def _shift_up(t):
    """result[s] = t[s+1]; row S-1 zeroed. Uses a positive (S-1) roll amount."""
    S = t.shape[0]
    row = lax.broadcasted_iota(jnp.int32, t.shape, 0)
    return jnp.where(row < S - 1, pltpu.roll(t, S - 1, axis=0), 0.0)


def _conv3_taps(hb, w0_ref, w1_ref, w2_ref, bias_ref):
    """Conv1d(k=3, pad=1): y[s] = h[s-1]@W0 + h[s]@W1 + h[s+1]@W2 + b.

    hb: (S, C_in) bf16 activation; taps: (C_in, C_out) bf16; bias: (1, C_out) f32.
    Three matmuls on the UNshifted activation; the +-1 row shift happens on the
    per-tap f32 outputs via pltpu.roll + boundary masking (no misaligned slices).
    """
    t0 = jnp.dot(hb, w0_ref[...], preferred_element_type=jnp.float32)
    t1 = jnp.dot(hb, w1_ref[...], preferred_element_type=jnp.float32)
    t2 = jnp.dot(hb, w2_ref[...], preferred_element_type=jnp.float32)
    return _shift_down(t0) + t1 + _shift_up(t2) + bias_ref[...]


# ----------------------------------------------------------------------------
# kernels (one grid step == one batch element)
# ----------------------------------------------------------------------------
def _conv3_kernel(x_ref, w0, w1, w2, bias, o_ref):
    hb = x_ref[...].astype(BF16)
    o_ref[...] = _conv3_taps(hb, w0, w1, w2, bias).astype(o_ref.dtype)


def _gn_swish_conv3_kernel(x_ref, m, g, b, w0, w1, w2, bias, o_ref):
    h = _swish(_group_norm(x_ref[...].astype(F32), m[...], g[...], b[...]))
    o_ref[...] = _conv3_taps(h.astype(BF16), w0, w1, w2, bias).astype(o_ref.dtype)


def _resnet_body(x_ref, m1, g1, b1, w10, w11, w12, c1b,
                 m2, g2, b2, w20, w21, w22, c2b):
    h = _swish(_group_norm(x_ref[...].astype(F32), m1[...], g1[...], b1[...]))
    h = _conv3_taps(h.astype(BF16), w10, w11, w12, c1b)          # (S, Cout) f32
    h = _swish(_group_norm(h, m2[...], g2[...], b2[...]))
    # dropout is identity at inference
    return _conv3_taps(h.astype(BF16), w20, w21, w22, c2b)       # (S, Cout) f32


def _resnet_kernel(x_ref, m1, g1, b1, w10, w11, w12, c1b,
                   m2, g2, b2, w20, w21, w22, c2b, o_ref):
    h = _resnet_body(x_ref, m1, g1, b1, w10, w11, w12, c1b,
                     m2, g2, b2, w20, w21, w22, c2b)
    # residual re-reads x_ref here (short f32 live range)
    o_ref[...] = (x_ref[...].astype(F32) + h).astype(o_ref.dtype)


def _resnet_sc_kernel(x_ref, m1, g1, b1, w10, w11, w12, c1b,
                      m2, g2, b2, w20, w21, w22, c2b, ws, bs, o_ref):
    h = _resnet_body(x_ref, m1, g1, b1, w10, w11, w12, c1b,
                     m2, g2, b2, w20, w21, w22, c2b)
    sc = jnp.dot(x_ref[...].astype(BF16), ws[...],
                 preferred_element_type=jnp.float32) + bs[...]
    o_ref[...] = (sc + h).astype(o_ref.dtype)


def _upsample_conv3_kernel(x_ref, w0, w01, w12, w2, bias, o_ref):
    """Nearest-2x upsample fused with Conv1d(k=3, pad=1).

    With hu = repeat(h, 2) along the sequence:
      y[2s]   = h[s-1]@W0 + h[s]@(W1+W2)
      y[2s+1] = h[s]@(W0+W1) + h[s+1]@W2
    so everything is computed from the un-upsampled (S, C) slab.  The kernel stores
    [y_even | y_odd] as a lane-dense (S, 2*O) block; the wrapper's row-major reshape
    to (2S, O) interleaves them for free.
    """
    hb = x_ref[...].astype(BF16)
    t0 = jnp.dot(hb, w0[...], preferred_element_type=jnp.float32)
    t01 = jnp.dot(hb, w01[...], preferred_element_type=jnp.float32)
    t12 = jnp.dot(hb, w12[...], preferred_element_type=jnp.float32)
    t2 = jnp.dot(hb, w2[...], preferred_element_type=jnp.float32)
    ye = _shift_down(t0) + t12 + bias[...]        # output rows 2s
    yo = t01 + _shift_up(t2) + bias[...]          # output rows 2s+1
    o_ref[...] = jnp.concatenate([ye, yo], axis=-1).astype(o_ref.dtype)


def _attn_kernel(x_ref, m, g, b, wq, bq, wk, bk, wv, bv, wp, bp, o_ref):
    """AttnBlock1D on one batch element, channels-last (S, C).

    bf16 MXU operands, f32 accumulation; 1/sqrt(C) is pre-folded into (wq, bq).
    """
    h = _group_norm(x_ref[...].astype(F32), m[...], g[...], b[...])
    hb = h.astype(BF16)

    q = jnp.dot(hb, wq[...], preferred_element_type=jnp.float32) + bq[...]
    k = jnp.dot(hb, wk[...], preferred_element_type=jnp.float32) + bk[...]
    v = jnp.dot(hb, wv[...], preferred_element_type=jnp.float32) + bv[...]

    # scores[i, j] = q_i . k_j : contract channels of both operands, no transpose.
    s = lax.dot_general(q.astype(BF16), k.astype(BF16),
                        dimension_numbers=(((1,), (1,)), ((), ())),
                        preferred_element_type=jnp.float32)       # (S, S)
    s = s - jnp.max(s, axis=-1, keepdims=True)
    p = jnp.exp(s)
    p = p * pl.reciprocal(jnp.sum(p, axis=-1, keepdims=True), approx=True)

    h_att = jnp.dot(p.astype(BF16), v.astype(BF16),
                    preferred_element_type=jnp.float32)           # (S, C)
    proj = jnp.dot(h_att.astype(BF16), wp[...],
                   preferred_element_type=jnp.float32) + bp[...]

    o_ref[...] = (x_ref[...].astype(F32) + proj).astype(o_ref.dtype)


# ----------------------------------------------------------------------------
# pallas_call plumbing
# ----------------------------------------------------------------------------
def _xspec(S, C):
    # per-batch (S, C) slab; batch dim squeezed
    return pl.BlockSpec((None, S, C), lambda bidx: (bidx, 0, 0))


def _pspec(shape):
    # full parameter block, constant index across the batch grid
    return pl.BlockSpec(shape, lambda bidx: (0, 0))


def _pcall(kernel, args, in_specs, out_s, out_c, dtype):
    B = args[0].shape[0]
    # explicit VMEM budget: per-step block bytes x (double buffer + live copy) + headroom
    blk = out_s * out_c * jnp.dtype(dtype).itemsize
    for a in args:
        per = a.size // (a.shape[0] if a.ndim == 3 else 1)
        blk += per * jnp.dtype(a.dtype).itemsize
    vmem_limit = int(min(max(4 * blk + (4 << 20), 32 << 20), 64 << 20))
    return pl.pallas_call(
        kernel,
        out_shape=jax.ShapeDtypeStruct((B, out_s, out_c), dtype),
        grid_spec=pltpu.PrefetchScalarGridSpec(
            num_scalar_prefetch=0,
            grid=(B,),
            in_specs=list(in_specs),
            out_specs=_xspec(out_s, out_c),
        ),
        compiler_params=pltpu.CompilerParams(
            dimension_semantics=("parallel",),
            vmem_limit_bytes=vmem_limit,
        ),
    )(*args)


# ----------------------------------------------------------------------------
# layer wrappers (channels-last (B, S, C) arrays, prepared params)
# ----------------------------------------------------------------------------
def conv3_layer(x, p):
    B, S, C = x.shape
    O = p["w"][0].shape[1]
    args = (x, *p["w"], p["b"])
    in_specs = [_xspec(S, C)] + [_pspec((C, O))] * 3 + [_pspec((1, O))]
    return _pcall(_conv3_kernel, args, in_specs, S, O, x.dtype)


def gn_swish_conv3_layer(x, norm_p, conv_p):
    B, S, C = x.shape
    O = conv_p["w"][0].shape[1]
    args = (x, norm_p["m"], norm_p["gamma"], norm_p["beta"], *conv_p["w"], conv_p["b"])
    in_specs = [_xspec(S, C), _pspec((C, C)), _pspec((1, C)), _pspec((1, C)),
                _pspec((C, O)), _pspec((C, O)), _pspec((C, O)), _pspec((1, O))]
    return _pcall(_gn_swish_conv3_kernel, args, in_specs, S, O, x.dtype)


def resnet_block(x, p):
    B, S, Cin = x.shape
    Cout = p["conv1"]["w"][0].shape[1]
    args = [x,
            p["norm1"]["m"], p["norm1"]["gamma"], p["norm1"]["beta"],
            *p["conv1"]["w"], p["conv1"]["b"],
            p["norm2"]["m"], p["norm2"]["gamma"], p["norm2"]["beta"],
            *p["conv2"]["w"], p["conv2"]["b"]]
    in_specs = [
        _xspec(S, Cin),
        _pspec((Cin, Cin)), _pspec((1, Cin)), _pspec((1, Cin)),
        _pspec((Cin, Cout)), _pspec((Cin, Cout)), _pspec((Cin, Cout)), _pspec((1, Cout)),
        _pspec((Cout, Cout)), _pspec((1, Cout)), _pspec((1, Cout)),
        _pspec((Cout, Cout)), _pspec((Cout, Cout)), _pspec((Cout, Cout)), _pspec((1, Cout)),
    ]
    if "nin_shortcut" in p:
        args += [p["nin_shortcut"]["w"], p["nin_shortcut"]["b"]]
        in_specs += [_pspec((Cin, Cout)), _pspec((1, Cout))]
        kern = _resnet_sc_kernel
    else:
        kern = _resnet_kernel
    return _pcall(kern, tuple(args), in_specs, S, Cout, x.dtype)


def attn_block(x, p):
    B, S, C = x.shape
    args = (x, p["norm"]["m"], p["norm"]["gamma"], p["norm"]["beta"],
            p["q"]["w"], p["q"]["b"], p["k"]["w"], p["k"]["b"],
            p["v"]["w"], p["v"]["b"], p["proj_out"]["w"], p["proj_out"]["b"])
    in_specs = ([_xspec(S, C), _pspec((C, C)), _pspec((1, C)), _pspec((1, C))]
                + [_pspec((C, C)), _pspec((1, C))] * 4)
    return _pcall(_attn_kernel, args, in_specs, S, C, x.dtype)


def upsample_conv3_layer(x, p):
    B, S, C = x.shape
    O = p["w0"].shape[1]
    args = (x, p["w0"], p["w01"], p["w12"], p["w2"], p["b"])
    in_specs = [_xspec(S, C)] + [_pspec((C, O))] * 4 + [_pspec((1, O))]
    out = _pcall(_upsample_conv3_kernel, args, in_specs, S, 2 * O, x.dtype)
    # row-major (B, S, 2*O) -> (B, 2*S, O) is a free reshape that interleaves the
    # even/odd conv outputs, i.e. the conv of the nearest-2x upsampled sequence.
    return out.reshape(B, 2 * S, O)


# ----------------------------------------------------------------------------
# one-time host-side weight preparation (outside jit)
# ----------------------------------------------------------------------------
def _group_mask(C):
    assert C % NUM_GROUPS == 0
    gs = C // NUM_GROUPS
    g = jnp.arange(C, dtype=jnp.int32) // gs
    return (g[:, None] == g[None, :]).astype(F32)


def prepare_params(params, cfg, out_pad=128):
    """Pre-transpose/cast all weights once: taps -> (C_in, C_out) bf16, biases (1, O)
    f32, 1/sqrt(C) folded into q, upsample taps pre-summed, conv_out padded to a
    lane-dense output width, GroupNorm group masks precomputed."""

    def normp(p):
        C = p["gamma"].shape[0]
        return dict(m=_group_mask(C),
                    gamma=p["gamma"].reshape(1, C).astype(F32),
                    beta=p["beta"].reshape(1, C).astype(F32))

    def conv3p(p, pad_to=None):
        O, C, _ = p["w"].shape
        w, bvec = p["w"], p["b"]
        if pad_to is not None and O < pad_to:
            w = jnp.zeros((pad_to, C, 3), w.dtype).at[:O].set(w)
            bvec = jnp.zeros((pad_to,), bvec.dtype).at[:O].set(bvec)
            O = pad_to
        taps = tuple(jnp.transpose(w[:, :, k]).astype(BF16) for k in range(3))
        return dict(w=taps, b=bvec.reshape(1, O).astype(F32))

    def conv1p(p, scale=1.0):
        O = p["w"].shape[0]
        return dict(w=(jnp.transpose(p["w"][:, :, 0]) * scale).astype(BF16),
                    b=(p["b"].reshape(1, O) * scale).astype(F32))

    def upsamplep(p):
        O = p["w"].shape[0]
        w = [jnp.transpose(p["w"][:, :, k]) for k in range(3)]
        return dict(w0=w[0].astype(BF16), w01=(w[0] + w[1]).astype(BF16),
                    w12=(w[1] + w[2]).astype(BF16), w2=w[2].astype(BF16),
                    b=p["b"].reshape(1, O).astype(F32))

    def resnetp(p):
        out = dict(norm1=normp(p["norm1"]), conv1=conv3p(p["conv1"]),
                   norm2=normp(p["norm2"]), conv2=conv3p(p["conv2"]))
        if "nin_shortcut" in p:
            out["nin_shortcut"] = conv1p(p["nin_shortcut"])
        return out

    def attnp(p):
        C = p["q"]["w"].shape[0]
        return dict(norm=normp(p["norm"]),
                    q=conv1p(p["q"], scale=float(C) ** -0.5),
                    k=conv1p(p["k"]), v=conv1p(p["v"]),
                    proj_out=conv1p(p["proj_out"]))

    prep = dict(conv_in=conv3p(params["conv_in"]),
                mid=dict(block_1=resnetp(params["mid"]["block_1"]),
                         attn_1=attnp(params["mid"]["attn_1"]),
                         block_2=resnetp(params["mid"]["block_2"])))
    up = []
    for lvl in params["up"]:
        plvl = dict(block=[resnetp(bp) for bp in lvl["block"]],
                    attn=[attnp(ap) for ap in lvl["attn"]])
        if "upsample" in lvl:
            plvl["upsample"] = upsamplep(lvl["upsample"])
        up.append(plvl)
    prep["up"] = up
    prep["norm_out"] = normp(params["norm_out"])
    prep["conv_out"] = conv3p(params["conv_out"], pad_to=out_pad)
    return prep


# ----------------------------------------------------------------------------
# forward pass
# ----------------------------------------------------------------------------
def decoder_forward_pallas(z, prep, cfg):
    """z: (B, z_channels, S) in PyTorch NCW layout. Returns (B, out_ch, S_out)."""
    h = jnp.transpose(z, (0, 2, 1))                     # -> channels-last (B, S, C)
    h = conv3_layer(h, prep["conv_in"])
    h = resnet_block(h, prep["mid"]["block_1"])
    h = attn_block(h, prep["mid"]["attn_1"])
    h = resnet_block(h, prep["mid"]["block_2"])
    for i_level in reversed(range(len(cfg["ch_mult"]))):
        lvl = prep["up"][i_level]
        for i_block in range(cfg["num_res_blocks"] + 1):
            h = resnet_block(h, lvl["block"][i_block])
            if lvl["attn"]:
                h = attn_block(h, lvl["attn"][i_block])
        if i_level != 0:
            h = upsample_conv3_layer(h, lvl["upsample"])
    h = gn_swish_conv3_layer(h, prep["norm_out"], prep["conv_out"])
    h = h[:, :, :cfg["out_ch"]]                         # drop lane padding of conv_out
    return jnp.transpose(h, (0, 2, 1))                  # back to (B, C, S)


# ----------------------------------------------------------------------------
# parameter construction (mirrors the PyTorch module structure)
# ----------------------------------------------------------------------------
def make_decoder_params(key, cfg):
    keys = iter(jax.random.split(key, 128))
    scale = 0.05

    def norm_p(C):
        return dict(gamma=1.0 + scale * jax.random.normal(next(keys), (C,), F32),
                    beta=scale * jax.random.normal(next(keys), (C,), F32))

    def conv_p(O, C, K):
        return dict(w=scale * jax.random.normal(next(keys), (O, C, K), F32),
                    b=scale * jax.random.normal(next(keys), (O,), F32))

    def resnet_p(Cin, Cout):
        p = dict(norm1=norm_p(Cin), conv1=conv_p(Cout, Cin, 3),
                 norm2=norm_p(Cout), conv2=conv_p(Cout, Cout, 3))
        if Cin != Cout:
            p["nin_shortcut"] = conv_p(Cout, Cin, 1)
        return p

    def attn_p(C):
        return dict(norm=norm_p(C), q=conv_p(C, C, 1), k=conv_p(C, C, 1),
                    v=conv_p(C, C, 1), proj_out=conv_p(C, C, 1))

    ch, ch_mult = cfg["ch"], cfg["ch_mult"]
    num_lvls = len(ch_mult)
    block_in = ch * ch_mult[-1]
    params = dict(conv_in=conv_p(block_in, cfg["z_channels"], 3),
                  mid=dict(block_1=resnet_p(block_in, block_in),
                           attn_1=attn_p(block_in),
                           block_2=resnet_p(block_in, block_in)))
    curr_res = cfg["resolution"] // 2 ** (num_lvls - 1)
    up = [None] * num_lvls
    bi = block_in
    for i_level in reversed(range(num_lvls)):
        block_out = ch * ch_mult[i_level]
        blocks, attns = [], []
        for _ in range(cfg["num_res_blocks"] + 1):
            blocks.append(resnet_p(bi, block_out))
            bi = block_out
            if curr_res in cfg["attn_resolutions"]:
                attns.append(attn_p(bi))
        lvl = dict(block=blocks, attn=attns)
        if i_level != 0:
            lvl["upsample"] = conv_p(bi, bi, 3)
            curr_res *= 2
        up[i_level] = lvl
    params["up"] = up
    params["norm_out"] = norm_p(bi)
    params["conv_out"] = conv_p(cfg["out_ch"], bi, 3)
    return params


# ----------------------------------------------------------------------------
# pure-JAX reference (PyTorch NCW layout), for correctness checking
# ----------------------------------------------------------------------------
def _ref_swish(x):
    return x * jax.nn.sigmoid(x)


def _ref_groupnorm(x, gamma, beta):
    B, C, S = x.shape
    gs = C // NUM_GROUPS
    xg = x.reshape(B, NUM_GROUPS, gs * S)
    mean = xg.mean(-1, keepdims=True)
    var = ((xg - mean) ** 2).mean(-1, keepdims=True)
    h = ((xg - mean) / jnp.sqrt(var + EPS)).reshape(B, C, S)
    return h * gamma.reshape(1, C, 1) + beta.reshape(1, C, 1)


def _ref_conv3(x, w, b):
    S = x.shape[2]
    xp = jnp.pad(x, ((0, 0), (0, 0), (1, 1)))
    y = sum(jnp.einsum("oc,bcs->bos", w[:, :, kk], xp[:, :, kk:kk + S]) for kk in range(3))
    return y + b.reshape(1, -1, 1)


def _ref_conv1(x, w, b):
    return jnp.einsum("oc,bcs->bos", w[:, :, 0], x) + b.reshape(1, -1, 1)


def _ref_resnet(x, p):
    h = _ref_conv3(_ref_swish(_ref_groupnorm(x, p["norm1"]["gamma"], p["norm1"]["beta"])),
                   p["conv1"]["w"], p["conv1"]["b"])
    h = _ref_conv3(_ref_swish(_ref_groupnorm(h, p["norm2"]["gamma"], p["norm2"]["beta"])),
                   p["conv2"]["w"], p["conv2"]["b"])
    if "nin_shortcut" in p:
        x = _ref_conv1(x, p["nin_shortcut"]["w"], p["nin_shortcut"]["b"])
    return x + h


def _ref_attn(x, p):
    B, C, S = x.shape
    h = _ref_groupnorm(x, p["norm"]["gamma"], p["norm"]["beta"])
    q = _ref_conv1(h, p["q"]["w"], p["q"]["b"])
    k = _ref_conv1(h, p["k"]["w"], p["k"]["b"])
    v = _ref_conv1(h, p["v"]["w"], p["v"]["b"])
    w = jnp.einsum("bcs,bct->bst", q, k) * (int(C) ** -0.5)
    w = jax.nn.softmax(w, axis=2)
    h_att = jnp.einsum("bct,bst->bcs", v, w)
    return x + _ref_conv1(h_att, p["proj_out"]["w"], p["proj_out"]["b"])


def _ref_decoder(z, params, cfg):
    h = _ref_conv3(z, params["conv_in"]["w"], params["conv_in"]["b"])
    h = _ref_resnet(h, params["mid"]["block_1"])
    h = _ref_attn(h, params["mid"]["attn_1"])
    h = _ref_resnet(h, params["mid"]["block_2"])
    for i_level in reversed(range(len(cfg["ch_mult"]))):
        lvl = params["up"][i_level]
        for i_block in range(cfg["num_res_blocks"] + 1):
            h = _ref_resnet(h, lvl["block"][i_block])
            if lvl["attn"]:
                h = _ref_attn(h, lvl["attn"][i_block])
        if i_level != 0:
            h = jnp.repeat(h, 2, axis=2)
            h = _ref_conv3(h, lvl["upsample"]["w"], lvl["upsample"]["b"])
    h = _ref_groupnorm(h, params["norm_out"]["gamma"], params["norm_out"]["beta"])
    h = _ref_swish(h)
    return _ref_conv3(h, params["conv_out"]["w"], params["conv_out"]["b"])


# ----------------------------------------------------------------------------
if __name__ == "__main__":
    cfg = dict(ch=32, out_ch=3, ch_mult=(1, 2), num_res_blocks=1,
               attn_resolutions=(8,), resolution=16, z_channels=16)
    B = 2
    S0 = cfg["resolution"] // 2 ** (len(cfg["ch_mult"]) - 1)     # latent length = 8

    key = jax.random.PRNGKey(0)
    kz, kp = jax.random.split(key)
    z = jax.random.normal(kz, (B, cfg["z_channels"], S0), dtype=jnp.float32)
    params = make_decoder_params(kp, cfg)
    prep = prepare_params(params, cfg)        # one-time host-side weight prep (outside jit)

    fwd = jax.jit(lambda zz, pp: decoder_forward_pallas(zz, pp, cfg))
    out = jax.block_until_ready(fwd(z, prep))

    ref = _ref_decoder(z, params, cfg)
    assert out.shape == (B, cfg["out_ch"], cfg["resolution"]), out.shape
    max_err = float(jnp.max(jnp.abs(out - ref)))
    assert max_err < 5e-2, max_err   # bf16 MXU operands + approx reciprocal softmax
    print("KERNEL_OK")
</pallas_src>

<mosaic_0001>
module attributes {stable_mosaic.version = 11 : i64} {
  func.func @_conv3_kernel(%arg0: i32, %arg1: memref<1x8x16xf32, #tpu.memory_space<vmem>>, %arg2: memref<16x64xbf16, #tpu.memory_space<vmem>>, %arg3: memref<16x64xbf16, #tpu.memory_space<vmem>>, %arg4: memref<16x64xbf16, #tpu.memory_space<vmem>>, %arg5: memref<1x64xf32, #tpu.memory_space<vmem>>, %arg6: memref<1x8x64xf32, #tpu.memory_space<vmem>>) attributes {dimension_semantics = [#tpu.dimension_semantics<parallel>], iteration_bounds = array<i64: 2>, scalar_prefetch = 0 : i64, scratch_operands = 0 : i64, tpu.core_type = #tpu.core_type<tc>, window_params = [{transform_indices = @transform_0, window_bounds = array<i64: 1, 8, 16>}, {pipeline_mode = #tpu.pipeline_mode<synchronous>, transform_indices = @transform_1, window_bounds = array<i64: 16, 64>}, {pipeline_mode = #tpu.pipeline_mode<synchronous>, transform_indices = @transform_2, window_bounds = array<i64: 16, 64>}, {pipeline_mode = #tpu.pipeline_mode<synchronous>, transform_indices = @transform_3, window_bounds = array<i64: 16, 64>}, {pipeline_mode = #tpu.pipeline_mode<synchronous>, transform_indices = @transform_4, window_bounds = array<i64: 1, 64>}, {transform_indices = @transform_5, window_bounds = array<i64: 1, 8, 64>}]} {
    %c0 = arith.constant 0 : index
    %c0_0 = arith.constant 0 : index
    %c0_1 = arith.constant 0 : index
    %0 = vector.load %arg1[%c0, %c0_0, %c0_1] : memref<1x8x16xf32, #tpu.memory_space<vmem>>, vector<1x8x16xf32>
    %1 = vector.shape_cast %0 : vector<1x8x16xf32> to vector<8x16xf32>
    %2 = arith.truncf %1 : vector<8x16xf32> to vector<8x16xbf16>
    %c0_2 = arith.constant 0 : index
    %c0_3 = arith.constant 0 : index
    %3 = vector.load %arg2[%c0_2, %c0_3] : memref<16x64xbf16, #tpu.memory_space<vmem>>, vector<16x64xbf16>
    %cst = arith.constant dense<0.000000e+00> : vector<8x64xf32>
    %4 = tpu.matmul %2, %3, %cst {dimension_numbers = #tpu.dot_dimension_numbers<[1], [0], [0], [1], [0, 0, 1, 1], [], []>} : vector<8x16xbf16>, vector<16x64xbf16>, vector<8x64xf32> -> vector<8x64xf32>
    %c0_4 = arith.constant 0 : index
    %c0_5 = arith.constant 0 : index
    %5 = vector.load %arg3[%c0_4, %c0_5] : memref<16x64xbf16, #tpu.memory_space<vmem>>, vector<16x64xbf16>
    %cst_6 = arith.constant dense<0.000000e+00> : vector<8x64xf32>
    %6 = tpu.matmul %2, %5, %cst_6 {dimension_numbers = #tpu.dot_dimension_numbers<[1], [0], [0], [1], [0, 0, 1, 1], [], []>} : vector<8x16xbf16>, vector<16x64xbf16>, vector<8x64xf32> -> vector<8x64xf32>
    %c0_7 = arith.constant 0 : index
    %c0_8 = arith.constant 0 : index
    %7 = vector.load %arg4[%c0_7, %c0_8] : memref<16x64xbf16, #tpu.memory_space<vmem>>, vector<16x64xbf16>
    %cst_9 = arith.constant dense<0.000000e+00> : vector<8x64xf32>
    %8 = tpu.matmul %2, %7, %cst_9 {dimension_numbers = #tpu.dot_dimension_numbers<[1], [0], [0], [1], [0, 0, 1, 1], [], []>} : vector<8x16xbf16>, vector<16x64xbf16>, vector<8x64xf32> -> vector<8x64xf32>
    %9 = tpu.iota {dimensions = array<i32: 0>} : vector<8x64xi32>
    %c0_i32 = arith.constant 0 : i32
    %10 = vector.broadcast %c0_i32 : i32 to vector<8x64xi32>
    %11 = arith.cmpi sgt, %9, %10 : vector<8x64xi32>
    %c1_i32 = arith.constant 1 : i32
    %12 = tpu.dynamic_rotate %4 by %c1_i32 dim 0 : vector<8x64xf32>, i32 -> vector<8x64xf32>
    %cst_10 = arith.constant 0.000000e+00 : f32
    %13 = vector.broadcast %cst_10 : f32 to vector<8x64xf32>
    %14 = arith.select %11, %12, %13 : vector<8x64xi1>, vector<8x64xf32>
    %15 = arith.addf %14, %6 : vector<8x64xf32>
    %16 = tpu.iota {dimensions = array<i32: 0>} : vector<8x64xi32>
    %c7_i32 = arith.constant 7 : i32
    %17 = vector.broadcast %c7_i32 : i32 to vector<8x64xi32>
    %18 = arith.cmpi slt, %16, %17 : vector<8x64xi32>
    %c7_i32_11 = arith.constant 7 : i32
    %19 = tpu.dynamic_rotate %8 by %c7_i32_11 dim 0 : vector<8x64xf32>, i32 -> vector<8x64xf32>
    %cst_12 = arith.constant 0.000000e+00 : f32
    %20 = vector.broadcast %cst_12 : f32 to vector<8x64xf32>
    %21 = arith.select %18, %19, %20 : vector<8x64xi1>, vector<8x64xf32>
    %22 = arith.addf %15, %21 : vector<8x64xf32>
    %c0_13 = arith.constant 0 : index
    %c0_14 = arith.constant 0 : index
    %23 = vector.load %arg5[%c0_13, %c0_14] : memref<1x64xf32, #tpu.memory_space<vmem>>, vector<1x64xf32>
    %24 = vector.broadcast %23 : vector<1x64xf32> to vector<8x64xf32>
    %25 = arith.addf %22, %24 : vector<8x64xf32>
    %c0_15 = arith.constant 0 : index
    %c0_16 = arith.constant 0 : index
    %c0_17 = arith.constant 0 : index
    %26 = vector.load %arg6[%c0_15, %c0_16, %c0_17] : memref<1x8x64xf32, #tpu.memory_space<vmem>>, vector<1x8x64xf32>
    %27 = vector.shape_cast %26 : vector<1x8x64xf32> to vector<8x64xf32>
    %28 = vector.shape_cast %25 : vector<8x64xf32> to vector<1x8x64xf32>
    tpu.vector_store %arg6[%c0_15, %c0_16, %c0_17], %28 {strides = array<i32>} : memref<1x8x64xf32, #tpu.memory_space<vmem>>, vector<1x8x64xf32>,
    return
  }
  func.func @transform_0(%arg0: i32) -> (i32, i32, i32) {
    %c0_i32 = arith.constant 0 : i32
    %c0_i32_0 = arith.constant 0 : i32
    %c0_i32_1 = arith.constant 0 : i32
    return %arg0, %c0_i32, %c0_i32_0 : i32, i32, i32
  }
  func.func @transform_1(%arg0: i32) -> (i32, i32) {
    %c0_i32 = arith.constant 0 : i32
    %c0_i32_0 = arith.constant 0 : i32
    %c0_i32_1 = arith.constant 0 : i32
    return %c0_i32, %c0_i32_0 : i32, i32
  }
  func.func @transform_2(%arg0: i32) -> (i32, i32) {
    %c0_i32 = arith.constant 0 : i32
    %c0_i32_0 = arith.constant 0 : i32
    %c0_i32_1 = arith.constant 0 : i32
    return %c0_i32, %c0_i32_0 : i32, i32
  }
  func.func @transform_3(%arg0: i32) -> (i32, i32) {
    %c0_i32 = arith.constant 0 : i32
    %c0_i32_0 = arith.constant 0 : i32
    %c0_i32_1 = arith.constant 0 : i32
    return %c0_i32, %c0_i32_0 : i32, i32
  }
  func.func @transform_4(%arg0: i32) -> (i32, i32) {
    %c0_i32 = arith.constant 0 : i32
    %c0_i32_0 = arith.constant 0 : i32
    %c0_i32_1 = arith.constant 0 : i32
    return %c0_i32, %c0_i32_0 : i32, i32
  }
  func.func @transform_5(%arg0: i32) -> (i32, i32, i32) {
    %c0_i32 = arith.constant 0 : i32
    %c0_i32_0 = arith.constant 0 : i32
    %c0_i32_1 = arith.constant 0 : i32
    return %arg0, %c0_i32, %c0_i32_0 : i32, i32, i32
  }
}

module attributes {stable_mosaic.version = 11 : i64} {
  func.func @_attn_kernel(%arg0: i32, %arg1: memref<1x8x64xf32, #tpu.memory_space<vmem>>, %arg2: memref<64x64xf32, #tpu.memory_space<vmem>>, %arg3: memref<1x64xf32, #tpu.memory_space<vmem>>, %arg4: memref<1x64xf32, #tpu.memory_space<vmem>>, %arg5: memref<64x64xbf16, #tpu.memory_space<vmem>>, %arg6: memref<1x64xf32, #tpu.memory_space<vmem>>, %arg7: memref<64x64xbf16, #tpu.memory_space<vmem>>, %arg8: memref<1x64xf32, #tpu.memory_space<vmem>>, %arg9: memref<64x64xbf16, #tpu.memory_space<vmem>>, %arg10: memref<1x64xf32, #tpu.memory_space<vmem>>, %arg11: memref<64x64xbf16, #tpu.memory_space<vmem>>, %arg12: memref<1x64xf32, #tpu.memory_space<vmem>>, %arg13: memref<1x8x64xf32, #tpu.memory_space<vmem>>) attributes {dimension_semantics = [#tpu.dimension_semantics<parallel>], iteration_bounds = array<i64: 2>, scalar_prefetch = 0 : i64, scratch_operands = 0 : i64, tpu.core_type = #tpu.core_type<tc>, window_params = [{transform_indices = @transform_0, window_bounds = array<i64: 1, 8, 64>}, {pipeline_mode = #tpu.pipeline_mode<synchronous>, transform_indices = @transform_1, window_bounds = array<i64: 64, 64>}, {pipeline_mode = #tpu.pipeline_mode<synchronous>, transform_indices = @transform_2, window_bounds = array<i64: 1, 64>}, {pipeline_mode = #tpu.pipeline_mode<synchronous>, transform_indices = @transform_3, window_bounds = array<i64: 1, 64>}, {pipeline_mode = #tpu.pipeline_mode<synchronous>, transform_indices = @transform_4, window_bounds = array<i64: 64, 64>}, {pipeline_mode = #tpu.pipeline_mode<synchronous>, transform_indices = @transform_5, window_bounds = array<i64: 1, 64>}, {pipeline_mode = #tpu.pipeline_mode<synchronous>, transform_indices = @transform_6, window_bounds = array<i64: 64, 64>}, {pipeline_mode = #tpu.pipeline_mode<synchronous>, transform_indices = @transform_7, window_bounds = array<i64: 1, 64>}, {pipeline_mode = #tpu.pipeline_mode<synchronous>, transform_indices = @transform_8, window_bounds = array<i64: 64, 64>}, {pipeline_mode = #tpu.pipeline_mode<synchronous>, transform_indices = @transform_9, window_bounds = array<i64: 1, 64>}, {pipeline_mode = #tpu.pipeline_mode<synchronous>, transform_indices = @transform_10, window_bounds = array<i64: 64, 64>}, {pipeline_mode = #tpu.pipeline_mode<synchronous>, transform_indices = @transform_11, window_bounds = array<i64: 1, 64>}, {transform_indices = @transform_12, window_bounds = array<i64: 1, 8, 64>}]} {
    %c0 = arith.constant 0 : index
    %c0_0 = arith.constant 0 : index
    %c0_1 = arith.constant 0 : index
    %0 = vector.load %arg1[%c0, %c0_0, %c0_1] : memref<1x8x64xf32, #tpu.memory_space<vmem>>, vector<1x8x64xf32>
    %1 = vector.shape_cast %0 : vector<1x8x64xf32> to vector<8x64xf32>
    %c0_2 = arith.constant 0 : index
    %c0_3 = arith.constant 0 : index
    %2 = vector.load %arg2[%c0_2, %c0_3] : memref<64x64xf32, #tpu.memory_space<vmem>>, vector<64x64xf32>
    %c0_4 = arith.constant 0 : index
    %c0_5 = arith.constant 0 : index
    %3 = vector.load %arg3[%c0_4, %c0_5] : memref<1x64xf32, #tpu.memory_space<vmem>>, vector<1x64xf32>
    %c0_6 = arith.constant 0 : index
    %c0_7 = arith.constant 0 : index
    %4 = vector.load %arg4[%c0_6, %c0_7] : memref<1x64xf32, #tpu.memory_space<vmem>>, vector<1x64xf32>
    %cst = arith.constant dense<0.000000e+00> : vector<64xf32>
    %5 = vector.multi_reduction <add>, %1, %cst [0] : vector<8x64xf32> to vector<64xf32>
    %6 = vector.shape_cast %5 : vector<64xf32> to vector<1x64xf32>
    %cst_8 = arith.constant dense<0.000000e+00> : vector<1x64xf32>
    %7 = tpu.matmul %6, %2, %cst_8 {dimension_numbers = #tpu.dot_dimension_numbers<[1], [0], [0], [1], [0, 0, 1, 1], [], []>} : vector<1x64xf32>, vector<64x64xf32>, vector<1x64xf32> -> vector<1x64xf32>
    %cst_9 = arith.constant 1.600000e+01 : f32
    %8 = vector.broadcast %cst_9 : f32 to vector<1x64xf32>
    %9 = arith.divf %7, %8 : vector<1x64xf32>
    %10 = vector.broadcast %9 : vector<1x64xf32> to vector<8x64xf32>
    %11 = arith.subf %1, %10 : vector<8x64xf32>
    %12 = arith.mulf %11, %11 : vector<8x64xf32>
    %cst_10 = arith.constant dense<0.000000e+00> : vector<64xf32>
    %13 = vector.multi_reduction <add>, %12, %cst_10 [0] : vector<8x64xf32> to vector<64xf32>
    %14 = vector.shape_cast %13 : vector<64xf32> to vector<1x64xf32>
    %cst_11 = arith.constant dense<0.000000e+00> : vector<1x64xf32>
    %15 = tpu.matmul %14, %2, %cst_11 {dimension_numbers = #tpu.dot_dimension_numbers<[1], [0], [0], [1], [0, 0, 1, 1], [], []>} : vector<1x64xf32>, vector<64x64xf32>, vector<1x64xf32> -> vector<1x64xf32>
    %cst_12 = arith.constant 1.600000e+01 : f32
    %16 = vector.broadcast %cst_12 : f32 to vector<1x64xf32>
    %17 = arith.divf %15, %16 : vector<1x64xf32>
    %cst_13 = arith.constant 9.99999997E-7 : f32
    %18 = vector.broadcast %cst_13 : f32 to vector<1x64xf32>
    %19 = arith.addf %17, %18 : vector<1x64xf32>
    %20 = math.rsqrt %19 : vector<1x64xf32>
    %21 = arith.mulf %20, %3 : vector<1x64xf32>
    %22 = vector.broadcast %21 : vector<1x64xf32> to vector<8x64xf32>
    %23 = arith.mulf %11, %22 : vector<8x64xf32>
    %24 = vector.broadcast %4 : vector<1x64xf32> to vector<8x64xf32>
    %25 = arith.addf %23, %24 : vector<8x64xf32>
    %26 = arith.truncf %25 : vector<8x64xf32> to vector<8x64xbf16>
    %c0_14 = arith.constant 0 : index
    %c0_15 = arith.constant 0 : index
    %27 = vector.load %arg5[%c0_14, %c0_15] : memref<64x64xbf16, #tpu.memory_space<vmem>>, vector<64x64xbf16>
    %cst_16 = arith.constant dense<0.000000e+00> : vector<8x64xf32>
    %28 = tpu.matmul %26, %27, %cst_16 {dimension_numbers = #tpu.dot_dimension_numbers<[1], [0], [0], [1], [0, 0, 1, 1], [], []>} : vector<8x64xbf16>, vector<64x64xbf16>, vector<8x64xf32> -> vector<8x64xf32>
    %c0_17 = arith.constant 0 : index
    %c0_18 = arith.constant 0 : index
    %29 = vector.load %arg6[%c0_17, %c0_18] : memref<1x64xf32, #tpu.memory_space<vmem>>, vector<1x64xf32>
    %30 = vector.broadcast %29 : vector<1x64xf32> to vector<8x64xf32>
    %31 = arith.addf %28, %30 : vector<8x64xf32>
    %c0_19 = arith.constant 0 : index
    %c0_20 = arith.constant 0 : index
    %32 = vector.load %arg7[%c0_19, %c0_20] : memref<64x64xbf16, #tpu.memory_space<vmem>>, vector<64x64xbf16>
    %cst_21 = arith.constant dense<0.000000e+00> : vector<8x64xf32>
    %33 = tpu.matmul %26, %32, %cst_21 {dimension_numbers = #tpu.dot_dimension_numbers<[1], [0], [0], [1], [0, 0, 1, 1], [], []>} : vector<8x64xbf16>, vector<64x64xbf16>, vector<8x64xf32> -> vector<8x64xf32>
    %c0_22 = arith.constant 0 : index
    %c0_23 = arith.constant 0 : index
    %34 = vector.load %arg8[%c0_22, %c0_23] : memref<1x64xf32, #tpu.memory_space<vmem>>, vector<1x64xf32>
    %35 = vector.broadcast %34 : vector<1x64xf32> to vector<8x64xf32>
    %36 = arith.addf %33, %35 : vector<8x64xf32>
    %c0_24 = arith.constant 0 : index
    %c0_25 = arith.constant 0 : index
    %37 = vector.load %arg9[%c0_24, %c0_25] : memref<64x64xbf16, #tpu.memory_space<vmem>>, vector<64x64xbf16>
    %cst_26 = arith.constant dense<0.000000e+00> : vector<8x64xf32>
    %38 = tpu.matmul %26, %37, %cst_26 {dimension_numbers = #tpu.dot_dimension_numbers<[1], [0], [0], [1], [0, 0, 1, 1], [], []>} : vector<8x64xbf16>, vector<64x64xbf16>, vector<8x64xf32> -> vector<8x64xf32>
    %c0_27 = arith.constant 0 : index
    %c0_28 = arith.constant 0 : index
    %39 = vector.load %arg10[%c0_27, %c0_28] : memref<1x64xf32, #tpu.memory_space<vmem>>, vector<1x64xf32>
    %40 = vector.broadcast %39 : vector<1x64xf32> to vector<8x64xf32>
    %41 = arith.addf %38, %40 : vector<8x64xf32>
    %42 = arith.truncf %31 : vector<8x64xf32> to vector<8x64xbf16>
    %43 = arith.truncf %36 : vector<8x64xf32> to vector<8x64xbf16>
    %cst_29 = arith.constant dense<0.000000e+00> : vector<8x8xf32>
    %44 = tpu.matmul %42, %43, %cst_29 {dimension_numbers = #tpu.dot_dimension_numbers<[1], [1], [0], [0], [0, 0, 1, 0], [], []>} : vector<8x64xbf16>, vector<8x64xbf16>, vector<8x8xf32> -> vector<8x8xf32>
    %cst_30 = arith.constant dense<0xFF800000> : vector<8xf32>
    %45 = vector.multi_reduction <maximumf>, %44, %cst_30 [1] : vector<8x8xf32> to vector<8xf32>
    %46 = vector.shape_cast %45 : vector<8xf32> to vector<8x1xf32>
    %47 = vector.broadcast %46 : vector<8x1xf32> to vector<8x8xf32>
    %48 = arith.subf %44, %47 : vector<8x8xf32>
    %49 = math.exp %48 : vector<8x8xf32>
    %cst_31 = arith.constant dense<0.000000e+00> : vector<8xf32>
    %50 = vector.multi_reduction <add>, %49, %cst_31 [1] : vector<8x8xf32> to vector<8xf32>
    %51 = vector.shape_cast %50 : vector<8xf32> to vector<8x1xf32>
    %52 = tpu.reciprocal %51 {approx = true} : vector<8x1xf32> -> vector<8x1xf32>
    %53 = vector.broadcast %52 : vector<8x1xf32> to vector<8x8xf32>
    %54 = arith.mulf %49, %53 : vector<8x8xf32>
    %55 = arith.truncf %54 : vector<8x8xf32> to vector<8x8xbf16>
    %56 = arith.truncf %41 : vector<8x64xf32> to vector<8x64xbf16>
    %cst_32 = arith.constant dense<0.000000e+00> : vector<8x64xf32>
    %57 = tpu.matmul %55, %56, %cst_32 {dimension_numbers = #tpu.dot_dimension_numbers<[1], [0], [0], [1], [0, 0, 1, 1], [], []>} : vector<8x8xbf16>, vector<8x64xbf16>, vector<8x64xf32> -> vector<8x64xf32>
    %58 = arith.truncf %57 : vector<8x64xf32> to vector<8x64xbf16>
    %c0_33 = arith.constant 0 : index
    %c0_34 = arith.constant 0 : index
    %59 = vector.load %arg11[%c0_33, %c0_34] : memref<64x64xbf16, #tpu.memory_space<vmem>>, vector<64x64xbf16>
    %cst_35 = arith.constant dense<0.000000e+00> : vector<8x64xf32>
    %60 = tpu.matmul %58, %59, %cst_35 {dimension_numbers = #tpu.dot_dimension_numbers<[1], [0], [0], [1], [0, 0, 1, 1], [], []>} : vector<8x64xbf16>, vector<64x64xbf16>, vector<8x64xf32> -> vector<8x64xf32>
    %c0_36 = arith.constant 0 : index
    %c0_37 = arith.constant 0 : index
    %61 = vector.load %arg12[%c0_36, %c0_37] : memref<1x64xf32, #tpu.memory_space<vmem>>, vector<1x64xf32>
    %62 = vector.broadcast %61 : vector<1x64xf32> to vector<8x64xf32>
    %63 = arith.addf %60, %62 : vector<8x64xf32>
    %c0_38 = arith.constant 0 : index
    %c0_39 = arith.constant 0 : index
    %c0_40 = arith.constant 0 : index
    %64 = vector.load %arg1[%c0_38, %c0_39, %c0_40] : memref<1x8x64xf32, #tpu.memory_space<vmem>>, vector<1x8x64xf32>
    %65 = vector.shape_cast %64 : vector<1x8x64xf32> to vector<8x64xf32>
    %66 = arith.addf %65, %63 : vector<8x64xf32>
    %c0_41 = arith.constant 0 : index
    %c0_42 = arith.constant 0 : index
    %c0_43 = arith.constant 0 : index
    %67 = vector.load %arg13[%c0_41, %c0_42, %c0_43] : memref<1x8x64xf32, #tpu.memory_space<vmem>>, vector<1x8x64xf32>
    %68 = vector.shape_cast %67 : vector<1x8x64xf32> to vector<8x64xf32>
    %69 = vector.shape_cast %66 : vector<8x64xf32> to vector<1x8x64xf32>
    tpu.vector_store %arg13[%c0_41, %c0_42, %c0_43], %69 {strides = array<i32>} : memref<1x8x64xf32, #tpu.memory_space<vmem>>, vector<1x8x64xf32>,
    return
  }
  func.func @transform_0(%arg0: i32) -> (i32, i32, i32) {
    %c0_i32 = arith.constant 0 : i32
    %c0_i32_0 = arith.constant 0 : i32
    %c0_i32_1 = arith.constant 0 : i32
    return %arg0, %c0_i32, %c0_i32_0 : i32, i32, i32
  }
  func.func @transform_1(%arg0: i32) -> (i32, i32) {
    %c0_i32 = arith.constant 0 : i32
    %c0_i32_0 = arith.constant 0 : i32
    %c0_i32_1 = arith.constant 0 : i32
    return %c0_i32, %c0_i32_0 : i32, i32
  }
  func.func @transform_2(%arg0: i32) -> (i32, i32) {
    %c0_i32 = arith.constant 0 : i32
    %c0_i32_0 = arith.constant 0 : i32
    %c0_i32_1 = arith.constant 0 : i32
    return %c0_i32, %c0_i32_0 : i32, i32
  }
  func.func @transform_3(%arg0: i32) -> (i32, i32) {
    %c0_i32 = arith.constant 0 : i32
    %c0_i32_0 = arith.constant 0 : i32
    %c0_i32_1 = arith.constant 0 : i32
    return %c0_i32, %c0_i32_0 : i32, i32
  }
  func.func @transform_4(%arg0: i32) -> (i32, i32) {
    %c0_i32 = arith.constant 0 : i32
    %c0_i32_0 = arith.constant 0 : i32
    %c0_i32_1 = arith.constant 0 : i32
    return %c0_i32, %c0_i32_0 : i32, i32
  }
  func.func @transform_5(%arg0: i32) -> (i32, i32) {
    %c0_i32 = arith.constant 0 : i32
    %c0_i32_0 = arith.constant 0 : i32
    %c0_i32_1 = arith.constant 0 : i32
    return %c0_i32, %c0_i32_0 : i32, i32
  }
  func.func @transform_6(%arg0: i32) -> (i32, i32) {
    %c0_i32 = arith.constant 0 : i32
    %c0_i32_0 = arith.constant 0 : i32
    %c0_i32_1 = arith.constant 0 : i32
    return %c0_i32, %c0_i32_0 : i32, i32
  }
  func.func @transform_7(%arg0: i32) -> (i32, i32) {
    %c0_i32 = arith.constant 0 : i32
    %c0_i32_0 = arith.constant 0 : i32
    %c0_i32_1 = arith.constant 0 : i32
    return %c0_i32, %c0_i32_0 : i32, i32
  }
  func.func @transform_8(%arg0: i32) -> (i32, i32) {
    %c0_i32 = arith.constant 0 : i32
    %c0_i32_0 = arith.constant 0 : i32
    %c0_i32_1 = arith.constant 0 : i32
    return %c0_i32, %c0_i32_0 : i32, i32
  }
  func.func @transform_9(%arg0: i32) -> (i32, i32) {
    %c0_i32 = arith.constant 0 : i32
    %c0_i32_0 = arith.constant 0 : i32
    %c0_i32_1 = arith.constant 0 : i32
    return %c0_i32, %c0_i32_0 : i32, i32
  }
  func.func @transform_10(%arg0: i32) -> (i32, i32) {
    %c0_i32 = arith.constant 0 : i32
    %c0_i32_0 = arith.constant 0 : i32
    %c0_i32_1 = arith.constant 0 : i32
    return %c0_i32, %c0_i32_0 : i32, i32
  }
  func.func @transform_11(%arg0: i32) -> (i32, i32) {
    %c0_i32 = arith.constant 0 : i32
    %c0_i32_0 = arith.constant 0 : i32
    %c0_i32_1 = arith.constant 0 : i32
    return %c0_i32, %c0_i32_0 : i32, i32
  }
  func.func @transform_12(%arg0: i32) -> (i32, i32, i32) {
    %c0_i32 = arith.constant 0 : i32
    %c0_i32_0 = arith.constant 0 : i32
    %c0_i32_1 = arith.constant 0 : i32
    return %arg0, %c0_i32, %c0_i32_0 : i32, i32, i32
  }
}

module attributes {stable_mosaic.version = 11 : i64} {
  func.func @_resnet_kernel(%arg0: i32, %arg1: memref<1x8x64xf32, #tpu.memory_space<vmem>>, %arg2: memref<64x64xf32, #tpu.memory_space<vmem>>, %arg3: memref<1x64xf32, #tpu.memory_space<vmem>>, %arg4: memref<1x64xf32, #tpu.memory_space<vmem>>, %arg5: memref<64x64xbf16, #tpu.memory_space<vmem>>, %arg6: memref<64x64xbf16, #tpu.memory_space<vmem>>, %arg7: memref<64x64xbf16, #tpu.memory_space<vmem>>, %arg8: memref<1x64xf32, #tpu.memory_space<vmem>>, %arg9: memref<64x64xf32, #tpu.memory_space<vmem>>, %arg10: memref<1x64xf32, #tpu.memory_space<vmem>>, %arg11: memref<1x64xf32, #tpu.memory_space<vmem>>, %arg12: memref<64x64xbf16, #tpu.memory_space<vmem>>, %arg13: memref<64x64xbf16, #tpu.memory_space<vmem>>, %arg14: memref<64x64xbf16, #tpu.memory_space<vmem>>, %arg15: memref<1x64xf32, #tpu.memory_space<vmem>>, %arg16: memref<1x8x64xf32, #tpu.memory_space<vmem>>) attributes {dimension_semantics = [#tpu.dimension_semantics<parallel>], iteration_bounds = array<i64: 2>, scalar_prefetch = 0 : i64, scratch_operands = 0 : i64, tpu.core_type = #tpu.core_type<tc>, window_params = [{transform_indices = @transform_0, window_bounds = array<i64: 1, 8, 64>}, {pipeline_mode = #tpu.pipeline_mode<synchronous>, transform_indices = @transform_1, window_bounds = array<i64: 64, 64>}, {pipeline_mode = #tpu.pipeline_mode<synchronous>, transform_indices = @transform_2, window_bounds = array<i64: 1, 64>}, {pipeline_mode = #tpu.pipeline_mode<synchronous>, transform_indices = @transform_3, window_bounds = array<i64: 1, 64>}, {pipeline_mode = #tpu.pipeline_mode<synchronous>, transform_indices = @transform_4, window_bounds = array<i64: 64, 64>}, {pipeline_mode = #tpu.pipeline_mode<synchronous>, transform_indices = @transform_5, window_bounds = array<i64: 64, 64>}, {pipeline_mode = #tpu.pipeline_mode<synchronous>, transform_indices = @transform_6, window_bounds = array<i64: 64, 64>}, {pipeline_mode = #tpu.pipeline_mode<synchronous>, transform_indices = @transform_7, window_bounds = array<i64: 1, 64>}, {pipeline_mode = #tpu.pipeline_mode<synchronous>, transform_indices = @transform_8, window_bounds = array<i64: 64, 64>}, {pipeline_mode = #tpu.pipeline_mode<synchronous>, transform_indices = @transform_9, window_bounds = array<i64: 1, 64>}, {pipeline_mode = #tpu.pipeline_mode<synchronous>, transform_indices = @transform_10, window_bounds = array<i64: 1, 64>}, {pipeline_mode = #tpu.pipeline_mode<synchronous>, transform_indices = @transform_11, window_bounds = array<i64: 64, 64>}, {pipeline_mode = #tpu.pipeline_mode<synchronous>, transform_indices = @transform_12, window_bounds = array<i64: 64, 64>}, {pipeline_mode = #tpu.pipeline_mode<synchronous>, transform_indices = @transform_13, window_bounds = array<i64: 64, 64>}, {pipeline_mode = #tpu.pipeline_mode<synchronous>, transform_indices = @transform_14, window_bounds = array<i64: 1, 64>}, {transform_indices = @transform_15, window_bounds = array<i64: 1, 8, 64>}]} {
    %c0 = arith.constant 0 : index
    %c0_0 = arith.constant 0 : index
    %c0_1 = arith.constant 0 : index
    %0 = vector.load %arg1[%c0, %c0_0, %c0_1] : memref<1x8x64xf32, #tpu.memory_space<vmem>>, vector<1x8x64xf32>
    %1 = vector.shape_cast %0 : vector<1x8x64xf32> to vector<8x64xf32>
    %c0_2 = arith.constant 0 : index
    %c0_3 = arith.constant 0 : index
    %2 = vector.load %arg2[%c0_2, %c0_3] : memref<64x64xf32, #tpu.memory_space<vmem>>, vector<64x64xf32>
    %c0_4 = arith.constant 0 : index
    %c0_5 = arith.constant 0 : index
    %3 = vector.load %arg3[%c0_4, %c0_5] : memref<1x64xf32, #tpu.memory_space<vmem>>, vector<1x64xf32>
    %c0_6 = arith.constant 0 : index
    %c0_7 = arith.constant 0 : index
    %4 = vector.load %arg4[%c0_6, %c0_7] : memref<1x64xf32, #tpu.memory_space<vmem>>, vector<1x64xf32>
    %cst = arith.constant dense<0.000000e+00> : vector<64xf32>
    %5 = vector.multi_reduction <add>, %1, %cst [0] : vector<8x64xf32> to vector<64xf32>
    %6 = vector.shape_cast %5 : vector<64xf32> to vector<1x64xf32>
    %cst_8 = arith.constant dense<0.000000e+00> : vector<1x64xf32>
    %7 = tpu.matmul %6, %2, %cst_8 {dimension_numbers = #tpu.dot_dimension_numbers<[1], [0], [0], [1], [0, 0, 1, 1], [], []>} : vector<1x64xf32>, vector<64x64xf32>, vector<1x64xf32> -> vector<1x64xf32>
    %cst_9 = arith.constant 1.600000e+01 : f32
    %8 = vector.broadcast %cst_9 : f32 to vector<1x64xf32>
    %9 = arith.divf %7, %8 : vector<1x64xf32>
    %10 = vector.broadcast %9 : vector<1x64xf32> to vector<8x64xf32>
    %11 = arith.subf %1, %10 : vector<8x64xf32>
    %12 = arith.mulf %11, %11 : vector<8x64xf32>
    %cst_10 = arith.constant dense<0.000000e+00> : vector<64xf32>
    %13 = vector.multi_reduction <add>, %12, %cst_10 [0] : vector<8x64xf32> to vector<64xf32>
    %14 = vector.shape_cast %13 : vector<64xf32> to vector<1x64xf32>
    %cst_11 = arith.constant dense<0.000000e+00> : vector<1x64xf32>
    %15 = tpu.matmul %14, %2, %cst_11 {dimension_numbers = #tpu.dot_dimension_numbers<[1], [0], [0], [1], [0, 0, 1, 1], [], []>} : vector<1x64xf32>, vector<64x64xf32>, vector<1x64xf32> -> vector<1x64xf32>
    %cst_12 = arith.constant 1.600000e+01 : f32
    %16 = vector.broadcast %cst_12 : f32 to vector<1x64xf32>
    %17 = arith.divf %15, %16 : vector<1x64xf32>
    %cst_13 = arith.constant 9.99999997E-7 : f32
    %18 = vector.broadcast %cst_13 : f32 to vector<1x64xf32>
    %19 = arith.addf %17, %18 : vector<1x64xf32>
    %20 = math.rsqrt %19 : vector<1x64xf32>
    %21 = arith.mulf %20, %3 : vector<1x64xf32>
    %22 = vector.broadcast %21 : vector<1x64xf32> to vector<8x64xf32>
    %23 = arith.mulf %11, %22 : vector<8x64xf32>
    %24 = vector.broadcast %4 : vector<1x64xf32> to vector<8x64xf32>
    %25 = arith.addf %23, %24 : vector<8x64xf32>
    %cst_14 = arith.constant 0.000000e+00 : f32
    %26 = vector.broadcast %cst_14 : f32 to vector<8x64xf32>
    %27 = arith.subf %26, %25 : vector<8x64xf32>
    %28 = math.exp %27 : vector<8x64xf32>
    %cst_15 = arith.constant 1.000000e+00 : f32
    %29 = vector.broadcast %cst_15 : f32 to vector<8x64xf32>
    %30 = arith.addf %29, %28 : vector<8x64xf32>
    %cst_16 = arith.constant 1.000000e+00 : f32
    %31 = vector.broadcast %cst_16 : f32 to vector<8x64xf32>
    %32 = arith.divf %31, %30 : vector<8x64xf32>
    %33 = arith.mulf %25, %32 : vector<8x64xf32>
    %34 = arith.truncf %33 : vector<8x64xf32> to vector<8x64xbf16>
    %c0_17 = arith.constant 0 : index
    %c0_18 = arith.constant 0 : index
    %35 = vector.load %arg5[%c0_17, %c0_18] : memref<64x64xbf16, #tpu.memory_space<vmem>>, vector<64x64xbf16>
    %cst_19 = arith.constant dense<0.000000e+00> : vector<8x64xf32>
    %36 = tpu.matmul %34, %35, %cst_19 {dimension_numbers = #tpu.dot_dimension_numbers<[1], [0], [0], [1], [0, 0, 1, 1], [], []>} : vector<8x64xbf16>, vector<64x64xbf16>, vector<8x64xf32> -> vector<8x64xf32>
    %c0_20 = arith.constant 0 : index
    %c0_21 = arith.constant 0 : index
    %37 = vector.load %arg6[%c0_20, %c0_21] : memref<64x64xbf16, #tpu.memory_space<vmem>>, vector<64x64xbf16>
    %cst_22 = arith.constant dense<0.000000e+00> : vector<8x64xf32>
    %38 = tpu.matmul %34, %37, %cst_22 {dimension_numbers = #tpu.dot_dimension_numbers<[1], [0], [0], [1], [0, 0, 1, 1], [], []>} : vector<8x64xbf16>, vector<64x64xbf16>, vector<8x64xf32> -> vector<8x64xf32>
    %c0_23 = arith.constant 0 : index
    %c0_24 = arith.constant 0 : index
    %39 = vector.load %arg7[%c0_23, %c0_24] : memref<64x64xbf16, #tpu.memory_space<vmem>>, vector<64x64xbf16>
    %cst_25 = arith.constant dense<0.000000e+00> : vector<8x64xf32>
    %40 = tpu.matmul %34, %39, %cst_25 {dimension_numbers = #tpu.dot_dimension_numbers<[1], [0], [0], [1], [0, 0, 1, 1], [], []>} : vector<8x64xbf16>, vector<64x64xbf16>, vector<8x64xf32> -> vector<8x64xf32>
    %41 = tpu.iota {dimensions = array<i32: 0>} : vector<8x64xi32>
    %c0_i32 = arith.constant 0 : i32
    %42 = vector.broadcast %c0_i32 : i32 to vector<8x64xi32>
    %43 = arith.cmpi sgt, %41, %42 : vector<8x64xi32>
    %c1_i32 = arith.constant 1 : i32
    %44 = tpu.dynamic_rotate %36 by %c1_i32 dim 0 : vector<8x64xf32>, i32 -> vector<8x64xf32>
    %cst_26 = arith.constant 0.000000e+00 : f32
    %45 = vector.broadcast %cst_26 : f32 to vector<8x64xf32>
    %46 = arith.select %43, %44, %45 : vector<8x64xi1>, vector<8x64xf32>
    %47 = arith.addf %46, %38 : vector<8x64xf32>
    %48 = tpu.iota {dimensions = array<i32: 0>} : vector<8x64xi32>
    %c7_i32 = arith.constant 7 : i32
    %49 = vector.broadcast %c7_i32 : i32 to vector<8x64xi32>
    %50 = arith.cmpi slt, %48, %49 : vector<8x64xi32>
    %c7_i32_27 = arith.constant 7 : i32
    %51 = tpu.dynamic_rotate %40 by %c7_i32_27 dim 0 : vector<8x64xf32>, i32 -> vector<8x64xf32>
    %cst_28 = arith.constant 0.000000e+00 : f32
    %52 = vector.broadcast %cst_28 : f32 to vector<8x64xf32>
    %53 = arith.select %50, %51, %52 : vector<8x64xi1>, vector<8x64xf32>
    %54 = arith.addf %47, %53 : vector<8x64xf32>
    %c0_29 = arith.constant 0 : index
    %c0_30 = arith.constant 0 : index
    %55 = vector.load %arg8[%c0_29, %c0_30] : memref<1x64xf32, #tpu.memory_space<vmem>>, vector<1x64xf32>
    %56 = vector.broadcast %55 : vector<1x64xf32> to vector<8x64xf32>
    %57 = arith.addf %54, %56 : vector<8x64xf32>
    %c0_31 = arith.constant 0 : index
    %c0_32 = arith.constant 0 : index
    %58 = vector.load %arg9[%c0_31, %c0_32] : memref<64x64xf32, #tpu.memory_space<vmem>>, vector<64x64xf32>
    %c0_33 = arith.constant 0 : index
    %c0_34 = arith.constant 0 : index
    %59 = vector.load %arg10[%c0_33, %c0_34] : memref<1x64xf32, #tpu.memory_space<vmem>>, vector<1x64xf32>
    %c0_35 = arith.constant 0 : index
    %c0_36 = arith.constant 0 : index
    %60 = vector.load %arg11[%c0_35, %c0_36] : memref<1x64xf32, #tpu.memory_space<vmem>>, vector<1x64xf32>
    %cst_37 = arith.constant dense<0.000000e+00> : vector<64xf32>
    %61 = vector.multi_reduction <add>, %57, %cst_37 [0] : vector<8x64xf32> to vector<64xf32>
    %62 = vector.shape_cast %61 : vector<64xf32> to vector<1x64xf32>
    %cst_38 = arith.constant dense<0.000000e+00> : vector<1x64xf32>
    %63 = tpu.matmul %62, %58, %cst_38 {dimension_numbers = #tpu.dot_dimension_numbers<[1], [0], [0], [1], [0, 0, 1, 1], [], []>} : vector<1x64xf32>, vector<64x64xf32>, vector<1x64xf32> -> vector<1x64xf32>
    %cst_39 = arith.constant 1.600000e+01 : f32
    %64 = vector.broadcast %cst_39 : f32 to vector<1x64xf32>
    %65 = arith.divf %63, %64 : vector<1x64xf32>
    %66 = vector.broadcast %65 : vector<1x64xf32> to vector<8x64xf32>
    %67 = arith.subf %57, %66 : vector<8x64xf32>
    %68 = arith.mulf %67, %67 : vector<8x64xf32>
    %cst_40 = arith.constant dense<0.000000e+00> : vector<64xf32>
    %69 = vector.multi_reduction <add>, %68, %cst_40 [0] : vector<8x64xf32> to vector<64xf32>
    %70 = vector.shape_cast %69 : vector<64xf32> to vector<1x64xf32>
    %cst_41 = arith.constant dense<0.000000e+00> : vector<1x64xf32>
    %71 = tpu.matmul %70, %58, %cst_41 {dimension_numbers = #tpu.dot_dimension_numbers<[1], [0], [0], [1], [0, 0, 1, 1], [], []>} : vector<1x64xf32>, vector<64x64xf32>, vector<1x64xf32> -> vector<1x64xf32>
    %cst_42 = arith.constant 1.600000e+01 : f32
    %72 = vector.broadcast %cst_42 : f32 to vector<1x64xf32>
    %73 = arith.divf %71, %72 : vector<1x64xf32>
    %cst_43 = arith.constant 9.99999997E-7 : f32
    %74 = vector.broadcast %cst_43 : f32 to vector<1x64xf32>
    %75 = arith.addf %73, %74 : vector<1x64xf32>
    %76 = math.rsqrt %75 : vector<1x64xf32>
    %77 = arith.mulf %76, %59 : vector<1x64xf32>
    %78 = vector.broadcast %77 : vector<1x64xf32> to vector<8x64xf32>
    %79 = arith.mulf %67, %78 : vector<8x64xf32>
    %80 = vector.broadcast %60 : vector<1x64xf32> to vector<8x64xf32>
    %81 = arith.addf %79, %80 : vector<8x64xf32>
    %cst_44 = arith.constant 0.000000e+00 : f32
    %82 = vector.broadcast %cst_44 : f32 to vector<8x64xf32>
    %83 = arith.subf %82, %81 : vector<8x64xf32>
    %84 = math.exp %83 : vector<8x64xf32>
    %cst_45 = arith.constant 1.000000e+00 : f32
    %85 = vector.broadcast %cst_45 : f32 to vector<8x64xf32>
    %86 = arith.addf %85, %84 : vector<8x64xf32>
    %cst_46 = arith.constant 1.000000e+00 : f32
    %87 = vector.broadcast %cst_46 : f32 to vector<8x64xf32>
    %88 = arith.divf %87, %86 : vector<8x64xf32>
    %89 = arith.mulf %81, %88 : vector<8x64xf32>
    %90 = arith.truncf %89 : vector<8x64xf32> to vector<8x64xbf16>
    %c0_47 = arith.constant 0 : index
    %c0_48 = arith.constant 0 : index
    %91 = vector.load %arg12[%c0_47, %c0_48] : memref<64x64xbf16, #tpu.memory_space<vmem>>, vector<64x64xbf16>
    %cst_49 = arith.constant dense<0.000000e+00> : vector<8x64xf32>
    %92 = tpu.matmul %90, %91, %cst_49 {dimension_numbers = #tpu.dot_dimension_numbers<[1], [0], [0], [1], [0, 0, 1, 1], [], []>} : vector<8x64xbf16>, vector<64x64xbf16>, vector<8x64xf32> -> vector<8x64xf32>
    %c0_50 = arith.constant 0 : index
    %c0_51 = arith.constant 0 : index
    %93 = vector.load %arg13[%c0_50, %c0_51] : memref<64x64xbf16, #tpu.memory_space<vmem>>, vector<64x64xbf16>
    %cst_52 = arith.constant dense<0.000000e+00> : vector<8x64xf32>
    %94 = tpu.matmul %90, %93, %cst_52 {dimension_numbers = #tpu.dot_dimension_numbers<[1], [0], [0], [1], [0, 0, 1, 1], [], []>} : vector<8x64xbf16>, vector<64x64xbf16>, vector<8x64xf32> -> vector<8x64xf32>
    %c0_53 = arith.constant 0 : index
    %c0_54 = arith.constant 0 : index
    %95 = vector.load %arg14[%c0_53, %c0_54] : memref<64x64xbf16, #tpu.memory_space<vmem>>, vector<64x64xbf16>
    %cst_55 = arith.constant dense<0.000000e+00> : vector<8x64xf32>
    %96 = tpu.matmul %90, %95, %cst_55 {dimension_numbers = #tpu.dot_dimension_numbers<[1], [0], [0], [1], [0, 0, 1, 1], [], []>} : vector<8x64xbf16>, vector<64x64xbf16>, vector<8x64xf32> -> vector<8x64xf32>
    %97 = tpu.iota {dimensions = array<i32: 0>} : vector<8x64xi32>
    %c0_i32_56 = arith.constant 0 : i32
    %98 = vector.broadcast %c0_i32_56 : i32 to vector<8x64xi32>
    %99 = arith.cmpi sgt, %97, %98 : vector<8x64xi32>
    %c1_i32_57 = arith.constant 1 : i32
    %100 = tpu.dynamic_rotate %92 by %c1_i32_57 dim 0 : vector<8x64xf32>, i32 -> vector<8x64xf32>
    %cst_58 = arith.constant 0.000000e+00 : f32
    %101 = vector.broadcast %cst_58 : f32 to vector<8x64xf32>
    %102 = arith.select %99, %100, %101 : vector<8x64xi1>, vector<8x64xf32>
    %103 = arith.addf %102, %94 : vector<8x64xf32>
    %104 = tpu.iota {dimensions = array<i32: 0>} : vector<8x64xi32>
    %c7_i32_59 = arith.constant 7 : i32
    %105 = vector.broadcast %c7_i32_59 : i32 to vector<8x64xi32>
    %106 = arith.cmpi slt, %104, %105 : vector<8x64xi32>
    %c7_i32_60 = arith.constant 7 : i32
    %107 = tpu.dynamic_rotate %96 by %c7_i32_60 dim 0 : vector<8x64xf32>, i32 -> vector<8x64xf32>
    %cst_61 = arith.constant 0.000000e+00 : f32
    %108 = vector.broadcast %cst_61 : f32 to vector<8x64xf32>
    %109 = arith.select %106, %107, %108 : vector<8x64xi1>, vector<8x64xf32>
    %110 = arith.addf %103, %109 : vector<8x64xf32>
    %c0_62 = arith.constant 0 : index
    %c0_63 = arith.constant 0 : index
    %111 = vector.load %arg15[%c0_62, %c0_63] : memref<1x64xf32, #tpu.memory_space<vmem>>, vector<1x64xf32>
    %112 = vector.broadcast %111 : vector<1x64xf32> to vector<8x64xf32>
    %113 = arith.addf %110, %112 : vector<8x64xf32>
    %c0_64 = arith.constant 0 : index
    %c0_65 = arith.constant 0 : index
    %c0_66 = arith.constant 0 : index
    %114 = vector.load %arg1[%c0_64, %c0_65, %c0_66] : memref<1x8x64xf32, #tpu.memory_space<vmem>>, vector<1x8x64xf32>
    %115 = vector.shape_cast %114 : vector<1x8x64xf32> to vector<8x64xf32>
    %116 = arith.addf %115, %113 : vector<8x64xf32>
    %c0_67 = arith.constant 0 : index
    %c0_68 = arith.constant 0 : index
    %c0_69 = arith.constant 0 : index
    %117 = vector.load %arg16[%c0_67, %c0_68, %c0_69] : memref<1x8x64xf32, #tpu.memory_space<vmem>>, vector<1x8x64xf32>
    %118 = vector.shape_cast %117 : vector<1x8x64xf32> to vector<8x64xf32>
    %119 = vector.shape_cast %116 : vector<8x64xf32> to vector<1x8x64xf32>
    tpu.vector_store %arg16[%c0_67, %c0_68, %c0_69], %119 {strides = array<i32>} : memref<1x8x64xf32, #tpu.memory_space<vmem>>, vector<1x8x64xf32>,
    return
  }
  func.func @transform_0(%arg0: i32) -> (i32, i32, i32) {
    %c0_i32 = arith.constant 0 : i32
    %c0_i32_0 = arith.constant 0 : i32
    %c0_i32_1 = arith.constant 0 : i32
    return %arg0, %c0_i32, %c0_i32_0 : i32, i32, i32
  }
  func.func @transform_1(%arg0: i32) -> (i32, i32) {
    %c0_i32 = arith.constant 0 : i32
    %c0_i32_0 = arith.constant 0 : i32
    %c0_i32_1 = arith.constant 0 : i32
    return %c0_i32, %c0_i32_0 : i32, i32
  }
  func.func @transform_2(%arg0: i32) -> (i32, i32) {
    %c0_i32 = arith.constant 0 : i32
    %c0_i32_0 = arith.constant 0 : i32
    %c0_i32_1 = arith.constant 0 : i32
    return %c0_i32, %c0_i32_0 : i32, i32
  }
  func.func @transform_3(%arg0: i32) -> (i32, i32) {
    %c0_i32 = arith.constant 0 : i32
    %c0_i32_0 = arith.constant 0 : i32
    %c0_i32_1 = arith.constant 0 : i32
    return %c0_i32, %c0_i32_0 : i32, i32
  }
  func.func @transform_4(%arg0: i32) -> (i32, i32) {
    %c0_i32 = arith.constant 0 : i32
    %c0_i32_0 = arith.constant 0 : i32
    %c0_i32_1 = arith.constant 0 : i32
    return %c0_i32, %c0_i32_0 : i32, i32
  }
  func.func @transform_5(%arg0: i32) -> (i32, i32) {
    %c0_i32 = arith.constant 0 : i32
    %c0_i32_0 = arith.constant 0 : i32
    %c0_i32_1 = arith.constant 0 : i32
    return %c0_i32, %c0_i32_0 : i32, i32
  }
  func.func @transform_6(%arg0: i32) -> (i32, i32) {
    %c0_i32 = arith.constant 0 : i32
    %c0_i32_0 = arith.constant 0 : i32
    %c0_i32_1 = arith.constant 0 : i32
    return %c0_i32, %c0_i32_0 : i32, i32
  }
  func.func @transform_7(%arg0: i32) -> (i32, i32) {
    %c0_i32 = arith.constant 0 : i32
    %c0_i32_0 = arith.constant 0 : i32
    %c0_i32_1 = arith.constant 0 : i32
    return %c0_i32, %c0_i32_0 : i32, i32
  }
  func.func @transform_8(%arg0: i32) -> (i32, i32) {
    %c0_i32 = arith.constant 0 : i32
    %c0_i32_0 = arith.constant 0 : i32
    %c0_i32_1 = arith.constant 0 : i32
    return %c0_i32, %c0_i32_0 : i32, i32
  }
  func.func @transform_9(%arg0: i32) -> (i32, i32) {
    %c0_i32 = arith.constant 0 : i32
    %c0_i32_0 = arith.constant 0 : i32
    %c0_i32_1 = arith.constant 0 : i32
    return %c0_i32, %c0_i32_0 : i32, i32
  }
  func.func @transform_10(%arg0: i32) -> (i32, i32) {
    %c0_i32 = arith.constant 0 : i32
    %c0_i32_0 = arith.constant 0 : i32
    %c0_i32_1 = arith.constant 0 : i32
    return %c0_i32, %c0_i32_0 : i32, i32
  }
  func.func @transform_11(%arg0: i32) -> (i32, i32) {
    %c0_i32 = arith.constant 0 : i32
    %c0_i32_0 = arith.constant 0 : i32
    %c0_i32_1 = arith.constant 0 : i32
    return %c0_i32, %c0_i32_0 : i32, i32
  }
  func.func @transform_12(%arg0: i32) -> (i32, i32) {
    %c0_i32 = arith.constant 0 : i32
    %c0_i32_0 = arith.constant 0 : i32
    %c0_i32_1 = arith.constant 0 : i32
    return %c0_i32, %c0_i32_0 : i32, i32
  }
  func.func @transform_13(%arg0: i32) -> (i32, i32) {
    %c0_i32 = arith.constant 0 : i32
    %c0_i32_0 = arith.constant 0 : i32
    %c0_i32_1 = arith.constant 0 : i32
    return %c0_i32, %c0_i32_0 : i32, i32
  }
  func.func @transform_14(%arg0: i32) -> (i32, i32) {
    %c0_i32 = arith.constant 0 : i32
    %c0_i32_0 = arith.constant 0 : i32
    %c0_i32_1 = arith.constant 0 : i32
    return %c0_i32, %c0_i32_0 : i32, i32
  }
  func.func @transform_15(%arg0: i32) -> (i32, i32, i32) {
    %c0_i32 = arith.constant 0 : i32
    %c0_i32_0 = arith.constant 0 : i32
    %c0_i32_1 = arith.constant 0 : i32
    return %arg0, %c0_i32, %c0_i32_0 : i32, i32, i32
  }
}

module attributes {stable_mosaic.version = 11 : i64} {
  func.func @_resnet_kernel(%arg0: i32, %arg1: memref<1x8x64xf32, #tpu.memory_space<vmem>>, %arg2: memref<64x64xf32, #tpu.memory_space<vmem>>, %arg3: memref<1x64xf32, #tpu.memory_space<vmem>>, %arg4: memref<1x64xf32, #tpu.memory_space<vmem>>, %arg5: memref<64x64xbf16, #tpu.memory_space<vmem>>, %arg6: memref<64x64xbf16, #tpu.memory_space<vmem>>, %arg7: memref<64x64xbf16, #tpu.memory_space<vmem>>, %arg8: memref<1x64xf32, #tpu.memory_space<vmem>>, %arg9: memref<64x64xf32, #tpu.memory_space<vmem>>, %arg10: memref<1x64xf32, #tpu.memory_space<vmem>>, %arg11: memref<1x64xf32, #tpu.memory_space<vmem>>, %arg12: memref<64x64xbf16, #tpu.memory_space<vmem>>, %arg13: memref<64x64xbf16, #tpu.memory_space<vmem>>, %arg14: memref<64x64xbf16, #tpu.memory_space<vmem>>, %arg15: memref<1x64xf32, #tpu.memory_space<vmem>>, %arg16: memref<1x8x64xf32, #tpu.memory_space<vmem>>) attributes {dimension_semantics = [#tpu.dimension_semantics<parallel>], iteration_bounds = array<i64: 2>, scalar_prefetch = 0 : i64, scratch_operands = 0 : i64, tpu.core_type = #tpu.core_type<tc>, window_params = [{transform_indices = @transform_0, window_bounds = array<i64: 1, 8, 64>}, {pipeline_mode = #tpu.pipeline_mode<synchronous>, transform_indices = @transform_1, window_bounds = array<i64: 64, 64>}, {pipeline_mode = #tpu.pipeline_mode<synchronous>, transform_indices = @transform_2, window_bounds = array<i64: 1, 64>}, {pipeline_mode = #tpu.pipeline_mode<synchronous>, transform_indices = @transform_3, window_bounds = array<i64: 1, 64>}, {pipeline_mode = #tpu.pipeline_mode<synchronous>, transform_indices = @transform_4, window_bounds = array<i64: 64, 64>}, {pipeline_mode = #tpu.pipeline_mode<synchronous>, transform_indices = @transform_5, window_bounds = array<i64: 64, 64>}, {pipeline_mode = #tpu.pipeline_mode<synchronous>, transform_indices = @transform_6, window_bounds = array<i64: 64, 64>}, {pipeline_mode = #tpu.pipeline_mode<synchronous>, transform_indices = @transform_7, window_bounds = array<i64: 1, 64>}, {pipeline_mode = #tpu.pipeline_mode<synchronous>, transform_indices = @transform_8, window_bounds = array<i64: 64, 64>}, {pipeline_mode = #tpu.pipeline_mode<synchronous>, transform_indices = @transform_9, window_bounds = array<i64: 1, 64>}, {pipeline_mode = #tpu.pipeline_mode<synchronous>, transform_indices = @transform_10, window_bounds = array<i64: 1, 64>}, {pipeline_mode = #tpu.pipeline_mode<synchronous>, transform_indices = @transform_11, window_bounds = array<i64: 64, 64>}, {pipeline_mode = #tpu.pipeline_mode<synchronous>, transform_indices = @transform_12, window_bounds = array<i64: 64, 64>}, {pipeline_mode = #tpu.pipeline_mode<synchronous>, transform_indices = @transform_13, window_bounds = array<i64: 64, 64>}, {pipeline_mode = #tpu.pipeline_mode<synchronous>, transform_indices = @transform_14, window_bounds = array<i64: 1, 64>}, {transform_indices = @transform_15, window_bounds = array<i64: 1, 8, 64>}]} {
    %c0 = arith.constant 0 : index
    %c0_0 = arith.constant 0 : index
    %c0_1 = arith.constant 0 : index
    %0 = vector.load %arg1[%c0, %c0_0, %c0_1] : memref<1x8x64xf32, #tpu.memory_space<vmem>>, vector<1x8x64xf32>
    %1 = vector.shape_cast %0 : vector<1x8x64xf32> to vector<8x64xf32>
    %c0_2 = arith.constant 0 : index
    %c0_3 = arith.constant 0 : index
    %2 = vector.load %arg2[%c0_2, %c0_3] : memref<64x64xf32, #tpu.memory_space<vmem>>, vector<64x64xf32>
    %c0_4 = arith.constant 0 : index
    %c0_5 = arith.constant 0 : index
    %3 = vector.load %arg3[%c0_4, %c0_5] : memref<1x64xf32, #tpu.memory_space<vmem>>, vector<1x64xf32>
    %c0_6 = arith.constant 0 : index
    %c0_7 = arith.constant 0 : index
    %4 = vector.load %arg4[%c0_6, %c0_7] : memref<1x64xf32, #tpu.memory_space<vmem>>, vector<1x64xf32>
    %cst = arith.constant dense<0.000000e+00> : vector<64xf32>
    %5 = vector.multi_reduction <add>, %1, %cst [0] : vector<8x64xf32> to vector<64xf32>
    %6 = vector.shape_cast %5 : vector<64xf32> to vector<1x64xf32>
    %cst_8 = arith.constant dense<0.000000e+00> : vector<1x64xf32>
    %7 = tpu.matmul %6, %2, %cst_8 {dimension_numbers = #tpu.dot_dimension_numbers<[1], [0], [0], [1], [0, 0, 1, 1], [], []>} : vector<1x64xf32>, vector<64x64xf32>, vector<1x64xf32> -> vector<1x64xf32>
    %cst_9 = arith.constant 1.600000e+01 : f32
    %8 = vector.broadcast %cst_9 : f32 to vector<1x64xf32>
    %9 = arith.divf %7, %8 : vector<1x64xf32>
    %10 = vector.broadcast %9 : vector<1x64xf32> to vector<8x64xf32>
    %11 = arith.subf %1, %10 : vector<8x64xf32>
    %12 = arith.mulf %11, %11 : vector<8x64xf32>
    %cst_10 = arith.constant dense<0.000000e+00> : vector<64xf32>
    %13 = vector.multi_reduction <add>, %12, %cst_10 [0] : vector<8x64xf32> to vector<64xf32>
    %14 = vector.shape_cast %13 : vector<64xf32> to vector<1x64xf32>
    %cst_11 = arith.constant dense<0.000000e+00> : vector<1x64xf32>
    %15 = tpu.matmul %14, %2, %cst_11 {dimension_numbers = #tpu.dot_dimension_numbers<[1], [0], [0], [1], [0, 0, 1, 1], [], []>} : vector<1x64xf32>, vector<64x64xf32>, vector<1x64xf32> -> vector<1x64xf32>
    %cst_12 = arith.constant 1.600000e+01 : f32
    %16 = vector.broadcast %cst_12 : f32 to vector<1x64xf32>
    %17 = arith.divf %15, %16 : vector<1x64xf32>
    %cst_13 = arith.constant 9.99999997E-7 : f32
    %18 = vector.broadcast %cst_13 : f32 to vector<1x64xf32>
    %19 = arith.addf %17, %18 : vector<1x64xf32>
    %20 = math.rsqrt %19 : vector<1x64xf32>
    %21 = arith.mulf %20, %3 : vector<1x64xf32>
    %22 = vector.broadcast %21 : vector<1x64xf32> to vector<8x64xf32>
    %23 = arith.mulf %11, %22 : vector<8x64xf32>
    %24 = vector.broadcast %4 : vector<1x64xf32> to vector<8x64xf32>
    %25 = arith.addf %23, %24 : vector<8x64xf32>
    %cst_14 = arith.constant 0.000000e+00 : f32
    %26 = vector.broadcast %cst_14 : f32 to vector<8x64xf32>
    %27 = arith.subf %26, %25 : vector<8x64xf32>
    %28 = math.exp %27 : vector<8x64xf32>
    %cst_15 = arith.constant 1.000000e+00 : f32
    %29 = vector.broadcast %cst_15 : f32 to vector<8x64xf32>
    %30 = arith.addf %29, %28 : vector<8x64xf32>
    %cst_16 = arith.constant 1.000000e+00 : f32
    %31 = vector.broadcast %cst_16 : f32 to vector<8x64xf32>
    %32 = arith.divf %31, %30 : vector<8x64xf32>
    %33 = arith.mulf %25, %32 : vector<8x64xf32>
    %34 = arith.truncf %33 : vector<8x64xf32> to vector<8x64xbf16>
    %c0_17 = arith.constant 0 : index
    %c0_18 = arith.constant 0 : index
    %35 = vector.load %arg5[%c0_17, %c0_18] : memref<64x64xbf16, #tpu.memory_space<vmem>>, vector<64x64xbf16>
    %cst_19 = arith.constant dense<0.000000e+00> : vector<8x64xf32>
    %36 = tpu.matmul %34, %35, %cst_19 {dimension_numbers = #tpu.dot_dimension_numbers<[1], [0], [0], [1], [0, 0, 1, 1], [], []>} : vector<8x64xbf16>, vector<64x64xbf16>, vector<8x64xf32> -> vector<8x64xf32>
    %c0_20 = arith.constant 0 : index
    %c0_21 = arith.constant 0 : index
    %37 = vector.load %arg6[%c0_20, %c0_21] : memref<64x64xbf16, #tpu.memory_space<vmem>>, vector<64x64xbf16>
    %cst_22 = arith.constant dense<0.000000e+00> : vector<8x64xf32>
    %38 = tpu.matmul %34, %37, %cst_22 {dimension_numbers = #tpu.dot_dimension_numbers<[1], [0], [0], [1], [0, 0, 1, 1], [], []>} : vector<8x64xbf16>, vector<64x64xbf16>, vector<8x64xf32> -> vector<8x64xf32>
    %c0_23 = arith.constant 0 : index
    %c0_24 = arith.constant 0 : index
    %39 = vector.load %arg7[%c0_23, %c0_24] : memref<64x64xbf16, #tpu.memory_space<vmem>>, vector<64x64xbf16>
    %cst_25 = arith.constant dense<0.000000e+00> : vector<8x64xf32>
    %40 = tpu.matmul %34, %39, %cst_25 {dimension_numbers = #tpu.dot_dimension_numbers<[1], [0], [0], [1], [0, 0, 1, 1], [], []>} : vector<8x64xbf16>, vector<64x64xbf16>, vector<8x64xf32> -> vector<8x64xf32>
    %41 = tpu.iota {dimensions = array<i32: 0>} : vector<8x64xi32>
    %c0_i32 = arith.constant 0 : i32
    %42 = vector.broadcast %c0_i32 : i32 to vector<8x64xi32>
    %43 = arith.cmpi sgt, %41, %42 : vector<8x64xi32>
    %c1_i32 = arith.constant 1 : i32
    %44 = tpu.dynamic_rotate %36 by %c1_i32 dim 0 : vector<8x64xf32>, i32 -> vector<8x64xf32>
    %cst_26 = arith.constant 0.000000e+00 : f32
    %45 = vector.broadcast %cst_26 : f32 to vector<8x64xf32>
    %46 = arith.select %43, %44, %45 : vector<8x64xi1>, vector<8x64xf32>
    %47 = arith.addf %46, %38 : vector<8x64xf32>
    %48 = tpu.iota {dimensions = array<i32: 0>} : vector<8x64xi32>
    %c7_i32 = arith.constant 7 : i32
    %49 = vector.broadcast %c7_i32 : i32 to vector<8x64xi32>
    %50 = arith.cmpi slt, %48, %49 : vector<8x64xi32>
    %c7_i32_27 = arith.constant 7 : i32
    %51 = tpu.dynamic_rotate %40 by %c7_i32_27 dim 0 : vector<8x64xf32>, i32 -> vector<8x64xf32>
    %cst_28 = arith.constant 0.000000e+00 : f32
    %52 = vector.broadcast %cst_28 : f32 to vector<8x64xf32>
    %53 = arith.select %50, %51, %52 : vector<8x64xi1>, vector<8x64xf32>
    %54 = arith.addf %47, %53 : vector<8x64xf32>
    %c0_29 = arith.constant 0 : index
    %c0_30 = arith.constant 0 : index
    %55 = vector.load %arg8[%c0_29, %c0_30] : memref<1x64xf32, #tpu.memory_space<vmem>>, vector<1x64xf32>
    %56 = vector.broadcast %55 : vector<1x64xf32> to vector<8x64xf32>
    %57 = arith.addf %54, %56 : vector<8x64xf32>
    %c0_31 = arith.constant 0 : index
    %c0_32 = arith.constant 0 : index
    %58 = vector.load %arg9[%c0_31, %c0_32] : memref<64x64xf32, #tpu.memory_space<vmem>>, vector<64x64xf32>
    %c0_33 = arith.constant 0 : index
    %c0_34 = arith.constant 0 : index
    %59 = vector.load %arg10[%c0_33, %c0_34] : memref<1x64xf32, #tpu.memory_space<vmem>>, vector<1x64xf32>
    %c0_35 = arith.constant 0 : index
    %c0_36 = arith.constant 0 : index
    %60 = vector.load %arg11[%c0_35, %c0_36] : memref<1x64xf32, #tpu.memory_space<vmem>>, vector<1x64xf32>
    %cst_37 = arith.constant dense<0.000000e+00> : vector<64xf32>
    %61 = vector.multi_reduction <add>, %57, %cst_37 [0] : vector<8x64xf32> to vector<64xf32>
    %62 = vector.shape_cast %61 : vector<64xf32> to vector<1x64xf32>
    %cst_38 = arith.constant dense<0.000000e+00> : vector<1x64xf32>
    %63 = tpu.matmul %62, %58, %cst_38 {dimension_numbers = #tpu.dot_dimension_numbers<[1], [0], [0], [1], [0, 0, 1, 1], [], []>} : vector<1x64xf32>, vector<64x64xf32>, vector<1x64xf32> -> vector<1x64xf32>
    %cst_39 = arith.constant 1.600000e+01 : f32
    %64 = vector.broadcast %cst_39 : f32 to vector<1x64xf32>
    %65 = arith.divf %63, %64 : vector<1x64xf32>
    %66 = vector.broadcast %65 : vector<1x64xf32> to vector<8x64xf32>
    %67 = arith.subf %57, %66 : vector<8x64xf32>
    %68 = arith.mulf %67, %67 : vector<8x64xf32>
    %cst_40 = arith.constant dense<0.000000e+00> : vector<64xf32>
    %69 = vector.multi_reduction <add>, %68, %cst_40 [0] : vector<8x64xf32> to vector<64xf32>
    %70 = vector.shape_cast %69 : vector<64xf32> to vector<1x64xf32>
    %cst_41 = arith.constant dense<0.000000e+00> : vector<1x64xf32>
    %71 = tpu.matmul %70, %58, %cst_41 {dimension_numbers = #tpu.dot_dimension_numbers<[1], [0], [0], [1], [0, 0, 1, 1], [], []>} : vector<1x64xf32>, vector<64x64xf32>, vector<1x64xf32> -> vector<1x64xf32>
    %cst_42 = arith.constant 1.600000e+01 : f32
    %72 = vector.broadcast %cst_42 : f32 to vector<1x64xf32>
    %73 = arith.divf %71, %72 : vector<1x64xf32>
    %cst_43 = arith.constant 9.99999997E-7 : f32
    %74 = vector.broadcast %cst_43 : f32 to vector<1x64xf32>
    %75 = arith.addf %73, %74 : vector<1x64xf32>
    %76 = math.rsqrt %75 : vector<1x64xf32>
    %77 = arith.mulf %76, %59 : vector<1x64xf32>
    %78 = vector.broadcast %77 : vector<1x64xf32> to vector<8x64xf32>
    %79 = arith.mulf %67, %78 : vector<8x64xf32>
    %80 = vector.broadcast %60 : vector<1x64xf32> to vector<8x64xf32>
    %81 = arith.addf %79, %80 : vector<8x64xf32>
    %cst_44 = arith.constant 0.000000e+00 : f32
    %82 = vector.broadcast %cst_44 : f32 to vector<8x64xf32>
    %83 = arith.subf %82, %81 : vector<8x64xf32>
    %84 = math.exp %83 : vector<8x64xf32>
    %cst_45 = arith.constant 1.000000e+00 : f32
    %85 = vector.broadcast %cst_45 : f32 to vector<8x64xf32>
    %86 = arith.addf %85, %84 : vector<8x64xf32>
    %cst_46 = arith.constant 1.000000e+00 : f32
    %87 = vector.broadcast %cst_46 : f32 to vector<8x64xf32>
    %88 = arith.divf %87, %86 : vector<8x64xf32>
    %89 = arith.mulf %81, %88 : vector<8x64xf32>
    %90 = arith.truncf %89 : vector<8x64xf32> to vector<8x64xbf16>
    %c0_47 = arith.constant 0 : index
    %c0_48 = arith.constant 0 : index
    %91 = vector.load %arg12[%c0_47, %c0_48] : memref<64x64xbf16, #tpu.memory_space<vmem>>, vector<64x64xbf16>
    %cst_49 = arith.constant dense<0.000000e+00> : vector<8x64xf32>
    %92 = tpu.matmul %90, %91, %cst_49 {dimension_numbers = #tpu.dot_dimension_numbers<[1], [0], [0], [1], [0, 0, 1, 1], [], []>} : vector<8x64xbf16>, vector<64x64xbf16>, vector<8x64xf32> -> vector<8x64xf32>
    %c0_50 = arith.constant 0 : index
    %c0_51 = arith.constant 0 : index
    %93 = vector.load %arg13[%c0_50, %c0_51] : memref<64x64xbf16, #tpu.memory_space<vmem>>, vector<64x64xbf16>
    %cst_52 = arith.constant dense<0.000000e+00> : vector<8x64xf32>
    %94 = tpu.matmul %90, %93, %cst_52 {dimension_numbers = #tpu.dot_dimension_numbers<[1], [0], [0], [1], [0, 0, 1, 1], [], []>} : vector<8x64xbf16>, vector<64x64xbf16>, vector<8x64xf32> -> vector<8x64xf32>
    %c0_53 = arith.constant 0 : index
    %c0_54 = arith.constant 0 : index
    %95 = vector.load %arg14[%c0_53, %c0_54] : memref<64x64xbf16, #tpu.memory_space<vmem>>, vector<64x64xbf16>
    %cst_55 = arith.constant dense<0.000000e+00> : vector<8x64xf32>
    %96 = tpu.matmul %90, %95, %cst_55 {dimension_numbers = #tpu.dot_dimension_numbers<[1], [0], [0], [1], [0, 0, 1, 1], [], []>} : vector<8x64xbf16>, vector<64x64xbf16>, vector<8x64xf32> -> vector<8x64xf32>
    %97 = tpu.iota {dimensions = array<i32: 0>} : vector<8x64xi32>
    %c0_i32_56 = arith.constant 0 : i32
    %98 = vector.broadcast %c0_i32_56 : i32 to vector<8x64xi32>
    %99 = arith.cmpi sgt, %97, %98 : vector<8x64xi32>
    %c1_i32_57 = arith.constant 1 : i32
    %100 = tpu.dynamic_rotate %92 by %c1_i32_57 dim 0 : vector<8x64xf32>, i32 -> vector<8x64xf32>
    %cst_58 = arith.constant 0.000000e+00 : f32
    %101 = vector.broadcast %cst_58 : f32 to vector<8x64xf32>
    %102 = arith.select %99, %100, %101 : vector<8x64xi1>, vector<8x64xf32>
    %103 = arith.addf %102, %94 : vector<8x64xf32>
    %104 = tpu.iota {dimensions = array<i32: 0>} : vector<8x64xi32>
    %c7_i32_59 = arith.constant 7 : i32
    %105 = vector.broadcast %c7_i32_59 : i32 to vector<8x64xi32>
    %106 = arith.cmpi slt, %104, %105 : vector<8x64xi32>
    %c7_i32_60 = arith.constant 7 : i32
    %107 = tpu.dynamic_rotate %96 by %c7_i32_60 dim 0 : vector<8x64xf32>, i32 -> vector<8x64xf32>
    %cst_61 = arith.constant 0.000000e+00 : f32
    %108 = vector.broadcast %cst_61 : f32 to vector<8x64xf32>
    %109 = arith.select %106, %107, %108 : vector<8x64xi1>, vector<8x64xf32>
    %110 = arith.addf %103, %109 : vector<8x64xf32>
    %c0_62 = arith.constant 0 : index
    %c0_63 = arith.constant 0 : index
    %111 = vector.load %arg15[%c0_62, %c0_63] : memref<1x64xf32, #tpu.memory_space<vmem>>, vector<1x64xf32>
    %112 = vector.broadcast %111 : vector<1x64xf32> to vector<8x64xf32>
    %113 = arith.addf %110, %112 : vector<8x64xf32>
    %c0_64 = arith.constant 0 : index
    %c0_65 = arith.constant 0 : index
    %c0_66 = arith.constant 0 : index
    %114 = vector.load %arg1[%c0_64, %c0_65, %c0_66] : memref<1x8x64xf32, #tpu.memory_space<vmem>>, vector<1x8x64xf32>
    %115 = vector.shape_cast %114 : vector<1x8x64xf32> to vector<8x64xf32>
    %116 = arith.addf %115, %113 : vector<8x64xf32>
    %c0_67 = arith.constant 0 : index
    %c0_68 = arith.constant 0 : index
    %c0_69 = arith.constant 0 : index
    %117 = vector.load %arg16[%c0_67, %c0_68, %c0_69] : memref<1x8x64xf32, #tpu.memory_space<vmem>>, vector<1x8x64xf32>
    %118 = vector.shape_cast %117 : vector<1x8x64xf32> to vector<8x64xf32>
    %119 = vector.shape_cast %116 : vector<8x64xf32> to vector<1x8x64xf32>
    tpu.vector_store %arg16[%c0_67, %c0_68, %c0_69], %119 {strides = array<i32>} : memref<1x8x64xf32, #tpu.memory_space<vmem>>, vector<1x8x64xf32>,
    return
  }
  func.func @transform_0(%arg0: i32) -> (i32, i32, i32) {
    %c0_i32 = arith.constant 0 : i32
    %c0_i32_0 = arith.constant 0 : i32
    %c0_i32_1 = arith.constant 0 : i32
    return %arg0, %c0_i32, %c0_i32_0 : i32, i32, i32
  }
  func.func @transform_1(%arg0: i32) -> (i32, i32) {
    %c0_i32 = arith.constant 0 : i32
    %c0_i32_0 = arith.constant 0 : i32
    %c0_i32_1 = arith.constant 0 : i32
    return %c0_i32, %c0_i32_0 : i32, i32
  }
  func.func @transform_2(%arg0: i32) -> (i32, i32) {
    %c0_i32 = arith.constant 0 : i32
    %c0_i32_0 = arith.constant 0 : i32
    %c0_i32_1 = arith.constant 0 : i32
    return %c0_i32, %c0_i32_0 : i32, i32
  }
  func.func @transform_3(%arg0: i32) -> (i32, i32) {
    %c0_i32 = arith.constant 0 : i32
    %c0_i32_0 = arith.constant 0 : i32
    %c0_i32_1 = arith.constant 0 : i32
    return %c0_i32, %c0_i32_0 : i32, i32
  }
  func.func @transform_4(%arg0: i32) -> (i32, i32) {
    %c0_i32 = arith.constant 0 : i32
    %c0_i32_0 = arith.constant 0 : i32
    %c0_i32_1 = arith.constant 0 : i32
    return %c0_i32, %c0_i32_0 : i32, i32
  }
  func.func @transform_5(%arg0: i32) -> (i32, i32) {
    %c0_i32 = arith.constant 0 : i32
    %c0_i32_0 = arith.constant 0 : i32
    %c0_i32_1 = arith.constant 0 : i32
    return %c0_i32, %c0_i32_0 : i32, i32
  }
  func.func @transform_6(%arg0: i32) -> (i32, i32) {
    %c0_i32 = arith.constant 0 : i32
    %c0_i32_0 = arith.constant 0 : i32
    %c0_i32_1 = arith.constant 0 : i32
    return %c0_i32, %c0_i32_0 : i32, i32
  }
  func.func @transform_7(%arg0: i32) -> (i32, i32) {
    %c0_i32 = arith.constant 0 : i32
    %c0_i32_0 = arith.constant 0 : i32
    %c0_i32_1 = arith.constant 0 : i32
    return %c0_i32, %c0_i32_0 : i32, i32
  }
  func.func @transform_8(%arg0: i32) -> (i32, i32) {
    %c0_i32 = arith.constant 0 : i32
    %c0_i32_0 = arith.constant 0 : i32
    %c0_i32_1 = arith.constant 0 : i32
    return %c0_i32, %c0_i32_0 : i32, i32
  }
  func.func @transform_9(%arg0: i32) -> (i32, i32) {
    %c0_i32 = arith.constant 0 : i32
    %c0_i32_0 = arith.constant 0 : i32
    %c0_i32_1 = arith.constant 0 : i32
    return %c0_i32, %c0_i32_0 : i32, i32
  }
  func.func @transform_10(%arg0: i32) -> (i32, i32) {
    %c0_i32 = arith.constant 0 : i32
    %c0_i32_0 = arith.constant 0 : i32
    %c0_i32_1 = arith.constant 0 : i32
    return %c0_i32, %c0_i32_0 : i32, i32
  }
  func.func @transform_11(%arg0: i32) -> (i32, i32) {
    %c0_i32 = arith.constant 0 : i32
    %c0_i32_0 = arith.constant 0 : i32
    %c0_i32_1 = arith.constant 0 : i32
    return %c0_i32, %c0_i32_0 : i32, i32
  }
  func.func @transform_12(%arg0: i32) -> (i32, i32) {
    %c0_i32 = arith.constant 0 : i32
    %c0_i32_0 = arith.constant 0 : i32
    %c0_i32_1 = arith.constant 0 : i32
    return %c0_i32, %c0_i32_0 : i32, i32
  }
  func.func @transform_13(%arg0: i32) -> (i32, i32) {
    %c0_i32 = arith.constant 0 : i32
    %c0_i32_0 = arith.constant 0 : i32
    %c0_i32_1 = arith.constant 0 : i32
    return %c0_i32, %c0_i32_0 : i32, i32
  }
  func.func @transform_14(%arg0: i32) -> (i32, i32) {
    %c0_i32 = arith.constant 0 : i32
    %c0_i32_0 = arith.constant 0 : i32
    %c0_i32_1 = arith.constant 0 : i32
    return %c0_i32, %c0_i32_0 : i32, i32
  }
  func.func @transform_15(%arg0: i32) -> (i32, i32, i32) {
    %c0_i32 = arith.constant 0 : i32
    %c0_i32_0 = arith.constant 0 : i32
    %c0_i32_1 = arith.constant 0 : i32
    return %arg0, %c0_i32, %c0_i32_0 : i32, i32, i32
  }
}

module attributes {stable_mosaic.version = 11 : i64} {
  func.func @_attn_kernel(%arg0: i32, %arg1: memref<1x8x64xf32, #tpu.memory_space<vmem>>, %arg2: memref<64x64xf32, #tpu.memory_space<vmem>>, %arg3: memref<1x64xf32, #tpu.memory_space<vmem>>, %arg4: memref<1x64xf32, #tpu.memory_space<vmem>>, %arg5: memref<64x64xbf16, #tpu.memory_space<vmem>>, %arg6: memref<1x64xf32, #tpu.memory_space<vmem>>, %arg7: memref<64x64xbf16, #tpu.memory_space<vmem>>, %arg8: memref<1x64xf32, #tpu.memory_space<vmem>>, %arg9: memref<64x64xbf16, #tpu.memory_space<vmem>>, %arg10: memref<1x64xf32, #tpu.memory_space<vmem>>, %arg11: memref<64x64xbf16, #tpu.memory_space<vmem>>, %arg12: memref<1x64xf32, #tpu.memory_space<vmem>>, %arg13: memref<1x8x64xf32, #tpu.memory_space<vmem>>) attributes {dimension_semantics = [#tpu.dimension_semantics<parallel>], iteration_bounds = array<i64: 2>, scalar_prefetch = 0 : i64, scratch_operands = 0 : i64, tpu.core_type = #tpu.core_type<tc>, window_params = [{transform_indices = @transform_0, window_bounds = array<i64: 1, 8, 64>}, {pipeline_mode = #tpu.pipeline_mode<synchronous>, transform_indices = @transform_1, window_bounds = array<i64: 64, 64>}, {pipeline_mode = #tpu.pipeline_mode<synchronous>, transform_indices = @transform_2, window_bounds = array<i64: 1, 64>}, {pipeline_mode = #tpu.pipeline_mode<synchronous>, transform_indices = @transform_3, window_bounds = array<i64: 1, 64>}, {pipeline_mode = #tpu.pipeline_mode<synchronous>, transform_indices = @transform_4, window_bounds = array<i64: 64, 64>}, {pipeline_mode = #tpu.pipeline_mode<synchronous>, transform_indices = @transform_5, window_bounds = array<i64: 1, 64>}, {pipeline_mode = #tpu.pipeline_mode<synchronous>, transform_indices = @transform_6, window_bounds = array<i64: 64, 64>}, {pipeline_mode = #tpu.pipeline_mode<synchronous>, transform_indices = @transform_7, window_bounds = array<i64: 1, 64>}, {pipeline_mode = #tpu.pipeline_mode<synchronous>, transform_indices = @transform_8, window_bounds = array<i64: 64, 64>}, {pipeline_mode = #tpu.pipeline_mode<synchronous>, transform_indices = @transform_9, window_bounds = array<i64: 1, 64>}, {pipeline_mode = #tpu.pipeline_mode<synchronous>, transform_indices = @transform_10, window_bounds = array<i64: 64, 64>}, {pipeline_mode = #tpu.pipeline_mode<synchronous>, transform_indices = @transform_11, window_bounds = array<i64: 1, 64>}, {transform_indices = @transform_12, window_bounds = array<i64: 1, 8, 64>}]} {
    %c0 = arith.constant 0 : index
    %c0_0 = arith.constant 0 : index
    %c0_1 = arith.constant 0 : index
    %0 = vector.load %arg1[%c0, %c0_0, %c0_1] : memref<1x8x64xf32, #tpu.memory_space<vmem>>, vector<1x8x64xf32>
    %1 = vector.shape_cast %0 : vector<1x8x64xf32> to vector<8x64xf32>
    %c0_2 = arith.constant 0 : index
    %c0_3 = arith.constant 0 : index
    %2 = vector.load %arg2[%c0_2, %c0_3] : memref<64x64xf32, #tpu.memory_space<vmem>>, vector<64x64xf32>
    %c0_4 = arith.constant 0 : index
    %c0_5 = arith.constant 0 : index
    %3 = vector.load %arg3[%c0_4, %c0_5] : memref<1x64xf32, #tpu.memory_space<vmem>>, vector<1x64xf32>
    %c0_6 = arith.constant 0 : index
    %c0_7 = arith.constant 0 : index
    %4 = vector.load %arg4[%c0_6, %c0_7] : memref<1x64xf32, #tpu.memory_space<vmem>>, vector<1x64xf32>
    %cst = arith.constant dense<0.000000e+00> : vector<64xf32>
    %5 = vector.multi_reduction <add>, %1, %cst [0] : vector<8x64xf32> to vector<64xf32>
    %6 = vector.shape_cast %5 : vector<64xf32> to vector<1x64xf32>
    %cst_8 = arith.constant dense<0.000000e+00> : vector<1x64xf32>
    %7 = tpu.matmul %6, %2, %cst_8 {dimension_numbers = #tpu.dot_dimension_numbers<[1], [0], [0], [1], [0, 0, 1, 1], [], []>} : vector<1x64xf32>, vector<64x64xf32>, vector<1x64xf32> -> vector<1x64xf32>
    %cst_9 = arith.constant 1.600000e+01 : f32
    %8 = vector.broadcast %cst_9 : f32 to vector<1x64xf32>
    %9 = arith.divf %7, %8 : vector<1x64xf32>
    %10 = vector.broadcast %9 : vector<1x64xf32> to vector<8x64xf32>
    %11 = arith.subf %1, %10 : vector<8x64xf32>
    %12 = arith.mulf %11, %11 : vector<8x64xf32>
    %cst_10 = arith.constant dense<0.000000e+00> : vector<64xf32>
    %13 = vector.multi_reduction <add>, %12, %cst_10 [0] : vector<8x64xf32> to vector<64xf32>
    %14 = vector.shape_cast %13 : vector<64xf32> to vector<1x64xf32>
    %cst_11 = arith.constant dense<0.000000e+00> : vector<1x64xf32>
    %15 = tpu.matmul %14, %2, %cst_11 {dimension_numbers = #tpu.dot_dimension_numbers<[1], [0], [0], [1], [0, 0, 1, 1], [], []>} : vector<1x64xf32>, vector<64x64xf32>, vector<1x64xf32> -> vector<1x64xf32>
    %cst_12 = arith.constant 1.600000e+01 : f32
    %16 = vector.broadcast %cst_12 : f32 to vector<1x64xf32>
    %17 = arith.divf %15, %16 : vector<1x64xf32>
    %cst_13 = arith.constant 9.99999997E-7 : f32
    %18 = vector.broadcast %cst_13 : f32 to vector<1x64xf32>
    %19 = arith.addf %17, %18 : vector<1x64xf32>
    %20 = math.rsqrt %19 : vector<1x64xf32>
    %21 = arith.mulf %20, %3 : vector<1x64xf32>
    %22 = vector.broadcast %21 : vector<1x64xf32> to vector<8x64xf32>
    %23 = arith.mulf %11, %22 : vector<8x64xf32>
    %24 = vector.broadcast %4 : vector<1x64xf32> to vector<8x64xf32>
    %25 = arith.addf %23, %24 : vector<8x64xf32>
    %26 = arith.truncf %25 : vector<8x64xf32> to vector<8x64xbf16>
    %c0_14 = arith.constant 0 : index
    %c0_15 = arith.constant 0 : index
    %27 = vector.load %arg5[%c0_14, %c0_15] : memref<64x64xbf16, #tpu.memory_space<vmem>>, vector<64x64xbf16>
    %cst_16 = arith.constant dense<0.000000e+00> : vector<8x64xf32>
    %28 = tpu.matmul %26, %27, %cst_16 {dimension_numbers = #tpu.dot_dimension_numbers<[1], [0], [0], [1], [0, 0, 1, 1], [], []>} : vector<8x64xbf16>, vector<64x64xbf16>, vector<8x64xf32> -> vector<8x64xf32>
    %c0_17 = arith.constant 0 : index
    %c0_18 = arith.constant 0 : index
    %29 = vector.load %arg6[%c0_17, %c0_18] : memref<1x64xf32, #tpu.memory_space<vmem>>, vector<1x64xf32>
    %30 = vector.broadcast %29 : vector<1x64xf32> to vector<8x64xf32>
    %31 = arith.addf %28, %30 : vector<8x64xf32>
    %c0_19 = arith.constant 0 : index
    %c0_20 = arith.constant 0 : index
    %32 = vector.load %arg7[%c0_19, %c0_20] : memref<64x64xbf16, #tpu.memory_space<vmem>>, vector<64x64xbf16>
    %cst_21 = arith.constant dense<0.000000e+00> : vector<8x64xf32>
    %33 = tpu.matmul %26, %32, %cst_21 {dimension_numbers = #tpu.dot_dimension_numbers<[1], [0], [0], [1], [0, 0, 1, 1], [], []>} : vector<8x64xbf16>, vector<64x64xbf16>, vector<8x64xf32> -> vector<8x64xf32>
    %c0_22 = arith.constant 0 : index
    %c0_23 = arith.constant 0 : index
    %34 = vector.load %arg8[%c0_22, %c0_23] : memref<1x64xf32, #tpu.memory_space<vmem>>, vector<1x64xf32>
    %35 = vector.broadcast %34 : vector<1x64xf32> to vector<8x64xf32>
    %36 = arith.addf %33, %35 : vector<8x64xf32>
    %c0_24 = arith.constant 0 : index
    %c0_25 = arith.constant 0 : index
    %37 = vector.load %arg9[%c0_24, %c0_25] : memref<64x64xbf16, #tpu.memory_space<vmem>>, vector<64x64xbf16>
    %cst_26 = arith.constant dense<0.000000e+00> : vector<8x64xf32>
    %38 = tpu.matmul %26, %37, %cst_26 {dimension_numbers = #tpu.dot_dimension_numbers<[1], [0], [0], [1], [0, 0, 1, 1], [], []>} : vector<8x64xbf16>, vector<64x64xbf16>, vector<8x64xf32> -> vector<8x64xf32>
    %c0_27 = arith.constant 0 : index
    %c0_28 = arith.constant 0 : index
    %39 = vector.load %arg10[%c0_27, %c0_28] : memref<1x64xf32, #tpu.memory_space<vmem>>, vector<1x64xf32>
    %40 = vector.broadcast %39 : vector<1x64xf32> to vector<8x64xf32>
    %41 = arith.addf %38, %40 : vector<8x64xf32>
    %42 = arith.truncf %31 : vector<8x64xf32> to vector<8x64xbf16>
    %43 = arith.truncf %36 : vector<8x64xf32> to vector<8x64xbf16>
    %cst_29 = arith.constant dense<0.000000e+00> : vector<8x8xf32>
    %44 = tpu.matmul %42, %43, %cst_29 {dimension_numbers = #tpu.dot_dimension_numbers<[1], [1], [0], [0], [0, 0, 1, 0], [], []>} : vector<8x64xbf16>, vector<8x64xbf16>, vector<8x8xf32> -> vector<8x8xf32>
    %cst_30 = arith.constant dense<0xFF800000> : vector<8xf32>
    %45 = vector.multi_reduction <maximumf>, %44, %cst_30 [1] : vector<8x8xf32> to vector<8xf32>
    %46 = vector.shape_cast %45 : vector<8xf32> to vector<8x1xf32>
    %47 = vector.broadcast %46 : vector<8x1xf32> to vector<8x8xf32>
    %48 = arith.subf %44, %47 : vector<8x8xf32>
    %49 = math.exp %48 : vector<8x8xf32>
    %cst_31 = arith.constant dense<0.000000e+00> : vector<8xf32>
    %50 = vector.multi_reduction <add>, %49, %cst_31 [1] : vector<8x8xf32> to vector<8xf32>
    %51 = vector.shape_cast %50 : vector<8xf32> to vector<8x1xf32>
    %52 = tpu.reciprocal %51 {approx = true} : vector<8x1xf32> -> vector<8x1xf32>
    %53 = vector.broadcast %52 : vector<8x1xf32> to vector<8x8xf32>
    %54 = arith.mulf %49, %53 : vector<8x8xf32>
    %55 = arith.truncf %54 : vector<8x8xf32> to vector<8x8xbf16>
    %56 = arith.truncf %41 : vector<8x64xf32> to vector<8x64xbf16>
    %cst_32 = arith.constant dense<0.000000e+00> : vector<8x64xf32>
    %57 = tpu.matmul %55, %56, %cst_32 {dimension_numbers = #tpu.dot_dimension_numbers<[1], [0], [0], [1], [0, 0, 1, 1], [], []>} : vector<8x8xbf16>, vector<8x64xbf16>, vector<8x64xf32> -> vector<8x64xf32>
    %58 = arith.truncf %57 : vector<8x64xf32> to vector<8x64xbf16>
    %c0_33 = arith.constant 0 : index
    %c0_34 = arith.constant 0 : index
    %59 = vector.load %arg11[%c0_33, %c0_34] : memref<64x64xbf16, #tpu.memory_space<vmem>>, vector<64x64xbf16>
    %cst_35 = arith.constant dense<0.000000e+00> : vector<8x64xf32>
    %60 = tpu.matmul %58, %59, %cst_35 {dimension_numbers = #tpu.dot_dimension_numbers<[1], [0], [0], [1], [0, 0, 1, 1], [], []>} : vector<8x64xbf16>, vector<64x64xbf16>, vector<8x64xf32> -> vector<8x64xf32>
    %c0_36 = arith.constant 0 : index
    %c0_37 = arith.constant 0 : index
    %61 = vector.load %arg12[%c0_36, %c0_37] : memref<1x64xf32, #tpu.memory_space<vmem>>, vector<1x64xf32>
    %62 = vector.broadcast %61 : vector<1x64xf32> to vector<8x64xf32>
    %63 = arith.addf %60, %62 : vector<8x64xf32>
    %c0_38 = arith.constant 0 : index
    %c0_39 = arith.constant 0 : index
    %c0_40 = arith.constant 0 : index
    %64 = vector.load %arg1[%c0_38, %c0_39, %c0_40] : memref<1x8x64xf32, #tpu.memory_space<vmem>>, vector<1x8x64xf32>
    %65 = vector.shape_cast %64 : vector<1x8x64xf32> to vector<8x64xf32>
    %66 = arith.addf %65, %63 : vector<8x64xf32>
    %c0_41 = arith.constant 0 : index
    %c0_42 = arith.constant 0 : index
    %c0_43 = arith.constant 0 : index
    %67 = vector.load %arg13[%c0_41, %c0_42, %c0_43] : memref<1x8x64xf32, #tpu.memory_space<vmem>>, vector<1x8x64xf32>
    %68 = vector.shape_cast %67 : vector<1x8x64xf32> to vector<8x64xf32>
    %69 = vector.shape_cast %66 : vector<8x64xf32> to vector<1x8x64xf32>
    tpu.vector_store %arg13[%c0_41, %c0_42, %c0_43], %69 {strides = array<i32>} : memref<1x8x64xf32, #tpu.memory_space<vmem>>, vector<1x8x64xf32>,
    return
  }
  func.func @transform_0(%arg0: i32) -> (i32, i32, i32) {
    %c0_i32 = arith.constant 0 : i32
    %c0_i32_0 = arith.constant 0 : i32
    %c0_i32_1 = arith.constant 0 : i32
    return %arg0, %c0_i32, %c0_i32_0 : i32, i32, i32
  }
  func.func @transform_1(%arg0: i32) -> (i32, i32) {
    %c0_i32 = arith.constant 0 : i32
    %c0_i32_0 = arith.constant 0 : i32
    %c0_i32_1 = arith.constant 0 : i32
    return %c0_i32, %c0_i32_0 : i32, i32
  }
  func.func @transform_2(%arg0: i32) -> (i32, i32) {
    %c0_i32 = arith.constant 0 : i32
    %c0_i32_0 = arith.constant 0 : i32
    %c0_i32_1 = arith.constant 0 : i32
    return %c0_i32, %c0_i32_0 : i32, i32
  }
  func.func @transform_3(%arg0: i32) -> (i32, i32) {
    %c0_i32 = arith.constant 0 : i32
    %c0_i32_0 = arith.constant 0 : i32
    %c0_i32_1 = arith.constant 0 : i32
    return %c0_i32, %c0_i32_0 : i32, i32
  }
  func.func @transform_4(%arg0: i32) -> (i32, i32) {
    %c0_i32 = arith.constant 0 : i32
    %c0_i32_0 = arith.constant 0 : i32
    %c0_i32_1 = arith.constant 0 : i32
    return %c0_i32, %c0_i32_0 : i32, i32
  }
  func.func @transform_5(%arg0: i32) -> (i32, i32) {
    %c0_i32 = arith.constant 0 : i32
    %c0_i32_0 = arith.constant 0 : i32
    %c0_i32_1 = arith.constant 0 : i32
    return %c0_i32, %c0_i32_0 : i32, i32
  }
  func.func @transform_6(%arg0: i32) -> (i32, i32) {
    %c0_i32 = arith.constant 0 : i32
    %c0_i32_0 = arith.constant 0 : i32
    %c0_i32_1 = arith.constant 0 : i32
    return %c0_i32, %c0_i32_0 : i32, i32
  }
  func.func @transform_7(%arg0: i32) -> (i32, i32) {
    %c0_i32 = arith.constant 0 : i32
    %c0_i32_0 = arith.constant 0 : i32
    %c0_i32_1 = arith.constant 0 : i32
    return %c0_i32, %c0_i32_0 : i32, i32
  }
  func.func @transform_8(%arg0: i32) -> (i32, i32) {
    %c0_i32 = arith.constant 0 : i32
    %c0_i32_0 = arith.constant 0 : i32
    %c0_i32_1 = arith.constant 0 : i32
    return %c0_i32, %c0_i32_0 : i32, i32
  }
  func.func @transform_9(%arg0: i32) -> (i32, i32) {
    %c0_i32 = arith.constant 0 : i32
    %c0_i32_0 = arith.constant 0 : i32
    %c0_i32_1 = arith.constant 0 : i32
    return %c0_i32, %c0_i32_0 : i32, i32
  }
  func.func @transform_10(%arg0: i32) -> (i32, i32) {
    %c0_i32 = arith.constant 0 : i32
    %c0_i32_0 = arith.constant 0 : i32
    %c0_i32_1 = arith.constant 0 : i32
    return %c0_i32, %c0_i32_0 : i32, i32
  }
  func.func @transform_11(%arg0: i32) -> (i32, i32) {
    %c0_i32 = arith.constant 0 : i32
    %c0_i32_0 = arith.constant 0 : i32
    %c0_i32_1 = arith.constant 0 : i32
    return %c0_i32, %c0_i32_0 : i32, i32
  }
  func.func @transform_12(%arg0: i32) -> (i32, i32, i32) {
    %c0_i32 = arith.constant 0 : i32
    %c0_i32_0 = arith.constant 0 : i32
    %c0_i32_1 = arith.constant 0 : i32
    return %arg0, %c0_i32, %c0_i32_0 : i32, i32, i32
  }
}

module attributes {stable_mosaic.version = 11 : i64} {
  func.func @_upsample_conv3_kernel(%arg0: i32, %arg1: memref<1x8x64xf32, #tpu.memory_space<vmem>>, %arg2: memref<64x64xbf16, #tpu.memory_space<vmem>>, %arg3: memref<64x64xbf16, #tpu.memory_space<vmem>>, %arg4: memref<64x64xbf16, #tpu.memory_space<vmem>>, %arg5: memref<64x64xbf16, #tpu.memory_space<vmem>>, %arg6: memref<1x64xf32, #tpu.memory_space<vmem>>, %arg7: memref<1x8x128xf32, #tpu.memory_space<vmem>>) attributes {dimension_semantics = [#tpu.dimension_semantics<parallel>], iteration_bounds = array<i64: 2>, scalar_prefetch = 0 : i64, scratch_operands = 0 : i64, tpu.core_type = #tpu.core_type<tc>, window_params = [{transform_indices = @transform_0, window_bounds = array<i64: 1, 8, 64>}, {pipeline_mode = #tpu.pipeline_mode<synchronous>, transform_indices = @transform_1, window_bounds = array<i64: 64, 64>}, {pipeline_mode = #tpu.pipeline_mode<synchronous>, transform_indices = @transform_2, window_bounds = array<i64: 64, 64>}, {pipeline_mode = #tpu.pipeline_mode<synchronous>, transform_indices = @transform_3, window_bounds = array<i64: 64, 64>}, {pipeline_mode = #tpu.pipeline_mode<synchronous>, transform_indices = @transform_4, window_bounds = array<i64: 64, 64>}, {pipeline_mode = #tpu.pipeline_mode<synchronous>, transform_indices = @transform_5, window_bounds = array<i64: 1, 64>}, {transform_indices = @transform_6, window_bounds = array<i64: 1, 8, 128>}]} {
    %c0 = arith.constant 0 : index
    %c0_0 = arith.constant 0 : index
    %c0_1 = arith.constant 0 : index
    %0 = vector.load %arg1[%c0, %c0_0, %c0_1] : memref<1x8x64xf32, #tpu.memory_space<vmem>>, vector<1x8x64xf32>
    %1 = vector.shape_cast %0 : vector<1x8x64xf32> to vector<8x64xf32>
    %2 = arith.truncf %1 : vector<8x64xf32> to vector<8x64xbf16>
    %c0_2 = arith.constant 0 : index
    %c0_3 = arith.constant 0 : index
    %3 = vector.load %arg2[%c0_2, %c0_3] : memref<64x64xbf16, #tpu.memory_space<vmem>>, vector<64x64xbf16>
    %cst = arith.constant dense<0.000000e+00> : vector<8x64xf32>
    %4 = tpu.matmul %2, %3, %cst {dimension_numbers = #tpu.dot_dimension_numbers<[1], [0], [0], [1], [0, 0, 1, 1], [], []>} : vector<8x64xbf16>, vector<64x64xbf16>, vector<8x64xf32> -> vector<8x64xf32>
    %c0_4 = arith.constant 0 : index
    %c0_5 = arith.constant 0 : index
    %5 = vector.load %arg3[%c0_4, %c0_5] : memref<64x64xbf16, #tpu.memory_space<vmem>>, vector<64x64xbf16>
    %cst_6 = arith.constant dense<0.000000e+00> : vector<8x64xf32>
    %6 = tpu.matmul %2, %5, %cst_6 {dimension_numbers = #tpu.dot_dimension_numbers<[1], [0], [0], [1], [0, 0, 1, 1], [], []>} : vector<8x64xbf16>, vector<64x64xbf16>, vector<8x64xf32> -> vector<8x64xf32>
    %c0_7 = arith.constant 0 : index
    %c0_8 = arith.constant 0 : index
    %7 = vector.load %arg4[%c0_7, %c0_8] : memref<64x64xbf16, #tpu.memory_space<vmem>>, vector<64x64xbf16>
    %cst_9 = arith.constant dense<0.000000e+00> : vector<8x64xf32>
    %8 = tpu.matmul %2, %7, %cst_9 {dimension_numbers = #tpu.dot_dimension_numbers<[1], [0], [0], [1], [0, 0, 1, 1], [], []>} : vector<8x64xbf16>, vector<64x64xbf16>, vector<8x64xf32> -> vector<8x64xf32>
    %c0_10 = arith.constant 0 : index
    %c0_11 = arith.constant 0 : index
    %9 = vector.load %arg5[%c0_10, %c0_11] : memref<64x64xbf16, #tpu.memory_space<vmem>>, vector<64x64xbf16>
    %cst_12 = arith.constant dense<0.000000e+00> : vector<8x64xf32>
    %10 = tpu.matmul %2, %9, %cst_12 {dimension_numbers = #tpu.dot_dimension_numbers<[1], [0], [0], [1], [0, 0, 1, 1], [], []>} : vector<8x64xbf16>, vector<64x64xbf16>, vector<8x64xf32> -> vector<8x64xf32>
    %11 = tpu.iota {dimensions = array<i32: 0>} : vector<8x64xi32>
    %c0_i32 = arith.constant 0 : i32
    %12 = vector.broadcast %c0_i32 : i32 to vector<8x64xi32>
    %13 = arith.cmpi sgt, %11, %12 : vector<8x64xi32>
    %c1_i32 = arith.constant 1 : i32
    %14 = tpu.dynamic_rotate %4 by %c1_i32 dim 0 : vector<8x64xf32>, i32 -> vector<8x64xf32>
    %cst_13 = arith.constant 0.000000e+00 : f32
    %15 = vector.broadcast %cst_13 : f32 to vector<8x64xf32>
    %16 = arith.select %13, %14, %15 : vector<8x64xi1>, vector<8x64xf32>
    %17 = arith.addf %16, %8 : vector<8x64xf32>
    %c0_14 = arith.constant 0 : index
    %c0_15 = arith.constant 0 : index
    %18 = vector.load %arg6[%c0_14, %c0_15] : memref<1x64xf32, #tpu.memory_space<vmem>>, vector<1x64xf32>
    %19 = vector.broadcast %18 : vector<1x64xf32> to vector<8x64xf32>
    %20 = arith.addf %17, %19 : vector<8x64xf32>
    %21 = tpu.iota {dimensions = array<i32: 0>} : vector<8x64xi32>
    %c7_i32 = arith.constant 7 : i32
    %22 = vector.broadcast %c7_i32 : i32 to vector<8x64xi32>
    %23 = arith.cmpi slt, %21, %22 : vector<8x64xi32>
    %c7_i32_16 = arith.constant 7 : i32
    %24 = tpu.dynamic_rotate %10 by %c7_i32_16 dim 0 : vector<8x64xf32>, i32 -> vector<8x64xf32>
    %cst_17 = arith.constant 0.000000e+00 : f32
    %25 = vector.broadcast %cst_17 : f32 to vector<8x64xf32>
    %26 = arith.select %23, %24, %25 : vector<8x64xi1>, vector<8x64xf32>
    %27 = arith.addf %6, %26 : vector<8x64xf32>
    %c0_18 = arith.constant 0 : index
    %c0_19 = arith.constant 0 : index
    %28 = vector.load %arg6[%c0_18, %c0_19] : memref<1x64xf32, #tpu.memory_space<vmem>>, vector<1x64xf32>
    %29 = vector.broadcast %28 : vector<1x64xf32> to vector<8x64xf32>
    %30 = arith.addf %27, %29 : vector<8x64xf32>
    %31 = tpu.concatenate %20, %30 in 1 : vector<8x64xf32>, vector<8x64xf32> -> vector<8x128xf32>
    %c0_20 = arith.constant 0 : index
    %c0_21 = arith.constant 0 : index
    %c0_22 = arith.constant 0 : index
    %32 = vector.load %arg7[%c0_20, %c0_21, %c0_22] : memref<1x8x128xf32, #tpu.memory_space<vmem>>, vector<1x8x128xf32>
    %33 = vector.shape_cast %32 : vector<1x8x128xf32> to vector<8x128xf32>
    %34 = vector.shape_cast %31 : vector<8x128xf32> to vector<1x8x128xf32>
    tpu.vector_store %arg7[%c0_20, %c0_21, %c0_22], %34 {strides = array<i32>} : memref<1x8x128xf32, #tpu.memory_space<vmem>>, vector<1x8x128xf32>,
    return
  }
  func.func @transform_0(%arg0: i32) -> (i32, i32, i32) {
    %c0_i32 = arith.constant 0 : i32
    %c0_i32_0 = arith.constant 0 : i32
    %c0_i32_1 = arith.constant 0 : i32
    return %arg0, %c0_i32, %c0_i32_0 : i32, i32, i32
  }
  func.func @transform_1(%arg0: i32) -> (i32, i32) {
    %c0_i32 = arith.constant 0 : i32
    %c0_i32_0 = arith.constant 0 : i32
    %c0_i32_1 = arith.constant 0 : i32
    return %c0_i32, %c0_i32_0 : i32, i32
  }
  func.func @transform_2(%arg0: i32) -> (i32, i32) {
    %c0_i32 = arith.constant 0 : i32
    %c0_i32_0 = arith.constant 0 : i32
    %c0_i32_1 = arith.constant 0 : i32
    return %c0_i32, %c0_i32_0 : i32, i32
  }
  func.func @transform_3(%arg0: i32) -> (i32, i32) {
    %c0_i32 = arith.constant 0 : i32
    %c0_i32_0 = arith.constant 0 : i32
    %c0_i32_1 = arith.constant 0 : i32
    return %c0_i32, %c0_i32_0 : i32, i32
  }
  func.func @transform_4(%arg0: i32) -> (i32, i32) {
    %c0_i32 = arith.constant 0 : i32
    %c0_i32_0 = arith.constant 0 : i32
    %c0_i32_1 = arith.constant 0 : i32
    return %c0_i32, %c0_i32_0 : i32, i32
  }
  func.func @transform_5(%arg0: i32) -> (i32, i32) {
    %c0_i32 = arith.constant 0 : i32
    %c0_i32_0 = arith.constant 0 : i32
    %c0_i32_1 = arith.constant 0 : i32
    return %c0_i32, %c0_i32_0 : i32, i32
  }
  func.func @transform_6(%arg0: i32) -> (i32, i32, i32) {
    %c0_i32 = arith.constant 0 : i32
    %c0_i32_0 = arith.constant 0 : i32
    %c0_i32_1 = arith.constant 0 : i32
    return %arg0, %c0_i32, %c0_i32_0 : i32, i32, i32
  }
}

module attributes {stable_mosaic.version = 11 : i64} {
  func.func @_resnet_kernel(%arg0: i32, %arg1: memref<1x8x64xf32, #tpu.memory_space<vmem>>, %arg2: memref<64x64xf32, #tpu.memory_space<vmem>>, %arg3: memref<1x64xf32, #tpu.memory_space<vmem>>, %arg4: memref<1x64xf32, #tpu.memory_space<vmem>>, %arg5: memref<64x64xbf16, #tpu.memory_space<vmem>>, %arg6: memref<64x64xbf16, #tpu.memory_space<vmem>>, %arg7: memref<64x64xbf16, #tpu.memory_space<vmem>>, %arg8: memref<1x64xf32, #tpu.memory_space<vmem>>, %arg9: memref<64x64xf32, #tpu.memory_space<vmem>>, %arg10: memref<1x64xf32, #tpu.memory_space<vmem>>, %arg11: memref<1x64xf32, #tpu.memory_space<vmem>>, %arg12: memref<64x64xbf16, #tpu.memory_space<vmem>>, %arg13: memref<64x64xbf16, #tpu.memory_space<vmem>>, %arg14: memref<64x64xbf16, #tpu.memory_space<vmem>>, %arg15: memref<1x64xf32, #tpu.memory_space<vmem>>, %arg16: memref<1x8x64xf32, #tpu.memory_space<vmem>>) attributes {dimension_semantics = [#tpu.dimension_semantics<parallel>], iteration_bounds = array<i64: 2>, scalar_prefetch = 0 : i64, scratch_operands = 0 : i64, tpu.core_type = #tpu.core_type<tc>, window_params = [{transform_indices = @transform_0, window_bounds = array<i64: 1, 8, 64>}, {pipeline_mode = #tpu.pipeline_mode<synchronous>, transform_indices = @transform_1, window_bounds = array<i64: 64, 64>}, {pipeline_mode = #tpu.pipeline_mode<synchronous>, transform_indices = @transform_2, window_bounds = array<i64: 1, 64>}, {pipeline_mode = #tpu.pipeline_mode<synchronous>, transform_indices = @transform_3, window_bounds = array<i64: 1, 64>}, {pipeline_mode = #tpu.pipeline_mode<synchronous>, transform_indices = @transform_4, window_bounds = array<i64: 64, 64>}, {pipeline_mode = #tpu.pipeline_mode<synchronous>, transform_indices = @transform_5, window_bounds = array<i64: 64, 64>}, {pipeline_mode = #tpu.pipeline_mode<synchronous>, transform_indices = @transform_6, window_bounds = array<i64: 64, 64>}, {pipeline_mode = #tpu.pipeline_mode<synchronous>, transform_indices = @transform_7, window_bounds = array<i64: 1, 64>}, {pipeline_mode = #tpu.pipeline_mode<synchronous>, transform_indices = @transform_8, window_bounds = array<i64: 64, 64>}, {pipeline_mode = #tpu.pipeline_mode<synchronous>, transform_indices = @transform_9, window_bounds = array<i64: 1, 64>}, {pipeline_mode = #tpu.pipeline_mode<synchronous>, transform_indices = @transform_10, window_bounds = array<i64: 1, 64>}, {pipeline_mode = #tpu.pipeline_mode<synchronous>, transform_indices = @transform_11, window_bounds = array<i64: 64, 64>}, {pipeline_mode = #tpu.pipeline_mode<synchronous>, transform_indices = @transform_12, window_bounds = array<i64: 64, 64>}, {pipeline_mode = #tpu.pipeline_mode<synchronous>, transform_indices = @transform_13, window_bounds = array<i64: 64, 64>}, {pipeline_mode = #tpu.pipeline_mode<synchronous>, transform_indices = @transform_14, window_bounds = array<i64: 1, 64>}, {transform_indices = @transform_15, window_bounds = array<i64: 1, 8, 64>}]} {
    %c0 = arith.constant 0 : index
    %c0_0 = arith.constant 0 : index
    %c0_1 = arith.constant 0 : index
    %0 = vector.load %arg1[%c0, %c0_0, %c0_1] : memref<1x8x64xf32, #tpu.memory_space<vmem>>, vector<1x8x64xf32>
    %1 = vector.shape_cast %0 : vector<1x8x64xf32> to vector<8x64xf32>
    %c0_2 = arith.constant 0 : index
    %c0_3 = arith.constant 0 : index
    %2 = vector.load %arg2[%c0_2, %c0_3] : memref<64x64xf32, #tpu.memory_space<vmem>>, vector<64x64xf32>
    %c0_4 = arith.constant 0 : index
    %c0_5 = arith.constant 0 : index
    %3 = vector.load %arg3[%c0_4, %c0_5] : memref<1x64xf32, #tpu.memory_space<vmem>>, vector<1x64xf32>
    %c0_6 = arith.constant 0 : index
    %c0_7 = arith.constant 0 : index
    %4 = vector.load %arg4[%c0_6, %c0_7] : memref<1x64xf32, #tpu.memory_space<vmem>>, vector<1x64xf32>
    %cst = arith.constant dense<0.000000e+00> : vector<64xf32>
    %5 = vector.multi_reduction <add>, %1, %cst [0] : vector<8x64xf32> to vector<64xf32>
    %6 = vector.shape_cast %5 : vector<64xf32> to vector<1x64xf32>
    %cst_8 = arith.constant dense<0.000000e+00> : vector<1x64xf32>
    %7 = tpu.matmul %6, %2, %cst_8 {dimension_numbers = #tpu.dot_dimension_numbers<[1], [0], [0], [1], [0, 0, 1, 1], [], []>} : vector<1x64xf32>, vector<64x64xf32>, vector<1x64xf32> -> vector<1x64xf32>
    %cst_9 = arith.constant 1.600000e+01 : f32
    %8 = vector.broadcast %cst_9 : f32 to vector<1x64xf32>
    %9 = arith.divf %7, %8 : vector<1x64xf32>
    %10 = vector.broadcast %9 : vector<1x64xf32> to vector<8x64xf32>
    %11 = arith.subf %1, %10 : vector<8x64xf32>
    %12 = arith.mulf %11, %11 : vector<8x64xf32>
    %cst_10 = arith.constant dense<0.000000e+00> : vector<64xf32>
    %13 = vector.multi_reduction <add>, %12, %cst_10 [0] : vector<8x64xf32> to vector<64xf32>
    %14 = vector.shape_cast %13 : vector<64xf32> to vector<1x64xf32>
    %cst_11 = arith.constant dense<0.000000e+00> : vector<1x64xf32>
    %15 = tpu.matmul %14, %2, %cst_11 {dimension_numbers = #tpu.dot_dimension_numbers<[1], [0], [0], [1], [0, 0, 1, 1], [], []>} : vector<1x64xf32>, vector<64x64xf32>, vector<1x64xf32> -> vector<1x64xf32>
    %cst_12 = arith.constant 1.600000e+01 : f32
    %16 = vector.broadcast %cst_12 : f32 to vector<1x64xf32>
    %17 = arith.divf %15, %16 : vector<1x64xf32>
    %cst_13 = arith.constant 9.99999997E-7 : f32
    %18 = vector.broadcast %cst_13 : f32 to vector<1x64xf32>
    %19 = arith.addf %17, %18 : vector<1x64xf32>
    %20 = math.rsqrt %19 : vector<1x64xf32>
    %21 = arith.mulf %20, %3 : vector<1x64xf32>
    %22 = vector.broadcast %21 : vector<1x64xf32> to vector<8x64xf32>
    %23 = arith.mulf %11, %22 : vector<8x64xf32>
    %24 = vector.broadcast %4 : vector<1x64xf32> to vector<8x64xf32>
    %25 = arith.addf %23, %24 : vector<8x64xf32>
    %cst_14 = arith.constant 0.000000e+00 : f32
    %26 = vector.broadcast %cst_14 : f32 to vector<8x64xf32>
    %27 = arith.subf %26, %25 : vector<8x64xf32>
    %28 = math.exp %27 : vector<8x64xf32>
    %cst_15 = arith.constant 1.000000e+00 : f32
    %29 = vector.broadcast %cst_15 : f32 to vector<8x64xf32>
    %30 = arith.addf %29, %28 : vector<8x64xf32>
    %cst_16 = arith.constant 1.000000e+00 : f32
    %31 = vector.broadcast %cst_16 : f32 to vector<8x64xf32>
    %32 = arith.divf %31, %30 : vector<8x64xf32>
    %33 = arith.mulf %25, %32 : vector<8x64xf32>
    %34 = arith.truncf %33 : vector<8x64xf32> to vector<8x64xbf16>
    %c0_17 = arith.constant 0 : index
    %c0_18 = arith.constant 0 : index
    %35 = vector.load %arg5[%c0_17, %c0_18] : memref<64x64xbf16, #tpu.memory_space<vmem>>, vector<64x64xbf16>
    %cst_19 = arith.constant dense<0.000000e+00> : vector<8x64xf32>
    %36 = tpu.matmul %34, %35, %cst_19 {dimension_numbers = #tpu.dot_dimension_numbers<[1], [0], [0], [1], [0, 0, 1, 1], [], []>} : vector<8x64xbf16>, vector<64x64xbf16>, vector<8x64xf32> -> vector<8x64xf32>
    %c0_20 = arith.constant 0 : index
    %c0_21 = arith.constant 0 : index
    %37 = vector.load %arg6[%c0_20, %c0_21] : memref<64x64xbf16, #tpu.memory_space<vmem>>, vector<64x64xbf16>
    %cst_22 = arith.constant dense<0.000000e+00> : vector<8x64xf32>
    %38 = tpu.matmul %34, %37, %cst_22 {dimension_numbers = #tpu.dot_dimension_numbers<[1], [0], [0], [1], [0, 0, 1, 1], [], []>} : vector<8x64xbf16>, vector<64x64xbf16>, vector<8x64xf32> -> vector<8x64xf32>
    %c0_23 = arith.constant 0 : index
    %c0_24 = arith.constant 0 : index
    %39 = vector.load %arg7[%c0_23, %c0_24] : memref<64x64xbf16, #tpu.memory_space<vmem>>, vector<64x64xbf16>
    %cst_25 = arith.constant dense<0.000000e+00> : vector<8x64xf32>
    %40 = tpu.matmul %34, %39, %cst_25 {dimension_numbers = #tpu.dot_dimension_numbers<[1], [0], [0], [1], [0, 0, 1, 1], [], []>} : vector<8x64xbf16>, vector<64x64xbf16>, vector<8x64xf32> -> vector<8x64xf32>
    %41 = tpu.iota {dimensions = array<i32: 0>} : vector<8x64xi32>
    %c0_i32 = arith.constant 0 : i32
    %42 = vector.broadcast %c0_i32 : i32 to vector<8x64xi32>
    %43 = arith.cmpi sgt, %41, %42 : vector<8x64xi32>
    %c1_i32 = arith.constant 1 : i32
    %44 = tpu.dynamic_rotate %36 by %c1_i32 dim 0 : vector<8x64xf32>, i32 -> vector<8x64xf32>
    %cst_26 = arith.constant 0.000000e+00 : f32
    %45 = vector.broadcast %cst_26 : f32 to vector<8x64xf32>
    %46 = arith.select %43, %44, %45 : vector<8x64xi1>, vector<8x64xf32>
    %47 = arith.addf %46, %38 : vector<8x64xf32>
    %48 = tpu.iota {dimensions = array<i32: 0>} : vector<8x64xi32>
    %c7_i32 = arith.constant 7 : i32
    %49 = vector.broadcast %c7_i32 : i32 to vector<8x64xi32>
    %50 = arith.cmpi slt, %48, %49 : vector<8x64xi32>
    %c7_i32_27 = arith.constant 7 : i32
    %51 = tpu.dynamic_rotate %40 by %c7_i32_27 dim 0 : vector<8x64xf32>, i32 -> vector<8x64xf32>
    %cst_28 = arith.constant 0.000000e+00 : f32
    %52 = vector.broadcast %cst_28 : f32 to vector<8x64xf32>
    %53 = arith.select %50, %51, %52 : vector<8x64xi1>, vector<8x64xf32>
    %54 = arith.addf %47, %53 : vector<8x64xf32>
    %c0_29 = arith.constant 0 : index
    %c0_30 = arith.constant 0 : index
    %55 = vector.load %arg8[%c0_29, %c0_30] : memref<1x64xf32, #tpu.memory_space<vmem>>, vector<1x64xf32>
    %56 = vector.broadcast %55 : vector<1x64xf32> to vector<8x64xf32>
    %57 = arith.addf %54, %56 : vector<8x64xf32>
    %c0_31 = arith.constant 0 : index
    %c0_32 = arith.constant 0 : index
    %58 = vector.load %arg9[%c0_31, %c0_32] : memref<64x64xf32, #tpu.memory_space<vmem>>, vector<64x64xf32>
    %c0_33 = arith.constant 0 : index
    %c0_34 = arith.constant 0 : index
    %59 = vector.load %arg10[%c0_33, %c0_34] : memref<1x64xf32, #tpu.memory_space<vmem>>, vector<1x64xf32>
    %c0_35 = arith.constant 0 : index
    %c0_36 = arith.constant 0 : index
    %60 = vector.load %arg11[%c0_35, %c0_36] : memref<1x64xf32, #tpu.memory_space<vmem>>, vector<1x64xf32>
    %cst_37 = arith.constant dense<0.000000e+00> : vector<64xf32>
    %61 = vector.multi_reduction <add>, %57, %cst_37 [0] : vector<8x64xf32> to vector<64xf32>
    %62 = vector.shape_cast %61 : vector<64xf32> to vector<1x64xf32>
    %cst_38 = arith.constant dense<0.000000e+00> : vector<1x64xf32>
    %63 = tpu.matmul %62, %58, %cst_38 {dimension_numbers = #tpu.dot_dimension_numbers<[1], [0], [0], [1], [0, 0, 1, 1], [], []>} : vector<1x64xf32>, vector<64x64xf32>, vector<1x64xf32> -> vector<1x64xf32>
    %cst_39 = arith.constant 1.600000e+01 : f32
    %64 = vector.broadcast %cst_39 : f32 to vector<1x64xf32>
    %65 = arith.divf %63, %64 : vector<1x64xf32>
    %66 = vector.broadcast %65 : vector<1x64xf32> to vector<8x64xf32>
    %67 = arith.subf %57, %66 : vector<8x64xf32>
    %68 = arith.mulf %67, %67 : vector<8x64xf32>
    %cst_40 = arith.constant dense<0.000000e+00> : vector<64xf32>
    %69 = vector.multi_reduction <add>, %68, %cst_40 [0] : vector<8x64xf32> to vector<64xf32>
    %70 = vector.shape_cast %69 : vector<64xf32> to vector<1x64xf32>
    %cst_41 = arith.constant dense<0.000000e+00> : vector<1x64xf32>
    %71 = tpu.matmul %70, %58, %cst_41 {dimension_numbers = #tpu.dot_dimension_numbers<[1], [0], [0], [1], [0, 0, 1, 1], [], []>} : vector<1x64xf32>, vector<64x64xf32>, vector<1x64xf32> -> vector<1x64xf32>
    %cst_42 = arith.constant 1.600000e+01 : f32
    %72 = vector.broadcast %cst_42 : f32 to vector<1x64xf32>
    %73 = arith.divf %71, %72 : vector<1x64xf32>
    %cst_43 = arith.constant 9.99999997E-7 : f32
    %74 = vector.broadcast %cst_43 : f32 to vector<1x64xf32>
    %75 = arith.addf %73, %74 : vector<1x64xf32>
    %76 = math.rsqrt %75 : vector<1x64xf32>
    %77 = arith.mulf %76, %59 : vector<1x64xf32>
    %78 = vector.broadcast %77 : vector<1x64xf32> to vector<8x64xf32>
    %79 = arith.mulf %67, %78 : vector<8x64xf32>
    %80 = vector.broadcast %60 : vector<1x64xf32> to vector<8x64xf32>
    %81 = arith.addf %79, %80 : vector<8x64xf32>
    %cst_44 = arith.constant 0.000000e+00 : f32
    %82 = vector.broadcast %cst_44 : f32 to vector<8x64xf32>
    %83 = arith.subf %82, %81 : vector<8x64xf32>
    %84 = math.exp %83 : vector<8x64xf32>
    %cst_45 = arith.constant 1.000000e+00 : f32
    %85 = vector.broadcast %cst_45 : f32 to vector<8x64xf32>
    %86 = arith.addf %85, %84 : vector<8x64xf32>
    %cst_46 = arith.constant 1.000000e+00 : f32
    %87 = vector.broadcast %cst_46 : f32 to vector<8x64xf32>
    %88 = arith.divf %87, %86 : vector<8x64xf32>
    %89 = arith.mulf %81, %88 : vector<8x64xf32>
    %90 = arith.truncf %89 : vector<8x64xf32> to vector<8x64xbf16>
    %c0_47 = arith.constant 0 : index
    %c0_48 = arith.constant 0 : index
    %91 = vector.load %arg12[%c0_47, %c0_48] : memref<64x64xbf16, #tpu.memory_space<vmem>>, vector<64x64xbf16>
    %cst_49 = arith.constant dense<0.000000e+00> : vector<8x64xf32>
    %92 = tpu.matmul %90, %91, %cst_49 {dimension_numbers = #tpu.dot_dimension_numbers<[1], [0], [0], [1], [0, 0, 1, 1], [], []>} : vector<8x64xbf16>, vector<64x64xbf16>, vector<8x64xf32> -> vector<8x64xf32>
    %c0_50 = arith.constant 0 : index
    %c0_51 = arith.constant 0 : index
    %93 = vector.load %arg13[%c0_50, %c0_51] : memref<64x64xbf16, #tpu.memory_space<vmem>>, vector<64x64xbf16>
    %cst_52 = arith.constant dense<0.000000e+00> : vector<8x64xf32>
    %94 = tpu.matmul %90, %93, %cst_52 {dimension_numbers = #tpu.dot_dimension_numbers<[1], [0], [0], [1], [0, 0, 1, 1], [], []>} : vector<8x64xbf16>, vector<64x64xbf16>, vector<8x64xf32> -> vector<8x64xf32>
    %c0_53 = arith.constant 0 : index
    %c0_54 = arith.constant 0 : index
    %95 = vector.load %arg14[%c0_53, %c0_54] : memref<64x64xbf16, #tpu.memory_space<vmem>>, vector<64x64xbf16>
    %cst_55 = arith.constant dense<0.000000e+00> : vector<8x64xf32>
    %96 = tpu.matmul %90, %95, %cst_55 {dimension_numbers = #tpu.dot_dimension_numbers<[1], [0], [0], [1], [0, 0, 1, 1], [], []>} : vector<8x64xbf16>, vector<64x64xbf16>, vector<8x64xf32> -> vector<8x64xf32>
    %97 = tpu.iota {dimensions = array<i32: 0>} : vector<8x64xi32>
    %c0_i32_56 = arith.constant 0 : i32
    %98 = vector.broadcast %c0_i32_56 : i32 to vector<8x64xi32>
    %99 = arith.cmpi sgt, %97, %98 : vector<8x64xi32>
    %c1_i32_57 = arith.constant 1 : i32
    %100 = tpu.dynamic_rotate %92 by %c1_i32_57 dim 0 : vector<8x64xf32>, i32 -> vector<8x64xf32>
    %cst_58 = arith.constant 0.000000e+00 : f32
    %101 = vector.broadcast %cst_58 : f32 to vector<8x64xf32>
    %102 = arith.select %99, %100, %101 : vector<8x64xi1>, vector<8x64xf32>
    %103 = arith.addf %102, %94 : vector<8x64xf32>
    %104 = tpu.iota {dimensions = array<i32: 0>} : vector<8x64xi32>
    %c7_i32_59 = arith.constant 7 : i32
    %105 = vector.broadcast %c7_i32_59 : i32 to vector<8x64xi32>
    %106 = arith.cmpi slt, %104, %105 : vector<8x64xi32>
    %c7_i32_60 = arith.constant 7 : i32
    %107 = tpu.dynamic_rotate %96 by %c7_i32_60 dim 0 : vector<8x64xf32>, i32 -> vector<8x64xf32>
    %cst_61 = arith.constant 0.000000e+00 : f32
    %108 = vector.broadcast %cst_61 : f32 to vector<8x64xf32>
    %109 = arith.select %106, %107, %108 : vector<8x64xi1>, vector<8x64xf32>
    %110 = arith.addf %103, %109 : vector<8x64xf32>
    %c0_62 = arith.constant 0 : index
    %c0_63 = arith.constant 0 : index
    %111 = vector.load %arg15[%c0_62, %c0_63] : memref<1x64xf32, #tpu.memory_space<vmem>>, vector<1x64xf32>
    %112 = vector.broadcast %111 : vector<1x64xf32> to vector<8x64xf32>
    %113 = arith.addf %110, %112 : vector<8x64xf32>
    %c0_64 = arith.constant 0 : index
    %c0_65 = arith.constant 0 : index
    %c0_66 = arith.constant 0 : index
    %114 = vector.load %arg1[%c0_64, %c0_65, %c0_66] : memref<1x8x64xf32, #tpu.memory_space<vmem>>, vector<1x8x64xf32>
    %115 = vector.shape_cast %114 : vector<1x8x64xf32> to vector<8x64xf32>
    %116 = arith.addf %115, %113 : vector<8x64xf32>
    %c0_67 = arith.constant 0 : index
    %c0_68 = arith.constant 0 : index
    %c0_69 = arith.constant 0 : index
    %117 = vector.load %arg16[%c0_67, %c0_68, %c0_69] : memref<1x8x64xf32, #tpu.memory_space<vmem>>, vector<1x8x64xf32>
    %118 = vector.shape_cast %117 : vector<1x8x64xf32> to vector<8x64xf32>
    %119 = vector.shape_cast %116 : vector<8x64xf32> to vector<1x8x64xf32>
    tpu.vector_store %arg16[%c0_67, %c0_68, %c0_69], %119 {strides = array<i32>} : memref<1x8x64xf32, #tpu.memory_space<vmem>>, vector<1x8x64xf32>,
    return
  }
  func.func @transform_0(%arg0: i32) -> (i32, i32, i32) {
    %c0_i32 = arith.constant 0 : i32
    %c0_i32_0 = arith.constant 0 : i32
    %c0_i32_1 = arith.constant 0 : i32
    return %arg0, %c0_i32, %c0_i32_0 : i32, i32, i32
  }
  func.func @transform_1(%arg0: i32) -> (i32, i32) {
    %c0_i32 = arith.constant 0 : i32
    %c0_i32_0 = arith.constant 0 : i32
    %c0_i32_1 = arith.constant 0 : i32
    return %c0_i32, %c0_i32_0 : i32, i32
  }
  func.func @transform_2(%arg0: i32) -> (i32, i32) {
    %c0_i32 = arith.constant 0 : i32
    %c0_i32_0 = arith.constant 0 : i32
    %c0_i32_1 = arith.constant 0 : i32
    return %c0_i32, %c0_i32_0 : i32, i32
  }
  func.func @transform_3(%arg0: i32) -> (i32, i32) {
    %c0_i32 = arith.constant 0 : i32
    %c0_i32_0 = arith.constant 0 : i32
    %c0_i32_1 = arith.constant 0 : i32
    return %c0_i32, %c0_i32_0 : i32, i32
  }
  func.func @transform_4(%arg0: i32) -> (i32, i32) {
    %c0_i32 = arith.constant 0 : i32
    %c0_i32_0 = arith.constant 0 : i32
    %c0_i32_1 = arith.constant 0 : i32
    return %c0_i32, %c0_i32_0 : i32, i32
  }
  func.func @transform_5(%arg0: i32) -> (i32, i32) {
    %c0_i32 = arith.constant 0 : i32
    %c0_i32_0 = arith.constant 0 : i32
    %c0_i32_1 = arith.constant 0 : i32
    return %c0_i32, %c0_i32_0 : i32, i32
  }
  func.func @transform_6(%arg0: i32) -> (i32, i32) {
    %c0_i32 = arith.constant 0 : i32
    %c0_i32_0 = arith.constant 0 : i32
    %c0_i32_1 = arith.constant 0 : i32
    return %c0_i32, %c0_i32_0 : i32, i32
  }
  func.func @transform_7(%arg0: i32) -> (i32, i32) {
    %c0_i32 = arith.constant 0 : i32
    %c0_i32_0 = arith.constant 0 : i32
    %c0_i32_1 = arith.constant 0 : i32
    return %c0_i32, %c0_i32_0 : i32, i32
  }
  func.func @transform_8(%arg0: i32) -> (i32, i32) {
    %c0_i32 = arith.constant 0 : i32
    %c0_i32_0 = arith.constant 0 : i32
    %c0_i32_1 = arith.constant 0 : i32
    return %c0_i32, %c0_i32_0 : i32, i32
  }
  func.func @transform_9(%arg0: i32) -> (i32, i32) {
    %c0_i32 = arith.constant 0 : i32
    %c0_i32_0 = arith.constant 0 : i32
    %c0_i32_1 = arith.constant 0 : i32
    return %c0_i32, %c0_i32_0 : i32, i32
  }
  func.func @transform_10(%arg0: i32) -> (i32, i32) {
    %c0_i32 = arith.constant 0 : i32
    %c0_i32_0 = arith.constant 0 : i32
    %c0_i32_1 = arith.constant 0 : i32
    return %c0_i32, %c0_i32_0 : i32, i32
  }
  func.func @transform_11(%arg0: i32) -> (i32, i32) {
    %c0_i32 = arith.constant 0 : i32
    %c0_i32_0 = arith.constant 0 : i32
    %c0_i32_1 = arith.constant 0 : i32
    return %c0_i32, %c0_i32_0 : i32, i32
  }
  func.func @transform_12(%arg0: i32) -> (i32, i32) {
    %c0_i32 = arith.constant 0 : i32
    %c0_i32_0 = arith.constant 0 : i32
    %c0_i32_1 = arith.constant 0 : i32
    return %c0_i32, %c0_i32_0 : i32, i32
  }
  func.func @transform_13(%arg0: i32) -> (i32, i32) {
    %c0_i32 = arith.constant 0 : i32
    %c0_i32_0 = arith.constant 0 : i32
    %c0_i32_1 = arith.constant 0 : i32
    return %c0_i32, %c0_i32_0 : i32, i32
  }
  func.func @transform_14(%arg0: i32) -> (i32, i32) {
    %c0_i32 = arith.constant 0 : i32
    %c0_i32_0 = arith.constant 0 : i32
    %c0_i32_1 = arith.constant 0 : i32
    return %c0_i32, %c0_i32_0 : i32, i32
  }
  func.func @transform_15(%arg0: i32) -> (i32, i32, i32) {
    %c0_i32 = arith.constant 0 : i32
    %c0_i32_0 = arith.constant 0 : i32
    %c0_i32_1 = arith.constant 0 : i32
    return %arg0, %c0_i32, %c0_i32_0 : i32, i32, i32
  }
}

module attributes {stable_mosaic.version = 11 : i64} {
  func.func @_resnet_sc_kernel(%arg0: i32, %arg1: memref<1x16x64xf32, #tpu.memory_space<vmem>>, %arg2: memref<64x64xf32, #tpu.memory_space<vmem>>, %arg3: memref<1x64xf32, #tpu.memory_space<vmem>>, %arg4: memref<1x64xf32, #tpu.memory_space<vmem>>, %arg5: memref<64x32xbf16, #tpu.memory_space<vmem>>, %arg6: memref<64x32xbf16, #tpu.memory_space<vmem>>, %arg7: memref<64x32xbf16, #tpu.memory_space<vmem>>, %arg8: memref<1x32xf32, #tpu.memory_space<vmem>>, %arg9: memref<32x32xf32, #tpu.memory_space<vmem>>, %arg10: memref<1x32xf32, #tpu.memory_space<vmem>>, %arg11: memref<1x32xf32, #tpu.memory_space<vmem>>, %arg12: memref<32x32xbf16, #tpu.memory_space<vmem>>, %arg13: memref<32x32xbf16, #tpu.memory_space<vmem>>, %arg14: memref<32x32xbf16, #tpu.memory_space<vmem>>, %arg15: memref<1x32xf32, #tpu.memory_space<vmem>>, %arg16: memref<64x32xbf16, #tpu.memory_space<vmem>>, %arg17: memref<1x32xf32, #tpu.memory_space<vmem>>, %arg18: memref<1x16x32xf32, #tpu.memory_space<vmem>>) attributes {dimension_semantics = [#tpu.dimension_semantics<parallel>], iteration_bounds = array<i64: 2>, scalar_prefetch = 0 : i64, scratch_operands = 0 : i64, tpu.core_type = #tpu.core_type<tc>, window_params = [{transform_indices = @transform_0, window_bounds = array<i64: 1, 16, 64>}, {pipeline_mode = #tpu.pipeline_mode<synchronous>, transform_indices = @transform_1, window_bounds = array<i64: 64, 64>}, {pipeline_mode = #tpu.pipeline_mode<synchronous>, transform_indices = @transform_2, window_bounds = array<i64: 1, 64>}, {pipeline_mode = #tpu.pipeline_mode<synchronous>, transform_indices = @transform_3, window_bounds = array<i64: 1, 64>}, {pipeline_mode = #tpu.pipeline_mode<synchronous>, transform_indices = @transform_4, window_bounds = array<i64: 64, 32>}, {pipeline_mode = #tpu.pipeline_mode<synchronous>, transform_indices = @transform_5, window_bounds = array<i64: 64, 32>}, {pipeline_mode = #tpu.pipeline_mode<synchronous>, transform_indices = @transform_6, window_bounds = array<i64: 64, 32>}, {pipeline_mode = #tpu.pipeline_mode<synchronous>, transform_indices = @transform_7, window_bounds = array<i64: 1, 32>}, {pipeline_mode = #tpu.pipeline_mode<synchronous>, transform_indices = @transform_8, window_bounds = array<i64: 32, 32>}, {pipeline_mode = #tpu.pipeline_mode<synchronous>, transform_indices = @transform_9, window_bounds = array<i64: 1, 32>}, {pipeline_mode = #tpu.pipeline_mode<synchronous>, transform_indices = @transform_10, window_bounds = array<i64: 1, 32>}, {pipeline_mode = #tpu.pipeline_mode<synchronous>, transform_indices = @transform_11, window_bounds = array<i64: 32, 32>}, {pipeline_mode = #tpu.pipeline_mode<synchronous>, transform_indices = @transform_12, window_bounds = array<i64: 32, 32>}, {pipeline_mode = #tpu.pipeline_mode<synchronous>, transform_indices = @transform_13, window_bounds = array<i64: 32, 32>}, {pipeline_mode = #tpu.pipeline_mode<synchronous>, transform_indices = @transform_14, window_bounds = array<i64: 1, 32>}, {pipeline_mode = #tpu.pipeline_mode<synchronous>, transform_indices = @transform_15, window_bounds = array<i64: 64, 32>}, {pipeline_mode = #tpu.pipeline_mode<synchronous>, transform_indices = @transform_16, window_bounds = array<i64: 1, 32>}, {transform_indices = @transform_17, window_bounds = array<i64: 1, 16, 32>}]} {
    %c0 = arith.constant 0 : index
    %c0_0 = arith.constant 0 : index
    %c0_1 = arith.constant 0 : index
    %0 = vector.load %arg1[%c0, %c0_0, %c0_1] : memref<1x16x64xf32, #tpu.memory_space<vmem>>, vector<1x16x64xf32>
    %1 = vector.shape_cast %0 : vector<1x16x64xf32> to vector<16x64xf32>
    %c0_2 = arith.constant 0 : index
    %c0_3 = arith.constant 0 : index
    %2 = vector.load %arg2[%c0_2, %c0_3] : memref<64x64xf32, #tpu.memory_space<vmem>>, vector<64x64xf32>
    %c0_4 = arith.constant 0 : index
    %c0_5 = arith.constant 0 : index
    %3 = vector.load %arg3[%c0_4, %c0_5] : memref<1x64xf32, #tpu.memory_space<vmem>>, vector<1x64xf32>
    %c0_6 = arith.constant 0 : index
    %c0_7 = arith.constant 0 : index
    %4 = vector.load %arg4[%c0_6, %c0_7] : memref<1x64xf32, #tpu.memory_space<vmem>>, vector<1x64xf32>
    %cst = arith.constant dense<0.000000e+00> : vector<64xf32>
    %5 = vector.multi_reduction <add>, %1, %cst [0] : vector<16x64xf32> to vector<64xf32>
    %6 = vector.shape_cast %5 : vector<64xf32> to vector<1x64xf32>
    %cst_8 = arith.constant dense<0.000000e+00> : vector<1x64xf32>
    %7 = tpu.matmul %6, %2, %cst_8 {dimension_numbers = #tpu.dot_dimension_numbers<[1], [0], [0], [1], [0, 0, 1, 1], [], []>} : vector<1x64xf32>, vector<64x64xf32>, vector<1x64xf32> -> vector<1x64xf32>
    %cst_9 = arith.constant 3.200000e+01 : f32
    %8 = vector.broadcast %cst_9 : f32 to vector<1x64xf32>
    %9 = arith.divf %7, %8 : vector<1x64xf32>
    %10 = vector.broadcast %9 : vector<1x64xf32> to vector<16x64xf32>
    %11 = arith.subf %1, %10 : vector<16x64xf32>
    %12 = arith.mulf %11, %11 : vector<16x64xf32>
    %cst_10 = arith.constant dense<0.000000e+00> : vector<64xf32>
    %13 = vector.multi_reduction <add>, %12, %cst_10 [0] : vector<16x64xf32> to vector<64xf32>
    %14 = vector.shape_cast %13 : vector<64xf32> to vector<1x64xf32>
    %cst_11 = arith.constant dense<0.000000e+00> : vector<1x64xf32>
    %15 = tpu.matmul %14, %2, %cst_11 {dimension_numbers = #tpu.dot_dimension_numbers<[1], [0], [0], [1], [0, 0, 1, 1], [], []>} : vector<1x64xf32>, vector<64x64xf32>, vector<1x64xf32> -> vector<1x64xf32>
    %cst_12 = arith.constant 3.200000e+01 : f32
    %16 = vector.broadcast %cst_12 : f32 to vector<1x64xf32>
    %17 = arith.divf %15, %16 : vector<1x64xf32>
    %cst_13 = arith.constant 9.99999997E-7 : f32
    %18 = vector.broadcast %cst_13 : f32 to vector<1x64xf32>
    %19 = arith.addf %17, %18 : vector<1x64xf32>
    %20 = math.rsqrt %19 : vector<1x64xf32>
    %21 = arith.mulf %20, %3 : vector<1x64xf32>
    %22 = vector.broadcast %21 : vector<1x64xf32> to vector<16x64xf32>
    %23 = arith.mulf %11, %22 : vector<16x64xf32>
    %24 = vector.broadcast %4 : vector<1x64xf32> to vector<16x64xf32>
    %25 = arith.addf %23, %24 : vector<16x64xf32>
    %cst_14 = arith.constant 0.000000e+00 : f32
    %26 = vector.broadcast %cst_14 : f32 to vector<16x64xf32>
    %27 = arith.subf %26, %25 : vector<16x64xf32>
    %28 = math.exp %27 : vector<16x64xf32>
    %cst_15 = arith.constant 1.000000e+00 : f32
    %29 = vector.broadcast %cst_15 : f32 to vector<16x64xf32>
    %30 = arith.addf %29, %28 : vector<16x64xf32>
    %cst_16 = arith.constant 1.000000e+00 : f32
    %31 = vector.broadcast %cst_16 : f32 to vector<16x64xf32>
    %32 = arith.divf %31, %30 : vector<16x64xf32>
    %33 = arith.mulf %25, %32 : vector<16x64xf32>
    %34 = arith.truncf %33 : vector<16x64xf32> to vector<16x64xbf16>
    %c0_17 = arith.constant 0 : index
    %c0_18 = arith.constant 0 : index
    %35 = vector.load %arg5[%c0_17, %c0_18] : memref<64x32xbf16, #tpu.memory_space<vmem>>, vector<64x32xbf16>
    %cst_19 = arith.constant dense<0.000000e+00> : vector<16x32xf32>
    %36 = tpu.matmul %34, %35, %cst_19 {dimension_numbers = #tpu.dot_dimension_numbers<[1], [0], [0], [1], [0, 0, 1, 1], [], []>} : vector<16x64xbf16>, vector<64x32xbf16>, vector<16x32xf32> -> vector<16x32xf32>
    %c0_20 = arith.constant 0 : index
    %c0_21 = arith.constant 0 : index
    %37 = vector.load %arg6[%c0_20, %c0_21] : memref<64x32xbf16, #tpu.memory_space<vmem>>, vector<64x32xbf16>
    %cst_22 = arith.constant dense<0.000000e+00> : vector<16x32xf32>
    %38 = tpu.matmul %34, %37, %cst_22 {dimension_numbers = #tpu.dot_dimension_numbers<[1], [0], [0], [1], [0, 0, 1, 1], [], []>} : vector<16x64xbf16>, vector<64x32xbf16>, vector<16x32xf32> -> vector<16x32xf32>
    %c0_23 = arith.constant 0 : index
    %c0_24 = arith.constant 0 : index
    %39 = vector.load %arg7[%c0_23, %c0_24] : memref<64x32xbf16, #tpu.memory_space<vmem>>, vector<64x32xbf16>
    %cst_25 = arith.constant dense<0.000000e+00> : vector<16x32xf32>
    %40 = tpu.matmul %34, %39, %cst_25 {dimension_numbers = #tpu.dot_dimension_numbers<[1], [0], [0], [1], [0, 0, 1, 1], [], []>} : vector<16x64xbf16>, vector<64x32xbf16>, vector<16x32xf32> -> vector<16x32xf32>
    %41 = tpu.iota {dimensions = array<i32: 0>} : vector<16x32xi32>
    %c0_i32 = arith.constant 0 : i32
    %42 = vector.broadcast %c0_i32 : i32 to vector<16x32xi32>
    %43 = arith.cmpi sgt, %41, %42 : vector<16x32xi32>
    %c1_i32 = arith.constant 1 : i32
    %44 = tpu.dynamic_rotate %36 by %c1_i32 dim 0 : vector<16x32xf32>, i32 -> vector<16x32xf32>
    %cst_26 = arith.constant 0.000000e+00 : f32
    %45 = vector.broadcast %cst_26 : f32 to vector<16x32xf32>
    %46 = arith.select %43, %44, %45 : vector<16x32xi1>, vector<16x32xf32>
    %47 = arith.addf %46, %38 : vector<16x32xf32>
    %48 = tpu.iota {dimensions = array<i32: 0>} : vector<16x32xi32>
    %c15_i32 = arith.constant 15 : i32
    %49 = vector.broadcast %c15_i32 : i32 to vector<16x32xi32>
    %50 = arith.cmpi slt, %48, %49 : vector<16x32xi32>
    %c15_i32_27 = arith.constant 15 : i32
    %51 = tpu.dynamic_rotate %40 by %c15_i32_27 dim 0 : vector<16x32xf32>, i32 -> vector<16x32xf32>
    %cst_28 = arith.constant 0.000000e+00 : f32
    %52 = vector.broadcast %cst_28 : f32 to vector<16x32xf32>
    %53 = arith.select %50, %51, %52 : vector<16x32xi1>, vector<16x32xf32>
    %54 = arith.addf %47, %53 : vector<16x32xf32>
    %c0_29 = arith.constant 0 : index
    %c0_30 = arith.constant 0 : index
    %55 = vector.load %arg8[%c0_29, %c0_30] : memref<1x32xf32, #tpu.memory_space<vmem>>, vector<1x32xf32>
    %56 = vector.broadcast %55 : vector<1x32xf32> to vector<16x32xf32>
    %57 = arith.addf %54, %56 : vector<16x32xf32>
    %c0_31 = arith.constant 0 : index
    %c0_32 = arith.constant 0 : index
    %58 = vector.load %arg9[%c0_31, %c0_32] : memref<32x32xf32, #tpu.memory_space<vmem>>, vector<32x32xf32>
    %c0_33 = arith.constant 0 : index
    %c0_34 = arith.constant 0 : index
    %59 = vector.load %arg10[%c0_33, %c0_34] : memref<1x32xf32, #tpu.memory_space<vmem>>, vector<1x32xf32>
    %c0_35 = arith.constant 0 : index
    %c0_36 = arith.constant 0 : index
    %60 = vector.load %arg11[%c0_35, %c0_36] : memref<1x32xf32, #tpu.memory_space<vmem>>, vector<1x32xf32>
    %cst_37 = arith.constant dense<0.000000e+00> : vector<32xf32>
    %61 = vector.multi_reduction <add>, %57, %cst_37 [0] : vector<16x32xf32> to vector<32xf32>
    %62 = vector.shape_cast %61 : vector<32xf32> to vector<1x32xf32>
    %cst_38 = arith.constant dense<0.000000e+00> : vector<1x32xf32>
    %63 = tpu.matmul %62, %58, %cst_38 {dimension_numbers = #tpu.dot_dimension_numbers<[1], [0], [0], [1], [0, 0, 1, 1], [], []>} : vector<1x32xf32>, vector<32x32xf32>, vector<1x32xf32> -> vector<1x32xf32>
    %cst_39 = arith.constant 1.600000e+01 : f32
    %64 = vector.broadcast %cst_39 : f32 to vector<1x32xf32>
    %65 = arith.divf %63, %64 : vector<1x32xf32>
    %66 = vector.broadcast %65 : vector<1x32xf32> to vector<16x32xf32>
    %67 = arith.subf %57, %66 : vector<16x32xf32>
    %68 = arith.mulf %67, %67 : vector<16x32xf32>
    %cst_40 = arith.constant dense<0.000000e+00> : vector<32xf32>
    %69 = vector.multi_reduction <add>, %68, %cst_40 [0] : vector<16x32xf32> to vector<32xf32>
    %70 = vector.shape_cast %69 : vector<32xf32> to vector<1x32xf32>
    %cst_41 = arith.constant dense<0.000000e+00> : vector<1x32xf32>
    %71 = tpu.matmul %70, %58, %cst_41 {dimension_numbers = #tpu.dot_dimension_numbers<[1], [0], [0], [1], [0, 0, 1, 1], [], []>} : vector<1x32xf32>, vector<32x32xf32>, vector<1x32xf32> -> vector<1x32xf32>
    %cst_42 = arith.constant 1.600000e+01 : f32
    %72 = vector.broadcast %cst_42 : f32 to vector<1x32xf32>
    %73 = arith.divf %71, %72 : vector<1x32xf32>
    %cst_43 = arith.constant 9.99999997E-7 : f32
    %74 = vector.broadcast %cst_43 : f32 to vector<1x32xf32>
    %75 = arith.addf %73, %74 : vector<1x32xf32>
    %76 = math.rsqrt %75 : vector<1x32xf32>
    %77 = arith.mulf %76, %59 : vector<1x32xf32>
    %78 = vector.broadcast %77 : vector<1x32xf32> to vector<16x32xf32>
    %79 = arith.mulf %67, %78 : vector<16x32xf32>
    %80 = vector.broadcast %60 : vector<1x32xf32> to vector<16x32xf32>
    %81 = arith.addf %79, %80 : vector<16x32xf32>
    %cst_44 = arith.constant 0.000000e+00 : f32
    %82 = vector.broadcast %cst_44 : f32 to vector<16x32xf32>
    %83 = arith.subf %82, %81 : vector<16x32xf32>
    %84 = math.exp %83 : vector<16x32xf32>
    %cst_45 = arith.constant 1.000000e+00 : f32
    %85 = vector.broadcast %cst_45 : f32 to vector<16x32xf32>
    %86 = arith.addf %85, %84 : vector<16x32xf32>
    %cst_46 = arith.constant 1.000000e+00 : f32
    %87 = vector.broadcast %cst_46 : f32 to vector<16x32xf32>
    %88 = arith.divf %87, %86 : vector<16x32xf32>
    %89 = arith.mulf %81, %88 : vector<16x32xf32>
    %90 = arith.truncf %89 : vector<16x32xf32> to vector<16x32xbf16>
    %c0_47 = arith.constant 0 : index
    %c0_48 = arith.constant 0 : index
    %91 = vector.load %arg12[%c0_47, %c0_48] : memref<32x32xbf16, #tpu.memory_space<vmem>>, vector<32x32xbf16>
    %cst_49 = arith.constant dense<0.000000e+00> : vector<16x32xf32>
    %92 = tpu.matmul %90, %91, %cst_49 {dimension_numbers = #tpu.dot_dimension_numbers<[1], [0], [0], [1], [0, 0, 1, 1], [], []>} : vector<16x32xbf16>, vector<32x32xbf16>, vector<16x32xf32> -> vector<16x32xf32>
    %c0_50 = arith.constant 0 : index
    %c0_51 = arith.constant 0 : index
    %93 = vector.load %arg13[%c0_50, %c0_51] : memref<32x32xbf16, #tpu.memory_space<vmem>>, vector<32x32xbf16>
    %cst_52 = arith.constant dense<0.000000e+00> : vector<16x32xf32>
    %94 = tpu.matmul %90, %93, %cst_52 {dimension_numbers = #tpu.dot_dimension_numbers<[1], [0], [0], [1], [0, 0, 1, 1], [], []>} : vector<16x32xbf16>, vector<32x32xbf16>, vector<16x32xf32> -> vector<16x32xf32>
    %c0_53 = arith.constant 0 : index
    %c0_54 = arith.constant 0 : index
    %95 = vector.load %arg14[%c0_53, %c0_54] : memref<32x32xbf16, #tpu.memory_space<vmem>>, vector<32x32xbf16>
    %cst_55 = arith.constant dense<0.000000e+00> : vector<16x32xf32>
    %96 = tpu.matmul %90, %95, %cst_55 {dimension_numbers = #tpu.dot_dimension_numbers<[1], [0], [0], [1], [0, 0, 1, 1], [], []>} : vector<16x32xbf16>, vector<32x32xbf16>, vector<16x32xf32> -> vector<16x32xf32>
    %97 = tpu.iota {dimensions = array<i32: 0>} : vector<16x32xi32>
    %c0_i32_56 = arith.constant 0 : i32
    %98 = vector.broadcast %c0_i32_56 : i32 to vector<16x32xi32>
    %99 = arith.cmpi sgt, %97, %98 : vector<16x32xi32>
    %c1_i32_57 = arith.constant 1 : i32
    %100 = tpu.dynamic_rotate %92 by %c1_i32_57 dim 0 : vector<16x32xf32>, i32 -> vector<16x32xf32>
    %cst_58 = arith.constant 0.000000e+00 : f32
    %101 = vector.broadcast %cst_58 : f32 to vector<16x32xf32>
    %102 = arith.select %99, %100, %101 : vector<16x32xi1>, vector<16x32xf32>
    %103 = arith.addf %102, %94 : vector<16x32xf32>
    %104 = tpu.iota {dimensions = array<i32: 0>} : vector<16x32xi32>
    %c15_i32_59 = arith.constant 15 : i32
    %105 = vector.broadcast %c15_i32_59 : i32 to vector<16x32xi32>
    %106 = arith.cmpi slt, %104, %105 : vector<16x32xi32>
    %c15_i32_60 = arith.constant 15 : i32
    %107 = tpu.dynamic_rotate %96 by %c15_i32_60 dim 0 : vector<16x32xf32>, i32 -> vector<16x32xf32>
    %cst_61 = arith.constant 0.000000e+00 : f32
    %108 = vector.broadcast %cst_61 : f32 to vector<16x32xf32>
    %109 = arith.select %106, %107, %108 : vector<16x32xi1>, vector<16x32xf32>
    %110 = arith.addf %103, %109 : vector<16x32xf32>
    %c0_62 = arith.constant 0 : index
    %c0_63 = arith.constant 0 : index
    %111 = vector.load %arg15[%c0_62, %c0_63] : memref<1x32xf32, #tpu.memory_space<vmem>>, vector<1x32xf32>
    %112 = vector.broadcast %111 : vector<1x32xf32> to vector<16x32xf32>
    %113 = arith.addf %110, %112 : vector<16x32xf32>
    %c0_64 = arith.constant 0 : index
    %c0_65 = arith.constant 0 : index
    %c0_66 = arith.constant 0 : index
    %114 = vector.load %arg1[%c0_64, %c0_65, %c0_66] : memref<1x16x64xf32, #tpu.memory_space<vmem>>, vector<1x16x64xf32>
    %115 = vector.shape_cast %114 : vector<1x16x64xf32> to vector<16x64xf32>
    %116 = arith.truncf %115 : vector<16x64xf32> to vector<16x64xbf16>
    %c0_67 = arith.constant 0 : index
    %c0_68 = arith.constant 0 : index
    %117 = vector.load %arg16[%c0_67, %c0_68] : memref<64x32xbf16, #tpu.memory_space<vmem>>, vector<64x32xbf16>
    %cst_69 = arith.constant dense<0.000000e+00> : vector<16x32xf32>
    %118 = tpu.matmul %116, %117, %cst_69 {dimension_numbers = #tpu.dot_dimension_numbers<[1], [0], [0], [1], [0, 0, 1, 1], [], []>} : vector<16x64xbf16>, vector<64x32xbf16>, vector<16x32xf32> -> vector<16x32xf32>
    %c0_70 = arith.constant 0 : index
    %c0_71 = arith.constant 0 : index
    %119 = vector.load %arg17[%c0_70, %c0_71] : memref<1x32xf32, #tpu.memory_space<vmem>>, vector<1x32xf32>
    %120 = vector.broadcast %119 : vector<1x32xf32> to vector<16x32xf32>
    %121 = arith.addf %118, %120 : vector<16x32xf32>
    %122 = arith.addf %121, %113 : vector<16x32xf32>
    %c0_72 = arith.constant 0 : index
    %c0_73 = arith.constant 0 : index
    %c0_74 = arith.constant 0 : index
    %123 = vector.load %arg18[%c0_72, %c0_73, %c0_74] : memref<1x16x32xf32, #tpu.memory_space<vmem>>, vector<1x16x32xf32>
    %124 = vector.shape_cast %123 : vector<1x16x32xf32> to vector<16x32xf32>
    %125 = vector.shape_cast %122 : vector<16x32xf32> to vector<1x16x32xf32>
    tpu.vector_store %arg18[%c0_72, %c0_73, %c0_74], %125 {strides = array<i32>} : memref<1x16x32xf32, #tpu.memory_space<vmem>>, vector<1x16x32xf32>,
    return
  }
  func.func @transform_0(%arg0: i32) -> (i32, i32, i32) {
    %c0_i32 = arith.constant 0 : i32
    %c0_i32_0 = arith.constant 0 : i32
    %c0_i32_1 = arith.constant 0 : i32
    return %arg0, %c0_i32, %c0_i32_0 : i32, i32, i32
  }
  func.func @transform_1(%arg0: i32) -> (i32, i32) {
    %c0_i32 = arith.constant 0 : i32
    %c0_i32_0 = arith.constant 0 : i32
    %c0_i32_1 = arith.constant 0 : i32
    return %c0_i32, %c0_i32_0 : i32, i32
  }
  func.func @transform_2(%arg0: i32) -> (i32, i32) {
    %c0_i32 = arith.constant 0 : i32
    %c0_i32_0 = arith.constant 0 : i32
    %c0_i32_1 = arith.constant 0 : i32
    return %c0_i32, %c0_i32_0 : i32, i32
  }
  func.func @transform_3(%arg0: i32) -> (i32, i32) {
    %c0_i32 = arith.constant 0 : i32
    %c0_i32_0 = arith.constant 0 : i32
    %c0_i32_1 = arith.constant 0 : i32
    return %c0_i32, %c0_i32_0 : i32, i32
  }
  func.func @transform_4(%arg0: i32) -> (i32, i32) {
    %c0_i32 = arith.constant 0 : i32
    %c0_i32_0 = arith.constant 0 : i32
    %c0_i32_1 = arith.constant 0 : i32
    return %c0_i32, %c0_i32_0 : i32, i32
  }
  func.func @transform_5(%arg0: i32) -> (i32, i32) {
    %c0_i32 = arith.constant 0 : i32
    %c0_i32_0 = arith.constant 0 : i32
    %c0_i32_1 = arith.constant 0 : i32
    return %c0_i32, %c0_i32_0 : i32, i32
  }
  func.func @transform_6(%arg0: i32) -> (i32, i32) {
    %c0_i32 = arith.constant 0 : i32
    %c0_i32_0 = arith.constant 0 : i32
    %c0_i32_1 = arith.constant 0 : i32
    return %c0_i32, %c0_i32_0 : i32, i32
  }
  func.func @transform_7(%arg0: i32) -> (i32, i32) {
    %c0_i32 = arith.constant 0 : i32
    %c0_i32_0 = arith.constant 0 : i32
    %c0_i32_1 = arith.constant 0 : i32
    return %c0_i32, %c0_i32_0 : i32, i32
  }
  func.func @transform_8(%arg0: i32) -> (i32, i32) {
    %c0_i32 = arith.constant 0 : i32
    %c0_i32_0 = arith.constant 0 : i32
    %c0_i32_1 = arith.constant 0 : i32
    return %c0_i32, %c0_i32_0 : i32, i32
  }
  func.func @transform_9(%arg0: i32) -> (i32, i32) {
    %c0_i32 = arith.constant 0 : i32
    %c0_i32_0 = arith.constant 0 : i32
    %c0_i32_1 = arith.constant 0 : i32
    return %c0_i32, %c0_i32_0 : i32, i32
  }
  func.func @transform_10(%arg0: i32) -> (i32, i32) {
    %c0_i32 = arith.constant 0 : i32
    %c0_i32_0 = arith.constant 0 : i32
    %c0_i32_1 = arith.constant 0 : i32
    return %c0_i32, %c0_i32_0 : i32, i32
  }
  func.func @transform_11(%arg0: i32) -> (i32, i32) {
    %c0_i32 = arith.constant 0 : i32
    %c0_i32_0 = arith.constant 0 : i32
    %c0_i32_1 = arith.constant 0 : i32
    return %c0_i32, %c0_i32_0 : i32, i32
  }
  func.func @transform_12(%arg0: i32) -> (i32, i32) {
    %c0_i32 = arith.constant 0 : i32
    %c0_i32_0 = arith.constant 0 : i32
    %c0_i32_1 = arith.constant 0 : i32
    return %c0_i32, %c0_i32_0 : i32, i32
  }
  func.func @transform_13(%arg0: i32) -> (i32, i32) {
    %c0_i32 = arith.constant 0 : i32
    %c0_i32_0 = arith.constant 0 : i32
    %c0_i32_1 = arith.constant 0 : i32
    return %c0_i32, %c0_i32_0 : i32, i32
  }
  func.func @transform_14(%arg0: i32) -> (i32, i32) {
    %c0_i32 = arith.constant 0 : i32
    %c0_i32_0 = arith.constant 0 : i32
    %c0_i32_1 = arith.constant 0 : i32
    return %c0_i32, %c0_i32_0 : i32, i32
  }
  func.func @transform_15(%arg0: i32) -> (i32, i32) {
    %c0_i32 = arith.constant 0 : i32
    %c0_i32_0 = arith.constant 0 : i32
    %c0_i32_1 = arith.constant 0 : i32
    return %c0_i32, %c0_i32_0 : i32, i32
  }
  func.func @transform_16(%arg0: i32) -> (i32, i32) {
    %c0_i32 = arith.constant 0 : i32
    %c0_i32_0 = arith.constant 0 : i32
    %c0_i32_1 = arith.constant 0 : i32
    return %c0_i32, %c0_i32_0 : i32, i32
  }
  func.func @transform_17(%arg0: i32) -> (i32, i32, i32) {
    %c0_i32 = arith.constant 0 : i32
    %c0_i32_0 = arith.constant 0 : i32
    %c0_i32_1 = arith.constant 0 : i32
    return %arg0, %c0_i32, %c0_i32_0 : i32, i32, i32
  }
}

module attributes {stable_mosaic.version = 11 : i64} {
  func.func @_resnet_kernel(%arg0: i32, %arg1: memref<1x16x32xf32, #tpu.memory_space<vmem>>, %arg2: memref<32x32xf32, #tpu.memory_space<vmem>>, %arg3: memref<1x32xf32, #tpu.memory_space<vmem>>, %arg4: memref<1x32xf32, #tpu.memory_space<vmem>>, %arg5: memref<32x32xbf16, #tpu.memory_space<vmem>>, %arg6: memref<32x32xbf16, #tpu.memory_space<vmem>>, %arg7: memref<32x32xbf16, #tpu.memory_space<vmem>>, %arg8: memref<1x32xf32, #tpu.memory_space<vmem>>, %arg9: memref<32x32xf32, #tpu.memory_space<vmem>>, %arg10: memref<1x32xf32, #tpu.memory_space<vmem>>, %arg11: memref<1x32xf32, #tpu.memory_space<vmem>>, %arg12: memref<32x32xbf16, #tpu.memory_space<vmem>>, %arg13: memref<32x32xbf16, #tpu.memory_space<vmem>>, %arg14: memref<32x32xbf16, #tpu.memory_space<vmem>>, %arg15: memref<1x32xf32, #tpu.memory_space<vmem>>, %arg16: memref<1x16x32xf32, #tpu.memory_space<vmem>>) attributes {dimension_semantics = [#tpu.dimension_semantics<parallel>], iteration_bounds = array<i64: 2>, scalar_prefetch = 0 : i64, scratch_operands = 0 : i64, tpu.core_type = #tpu.core_type<tc>, window_params = [{transform_indices = @transform_0, window_bounds = array<i64: 1, 16, 32>}, {pipeline_mode = #tpu.pipeline_mode<synchronous>, transform_indices = @transform_1, window_bounds = array<i64: 32, 32>}, {pipeline_mode = #tpu.pipeline_mode<synchronous>, transform_indices = @transform_2, window_bounds = array<i64: 1, 32>}, {pipeline_mode = #tpu.pipeline_mode<synchronous>, transform_indices = @transform_3, window_bounds = array<i64: 1, 32>}, {pipeline_mode = #tpu.pipeline_mode<synchronous>, transform_indices = @transform_4, window_bounds = array<i64: 32, 32>}, {pipeline_mode = #tpu.pipeline_mode<synchronous>, transform_indices = @transform_5, window_bounds = array<i64: 32, 32>}, {pipeline_mode = #tpu.pipeline_mode<synchronous>, transform_indices = @transform_6, window_bounds = array<i64: 32, 32>}, {pipeline_mode = #tpu.pipeline_mode<synchronous>, transform_indices = @transform_7, window_bounds = array<i64: 1, 32>}, {pipeline_mode = #tpu.pipeline_mode<synchronous>, transform_indices = @transform_8, window_bounds = array<i64: 32, 32>}, {pipeline_mode = #tpu.pipeline_mode<synchronous>, transform_indices = @transform_9, window_bounds = array<i64: 1, 32>}, {pipeline_mode = #tpu.pipeline_mode<synchronous>, transform_indices = @transform_10, window_bounds = array<i64: 1, 32>}, {pipeline_mode = #tpu.pipeline_mode<synchronous>, transform_indices = @transform_11, window_bounds = array<i64: 32, 32>}, {pipeline_mode = #tpu.pipeline_mode<synchronous>, transform_indices = @transform_12, window_bounds = array<i64: 32, 32>}, {pipeline_mode = #tpu.pipeline_mode<synchronous>, transform_indices = @transform_13, window_bounds = array<i64: 32, 32>}, {pipeline_mode = #tpu.pipeline_mode<synchronous>, transform_indices = @transform_14, window_bounds = array<i64: 1, 32>}, {transform_indices = @transform_15, window_bounds = array<i64: 1, 16, 32>}]} {
    %c0 = arith.constant 0 : index
    %c0_0 = arith.constant 0 : index
    %c0_1 = arith.constant 0 : index
    %0 = vector.load %arg1[%c0, %c0_0, %c0_1] : memref<1x16x32xf32, #tpu.memory_space<vmem>>, vector<1x16x32xf32>
    %1 = vector.shape_cast %0 : vector<1x16x32xf32> to vector<16x32xf32>
    %c0_2 = arith.constant 0 : index
    %c0_3 = arith.constant 0 : index
    %2 = vector.load %arg2[%c0_2, %c0_3] : memref<32x32xf32, #tpu.memory_space<vmem>>, vector<32x32xf32>
    %c0_4 = arith.constant 0 : index
    %c0_5 = arith.constant 0 : index
    %3 = vector.load %arg3[%c0_4, %c0_5] : memref<1x32xf32, #tpu.memory_space<vmem>>, vector<1x32xf32>
    %c0_6 = arith.constant 0 : index
    %c0_7 = arith.constant 0 : index
    %4 = vector.load %arg4[%c0_6, %c0_7] : memref<1x32xf32, #tpu.memory_space<vmem>>, vector<1x32xf32>
    %cst = arith.constant dense<0.000000e+00> : vector<32xf32>
    %5 = vector.multi_reduction <add>, %1, %cst [0] : vector<16x32xf32> to vector<32xf32>
    %6 = vector.shape_cast %5 : vector<32xf32> to vector<1x32xf32>
    %cst_8 = arith.constant dense<0.000000e+00> : vector<1x32xf32>
    %7 = tpu.matmul %6, %2, %cst_8 {dimension_numbers = #tpu.dot_dimension_numbers<[1], [0], [0], [1], [0, 0, 1, 1], [], []>} : vector<1x32xf32>, vector<32x32xf32>, vector<1x32xf32> -> vector<1x32xf32>
    %cst_9 = arith.constant 1.600000e+01 : f32
    %8 = vector.broadcast %cst_9 : f32 to vector<1x32xf32>
    %9 = arith.divf %7, %8 : vector<1x32xf32>
    %10 = vector.broadcast %9 : vector<1x32xf32> to vector<16x32xf32>
    %11 = arith.subf %1, %10 : vector<16x32xf32>
    %12 = arith.mulf %11, %11 : vector<16x32xf32>
    %cst_10 = arith.constant dense<0.000000e+00> : vector<32xf32>
    %13 = vector.multi_reduction <add>, %12, %cst_10 [0] : vector<16x32xf32> to vector<32xf32>
    %14 = vector.shape_cast %13 : vector<32xf32> to vector<1x32xf32>
    %cst_11 = arith.constant dense<0.000000e+00> : vector<1x32xf32>
    %15 = tpu.matmul %14, %2, %cst_11 {dimension_numbers = #tpu.dot_dimension_numbers<[1], [0], [0], [1], [0, 0, 1, 1], [], []>} : vector<1x32xf32>, vector<32x32xf32>, vector<1x32xf32> -> vector<1x32xf32>
    %cst_12 = arith.constant 1.600000e+01 : f32
    %16 = vector.broadcast %cst_12 : f32 to vector<1x32xf32>
    %17 = arith.divf %15, %16 : vector<1x32xf32>
    %cst_13 = arith.constant 9.99999997E-7 : f32
    %18 = vector.broadcast %cst_13 : f32 to vector<1x32xf32>
    %19 = arith.addf %17, %18 : vector<1x32xf32>
    %20 = math.rsqrt %19 : vector<1x32xf32>
    %21 = arith.mulf %20, %3 : vector<1x32xf32>
    %22 = vector.broadcast %21 : vector<1x32xf32> to vector<16x32xf32>
    %23 = arith.mulf %11, %22 : vector<16x32xf32>
    %24 = vector.broadcast %4 : vector<1x32xf32> to vector<16x32xf32>
    %25 = arith.addf %23, %24 : vector<16x32xf32>
    %cst_14 = arith.constant 0.000000e+00 : f32
    %26 = vector.broadcast %cst_14 : f32 to vector<16x32xf32>
    %27 = arith.subf %26, %25 : vector<16x32xf32>
    %28 = math.exp %27 : vector<16x32xf32>
    %cst_15 = arith.constant 1.000000e+00 : f32
    %29 = vector.broadcast %cst_15 : f32 to vector<16x32xf32>
    %30 = arith.addf %29, %28 : vector<16x32xf32>
    %cst_16 = arith.constant 1.000000e+00 : f32
    %31 = vector.broadcast %cst_16 : f32 to vector<16x32xf32>
    %32 = arith.divf %31, %30 : vector<16x32xf32>
    %33 = arith.mulf %25, %32 : vector<16x32xf32>
    %34 = arith.truncf %33 : vector<16x32xf32> to vector<16x32xbf16>
    %c0_17 = arith.constant 0 : index
    %c0_18 = arith.constant 0 : index
    %35 = vector.load %arg5[%c0_17, %c0_18] : memref<32x32xbf16, #tpu.memory_space<vmem>>, vector<32x32xbf16>
    %cst_19 = arith.constant dense<0.000000e+00> : vector<16x32xf32>
    %36 = tpu.matmul %34, %35, %cst_19 {dimension_numbers = #tpu.dot_dimension_numbers<[1], [0], [0], [1], [0, 0, 1, 1], [], []>} : vector<16x32xbf16>, vector<32x32xbf16>, vector<16x32xf32> -> vector<16x32xf32>
    %c0_20 = arith.constant 0 : index
    %c0_21 = arith.constant 0 : index
    %37 = vector.load %arg6[%c0_20, %c0_21] : memref<32x32xbf16, #tpu.memory_space<vmem>>, vector<32x32xbf16>
    %cst_22 = arith.constant dense<0.000000e+00> : vector<16x32xf32>
    %38 = tpu.matmul %34, %37, %cst_22 {dimension_numbers = #tpu.dot_dimension_numbers<[1], [0], [0], [1], [0, 0, 1, 1], [], []>} : vector<16x32xbf16>, vector<32x32xbf16>, vector<16x32xf32> -> vector<16x32xf32>
    %c0_23 = arith.constant 0 : index
    %c0_24 = arith.constant 0 : index
    %39 = vector.load %arg7[%c0_23, %c0_24] : memref<32x32xbf16, #tpu.memory_space<vmem>>, vector<32x32xbf16>
    %cst_25 = arith.constant dense<0.000000e+00> : vector<16x32xf32>
    %40 = tpu.matmul %34, %39, %cst_25 {dimension_numbers = #tpu.dot_dimension_numbers<[1], [0], [0], [1], [0, 0, 1, 1], [], []>} : vector<16x32xbf16>, vector<32x32xbf16>, vector<16x32xf32> -> vector<16x32xf32>
    %41 = tpu.iota {dimensions = array<i32: 0>} : vector<16x32xi32>
    %c0_i32 = arith.constant 0 : i32
    %42 = vector.broadcast %c0_i32 : i32 to vector<16x32xi32>
    %43 = arith.cmpi sgt, %41, %42 : vector<16x32xi32>
    %c1_i32 = arith.constant 1 : i32
    %44 = tpu.dynamic_rotate %36 by %c1_i32 dim 0 : vector<16x32xf32>, i32 -> vector<16x32xf32>
    %cst_26 = arith.constant 0.000000e+00 : f32
    %45 = vector.broadcast %cst_26 : f32 to vector<16x32xf32>
    %46 = arith.select %43, %44, %45 : vector<16x32xi1>, vector<16x32xf32>
    %47 = arith.addf %46, %38 : vector<16x32xf32>
    %48 = tpu.iota {dimensions = array<i32: 0>} : vector<16x32xi32>
    %c15_i32 = arith.constant 15 : i32
    %49 = vector.broadcast %c15_i32 : i32 to vector<16x32xi32>
    %50 = arith.cmpi slt, %48, %49 : vector<16x32xi32>
    %c15_i32_27 = arith.constant 15 : i32
    %51 = tpu.dynamic_rotate %40 by %c15_i32_27 dim 0 : vector<16x32xf32>, i32 -> vector<16x32xf32>
    %cst_28 = arith.constant 0.000000e+00 : f32
    %52 = vector.broadcast %cst_28 : f32 to vector<16x32xf32>
    %53 = arith.select %50, %51, %52 : vector<16x32xi1>, vector<16x32xf32>
    %54 = arith.addf %47, %53 : vector<16x32xf32>
    %c0_29 = arith.constant 0 : index
    %c0_30 = arith.constant 0 : index
    %55 = vector.load %arg8[%c0_29, %c0_30] : memref<1x32xf32, #tpu.memory_space<vmem>>, vector<1x32xf32>
    %56 = vector.broadcast %55 : vector<1x32xf32> to vector<16x32xf32>
    %57 = arith.addf %54, %56 : vector<16x32xf32>
    %c0_31 = arith.constant 0 : index
    %c0_32 = arith.constant 0 : index
    %58 = vector.load %arg9[%c0_31, %c0_32] : memref<32x32xf32, #tpu.memory_space<vmem>>, vector<32x32xf32>
    %c0_33 = arith.constant 0 : index
    %c0_34 = arith.constant 0 : index
    %59 = vector.load %arg10[%c0_33, %c0_34] : memref<1x32xf32, #tpu.memory_space<vmem>>, vector<1x32xf32>
    %c0_35 = arith.constant 0 : index
    %c0_36 = arith.constant 0 : index
    %60 = vector.load %arg11[%c0_35, %c0_36] : memref<1x32xf32, #tpu.memory_space<vmem>>, vector<1x32xf32>
    %cst_37 = arith.constant dense<0.000000e+00> : vector<32xf32>
    %61 = vector.multi_reduction <add>, %57, %cst_37 [0] : vector<16x32xf32> to vector<32xf32>
    %62 = vector.shape_cast %61 : vector<32xf32> to vector<1x32xf32>
    %cst_38 = arith.constant dense<0.000000e+00> : vector<1x32xf32>
    %63 = tpu.matmul %62, %58, %cst_38 {dimension_numbers = #tpu.dot_dimension_numbers<[1], [0], [0], [1], [0, 0, 1, 1], [], []>} : vector<1x32xf32>, vector<32x32xf32>, vector<1x32xf32> -> vector<1x32xf32>
    %cst_39 = arith.constant 1.600000e+01 : f32
    %64 = vector.broadcast %cst_39 : f32 to vector<1x32xf32>
    %65 = arith.divf %63, %64 : vector<1x32xf32>
    %66 = vector.broadcast %65 : vector<1x32xf32> to vector<16x32xf32>
    %67 = arith.subf %57, %66 : vector<16x32xf32>
    %68 = arith.mulf %67, %67 : vector<16x32xf32>
    %cst_40 = arith.constant dense<0.000000e+00> : vector<32xf32>
    %69 = vector.multi_reduction <add>, %68, %cst_40 [0] : vector<16x32xf32> to vector<32xf32>
    %70 = vector.shape_cast %69 : vector<32xf32> to vector<1x32xf32>
    %cst_41 = arith.constant dense<0.000000e+00> : vector<1x32xf32>
    %71 = tpu.matmul %70, %58, %cst_41 {dimension_numbers = #tpu.dot_dimension_numbers<[1], [0], [0], [1], [0, 0, 1, 1], [], []>} : vector<1x32xf32>, vector<32x32xf32>, vector<1x32xf32> -> vector<1x32xf32>
    %cst_42 = arith.constant 1.600000e+01 : f32
    %72 = vector.broadcast %cst_42 : f32 to vector<1x32xf32>
    %73 = arith.divf %71, %72 : vector<1x32xf32>
    %cst_43 = arith.constant 9.99999997E-7 : f32
    %74 = vector.broadcast %cst_43 : f32 to vector<1x32xf32>
    %75 = arith.addf %73, %74 : vector<1x32xf32>
    %76 = math.rsqrt %75 : vector<1x32xf32>
    %77 = arith.mulf %76, %59 : vector<1x32xf32>
    %78 = vector.broadcast %77 : vector<1x32xf32> to vector<16x32xf32>
    %79 = arith.mulf %67, %78 : vector<16x32xf32>
    %80 = vector.broadcast %60 : vector<1x32xf32> to vector<16x32xf32>
    %81 = arith.addf %79, %80 : vector<16x32xf32>
    %cst_44 = arith.constant 0.000000e+00 : f32
    %82 = vector.broadcast %cst_44 : f32 to vector<16x32xf32>
    %83 = arith.subf %82, %81 : vector<16x32xf32>
    %84 = math.exp %83 : vector<16x32xf32>
    %cst_45 = arith.constant 1.000000e+00 : f32
    %85 = vector.broadcast %cst_45 : f32 to vector<16x32xf32>
    %86 = arith.addf %85, %84 : vector<16x32xf32>
    %cst_46 = arith.constant 1.000000e+00 : f32
    %87 = vector.broadcast %cst_46 : f32 to vector<16x32xf32>
    %88 = arith.divf %87, %86 : vector<16x32xf32>
    %89 = arith.mulf %81, %88 : vector<16x32xf32>
    %90 = arith.truncf %89 : vector<16x32xf32> to vector<16x32xbf16>
    %c0_47 = arith.constant 0 : index
    %c0_48 = arith.constant 0 : index
    %91 = vector.load %arg12[%c0_47, %c0_48] : memref<32x32xbf16, #tpu.memory_space<vmem>>, vector<32x32xbf16>
    %cst_49 = arith.constant dense<0.000000e+00> : vector<16x32xf32>
    %92 = tpu.matmul %90, %91, %cst_49 {dimension_numbers = #tpu.dot_dimension_numbers<[1], [0], [0], [1], [0, 0, 1, 1], [], []>} : vector<16x32xbf16>, vector<32x32xbf16>, vector<16x32xf32> -> vector<16x32xf32>
    %c0_50 = arith.constant 0 : index
    %c0_51 = arith.constant 0 : index
    %93 = vector.load %arg13[%c0_50, %c0_51] : memref<32x32xbf16, #tpu.memory_space<vmem>>, vector<32x32xbf16>
    %cst_52 = arith.constant dense<0.000000e+00> : vector<16x32xf32>
    %94 = tpu.matmul %90, %93, %cst_52 {dimension_numbers = #tpu.dot_dimension_numbers<[1], [0], [0], [1], [0, 0, 1, 1], [], []>} : vector<16x32xbf16>, vector<32x32xbf16>, vector<16x32xf32> -> vector<16x32xf32>
    %c0_53 = arith.constant 0 : index
    %c0_54 = arith.constant 0 : index
    %95 = vector.load %arg14[%c0_53, %c0_54] : memref<32x32xbf16, #tpu.memory_space<vmem>>, vector<32x32xbf16>
    %cst_55 = arith.constant dense<0.000000e+00> : vector<16x32xf32>
    %96 = tpu.matmul %90, %95, %cst_55 {dimension_numbers = #tpu.dot_dimension_numbers<[1], [0], [0], [1], [0, 0, 1, 1], [], []>} : vector<16x32xbf16>, vector<32x32xbf16>, vector<16x32xf32> -> vector<16x32xf32>
    %97 = tpu.iota {dimensions = array<i32: 0>} : vector<16x32xi32>
    %c0_i32_56 = arith.constant 0 : i32
    %98 = vector.broadcast %c0_i32_56 : i32 to vector<16x32xi32>
    %99 = arith.cmpi sgt, %97, %98 : vector<16x32xi32>
    %c1_i32_57 = arith.constant 1 : i32
    %100 = tpu.dynamic_rotate %92 by %c1_i32_57 dim 0 : vector<16x32xf32>, i32 -> vector<16x32xf32>
    %cst_58 = arith.constant 0.000000e+00 : f32
    %101 = vector.broadcast %cst_58 : f32 to vector<16x32xf32>
    %102 = arith.select %99, %100, %101 : vector<16x32xi1>, vector<16x32xf32>
    %103 = arith.addf %102, %94 : vector<16x32xf32>
    %104 = tpu.iota {dimensions = array<i32: 0>} : vector<16x32xi32>
    %c15_i32_59 = arith.constant 15 : i32
    %105 = vector.broadcast %c15_i32_59 : i32 to vector<16x32xi32>
    %106 = arith.cmpi slt, %104, %105 : vector<16x32xi32>
    %c15_i32_60 = arith.constant 15 : i32
    %107 = tpu.dynamic_rotate %96 by %c15_i32_60 dim 0 : vector<16x32xf32>, i32 -> vector<16x32xf32>
    %cst_61 = arith.constant 0.000000e+00 : f32
    %108 = vector.broadcast %cst_61 : f32 to vector<16x32xf32>
    %109 = arith.select %106, %107, %108 : vector<16x32xi1>, vector<16x32xf32>
    %110 = arith.addf %103, %109 : vector<16x32xf32>
    %c0_62 = arith.constant 0 : index
    %c0_63 = arith.constant 0 : index
    %111 = vector.load %arg15[%c0_62, %c0_63] : memref<1x32xf32, #tpu.memory_space<vmem>>, vector<1x32xf32>
    %112 = vector.broadcast %111 : vector<1x32xf32> to vector<16x32xf32>
    %113 = arith.addf %110, %112 : vector<16x32xf32>
    %c0_64 = arith.constant 0 : index
    %c0_65 = arith.constant 0 : index
    %c0_66 = arith.constant 0 : index
    %114 = vector.load %arg1[%c0_64, %c0_65, %c0_66] : memref<1x16x32xf32, #tpu.memory_space<vmem>>, vector<1x16x32xf32>
    %115 = vector.shape_cast %114 : vector<1x16x32xf32> to vector<16x32xf32>
    %116 = arith.addf %115, %113 : vector<16x32xf32>
    %c0_67 = arith.constant 0 : index
    %c0_68 = arith.constant 0 : index
    %c0_69 = arith.constant 0 : index
    %117 = vector.load %arg16[%c0_67, %c0_68, %c0_69] : memref<1x16x32xf32, #tpu.memory_space<vmem>>, vector<1x16x32xf32>
    %118 = vector.shape_cast %117 : vector<1x16x32xf32> to vector<16x32xf32>
    %119 = vector.shape_cast %116 : vector<16x32xf32> to vector<1x16x32xf32>
    tpu.vector_store %arg16[%c0_67, %c0_68, %c0_69], %119 {strides = array<i32>} : memref<1x16x32xf32, #tpu.memory_space<vmem>>, vector<1x16x32xf32>,
    return
  }
  func.func @transform_0(%arg0: i32) -> (i32, i32, i32) {
    %c0_i32 = arith.constant 0 : i32
    %c0_i32_0 = arith.constant 0 : i32
    %c0_i32_1 = arith.constant 0 : i32
    return %arg0, %c0_i32, %c0_i32_0 : i32, i32, i32
  }
  func.func @transform_1(%arg0: i32) -> (i32, i32) {
    %c0_i32 = arith.constant 0 : i32
    %c0_i32_0 = arith.constant 0 : i32
    %c0_i32_1 = arith.constant 0 : i32
    return %c0_i32, %c0_i32_0 : i32, i32
  }
  func.func @transform_2(%arg0: i32) -> (i32, i32) {
    %c0_i32 = arith.constant 0 : i32
    %c0_i32_0 = arith.constant 0 : i32
    %c0_i32_1 = arith.constant 0 : i32
    return %c0_i32, %c0_i32_0 : i32, i32
  }
  func.func @transform_3(%arg0: i32) -> (i32, i32) {
    %c0_i32 = arith.constant 0 : i32
    %c0_i32_0 = arith.constant 0 : i32
    %c0_i32_1 = arith.constant 0 : i32
    return %c0_i32, %c0_i32_0 : i32, i32
  }
  func.func @transform_4(%arg0: i32) -> (i32, i32) {
    %c0_i32 = arith.constant 0 : i32
    %c0_i32_0 = arith.constant 0 : i32
    %c0_i32_1 = arith.constant 0 : i32
    return %c0_i32, %c0_i32_0 : i32, i32
  }
  func.func @transform_5(%arg0: i32) -> (i32, i32) {
    %c0_i32 = arith.constant 0 : i32
    %c0_i32_0 = arith.constant 0 : i32
    %c0_i32_1 = arith.constant 0 : i32
    return %c0_i32, %c0_i32_0 : i32, i32
  }
  func.func @transform_6(%arg0: i32) -> (i32, i32) {
    %c0_i32 = arith.constant 0 : i32
    %c0_i32_0 = arith.constant 0 : i32
    %c0_i32_1 = arith.constant 0 : i32
    return %c0_i32, %c0_i32_0 : i32, i32
  }
  func.func @transform_7(%arg0: i32) -> (i32, i32) {
    %c0_i32 = arith.constant 0 : i32
    %c0_i32_0 = arith.constant 0 : i32
    %c0_i32_1 = arith.constant 0 : i32
    return %c0_i32, %c0_i32_0 : i32, i32
  }
  func.func @transform_8(%arg0: i32) -> (i32, i32) {
    %c0_i32 = arith.constant 0 : i32
    %c0_i32_0 = arith.constant 0 : i32
    %c0_i32_1 = arith.constant 0 : i32
    return %c0_i32, %c0_i32_0 : i32, i32
  }
  func.func @transform_9(%arg0: i32) -> (i32, i32) {
    %c0_i32 = arith.constant 0 : i32
    %c0_i32_0 = arith.constant 0 : i32
    %c0_i32_1 = arith.constant 0 : i32
    return %c0_i32, %c0_i32_0 : i32, i32
  }
  func.func @transform_10(%arg0: i32) -> (i32, i32) {
    %c0_i32 = arith.constant 0 : i32
    %c0_i32_0 = arith.constant 0 : i32
    %c0_i32_1 = arith.constant 0 : i32
    return %c0_i32, %c0_i32_0 : i32, i32
  }
  func.func @transform_11(%arg0: i32) -> (i32, i32) {
    %c0_i32 = arith.constant 0 : i32
    %c0_i32_0 = arith.constant 0 : i32
    %c0_i32_1 = arith.constant 0 : i32
    return %c0_i32, %c0_i32_0 : i32, i32
  }
  func.func @transform_12(%arg0: i32) -> (i32, i32) {
    %c0_i32 = arith.constant 0 : i32
    %c0_i32_0 = arith.constant 0 : i32
    %c0_i32_1 = arith.constant 0 : i32
    return %c0_i32, %c0_i32_0 : i32, i32
  }
  func.func @transform_13(%arg0: i32) -> (i32, i32) {
    %c0_i32 = arith.constant 0 : i32
    %c0_i32_0 = arith.constant 0 : i32
    %c0_i32_1 = arith.constant 0 : i32
    return %c0_i32, %c0_i32_0 : i32, i32
  }
  func.func @transform_14(%arg0: i32) -> (i32, i32) {
    %c0_i32 = arith.constant 0 : i32
    %c0_i32_0 = arith.constant 0 : i32
    %c0_i32_1 = arith.constant 0 : i32
    return %c0_i32, %c0_i32_0 : i32, i32
  }
  func.func @transform_15(%arg0: i32) -> (i32, i32, i32) {
    %c0_i32 = arith.constant 0 : i32
    %c0_i32_0 = arith.constant 0 : i32
    %c0_i32_1 = arith.constant 0 : i32
    return %arg0, %c0_i32, %c0_i32_0 : i32, i32, i32
  }
}

module attributes {stable_mosaic.version = 11 : i64} {
  func.func @_gn_swish_conv3_kernel(%arg0: i32, %arg1: memref<1x16x32xf32, #tpu.memory_space<vmem>>, %arg2: memref<32x32xf32, #tpu.memory_space<vmem>>, %arg3: memref<1x32xf32, #tpu.memory_space<vmem>>, %arg4: memref<1x32xf32, #tpu.memory_space<vmem>>, %arg5: memref<32x128xbf16, #tpu.memory_space<vmem>>, %arg6: memref<32x128xbf16, #tpu.memory_space<vmem>>, %arg7: memref<32x128xbf16, #tpu.memory_space<vmem>>, %arg8: memref<1x128xf32, #tpu.memory_space<vmem>>, %arg9: memref<1x16x128xf32, #tpu.memory_space<vmem>>) attributes {dimension_semantics = [#tpu.dimension_semantics<parallel>], iteration_bounds = array<i64: 2>, scalar_prefetch = 0 : i64, scratch_operands = 0 : i64, tpu.core_type = #tpu.core_type<tc>, window_params = [{transform_indices = @transform_0, window_bounds = array<i64: 1, 16, 32>}, {pipeline_mode = #tpu.pipeline_mode<synchronous>, transform_indices = @transform_1, window_bounds = array<i64: 32, 32>}, {pipeline_mode = #tpu.pipeline_mode<synchronous>, transform_indices = @transform_2, window_bounds = array<i64: 1, 32>}, {pipeline_mode = #tpu.pipeline_mode<synchronous>, transform_indices = @transform_3, window_bounds = array<i64: 1, 32>}, {pipeline_mode = #tpu.pipeline_mode<synchronous>, transform_indices = @transform_4, window_bounds = array<i64: 32, 128>}, {pipeline_mode = #tpu.pipeline_mode<synchronous>, transform_indices = @transform_5, window_bounds = array<i64: 32, 128>}, {pipeline_mode = #tpu.pipeline_mode<synchronous>, transform_indices = @transform_6, window_bounds = array<i64: 32, 128>}, {pipeline_mode = #tpu.pipeline_mode<synchronous>, transform_indices = @transform_7, window_bounds = array<i64: 1, 128>}, {transform_indices = @transform_8, window_bounds = array<i64: 1, 16, 128>}]} {
    %c0 = arith.constant 0 : index
    %c0_0 = arith.constant 0 : index
    %c0_1 = arith.constant 0 : index
    %0 = vector.load %arg1[%c0, %c0_0, %c0_1] : memref<1x16x32xf32, #tpu.memory_space<vmem>>, vector<1x16x32xf32>
    %1 = vector.shape_cast %0 : vector<1x16x32xf32> to vector<16x32xf32>
    %c0_2 = arith.constant 0 : index
    %c0_3 = arith.constant 0 : index
    %2 = vector.load %arg2[%c0_2, %c0_3] : memref<32x32xf32, #tpu.memory_space<vmem>>, vector<32x32xf32>
    %c0_4 = arith.constant 0 : index
    %c0_5 = arith.constant 0 : index
    %3 = vector.load %arg3[%c0_4, %c0_5] : memref<1x32xf32, #tpu.memory_space<vmem>>, vector<1x32xf32>
    %c0_6 = arith.constant 0 : index
    %c0_7 = arith.constant 0 : index
    %4 = vector.load %arg4[%c0_6, %c0_7] : memref<1x32xf32, #tpu.memory_space<vmem>>, vector<1x32xf32>
    %cst = arith.constant dense<0.000000e+00> : vector<32xf32>
    %5 = vector.multi_reduction <add>, %1, %cst [0] : vector<16x32xf32> to vector<32xf32>
    %6 = vector.shape_cast %5 : vector<32xf32> to vector<1x32xf32>
    %cst_8 = arith.constant dense<0.000000e+00> : vector<1x32xf32>
    %7 = tpu.matmul %6, %2, %cst_8 {dimension_numbers = #tpu.dot_dimension_numbers<[1], [0], [0], [1], [0, 0, 1, 1], [], []>} : vector<1x32xf32>, vector<32x32xf32>, vector<1x32xf32> -> vector<1x32xf32>
    %cst_9 = arith.constant 1.600000e+01 : f32
    %8 = vector.broadcast %cst_9 : f32 to vector<1x32xf32>
    %9 = arith.divf %7, %8 : vector<1x32xf32>
    %10 = vector.broadcast %9 : vector<1x32xf32> to vector<16x32xf32>
    %11 = arith.subf %1, %10 : vector<16x32xf32>
    %12 = arith.mulf %11, %11 : vector<16x32xf32>
    %cst_10 = arith.constant dense<0.000000e+00> : vector<32xf32>
    %13 = vector.multi_reduction <add>, %12, %cst_10 [0] : vector<16x32xf32> to vector<32xf32>
    %14 = vector.shape_cast %13 : vector<32xf32> to vector<1x32xf32>
    %cst_11 = arith.constant dense<0.000000e+00> : vector<1x32xf32>
    %15 = tpu.matmul %14, %2, %cst_11 {dimension_numbers = #tpu.dot_dimension_numbers<[1], [0], [0], [1], [0, 0, 1, 1], [], []>} : vector<1x32xf32>, vector<32x32xf32>, vector<1x32xf32> -> vector<1x32xf32>
    %cst_12 = arith.constant 1.600000e+01 : f32
    %16 = vector.broadcast %cst_12 : f32 to vector<1x32xf32>
    %17 = arith.divf %15, %16 : vector<1x32xf32>
    %cst_13 = arith.constant 9.99999997E-7 : f32
    %18 = vector.broadcast %cst_13 : f32 to vector<1x32xf32>
    %19 = arith.addf %17, %18 : vector<1x32xf32>
    %20 = math.rsqrt %19 : vector<1x32xf32>
    %21 = arith.mulf %20, %3 : vector<1x32xf32>
    %22 = vector.broadcast %21 : vector<1x32xf32> to vector<16x32xf32>
    %23 = arith.mulf %11, %22 : vector<16x32xf32>
    %24 = vector.broadcast %4 : vector<1x32xf32> to vector<16x32xf32>
    %25 = arith.addf %23, %24 : vector<16x32xf32>
    %cst_14 = arith.constant 0.000000e+00 : f32
    %26 = vector.broadcast %cst_14 : f32 to vector<16x32xf32>
    %27 = arith.subf %26, %25 : vector<16x32xf32>
    %28 = math.exp %27 : vector<16x32xf32>
    %cst_15 = arith.constant 1.000000e+00 : f32
    %29 = vector.broadcast %cst_15 : f32 to vector<16x32xf32>
    %30 = arith.addf %29, %28 : vector<16x32xf32>
    %cst_16 = arith.constant 1.000000e+00 : f32
    %31 = vector.broadcast %cst_16 : f32 to vector<16x32xf32>
    %32 = arith.divf %31, %30 : vector<16x32xf32>
    %33 = arith.mulf %25, %32 : vector<16x32xf32>
    %34 = arith.truncf %33 : vector<16x32xf32> to vector<16x32xbf16>
    %c0_17 = arith.constant 0 : index
    %c0_18 = arith.constant 0 : index
    %35 = vector.load %arg5[%c0_17, %c0_18] : memref<32x128xbf16, #tpu.memory_space<vmem>>, vector<32x128xbf16>
    %cst_19 = arith.constant dense<0.000000e+00> : vector<16x128xf32>
    %36 = tpu.matmul %34, %35, %cst_19 {dimension_numbers = #tpu.dot_dimension_numbers<[1], [0], [0], [1], [0, 0, 1, 1], [], []>} : vector<16x32xbf16>, vector<32x128xbf16>, vector<16x128xf32> -> vector<16x128xf32>
    %c0_20 = arith.constant 0 : index
    %c0_21 = arith.constant 0 : index
    %37 = vector.load %arg6[%c0_20, %c0_21] : memref<32x128xbf16, #tpu.memory_space<vmem>>, vector<32x128xbf16>
    %cst_22 = arith.constant dense<0.000000e+00> : vector<16x128xf32>
    %38 = tpu.matmul %34, %37, %cst_22 {dimension_numbers = #tpu.dot_dimension_numbers<[1], [0], [0], [1], [0, 0, 1, 1], [], []>} : vector<16x32xbf16>, vector<32x128xbf16>, vector<16x128xf32> -> vector<16x128xf32>
    %c0_23 = arith.constant 0 : index
    %c0_24 = arith.constant 0 : index
    %39 = vector.load %arg7[%c0_23, %c0_24] : memref<32x128xbf16, #tpu.memory_space<vmem>>, vector<32x128xbf16>
    %cst_25 = arith.constant dense<0.000000e+00> : vector<16x128xf32>
    %40 = tpu.matmul %34, %39, %cst_25 {dimension_numbers = #tpu.dot_dimension_numbers<[1], [0], [0], [1], [0, 0, 1, 1], [], []>} : vector<16x32xbf16>, vector<32x128xbf16>, vector<16x128xf32> -> vector<16x128xf32>
    %41 = tpu.iota {dimensions = array<i32: 0>} : vector<16x128xi32>
    %c0_i32 = arith.constant 0 : i32
    %42 = vector.broadcast %c0_i32 : i32 to vector<16x128xi32>
    %43 = arith.cmpi sgt, %41, %42 : vector<16x128xi32>
    %c1_i32 = arith.constant 1 : i32
    %44 = tpu.dynamic_rotate %36 by %c1_i32 dim 0 : vector<16x128xf32>, i32 -> vector<16x128xf32>
    %cst_26 = arith.constant 0.000000e+00 : f32
    %45 = vector.broadcast %cst_26 : f32 to vector<16x128xf32>
    %46 = arith.select %43, %44, %45 : vector<16x128xi1>, vector<16x128xf32>
    %47 = arith.addf %46, %38 : vector<16x128xf32>
    %48 = tpu.iota {dimensions = array<i32: 0>} : vector<16x128xi32>
    %c15_i32 = arith.constant 15 : i32
    %49 = vector.broadcast %c15_i32 : i32 to vector<16x128xi32>
    %50 = arith.cmpi slt, %48, %49 : vector<16x128xi32>
    %c15_i32_27 = arith.constant 15 : i32
    %51 = tpu.dynamic_rotate %40 by %c15_i32_27 dim 0 : vector<16x128xf32>, i32 -> vector<16x128xf32>
    %cst_28 = arith.constant 0.000000e+00 : f32
    %52 = vector.broadcast %cst_28 : f32 to vector<16x128xf32>
    %53 = arith.select %50, %51, %52 : vector<16x128xi1>, vector<16x128xf32>
    %54 = arith.addf %47, %53 : vector<16x128xf32>
    %c0_29 = arith.constant 0 : index
    %c0_30 = arith.constant 0 : index
    %55 = vector.load %arg8[%c0_29, %c0_30] : memref<1x128xf32, #tpu.memory_space<vmem>>, vector<1x128xf32>
    %56 = vector.broadcast %55 : vector<1x128xf32> to vector<16x128xf32>
    %57 = arith.addf %54, %56 : vector<16x128xf32>
    %c0_31 = arith.constant 0 : index
    %c0_32 = arith.constant 0 : index
    %c0_33 = arith.constant 0 : index
    %58 = vector.load %arg9[%c0_31, %c0_32, %c0_33] : memref<1x16x128xf32, #tpu.memory_space<vmem>>, vector<1x16x128xf32>
    %59 = vector.shape_cast %58 : vector<1x16x128xf32> to vector<16x128xf32>
    %60 = vector.shape_cast %57 : vector<16x128xf32> to vector<1x16x128xf32>
    tpu.vector_store %arg9[%c0_31, %c0_32, %c0_33], %60 {strides = array<i32>} : memref<1x16x128xf32, #tpu.memory_space<vmem>>, vector<1x16x128xf32>,
    return
  }
  func.func @transform_0(%arg0: i32) -> (i32, i32, i32) {
    %c0_i32 = arith.constant 0 : i32
    %c0_i32_0 = arith.constant 0 : i32
    %c0_i32_1 = arith.constant 0 : i32
    return %arg0, %c0_i32, %c0_i32_0 : i32, i32, i32
  }
  func.func @transform_1(%arg0: i32) -> (i32, i32) {
    %c0_i32 = arith.constant 0 : i32
    %c0_i32_0 = arith.constant 0 : i32
    %c0_i32_1 = arith.constant 0 : i32
    return %c0_i32, %c0_i32_0 : i32, i32
  }
  func.func @transform_2(%arg0: i32) -> (i32, i32) {
    %c0_i32 = arith.constant 0 : i32
    %c0_i32_0 = arith.constant 0 : i32
    %c0_i32_1 = arith.constant 0 : i32
    return %c0_i32, %c0_i32_0 : i32, i32
  }
  func.func @transform_3(%arg0: i32) -> (i32, i32) {
    %c0_i32 = arith.constant 0 : i32
    %c0_i32_0 = arith.constant 0 : i32
    %c0_i32_1 = arith.constant 0 : i32
    return %c0_i32, %c0_i32_0 : i32, i32
  }
  func.func @transform_4(%arg0: i32) -> (i32, i32) {
    %c0_i32 = arith.constant 0 : i32
    %c0_i32_0 = arith.constant 0 : i32
    %c0_i32_1 = arith.constant 0 : i32
    return %c0_i32, %c0_i32_0 : i32, i32
  }
  func.func @transform_5(%arg0: i32) -> (i32, i32) {
    %c0_i32 = arith.constant 0 : i32
    %c0_i32_0 = arith.constant 0 : i32
    %c0_i32_1 = arith.constant 0 : i32
    return %c0_i32, %c0_i32_0 : i32, i32
  }
  func.func @transform_6(%arg0: i32) -> (i32, i32) {
    %c0_i32 = arith.constant 0 : i32
    %c0_i32_0 = arith.constant 0 : i32
    %c0_i32_1 = arith.constant 0 : i32
    return %c0_i32, %c0_i32_0 : i32, i32
  }
  func.func @transform_7(%arg0: i32) -> (i32, i32) {
    %c0_i32 = arith.constant 0 : i32
    %c0_i32_0 = arith.constant 0 : i32
    %c0_i32_1 = arith.constant 0 : i32
    return %c0_i32, %c0_i32_0 : i32, i32
  }
  func.func @transform_8(%arg0: i32) -> (i32, i32, i32) {
    %c0_i32 = arith.constant 0 : i32
    %c0_i32_0 = arith.constant 0 : i32
    %c0_i32_1 = arith.constant 0 : i32
    return %arg0, %c0_i32, %c0_i32_0 : i32, i32, i32
  }
}

</mosaic_0001>

<bundles_post_ra>
// kernel: _lambda_.12
= control target key start
LH: loop header
LB: loop body
LE: loop exit
PB: predicated region body
PF: predicated region fallthrough
CT: control target
= control target key end

     0   :  { %10 = vsyncpa [#allocation3], 0  ;;  %s1169_s0 = inlined_call_operand.hbm [shape: f32[2,8,16], index: 0, kind: input, shape index: {}]   ;;  %s1170_s1 = inlined_call_operand.hbm [shape: bf16[16,64], index: 1, kind: input, shape index: {}]   ;;  %s1171_s2 = inlined_call_operand.hbm [shape: bf16[16,64], index: 2, kind: input, shape index: {}]   ;;  %s1172_s3 = inlined_call_operand.hbm [shape: bf16[16,64], index: 3, kind: input, shape index: {}]   ;;  %s1173_s4 = inlined_call_operand.hbm [shape: f32[1,64], index: 4, kind: input, shape index: {}]   ;;  %s1174_s5 = inlined_call_operand.vmem [shape: f32[2,8,64], index: 5, kind: output, shape index: {}]  }
   0x1   :  { %12 = vsyncpa [#allocation3 + $0x1], 0 }
   0x2   :  { %13 = vsyncpa [#allocation5], 0 }
   0x3   :  { %14 = vsyncpa [#allocation8], 0  ;;  %s931_s18 = smov 0   ;;  %s933_s19 = smov 0  }
   0x4   :  { %s935_s20 = smov 0   ;;  %s937_s21 = smov 0  }
   0x5 LB: > { %s892_s22 = smov [#allocation4]   ;;  %s952_s24 = sadd.s32 4294967295, %s890_s21   ;;  %s890_s21 = sphi %s937_s21, %s1191_s21   ;;  %s886_s20 = sphi %s935_s20, %s1190_s20   ;;  %s882_s19 = sphi %s933_s19, %s1189_s19   ;;  %s878_s18 = sphi %s931_s18, %s1188_s18  }
   0x6   : > { %s173_s23 = sshll.u32 %s892_s22, 4  ;;  %p571_p0 = scmp.ge.s32.totalorder %s890_s21, 1  ;;  %s957_s23 = int_to_ptr.vmem [resolvable:$true] %s173_s23 }
   0x7   : > { %p1175_p1 = scmp.eq.s32.totalorder %s952_s24, 0  ;;  %p161_p2 = scmp.lt.s32.totalorder %s890_s21, 3 }
   0x8   : > { %s893_s26 = smov [#allocation7]   ;;  %s894_s29 = smov [#allocation6]  }
   0x9   : > { %p959_p3 = pnand %p571_p0, %p161_p2  ;;  %s199_s27 = sshll.u32 %s893_s26, 4  ;;  %s971_s27 = int_to_ptr.vmem [resolvable:$true] %s199_s27 }
   0xa   : > { %s186_s30 = sshll.u32 %s894_s29, 4  ;;  %s706_s8 = scalar_lea.hbm %s1170_s1, 128  ;;  %s973_s30 = int_to_ptr.vmem [resolvable:$true] %s186_s30 }
   0xb   : > { %s1177_s25 = scalar_select %p959_p3, 1, 0 }
   0xc   : > { %p637_p4 = pneg %p959_p3  ;;  %p707_p6 = scmp.ne.s32.totalorder %s1170_s1, %s706_s8 }
   0xd   : > { %p713_p10 = scmp.lt.u32.totalorder %s706_s8, %s1170_s1 }
   0xe   : > { %p967_p5 = pnand %p637_p4, %p1175_p1 }
  0x10   : > { %p983_p7 = pneg %p967_p5 }
  0x12   : > { %p709_p8 = pnand %p983_p7, %p707_p6 }
  0x14   : > { %p710_p9 = pneg %p709_p8 }
  0x16   : > { %p715_p11 = pnand %p713_p10, %p710_p9 }
  0x18   : > { %718 = shalt.err (!%p715_p11)
}
  0x19   : > { %s719_s14 = scalar_lea.vmem %s957_s23, 128  ;;  %p727_p2 = scmp.lt.s32.totalorder %s957_s23, %s957_s23 }
  0x1a   : > { %p720_p12 = scmp.ne.s32.totalorder %s957_s23, %s719_s14  ;;  %p728_p4 = scmp.lt.s32.totalorder %s719_s14, %s719_s14 }
  0x1c   : > { %p722_p13 = pnand %p720_p12, %p983_p7  ;;  %p729_p6 = por %p728_p4, %p727_p2 }
  0x1e   : > { %p723_p0 = pneg %p722_p13 }
  0x20   : > { %p730_p8 = pnand %p729_p6, %p723_p0 }
  0x22   : > { %733 = shalt.err (!%p730_p8)
}
  0x23   : > { %s895_s15 = smov 64   ;;  %s896_s16 = smov 4  }
  0x24   : > { %640 = dma.hbm_to_vmem [thread:$0]  (!%p967_p5), %s1170_s1, 128, %s957_s23, [#allocation5], %s895_s15, %s895_s15, %s896_s16  }
  0x25   : > { %s734_s6 = scalar_lea.hbm %s1172_s3, 128 }
  0x26   : > { %p735_p9 = scmp.ne.s32.totalorder %s1172_s3, %s734_s6  ;;  %p741_p12 = scmp.lt.u32.totalorder %s734_s6, %s1172_s3 }
  0x28   : > { %p737_p10 = pnand %p735_p9, %p983_p7 }
  0x2a   : > { %p738_p11 = pneg %p737_p10 }
  0x2c   : > { %p743_p13 = pnand %p741_p12, %p738_p11 }
  0x2e   : > { %746 = shalt.err (!%p743_p13)
}
  0x2f   : > { %s747_s23 = scalar_lea.vmem %s971_s27, 128  ;;  %p755_p6 = scmp.lt.s32.totalorder %s971_s27, %s971_s27 }
  0x30   : > { %p748_p0 = scmp.ne.s32.totalorder %s971_s27, %s747_s23  ;;  %p756_p8 = scmp.lt.s32.totalorder %s747_s23, %s747_s23 }
  0x32   : > { %p750_p2 = pnand %p748_p0, %p983_p7  ;;  %p757_p9 = por %p756_p8, %p755_p6 }
  0x34   : > { %p751_p4 = pneg %p750_p2 }
  0x36   : > { %p758_p10 = pnand %p757_p9, %p751_p4 }
  0x38   : > { %761 = shalt.err (!%p758_p10)
}
  0x39   : > { %646 = dma.hbm_to_vmem [thread:$0]  (!%p967_p5), %s1172_s3, 128, %s971_s27, [#allocation8], %s895_s15, %s895_s15, %s896_s16  }
  0x3a   : > { %s762_s22 = scalar_lea.hbm %s1171_s2, 128 }
  0x3b   : > { %p763_p11 = scmp.ne.s32.totalorder %s1171_s2, %s762_s22  ;;  %p769_p0 = scmp.lt.u32.totalorder %s762_s22, %s1171_s2 }
  0x3d   : > { %p765_p12 = pnand %p763_p11, %p983_p7 }
  0x3f   : > { %p766_p13 = pneg %p765_p12 }
  0x41   : > { %p771_p2 = pnand %p769_p0, %p766_p13 }
  0x43   : > { %774 = shalt.err (!%p771_p2)
}
  0x44   : > { %s775_s27 = scalar_lea.vmem %s973_s30, 128  ;;  %p783_p9 = scmp.lt.s32.totalorder %s973_s30, %s973_s30 }
  0x45   : > { %p776_p4 = scmp.ne.s32.totalorder %s973_s30, %s775_s27  ;;  %p784_p10 = scmp.lt.s32.totalorder %s775_s27, %s775_s27 }
  0x47   : > { %p778_p6 = pnand %p776_p4, %p983_p7  ;;  %p785_p11 = por %p784_p10, %p783_p9 }
  0x49   : > { %p779_p8 = pneg %p778_p6 }
  0x4b   : > { %p786_p12 = pnand %p785_p11, %p779_p8 }
  0x4d   : > { %789 = shalt.err (!%p786_p12)
}
  0x4e   : > { %643 = dma.hbm_to_vmem [thread:$0]  (!%p967_p5), %s1171_s2, 128, %s973_s30, [#allocation5], %s895_s15, %s895_s15, %s896_s16  }
  0x4f   : > { %s897_s10 = smov [#allocation9]   ;;  %s790_s14 = scalar_lea.hbm %s1173_s4, 16 }
  0x50   : > { %s213_s23 = sshll.u32 %s897_s10, 4  ;;  %p791_p13 = scmp.ne.s32.totalorder %s1173_s4, %s790_s14  ;;  %s214_s23 = int_to_ptr.vmem [resolvable:$true] %s213_s23 }
  0x51   : > { %p797_p4 = scmp.lt.u32.totalorder %s790_s14, %s1173_s4 }
  0x52   : > { %p793_p0 = pnand %p791_p13, %p983_p7 }
  0x54   : > { %p794_p2 = pneg %p793_p0 }
  0x56   : > { %p799_p6 = pnand %p797_p4, %p794_p2 }
  0x58   : > { %802 = shalt.err (!%p799_p6)
}
  0x59   : > { %s803_s30 = scalar_lea.vmem %s214_s23, 16  ;;  %s810_s15 = scalar_lea.vmem %s214_s23, 32 }
  0x5a   : > { %p804_p8 = scmp.ne.s32.totalorder %s214_s23, %s803_s30  ;;  %p811_p11 = scmp.lt.s32.totalorder %s214_s23, %s214_s23 }
  0x5b   : > { %p812_p12 = scmp.lt.s32.totalorder %s810_s15, %s803_s30 }
  0x5c   : > { %p806_p9 = pnand %p804_p8, %p983_p7 }
  0x5d   : > { %p813_p1 = por %p812_p12, %p811_p11 }
  0x5e   : > { %p807_p10 = pneg %p806_p9 }
  0x60   : > { %p814_p3 = pnand %p813_p1, %p807_p10 }
  0x62   : > { %817 = shalt.err (!%p814_p3)
}
  0x63   : > { %649 = dma.hbm_to_vmem [thread:$0]  (!%p967_p5), %s1173_s4, 16, %s214_s23, [#allocation8]  }
  0x64   : > { %s1078_s11 = sadd.s32 1, %s890_s21   ;;  %s27_s28 = sadd.s32 1, %s886_s20 }
  0x65   : > { %s24_s7 = ssub.s32 %s890_s21, %s1078_s11  ;;  %p34_p1 = scmp.ne.s32.totalorder %s886_s20, %s882_s19 }
  0x66   : > { %p25_p3 = scmp.eq.s32.totalorder %s24_s7, 0  ;;  %p35_p7 = scmp.eq.s32.totalorder %s890_s21, 0 }
  0x67   : > { %p40_p13 = scmp.ne.s32.totalorder %s882_s19, %s878_s18  ;;  %p658_p0 = scmp.lt.s32.totalorder %s890_s21, 2 }
  0x68   : > { %s1090_s27 = scalar_select %p25_p3, %s886_s20, %s27_s28  }
  0x69   : > { %p36_p2 = por %p35_p7, %p34_p1  ;;  %p1180_p4 = scmp.eq.s32.totalorder %s952_s24, 0 }
  0x6a   : > { %s224_s9 = sand.u32 1, %s886_s20   ;;  %s578_s10 = sshll.u32 %s890_s21, 7 }
  0x6b   : > { %p1094_p6 = por %p1180_p4, %p40_p13  ;;  %s577_s23 = sshll.u32 %s224_s9, 3 }
  0x6c   : > { %s1103_s14 = scalar_lea.hbm %s1169_s0, %s578_s10  ;;  %s228_s18 = scalar_lea.vmem [#allocation2], %s577_s23 }
  0x6d   : > { %s235_s17 = sshll.u32 %s228_s18, 4  ;;  %p1105_p5 = pnand %p658_p0, %p36_p2  ;;  %s1109_s17 = int_to_ptr.vmem [resolvable:$true] %s235_s17 }
  0x6e   : > { %s225_s21 = scalar_lea.sflag [#allocation3], %s224_s9  ;;  %s818_s26 = scalar_lea.hbm %s1103_s14, 128 }
  0x6f   : > { %p819_p8 = scmp.ne.s32.totalorder %s1103_s14, %s818_s26  ;;  %p820_p9 = pneg %p1105_p5 }
  0x70   : > { %s823_s15 = scalar_lea.hbm %s1169_s0, 256  ;;  %p824_p12 = scmp.lt.u32.totalorder %s1103_s14, %s1169_s0 }
  0x71   : > { %p821_p10 = pnand %p820_p9, %p819_p8  ;;  %p825_p1 = scmp.lt.u32.totalorder %s823_s15, %s818_s26 }
  0x72   : > { %p827_p7 = scmp.lt.u32.totalorder %s818_s26, %s1103_s14 }
  0x73   : > { %p822_p11 = pneg %p821_p10  ;;  %p826_p3 = por %p825_p1, %p824_p12 }
  0x75   : > { %p828_p13 = por %p827_p7, %p826_p3 }
  0x77   : > { %p829_p0 = pnand %p828_p13, %p822_p11 }
  0x79   : > { %832 = shalt.err (!%p829_p0)
}
  0x7a   : > { %s833_s28 = scalar_lea.vmem %s1109_s17, 128  ;;  %s898_s7 = smov [#allocation2]  }
  0x7b   : > { %p834_p2 = scmp.ne.s32.totalorder %s1109_s17, %s833_s28  ;;  %s838_s9 = sshll.u32 %s898_s7, 4  ;;  %s839_s9 = int_to_ptr.vmem [resolvable:$false] %s838_s9 }
  0x7c   : > { %s840_s10 = scalar_lea.vmem %s839_s9, 256  ;;  %p841_p10 = scmp.lt.s32.totalorder %s1109_s17, %s839_s9 }
  0x7d   : > { %p836_p4 = pnand %p834_p2, %p820_p9  ;;  %p842_p12 = scmp.lt.s32.totalorder %s840_s10, %s833_s28 }
  0x7f   : > { %p837_p8 = pneg %p836_p4  ;;  %p843_p1 = por %p842_p12, %p841_p10 }
  0x81   : > { %p844_p3 = pnand %p843_p1, %p837_p8 }
  0x83   : > { %847 = shalt.err (!%p844_p3)
}
  0x84   : > { %653 = dma.hbm_to_vmem [thread:$0]  (!%p1105_p5), %s1103_s14, 128, %s1109_s17, %s225_s21  }
  0x85   : > { %p1183_p11 = scmp.ne.s32.totalorder %s1177_s25, 0 }
  0x86   : > { %s246_s23 = sand.u32 (!%p1183_p11), 1, %s882_s19  }
  0x87   : > { %244 = sbr.rel (%p1183_p11) target bundleno = 384 (0x180), region = 40  ;;  %s580_s12 = sshll.u32 (!%p1183_p11), %s246_s23, 3 }
  0x88   : > { %s247_s13 = scalar_lea.sflag (!%p1183_p11), [#allocation3], %s246_s23  ;;  %s250_s18 = scalar_lea.vmem (!%p1183_p11), [#allocation2], %s580_s12 }
  0x8e   : > { %865 = dma.done.wait (%p1094_p6), %s247_s13, 128  }
  0x8f   : > { %867 = vsyncadd (%p1094_p6), %s247_s13, 4294967168  ;;  %p1184_p9 = scmp.eq.s32.totalorder %s952_s24, 0 }
  0x91   : > { %869 = dma.done.wait (%p1184_p9), [#allocation5], 256   ;;  %p1185_p7 = pmov %p1184_p9 }
  0x93   : > { %871 = vsyncadd (%p1185_p7), [#allocation5], 4294967040  ;;  %p1186_p5 = pmov %p1185_p7 }
  0x95   : > { %873 = dma.done.wait (%p1186_p5), [#allocation8], 144   ;;  %p1187_p13 = pmov %p1186_p5 }
  0x96   : > { %v899_v0 = vmov 0.0   ;;  %vm900_vm0 = vmmov 0   ;;  %v703_v1 = vld [vmem:[#allocation4] sm:$0xff]   ;;  %v297_v2 = vld [vmem:[%s250_s18] sm:$0xff]  ;;  %vm307_vm1 = vcmask 130048   ;;  %v704_v4 = vld [vmem:[#allocation6] sm:$0xff]   ;;  %v447_v6 = vlaneseq }
  0x97   : > { %875 = vsyncadd (%p1187_p13), [#allocation8], 4294967152  ;;  %601 = vmatprep.subr.bf16.mxu0 %v899_v0  ;;  %603 = vmatprep.mubr.msk.bf16.mxu0 %vm900_vm0, %v899_v0  ;;  %v298_v3 = vpack.c.bf16 %v297_v2, %v297_v2  ;;  %v705_v5 = vld [vmem:[#allocation7] sm:$0xff]   ;;  %p292_p6 = scmp.lt.s32.totalorder %s952_s24, 1  ;;  %v592_v24 = vld [vmem:[#allocation9] ss:$0 sm:$0xff] }
  0x98   : > { %607 = vmatprep.subr.bf16.mxu1 %v899_v0  ;;  %609 = vmatprep.mubr.msk.bf16.mxu1 %vm900_vm0, %v899_v0  ;;  %v448_v7 = vshrl.u32 %v447_v6, 7  ;;  %vm465_vm4 = vcmask 523264  }
  0x99   : > { %602 = vmatpush3.bf16.msra.mxu0 %v703_v1  ;;  %608 = vmatpush3.bf16.msra.mxu1 %v704_v4  ;;  %s1193_s24 = smov (!%p292_p6, %s952_s24), 1 }
  0x9a   : > { %613 = vmatprep.subr.bf16.mxu0 %v899_v0  ;;  %vm449_vm2 = vcmp.gt.s32.totalorder %v448_v7, 0  ;;  %vm453_vm3 = vcmp.lt.s32.totalorder %v448_v7, 7  ;;  %s585_s25 = sshll.u32 %s1193_s24, 3 }
  0x9b   : > { %s295_s17 = scalar_lea.vmem %s1174_s5, %s585_s25 }
  0x9c   : > { %604 = vmatmul.mubr.msk.bf16.vlgmr.msra.gmra.mrb[0].mxu0 %vm307_vm1, %v298_v3  ;;  %610 = vmatmul.mubr.msk.bf16.vlgmr.msra.gmra.mrb[0].mxu1 %vm307_vm1, %v298_v3 }
  0x9d   : > { %614 = vmatpush3.bf16.msra.mxu0 %v705_v5  ;;  %615 = vmatprep.mubr.msk.bf16.mxu0 %vm900_vm0, %v899_v0 }
  0xa4   : > { %616 = vmatmul.mubr.msk.bf16.vlgmr.msra.gmra.mrb[4].mxu0 %vm307_vm1, %v298_v3 }
 0x16f   : > { %v345_v8 = vpop.f32.mrb[0].mxu0  ;;  %v393_v12 = vpop.f32.mrb[0].mxu1 }
 0x170   : > { %v450_v9 = vrot.slane %v345_v8, 7  ;;  %v605_v10 = vpop.f32.mrb[1].mxu0  ;;  %v611_v15 = vpop.f32.mrb[1].mxu1 }
 0x171   : > { %v348_v11 = vpop.f32.mrb[2].mxu0  ;;  %v396_v17 = vpop.f32.mrb[2].mxu1 }
 0x172   : > { %v606_v13 = vpop.f32.mrb[3].mxu0  ;;  %v451_v14 = vsel %vm449_vm2, %v450_v9, 0.0  ;;  %v612_v18 = vpop.f32.mrb[3].mxu1 }
 0x173   : > { %v452_v16 = vadd.f32 %v451_v14, %v393_v12 }
 0x177   : > { %v441_v19 = vpop.f32.mrb[4].mxu0 }
 0x178   : > { %v454_v20 = vrot.slane %v441_v19, 1  ;;  %v617_v21 = vpop.f32.mrb[5].mxu0 }
 0x179   : > { %v444_v22 = vpop.f32.mrb[6].mxu0 }
 0x17a   : > { %v455_v23 = vsel %vm453_vm3, %v454_v20, 0.0  ;;  %v618_v25 = vpop.f32.mrb[7].mxu0 }
 0x17b   : > { %v456_v26 = vadd.f32 %v455_v23, %v452_v16 }
 0x17d   : > { %v464_v27 = vadd.f32 %v592_v24, %v456_v26 }
 0x17f   : > { %466 = vst.msk [vmem:[%s295_s17] sm:$0xff] %vm465_vm4, %v464_v27 }
 0x180 PF: > { %p17_p0 = scmp.ge.s32.totalorder %s1078_s11, 4   ;;  %s1188_s18 = smov %s882_s19 }
 0x181   : > { %s1189_s19 = smov %s886_s20  ;;  %s1190_s20 = smov %s1090_s27 }
 0x182   : > { %s1191_s21 = smov %s1078_s11  ;;  %19 = sbr.rel (!%p17_p0) target bundleno = 5 (0x5), region = 96 }
 0x189   :  { %486 = vsyncpa [#allocation3], 1 }
 0x18a   :  { %488 = vsyncpa [#allocation3 + $0x1], 1 }
 0x18b   :  { %489 = vsyncpa [#allocation5], 1 }
 0x18c   :  { %490 = vsyncpa [#allocation8], 1 }

// kernel: _lambda_.14
= control target key start
LH: loop header
LB: loop body
LE: loop exit
PB: predicated region body
PF: predicated region fallthrough
CT: control target
= control target key end

     0   :  { %s1405_s21 = smov 0   ;;  %s1572_s0 = inlined_call_operand.vmem [shape: f32[2,8,64], index: 0, kind: input, shape index: {}]   ;;  %s1573_s1 = inlined_call_operand.vmem [shape: f32[64,64], index: 1, kind: input, shape index: {}]   ;;  %s1574_s2 = inlined_call_operand.vmem [shape: f32[1,64], index: 2, kind: input, shape index: {}]   ;;  %s1575_s3 = inlined_call_operand.vmem [shape: f32[1,64], index: 3, kind: input, shape index: {}]   ;;  %s1576_s4 = inlined_call_operand.vmem [shape: bf16[64,64], index: 4, kind: input, shape index: {}]   ;;  %s1577_s5 = inlined_call_operand.vmem [shape: f32[1,64], index: 5, kind: input, shape index: {}]   ;;  %s1578_s6 = inlined_call_operand.vmem [shape: bf16[64,64], index: 6, kind: input, shape index: {}]   ;;  %s1579_s7 = inlined_call_operand.vmem [shape: f32[1,64], index: 7, kind: input, shape index: {}]   ;;  %s1580_s8 = inlined_call_operand.vmem [shape: bf16[64,64], index: 8, kind: input, shape index: {}]   ;;  %s1581_s9 = inlined_call_operand.vmem [shape: f32[1,64], index: 9, kind: input, shape index: {}]   ;;  %s1582_s10 = inlined_call_operand.vmem [shape: bf16[64,64], index: 10, kind: input, shape index: {}]   ;;  %s1583_s11 = inlined_call_operand.vmem [shape: f32[1,64], index: 11, kind: input, shape index: {}]   ;;  %s1584_s12 = inlined_call_operand.vmem [shape: f32[2,8,64], index: 12, kind: output, shape index: {}]  }
   0x1 LB: > { %s1094_s22 = sadd.s32 4294967295, %s1335_s21   ;;  %p1098_p0 = scmp.ge.s32.totalorder %s1335_s21, 1  ;;  %s1335_s21 = sphi %s1405_s21, %s22_s21  }
   0x2   : > { %p361_p1 = scmp.lt.s32.totalorder %s1335_s21, 3 }
   0x4   : > { %p362_p2 = pnand %p1098_p0, %p361_p1 }
   0x5   : > { %v411_v0 = vld [vmem:[%s1573_s1] sm:$0xff] (!%p362_p2)  ;;  %v412_v1 = vld [vmem:[%s1573_s1 + $0x8] sm:$0xff] (!%p362_p2)  ;;  %v413_v2 = vld [vmem:[%s1573_s1 + $0x10] sm:$0xff] (!%p362_p2)  ;;  %v1337_v3 = vmov (!%p362_p2), 0.0|0.0   ;;  %vm1338_vm0 = vmmov (!%p362_p2), 0   ;;  %v1339_v6 = vmov (!%p362_p2), 0.0   ;;  %v504_v22 = vlaneseq (!%p362_p2) }
   0x6   : > { %365 = sbr.rel (%p362_p2) target bundleno = 1683 (0x693), region = 68  ;;  %1272 = vmatprep.subr.bf16.mxu0 (!%p362_p2), %v1337_v3  ;;  %v1273_v4 = vpack.c.bf16 (!%p362_p2), %v412_v1, %v411_v0  ;;  %v414_v5 = vld [vmem:[%s1573_s1 + $0x18] sm:$0xff] (!%p362_p2)  ;;  %1190 = vmatprep.mubr.msk.f32.mxu0 (!%p362_p2), %vm1338_vm0, %v1339_v6  ;;  %p401_p3 = scmp.lt.s32.totalorder (!%p362_p2), %s1094_s22, 1  ;;  %v415_v7 = vld [vmem:[%s1573_s1 + $0x20] sm:$0xff] (!%p362_p2)  ;;  %v416_v9 = vld [vmem:[%s1573_s1 + $0x28] sm:$0xff] (!%p362_p2)  ;;  %vm421_vm1 = vcmask (!%p362_p2), 523264  }
   0x7   : > { %1284 = vmatprep.subr.bf16.mxu1 (!%p362_p2), %v1337_v3  ;;  %1209 = vmatprep.mubr.msk.f32.mxu1 (!%p362_p2), %vm1338_vm0, %v1339_v6  ;;  %v1276_v8 = vpack.c.bf16 (!%p362_p2), %v414_v5, %v413_v2  ;;  %v417_v10 = vld [vmem:[%s1573_s1 + $0x30] sm:$0xff] (!%p362_p2)  ;;  %v1279_v11 = vpack.c.bf16 (!%p362_p2), %v416_v9, %v415_v7  ;;  %v418_v13 = vld [vmem:[%s1573_s1 + $0x38] sm:$0xff] (!%p362_p2)  ;;  %v505_v23 = vshrl.u32 (!%p362_p2), %v504_v22, 7  ;;  %v1307_v38 = vld [vmem:[%s1576_s4] sm:$0xff] (!%p362_p2)   ;;  %vm912_vm2 = vcmask (!%p362_p2), 1043456  }
   0x8   : > { %1274 = vmatpush3.bf16.msra.mxu0 (!%p362_p2), %v1273_v4  ;;  %1286 = vmatpush3.bf16.msra.mxu1 (!%p362_p2), %v1273_v4  ;;  %v1282_v16 = vpack.c.bf16 (!%p362_p2), %v418_v13, %v417_v10  ;;  %v1308_v39 = vld [vmem:[%s1578_s6] sm:$0xff] (!%p362_p2)   ;;  %v1309_v40 = vld [vmem:[%s1576_s4 + $0x8] sm:$0xff] (!%p362_p2)   ;;  %v1311_v42 = vld [vmem:[%s1576_s4 + $0x10] sm:$0xff] (!%p362_p2)   ;;  %vm895_vm3 = vcmask (!%p362_p2), 64512  }
   0x9   : > { %1275 = vmatprep.subr.bf16.mxu0 (!%p362_p2), %v1337_v3  ;;  %1287 = vmatprep.subr.bf16.mxu1 (!%p362_p2), %v1337_v3  ;;  %v506_v24 = vsub.s32 (!%p362_p2), 0, %v505_v23  ;;  %v1310_v41 = vld [vmem:[%s1578_s6 + $0x8] sm:$0xff] (!%p362_p2)   ;;  %v1312_v43 = vld [vmem:[%s1578_s6 + $0x10] sm:$0xff] (!%p362_p2)   ;;  %v1313_v44 = vld [vmem:[%s1576_s4 + $0x18] sm:$0xff] (!%p362_p2)  }
   0xa   : > { %v1314_v45 = vld [vmem:[%s1578_s6 + $0x18] sm:$0xff] (!%p362_p2)   ;;  %v419_v50 = vld [vmem:[%s1574_s2] sm:$0x1] (!%p362_p2)  ;;  %v1316_v59 = vld [vmem:[%s1580_s8 + $0x8] sm:$0xff] (!%p362_p2)  }
   0xb   : > { %v1103_v54 = vld [vmem:[%s1575_s3] ss:$0 sm:$0xff] (!%p362_p2)  ;;  %v1317_v60 = vld [vmem:[%s1580_s8 + $0x10] sm:$0xff] (!%p362_p2)   ;;  %v1318_v61 = vld [vmem:[%s1580_s8 + $0x18] sm:$0xff] (!%p362_p2)  }
   0xc   : > { %1277 = vmatpush3.bf16.msra.mxu0 (!%p362_p2), %v1276_v8  ;;  %1289 = vmatpush3.bf16.msra.mxu1 (!%p362_p2), %v1276_v8  ;;  %v1315_v57 = vld [vmem:[%s1580_s8] sm:$0xff] (!%p362_p2)  }
   0xd   : > { %s1586_s22 = smov (!%p401_p3, %s1094_s22), 1  ;;  %1278 = vmatprep.subr.bf16.mxu0 %v1337_v3  ;;  %1290 = vmatprep.subr.bf16.mxu1 %v1337_v3  ;;  %v1110_v62 = vld [vmem:[%s1579_s7] ss:$0 sm:$0xff] }
   0xe   : > { %s1099_s17 = sshll.u32 %s1586_s22, 3  ;;  %v1104_v10 = vld [vmem:[%s1577_s5] ss:$0 sm:$0xff] }
   0xf   : > { %s404_s24 = scalar_lea.vmem %s1572_s0, %s1099_s17  ;;  %s408_s28 = scalar_lea.vmem %s1584_s12, %s1099_s17 }
  0x10   : > { %v1446_v12 = vld [vmem:[%s404_s24] sm:$0xff]  ;;  %1280 = vmatpush3.bf16.msra.mxu0 %v1279_v11  ;;  %1292 = vmatpush3.bf16.msra.mxu1 %v1279_v11 }
  0x11   : > { %v422_v14 = vsel %vm421_vm1, %v1446_v12, 0.0  ;;  %1281 = vmatprep.subr.bf16.mxu0 %v1337_v3  ;;  %1293 = vmatprep.subr.bf16.mxu1 %v1337_v3 }
  0x12   : > { %v423_v15 = vrot.slane %v422_v14, 4 }
  0x14   : > { %v424_v17 = vadd.f32 %v423_v15, %v422_v14  ;;  %1283 = vmatpush3.bf16.msra.mxu0 %v1282_v16  ;;  %1295 = vmatpush3.bf16.msra.mxu1 %v1282_v16  ;;  %v1116_v15 = vld [vmem:[%s1581_s9] ss:$0 sm:$0xff] }
  0x15   : > { %1212 = vmatprep.subr.bf16.mxu0 %v1339_v6  ;;  %1224 = vmatprep.subr.bf16.mxu1 %v1339_v6 }
  0x16   : > { %v425_v18 = vrot.slane %v424_v17, 2 }
  0x18   : > { %v426_v19 = vadd.f32 %v425_v18, %v424_v17 }
  0x1a   : > { %v427_v20 = vrot.slane %v426_v19, 1 }
  0x1c   : > { %v428_v21 = vadd.f32 %v427_v20, %v426_v19 }
  0x1e   : > { %1191 = vmatmul.mubr.msk.f32.vlgmr.msra.gmra.mrb[0].mxu0 %vm421_vm1, %v428_v21 }
  0x1f   : > { %1220 = vmatprep.mubr.msk.bf16.mxu0 %vm1338_vm0, %v1339_v6  ;;  %1213 = vmatpush3.bf16.msra.mxu0 %v1307_v38 }
  0x20   : > { %1214 = vmatprep.subr.bf16.mxu0 %v1339_v6 }
  0x23   : > { %1215 = vmatpush3.bf16.msra.mxu0 %v1309_v40  ;;  %v1322_v40 = vld [vmem:[%s1582_s10 + $0x18] sm:$0xff]  }
  0x24   : > { %1216 = vmatprep.subr.bf16.mxu0 %v1339_v6 }
  0x27   : > { %1217 = vmatpush3.bf16.msra.mxu0 %v1311_v42 }
  0x28   : > { %1218 = vmatprep.subr.bf16.mxu0 %v1339_v6 }
  0x2b   : > { %1219 = vmatpush3.bf16.msra.mxu0 %v1313_v44 }
  0x2c   : > { %1236 = vmatprep.subr.bf16.mxu0 %v1339_v6 }
  0xf1   : > { %v498_v25 = vpop.f32.mrb[0].mxu0 }
  0xf2   : > { %v503_v26 = vmul.f32 0.0625, %v498_v25  ;;  %v1192_v27 = vpop.f32.mrb[1].mxu0 }
  0xf4   : > { %v507_v28 = vrot.slane %v503_v26, %v506_v24 }
  0xf6   : > { %v508_v29 = vsub.f32 %v1446_v12, %v507_v28 }
  0xf8   : > { %v509_v30 = vmul.f32 %v508_v29, %v508_v29 }
  0xfa   : > { %v510_v31 = vsel %vm421_vm1, %v509_v30, 0.0 }
  0xfb   : > { %v511_v32 = vrot.slane %v510_v31, 4 }
  0xfd   : > { %v512_v33 = vadd.f32 %v511_v32, %v510_v31 }
  0xff   : > { %v513_v34 = vrot.slane %v512_v33, 2 }
 0x101   : > { %v514_v35 = vadd.f32 %v513_v34, %v512_v33  ;;  %v1319_v33 = vld [vmem:[%s1582_s10] sm:$0xff]   ;;  %v1320_v34 = vld [vmem:[%s1582_s10 + $0x8] sm:$0xff]  }
 0x103   : > { %v515_v36 = vrot.slane %v514_v35, 1 }
 0x105   : > { %v516_v37 = vadd.f32 %v515_v36, %v514_v35  ;;  %v1321_v35 = vld [vmem:[%s1582_s10 + $0x10] sm:$0xff]  }
 0x107   : > { %1210 = vmatmul.mubr.msk.f32.vlgmr.msra.gmra.mrb[0].mxu1 %vm421_vm1, %v516_v37 }
 0x108   : > { %1232 = vmatprep.mubr.msk.bf16.mxu1 %vm1338_vm0, %v1339_v6  ;;  %1225 = vmatpush3.bf16.msra.mxu1 %v1308_v39 }
 0x109   : > { %1226 = vmatprep.subr.bf16.mxu1 %v1339_v6 }
 0x10c   : > { %1227 = vmatpush3.bf16.msra.mxu1 %v1310_v41 }
 0x10d   : > { %1228 = vmatprep.subr.bf16.mxu1 %v1339_v6 }
 0x110   : > { %1229 = vmatpush3.bf16.msra.mxu1 %v1312_v43 }
 0x111   : > { %1230 = vmatprep.subr.bf16.mxu1 %v1339_v6 }
 0x114   : > { %1231 = vmatpush3.bf16.msra.mxu1 %v1314_v45 }
 0x115   : > { %1248 = vmatprep.subr.bf16.mxu1 %v1339_v6 }
 0x1da   : > { %v586_v46 = vpop.f32.mrb[0].mxu1 }
 0x1db   : > { %v590_v47 = vmul.f32 0.0625, %v586_v46  ;;  %v1211_v48 = vpop.f32.mrb[1].mxu1 }
 0x1dd   : > { %v591_v49 = vadd.f32 1e-06, %v590_v47 }
 0x1df   : > { %1323 = vrsqrt.f32 %v591_v49 }
 0x1e9   : > { %v1324_v51 = vpop.eup %1323 }
 0x1ea   : > { %v593_v52 = vmul.f32 %v1324_v51, %v419_v50 }
 0x1ec   : > { %v597_v53 = vrot.slane %v593_v52, %v506_v24 }
 0x1ee   : > { %v598_v55 = vmul.f32 %v597_v53, %v508_v29 }
 0x1f0   : > { %v605_v56 = vadd.f32 %v1103_v54, %v598_v55 }
 0x1f2   : > { %v606_v58 = vpack.c.bf16 %v605_v56, %v605_v56 }
 0x1f4   : > { %1221 = vmatmul.mubr.msk.bf16.vlgmr.msra.gmra.mrb[4].mxu0 %vm421_vm1, %v606_v58  ;;  %1233 = vmatmul.mubr.msk.bf16.vlgmr.msra.gmra.mrb[4].mxu1 %vm421_vm1, %v606_v58 }
 0x1f5   : > { %1237 = vmatpush3.bf16.msra.mxu0 %v1315_v57  ;;  %1244 = vmatprep.mubr.msk.bf16.mxu0 %vm1338_vm0, %v1339_v6 }
 0x1f6   : > { %1238 = vmatprep.subr.bf16.mxu0 %v1339_v6  ;;  %1250 = vmatprep.mubr.msk.bf16.mxu1 %vm1338_vm0, %v1339_v6 }
 0x1f9   : > { %1239 = vmatpush3.bf16.msra.mxu0 %v1316_v59 }
 0x1fa   : > { %1240 = vmatprep.subr.bf16.mxu0 %v1339_v6 }
 0x1fd   : > { %1241 = vmatpush3.bf16.msra.mxu0 %v1317_v60 }
 0x1fe   : > { %1242 = vmatprep.subr.bf16.mxu0 %v1339_v6 }
 0x201   : > { %1243 = vmatpush3.bf16.msra.mxu0 %v1318_v61 }
 0x202   : > { %1260 = vmatprep.subr.bf16.mxu0 %v1339_v6 }
 0x204   : > { %1245 = vmatmul.mubr.msk.bf16.vlgmr.msra.gmra.mrb[8].mxu0 %vm421_vm1, %v606_v58 }
 0x205   : > { %1268 = vmatprep.mubr.msk.bf16.mxu0 %vm1338_vm0, %v1339_v6  ;;  %1261 = vmatpush3.bf16.msra.mxu0 %v1319_v33 }
 0x206   : > { %1262 = vmatprep.subr.bf16.mxu0 %v1339_v6 }
 0x209   : > { %1263 = vmatpush3.bf16.msra.mxu0 %v1320_v34 }
 0x20a   : > { %1264 = vmatprep.subr.bf16.mxu0 %v1339_v6 }
 0x20d   : > { %1265 = vmatpush3.bf16.msra.mxu0 %v1321_v35 }
 0x20e   : > { %1266 = vmatprep.subr.bf16.mxu0 %v1339_v6 }
 0x211   : > { %1267 = vmatpush3.bf16.msra.mxu0 %v1322_v40 }
 0x2c7   : > { %v683_v63 = vpop.f32.mrb[4].mxu0  ;;  %v762_v0 = vpop.f32.mrb[4].mxu1 }
 0x2c8   : > { %v763_v1 = vadd.f32 %v1110_v62, %v762_v0  ;;  %v1222_v2 = vpop.f32.mrb[5].mxu0  ;;  %v1234_v3 = vpop.f32.mrb[5].mxu1  ;;  %v684_v13 = vadd.f32 %v1104_v10, %v683_v63 }
 0x2c9   : > { %v686_v4 = vpop.f32.mrb[6].mxu0  ;;  %v765_v5 = vpop.f32.mrb[6].mxu1 }
 0x2ca   : > { %v848_v7 = vpack.c.bf16 %v763_v1, %v763_v1  ;;  %v1223_v8 = vpop.f32.mrb[7].mxu0  ;;  %v1235_v9 = vpop.f32.mrb[7].mxu1  ;;  %v847_v14 = vpack.c.bf16 %v684_v13, %v684_v13 }
 0x2cc   : > { %v853_v11 = vsel %vm421_vm1, %v848_v7, 0 }
 0x2cd   : > { %1249 = vmatpush3.bf16.xpose.msra.mxu1 %v853_v11 }
 0x2ce   : > { %1254 = vmatprep.subr.bf16.mxu1 %v1339_v6 }
 0x2d4   : > { %1251 = vmatmul.mubr.msk.bf16.vlgmr.msra.gmra.mrb[8].mxu1 %vm421_vm1, %v847_v14 }
 0x2d5   : > { %1256 = vmatprep.mubr.msk.bf16.mxu1 %vm1338_vm0, %v1339_v6  ;;  %v1124_v6 = vld [vmem:[%s1583_s11] ss:$0 sm:$0xff] }
 0x2d7   : > { %v841_v16 = vpop.f32.mrb[8].mxu0 }
 0x2d8   : > { %v842_v17 = vadd.f32 %v1116_v15, %v841_v16  ;;  %v1246_v18 = vpop.f32.mrb[9].mxu0 }
 0x2d9   : > { %v844_v19 = vpop.f32.mrb[10].mxu0 }
 0x2da   : > { %v908_v20 = vpack.c.bf16 %v842_v17, %v842_v17  ;;  %v1247_v21 = vpop.f32.mrb[11].mxu0 }
 0x2dc   : > { %v914_v22 = vsel %vm912_vm2, %v908_v20, 0 }
 0x2dd   : > { %1255 = vmatpush3.bf16.msra.mxu1 %v914_v22 }
 0x3a7   : > { %v889_v23 = vpop.f32.mrb[8].mxu1 }
 0x3a8   : > { %v1252_v24 = vpop.f32.mrb[9].mxu1  ;;  %v896_v25 = vsel %vm895_vm3, %v889_v23, -inf }
 0x3a9   : > { %897 = vmax.xlane.f32.xlu0 %v896_v25  ;;  %v892_v26 = vpop.f32.mrb[10].mxu1 }
 0x3aa   : > { %v1253_v27 = vpop.f32.mrb[11].mxu1 }
 0x436   : > { %v898_v28 = vpop.xlane.xlu0 %897 }
 0x437   : > { %v899_v29 = vsub.f32 %v889_v23, %v898_v28 }
 0x439   : > { %v900_v30 = vmul.f32 1.442695, %v899_v29 }
 0x43b   : > { %1325 = vpow2.f32 %v900_v30 }
 0x445   : > { %v1326_v31 = vpop.eup %1325 }
 0x446   : > { %v902_v32 = vsel %vm895_vm3, %v1326_v31, 0.0 }
 0x447   : > { %903 = vadd.xlane.f32.xlu0 %v902_v32 }
 0x4d4   : > { %v904_v36 = vpop.xlane.xlu0 %903 }
 0x4d5   : > { %1327 = vrcp.f32 %v904_v36 }
 0x4df   : > { %v1328_v37 = vpop.eup %1327 }
 0x4e0   : > { %v906_v38 = vmul.f32 %v1328_v37, %v1326_v31 }
 0x4e2   : > { %v907_v39 = vpack.c.bf16 %v906_v38, %v906_v38 }
 0x4e4   : > { %1257 = vmatmul.mubr.msk.bf16.vlgmr.msra.gmra.mrb[12].mxu1 %vm895_vm3, %v907_v39 }
 0x5b7   : > { %v950_v41 = vpop.f32.mrb[12].mxu1 }
 0x5b8   : > { %v956_v42 = vpack.c.bf16 %v950_v41, %v950_v41  ;;  %v1258_v43 = vpop.f32.mrb[13].mxu1 }
 0x5b9   : > { %v953_v44 = vpop.f32.mrb[14].mxu1 }
 0x5ba   : > { %v1259_v45 = vpop.f32.mrb[15].mxu1  ;;  %1269 = vmatmul.mubr.msk.bf16.vlgmr.msra.gmra.mrb[12].mxu0 %vm421_vm1, %v956_v42 }
 0x68d   : > { %v1033_v46 = vpop.f32.mrb[12].mxu0 }
 0x68e   : > { %v1034_v47 = vadd.f32 %v1124_v6, %v1033_v46  ;;  %v1270_v48 = vpop.f32.mrb[13].mxu0 }
 0x68f   : > { %v1036_v49 = vpop.f32.mrb[14].mxu0 }
 0x690   : > { %v1039_v50 = vadd.f32 %v1034_v47, %v1446_v12  ;;  %v1271_v51 = vpop.f32.mrb[15].mxu0 }
 0x692   : > { %1040 = vst.msk [vmem:[%s408_s28] sm:$0xff] %vm421_vm1, %v1039_v50 }
 0x693 PF: > { %s22_s21 = sadd.s32 1, %s1335_s21  }
 0x694   : > { %p19_p4 = scmp.ge.s32.totalorder %s22_s21, 4  }
 0x696   :  { %21 = sbr.rel (!%p19_p4) target bundleno = 1 (0x1), region = 98 }

// kernel: _lambda_.15
= control target key start
LH: loop header
LB: loop body
LE: loop exit
PB: predicated region body
PF: predicated region fallthrough
CT: control target
= control target key end

     0   :  { %s1868_s18 = smov 0   ;;  %s2129_s0 = inlined_call_operand.vmem [shape: f32[2,8,64], index: 0, kind: input, shape index: {}]   ;;  %s2130_s1 = inlined_call_operand.vmem [shape: f32[64,64], index: 1, kind: input, shape index: {}]   ;;  %s2131_s2 = inlined_call_operand.vmem [shape: f32[1,64], index: 2, kind: input, shape index: {}]   ;;  %s2132_s3 = inlined_call_operand.vmem [shape: f32[1,64], index: 3, kind: input, shape index: {}]   ;;  %s2133_s4 = inlined_call_operand.vmem [shape: bf16[64,64], index: 4, kind: input, shape index: {}]   ;;  %s2134_s5 = inlined_call_operand.vmem [shape: bf16[64,64], index: 5, kind: input, shape index: {}]   ;;  %s2135_s6 = inlined_call_operand.vmem [shape: bf16[64,64], index: 6, kind: input, shape index: {}]   ;;  %s2136_s7 = inlined_call_operand.vmem [shape: f32[1,64], index: 7, kind: input, shape index: {}]   ;;  %s2137_s8 = inlined_call_operand.vmem [shape: f32[64,64], index: 8, kind: input, shape index: {}]   ;;  %s2138_s9 = inlined_call_operand.vmem [shape: f32[1,64], index: 9, kind: input, shape index: {}]   ;;  %s2139_s10 = inlined_call_operand.vmem [shape: f32[1,64], index: 10, kind: input, shape index: {}]   ;;  %s2140_s11 = inlined_call_operand.vmem [shape: bf16[64,64], index: 11, kind: input, shape index: {}]   ;;  %s2141_s12 = inlined_call_operand.vmem [shape: bf16[64,64], index: 12, kind: input, shape index: {}]   ;;  %s2142_s13 = inlined_call_operand.vmem [shape: bf16[64,64], index: 13, kind: input, shape index: {}]   ;;  %s2143_s14 = inlined_call_operand.vmem [shape: f32[1,64], index: 14, kind: input, shape index: {}]   ;;  %s2144_s15 = inlined_call_operand.vmem [shape: f32[2,8,64], index: 15, kind: output, shape index: {}]  }
   0x1 LB: > { %s1421_s19 = sadd.s32 4294967295, %s1783_s18   ;;  %p1425_p0 = scmp.ge.s32.totalorder %s1783_s18, 1  ;;  %s1783_s18 = sphi %s1868_s18, %s25_s18  }
   0x2   : > { %p436_p1 = scmp.lt.s32.totalorder %s1783_s18, 3 }
   0x4   : > { %p437_p2 = pnand %p1425_p0, %p436_p1 }
   0x5   : > { %v492_v0 = vld [vmem:[%s2130_s1] sm:$0xff] (!%p437_p2)  ;;  %v493_v1 = vld [vmem:[%s2130_s1 + $0x8] sm:$0xff] (!%p437_p2)  ;;  %v494_v2 = vld [vmem:[%s2130_s1 + $0x10] sm:$0xff] (!%p437_p2)  ;;  %v1785_v3 = vmov (!%p437_p2), 0.0|0.0   ;;  %vm1786_vm0 = vmmov (!%p437_p2), 0   ;;  %v1787_v6 = vmov (!%p437_p2), 0.0   ;;  %v585_v22 = vlaneseq (!%p437_p2) }
   0x6   : > { %440 = sbr.rel (%p437_p2) target bundleno = 1516 (0x5ec), region = 80  ;;  %1682 = vmatprep.subr.bf16.mxu0 (!%p437_p2), %v1785_v3  ;;  %v1683_v4 = vpack.c.bf16 (!%p437_p2), %v493_v1, %v492_v0  ;;  %v495_v5 = vld [vmem:[%s2130_s1 + $0x18] sm:$0xff] (!%p437_p2)  ;;  %1550 = vmatprep.mubr.msk.f32.mxu0 (!%p437_p2), %vm1786_vm0, %v1787_v6  ;;  %p482_p3 = scmp.lt.s32.totalorder (!%p437_p2), %s1421_s19, 1  ;;  %v496_v7 = vld [vmem:[%s2130_s1 + $0x20] sm:$0xff] (!%p437_p2)  ;;  %v497_v9 = vld [vmem:[%s2130_s1 + $0x28] sm:$0xff] (!%p437_p2)  ;;  %vm502_vm1 = vcmask (!%p437_p2), 523264  }
   0x7   : > { %1694 = vmatprep.subr.bf16.mxu1 (!%p437_p2), %v1785_v3  ;;  %1569 = vmatprep.mubr.msk.f32.mxu1 (!%p437_p2), %vm1786_vm0, %v1787_v6  ;;  %v1686_v8 = vpack.c.bf16 (!%p437_p2), %v495_v5, %v494_v2  ;;  %v498_v10 = vld [vmem:[%s2130_s1 + $0x30] sm:$0xff] (!%p437_p2)  ;;  %v1689_v11 = vpack.c.bf16 (!%p437_p2), %v497_v9, %v496_v7  ;;  %v499_v13 = vld [vmem:[%s2130_s1 + $0x38] sm:$0xff] (!%p437_p2)  ;;  %v1929_v23 = vshrl.u32 (!%p437_p2), %v585_v22, 7  ;;  %v1741_v38 = vld [vmem:[%s2133_s4] sm:$0xff] (!%p437_p2)  }
   0x8   : > { %1684 = vmatpush3.bf16.msra.mxu0 (!%p437_p2), %v1683_v4  ;;  %1696 = vmatpush3.bf16.msra.mxu1 (!%p437_p2), %v1683_v4  ;;  %v1692_v16 = vpack.c.bf16 (!%p437_p2), %v499_v13, %v498_v10  ;;  %v1742_v39 = vld [vmem:[%s2134_s5] sm:$0xff] (!%p437_p2)   ;;  %v1743_v40 = vld [vmem:[%s2133_s4 + $0x8] sm:$0xff] (!%p437_p2)   ;;  %v1745_v42 = vld [vmem:[%s2133_s4 + $0x10] sm:$0xff] (!%p437_p2)  }
   0x9   : > { %1685 = vmatprep.subr.bf16.mxu0 (!%p437_p2), %v1785_v3  ;;  %1697 = vmatprep.subr.bf16.mxu1 (!%p437_p2), %v1785_v3  ;;  %v1932_v24 = vsub.s32 (!%p437_p2), 0, %v1929_v23  ;;  %v1744_v41 = vld [vmem:[%s2134_s5 + $0x8] sm:$0xff] (!%p437_p2)   ;;  %v1746_v43 = vld [vmem:[%s2134_s5 + $0x10] sm:$0xff] (!%p437_p2)   ;;  %v1747_v44 = vld [vmem:[%s2133_s4 + $0x18] sm:$0xff] (!%p437_p2)   ;;  %vm916_vm2 = vcmp.gt.s32.totalorder (!%p437_p2), %v1929_v23, 0  ;;  %vm920_vm3 = vcmp.lt.s32.totalorder (!%p437_p2), %v1929_v23, 7 }
   0xa   : > { %v1748_v45 = vld [vmem:[%s2134_s5 + $0x18] sm:$0xff] (!%p437_p2)   ;;  %v500_v50 = vld [vmem:[%s2131_s2] sm:$0x1] (!%p437_p2)  ;;  %v1750_v1 = vld [vmem:[%s2135_s6 + $0x8] sm:$0xff] (!%p437_p2)  }
   0xb   : > { %v1430_v54 = vld [vmem:[%s2132_s3] ss:$0 sm:$0xff] (!%p437_p2)  ;;  %v1751_v2 = vld [vmem:[%s2135_s6 + $0x10] sm:$0xff] (!%p437_p2)   ;;  %v1752_v4 = vld [vmem:[%s2135_s6 + $0x18] sm:$0xff] (!%p437_p2)  }
   0xc   : > { %1687 = vmatpush3.bf16.msra.mxu0 (!%p437_p2), %v1686_v8  ;;  %1699 = vmatpush3.bf16.msra.mxu1 (!%p437_p2), %v1686_v8  ;;  %v1749_v63 = vld [vmem:[%s2135_s6] sm:$0xff] (!%p437_p2)   ;;  %v933_v7 = vld [vmem:[%s2137_s8 + $0x8] sm:$0xff] (!%p437_p2)  ;;  %v934_v9 = vld [vmem:[%s2137_s8 + $0x10] sm:$0xff] (!%p437_p2) }
   0xd   : > { %s2146_s19 = smov (!%p482_p3, %s1421_s19), 1  ;;  %1688 = vmatprep.subr.bf16.mxu0 %v1785_v3  ;;  %1700 = vmatprep.subr.bf16.mxu1 %v1785_v3  ;;  %v932_v5 = vld [vmem:[%s2137_s8] sm:$0xff]  ;;  %v935_v10 = vld [vmem:[%s2137_s8 + $0x18] sm:$0xff] }
   0xe   : > { %s1426_s17 = sshll.u32 %s2146_s19, 3  ;;  %v1707_v8 = vpack.c.bf16 %v933_v7, %v932_v5  ;;  %v936_v13 = vld [vmem:[%s2137_s8 + $0x20] sm:$0xff] }
   0xf   : > { %s485_s24 = scalar_lea.vmem %s2129_s0, %s1426_s17  ;;  %s489_s21 = scalar_lea.vmem %s2144_s15, %s1426_s17 }
  0x10   : > { %v1913_v12 = vld [vmem:[%s485_s24] sm:$0xff]  ;;  %1690 = vmatpush3.bf16.msra.mxu0 %v1689_v11  ;;  %1702 = vmatpush3.bf16.msra.mxu1 %v1689_v11  ;;  %v1710_v11 = vpack.c.bf16 %v935_v10, %v934_v9 }
  0x11   : > { %v503_v14 = vsel %vm502_vm1, %v1913_v12, 0.0  ;;  %1691 = vmatprep.subr.bf16.mxu0 %v1785_v3  ;;  %1703 = vmatprep.subr.bf16.mxu1 %v1785_v3  ;;  %v940_v10 = vld [vmem:[%s2138_s9] sm:$0x1] }
  0x12   : > { %v504_v15 = vrot.slane %v503_v14, 4 }
  0x14   : > { %v505_v17 = vadd.f32 %v504_v15, %v503_v14  ;;  %1693 = vmatpush3.bf16.msra.mxu0 %v1692_v16  ;;  %1705 = vmatpush3.bf16.msra.mxu1 %v1692_v16  ;;  %v937_v14 = vld [vmem:[%s2137_s8 + $0x28] sm:$0xff]  ;;  %v938_v16 = vld [vmem:[%s2137_s8 + $0x30] sm:$0xff] }
  0x15   : > { %1572 = vmatprep.subr.bf16.mxu0 %v1787_v6  ;;  %1584 = vmatprep.subr.bf16.mxu1 %v1787_v6  ;;  %v1713_v15 = vpack.c.bf16 %v937_v14, %v936_v13 }
  0x16   : > { %v506_v18 = vrot.slane %v505_v17, 2 }
  0x18   : > { %v507_v19 = vadd.f32 %v506_v18, %v505_v17  ;;  %v939_v17 = vld [vmem:[%s2137_s8 + $0x38] sm:$0xff] }
  0x19   : > { %v1716_v18 = vpack.c.bf16 %v939_v17, %v938_v16 }
  0x1a   : > { %v508_v20 = vrot.slane %v507_v19, 1 }
  0x1c   : > { %v509_v21 = vadd.f32 %v508_v20, %v507_v19 }
  0x1e   : > { %1551 = vmatmul.mubr.msk.f32.vlgmr.msra.gmra.mrb[0].mxu0 %vm502_vm1, %v509_v21 }
  0x1f   : > { %1580 = vmatprep.mubr.msk.bf16.mxu0 %vm1786_vm0, %v1787_v6  ;;  %1573 = vmatpush3.bf16.msra.mxu0 %v1741_v38 }
  0x20   : > { %1574 = vmatprep.subr.bf16.mxu0 %v1787_v6 }
  0x23   : > { %1575 = vmatpush3.bf16.msra.mxu0 %v1743_v40 }
  0x24   : > { %1576 = vmatprep.subr.bf16.mxu0 %v1787_v6 }
  0x27   : > { %1577 = vmatpush3.bf16.msra.mxu0 %v1745_v42 }
  0x28   : > { %1578 = vmatprep.subr.bf16.mxu0 %v1787_v6 }
  0x2b   : > { %1579 = vmatpush3.bf16.msra.mxu0 %v1747_v44 }
  0x2c   : > { %1596 = vmatprep.subr.bf16.mxu0 %v1787_v6 }
  0xf1   : > { %v579_v25 = vpop.f32.mrb[0].mxu0 }
  0xf2   : > { %v584_v26 = vmul.f32 0.0625, %v579_v25  ;;  %v1552_v27 = vpop.f32.mrb[1].mxu0 }
  0xf4   : > { %v588_v28 = vrot.slane %v584_v26, %v1932_v24 }
  0xf6   : > { %v589_v29 = vsub.f32 %v1913_v12, %v588_v28 }
  0xf8   : > { %v590_v30 = vmul.f32 %v589_v29, %v589_v29 }
  0xfa   : > { %v591_v31 = vsel %vm502_vm1, %v590_v30, 0.0 }
  0xfb   : > { %v592_v32 = vrot.slane %v591_v31, 4 }
  0xfd   : > { %v593_v33 = vadd.f32 %v592_v32, %v591_v31 }
  0xff   : > { %v594_v34 = vrot.slane %v593_v33, 2 }
 0x101   : > { %v595_v35 = vadd.f32 %v594_v34, %v593_v33 }
 0x103   : > { %v596_v36 = vrot.slane %v595_v35, 1 }
 0x105   : > { %v597_v37 = vadd.f32 %v596_v36, %v595_v35  ;;  %v1446_v36 = vld [vmem:[%s2136_s7] ss:$0 sm:$0xff] }
 0x107   : > { %1570 = vmatmul.mubr.msk.f32.vlgmr.msra.gmra.mrb[0].mxu1 %vm502_vm1, %v597_v37 }
 0x108   : > { %1592 = vmatprep.mubr.msk.bf16.mxu1 %vm1786_vm0, %v1787_v6  ;;  %1585 = vmatpush3.bf16.msra.mxu1 %v1742_v39 }
 0x109   : > { %1586 = vmatprep.subr.bf16.mxu1 %v1787_v6 }
 0x10c   : > { %1587 = vmatpush3.bf16.msra.mxu1 %v1744_v41 }
 0x10d   : > { %1588 = vmatprep.subr.bf16.mxu1 %v1787_v6 }
 0x110   : > { %1589 = vmatpush3.bf16.msra.mxu1 %v1746_v43 }
 0x111   : > { %1590 = vmatprep.subr.bf16.mxu1 %v1787_v6 }
 0x114   : > { %1591 = vmatpush3.bf16.msra.mxu1 %v1748_v45 }
 0x115   : > { %1706 = vmatprep.subr.bf16.mxu1 %v1785_v3 }
 0x1da   : > { %v667_v46 = vpop.f32.mrb[0].mxu1 }
 0x1db   : > { %v671_v47 = vmul.f32 0.0625, %v667_v46  ;;  %v1571_v48 = vpop.f32.mrb[1].mxu1 }
 0x1dd   : > { %v672_v49 = vadd.f32 1e-06, %v671_v47 }
 0x1df   : > { %1765 = vrsqrt.f32 %v672_v49 }
 0x1e9   : > { %v1766_v51 = vpop.eup %1765 }
 0x1ea   : > { %v674_v52 = vmul.f32 %v1766_v51, %v500_v50 }
 0x1ec   : > { %v678_v53 = vrot.slane %v674_v52, %v1932_v24 }
 0x1ee   : > { %v679_v55 = vmul.f32 %v678_v53, %v589_v29 }
 0x1f0   : > { %v686_v56 = vadd.f32 %v1430_v54, %v679_v55 }
 0x1f2   : > { %v687_v57 = vsub.f32 0.0, %v686_v56 }
 0x1f4   : > { %v688_v58 = vmul.f32 1.442695, %v687_v57 }
 0x1f6   : > { %1767 = vpow2.f32 %v688_v58 }
 0x200   : > { %v1768_v59 = vpop.eup %1767 }
 0x201   : > { %v690_v60 = vadd.f32 1.0, %v1768_v59 }
 0x203   : > { %1769 = vrcp.f32 %v690_v60  ;;  %v1753_v60 = vld [vmem:[%s2140_s11] sm:$0xff]  }
 0x20d   : > { %v1770_v61 = vpop.eup %1769 }
 0x20e   : > { %v693_v62 = vmul.f32 %v1770_v61, %v686_v56  ;;  %v1754_v61 = vld [vmem:[%s2141_s12] sm:$0xff]  }
 0x210   : > { %v694_v0 = vpack.c.bf16 %v693_v62, %v693_v62  ;;  %v1755_v62 = vld [vmem:[%s2140_s11 + $0x8] sm:$0xff]  }
 0x212   : > { %1581 = vmatmul.mubr.msk.bf16.vlgmr.msra.gmra.mrb[4].mxu0 %vm502_vm1, %v694_v0  ;;  %1593 = vmatmul.mubr.msk.bf16.vlgmr.msra.gmra.mrb[4].mxu1 %vm502_vm1, %v694_v0 }
 0x213   : > { %1597 = vmatpush3.bf16.msra.mxu0 %v1749_v63  ;;  %1604 = vmatprep.mubr.msk.bf16.mxu0 %vm1786_vm0, %v1787_v6  ;;  %v1756_v63 = vld [vmem:[%s2141_s12 + $0x8] sm:$0xff]  }
 0x214   : > { %1598 = vmatprep.subr.bf16.mxu0 %v1787_v6  ;;  %1624 = vmatprep.mubr.msk.f32.mxu1 %vm1786_vm0, %v1787_v6 }
 0x215   : > { %1708 = vmatpush3.bf16.msra.mxu1 %v1707_v8 }
 0x216   : > { %1709 = vmatprep.subr.bf16.mxu1 %v1785_v3 }
 0x217   : > { %1599 = vmatpush3.bf16.msra.mxu0 %v1750_v1  ;;  %v1758_v1 = vld [vmem:[%s2141_s12 + $0x10] sm:$0xff]  }
 0x218   : > { %1600 = vmatprep.subr.bf16.mxu0 %v1787_v6 }
 0x219   : > { %1711 = vmatpush3.bf16.msra.mxu1 %v1710_v11 }
 0x21a   : > { %1712 = vmatprep.subr.bf16.mxu1 %v1785_v3 }
 0x21b   : > { %1601 = vmatpush3.bf16.msra.mxu0 %v1751_v2  ;;  %v1759_v2 = vld [vmem:[%s2140_s11 + $0x18] sm:$0xff]  }
 0x21c   : > { %1602 = vmatprep.subr.bf16.mxu0 %v1787_v6 }
 0x21d   : > { %1714 = vmatpush3.bf16.msra.mxu1 %v1713_v15 }
 0x21e   : > { %1715 = vmatprep.subr.bf16.mxu1 %v1785_v3 }
 0x21f   : > { %1603 = vmatpush3.bf16.msra.mxu0 %v1752_v4  ;;  %v1760_v4 = vld [vmem:[%s2141_s12 + $0x18] sm:$0xff]  }
 0x220   : > { %1718 = vmatprep.subr.bf16.mxu0 %v1785_v3 }
 0x221   : > { %1717 = vmatpush3.bf16.msra.mxu1 %v1716_v18 }
 0x222   : > { %1605 = vmatmul.mubr.msk.bf16.vlgmr.msra.gmra.mrb[8].mxu0 %vm502_vm1, %v694_v0  ;;  %1646 = vmatprep.subr.bf16.mxu1 %v1787_v6  ;;  %v1757_v0 = vld [vmem:[%s2140_s11 + $0x10] sm:$0xff]  }
 0x223   : > { %1643 = vmatprep.mubr.msk.f32.mxu0 %vm1786_vm0, %v1787_v6  ;;  %1720 = vmatpush3.bf16.msra.mxu0 %v1707_v8 }
 0x224   : > { %1721 = vmatprep.subr.bf16.mxu0 %v1785_v3 }
 0x227   : > { %1723 = vmatpush3.bf16.msra.mxu0 %v1710_v11 }
 0x228   : > { %1724 = vmatprep.subr.bf16.mxu0 %v1785_v3 }
 0x22b   : > { %1726 = vmatpush3.bf16.msra.mxu0 %v1713_v15  ;;  %v1449_v15 = vld [vmem:[%s2139_s10] ss:$0 sm:$0xff] }
 0x22c   : > { %1727 = vmatprep.subr.bf16.mxu0 %v1785_v3 }
 0x22f   : > { %1729 = vmatpush3.bf16.msra.mxu0 %v1716_v18 }
 0x230   : > { %1658 = vmatprep.subr.bf16.mxu0 %v1787_v6 }
 0x2e5   : > { %v764_v19 = vpop.f32.mrb[4].mxu0  ;;  %v836_v20 = vpop.f32.mrb[4].mxu1 }
 0x2e6   : > { %v917_v21 = vrot.slane %v764_v19, 7  ;;  %v1582_v22 = vpop.f32.mrb[5].mxu0  ;;  %v1594_v25 = vpop.f32.mrb[5].mxu1 }
 0x2e7   : > { %v767_v26 = vpop.f32.mrb[6].mxu0  ;;  %v839_v27 = vpop.f32.mrb[6].mxu1 }
 0x2e8   : > { %v918_v28 = vsel %vm916_vm2, %v917_v21, 0.0  ;;  %v1583_v3 = vpop.f32.mrb[7].mxu0  ;;  %v1595_v29 = vpop.f32.mrb[7].mxu1  ;;  %v1761_v26 = vld [vmem:[%s2142_s13] sm:$0xff]  }
 0x2e9   : > { %v919_v30 = vadd.f32 %v918_v28, %v836_v20  ;;  %v1763_v28 = vld [vmem:[%s2142_s13 + $0x10] sm:$0xff]   ;;  %v1764_v3 = vld [vmem:[%s2142_s13 + $0x18] sm:$0xff]  }
 0x2f5   : > { %v908_v31 = vpop.f32.mrb[8].mxu0 }
 0x2f6   : > { %v921_v32 = vrot.slane %v908_v31, 1  ;;  %v1606_v33 = vpop.f32.mrb[9].mxu0 }
 0x2f7   : > { %v911_v34 = vpop.f32.mrb[10].mxu0 }
 0x2f8   : > { %v922_v35 = vsel %vm920_vm3, %v921_v32, 0.0  ;;  %v1607_v37 = vpop.f32.mrb[11].mxu0 }
 0x2f9   : > { %v923_v38 = vadd.f32 %v922_v35, %v919_v30 }
 0x2fb   : > { %v931_v39 = vadd.f32 %v1446_v36, %v923_v38 }
 0x2fd   : > { %v942_v40 = vsel %vm502_vm1, %v931_v39, 0.0 }
 0x2fe   : > { %v943_v41 = vrot.slane %v942_v40, 4 }
 0x300   : > { %v944_v42 = vadd.f32 %v943_v41, %v942_v40 }
 0x302   : > { %v945_v43 = vrot.slane %v944_v42, 2 }
 0x304   : > { %v946_v44 = vadd.f32 %v945_v43, %v944_v42 }
 0x306   : > { %v947_v45 = vrot.slane %v946_v44, 1 }
 0x308   : > { %v948_v46 = vadd.f32 %v947_v45, %v946_v44  ;;  %v1465_v44 = vld [vmem:[%s2143_s14] ss:$0 sm:$0xff] }
 0x30a   : > { %1625 = vmatmul.mubr.msk.f32.vlgmr.msra.gmra.mrb[2].mxu1 %vm502_vm1, %v948_v46 }
 0x30b   : > { %1654 = vmatprep.mubr.msk.bf16.mxu1 %vm1786_vm0, %v1787_v6  ;;  %1647 = vmatpush3.bf16.msra.mxu1 %v1753_v60 }
 0x30c   : > { %1648 = vmatprep.subr.bf16.mxu1 %v1787_v6 }
 0x30f   : > { %1649 = vmatpush3.bf16.msra.mxu1 %v1755_v62 }
 0x310   : > { %1650 = vmatprep.subr.bf16.mxu1 %v1787_v6 }
 0x313   : > { %1651 = vmatpush3.bf16.msra.mxu1 %v1757_v0 }
 0x314   : > { %1652 = vmatprep.subr.bf16.mxu1 %v1787_v6 }
 0x317   : > { %1653 = vmatpush3.bf16.msra.mxu1 %v1759_v2 }
 0x318   : > { %1670 = vmatprep.subr.bf16.mxu1 %v1787_v6 }
 0x3dd   : > { %v1018_v47 = vpop.f32.mrb[2].mxu1 }
 0x3de   : > { %v1022_v48 = vmul.f32 0.0625, %v1018_v47  ;;  %v1626_v49 = vpop.f32.mrb[3].mxu1 }
 0x3e0   : > { %v1026_v50 = vrot.slane %v1022_v48, %v1932_v24 }
 0x3e2   : > { %v1027_v51 = vsub.f32 %v931_v39, %v1026_v50 }
 0x3e4   : > { %v1028_v52 = vmul.f32 %v1027_v51, %v1027_v51 }
 0x3e6   : > { %v1029_v53 = vsel %vm502_vm1, %v1028_v52, 0.0 }
 0x3e7   : > { %v1030_v54 = vrot.slane %v1029_v53, 4 }
 0x3e9   : > { %v1031_v55 = vadd.f32 %v1030_v54, %v1029_v53 }
 0x3eb   : > { %v1032_v56 = vrot.slane %v1031_v55, 2 }
 0x3ed   : > { %v1033_v57 = vadd.f32 %v1032_v56, %v1031_v55 }
 0x3ef   : > { %v1034_v58 = vrot.slane %v1033_v57, 1 }
 0x3f1   : > { %v1035_v59 = vadd.f32 %v1034_v58, %v1033_v57 }
 0x3f3   : > { %1644 = vmatmul.mubr.msk.f32.vlgmr.msra.gmra.mrb[2].mxu0 %vm502_vm1, %v1035_v59 }
 0x3f4   : > { %1666 = vmatprep.mubr.msk.bf16.mxu0 %vm1786_vm0, %v1787_v6  ;;  %1659 = vmatpush3.bf16.msra.mxu0 %v1754_v61 }
 0x3f5   : > { %1660 = vmatprep.subr.bf16.mxu0 %v1787_v6 }
 0x3f8   : > { %1661 = vmatpush3.bf16.msra.mxu0 %v1756_v63 }
 0x3f9   : > { %1662 = vmatprep.subr.bf16.mxu0 %v1787_v6 }
 0x3fc   : > { %1663 = vmatpush3.bf16.msra.mxu0 %v1758_v1 }
 0x3fd   : > { %1664 = vmatprep.subr.bf16.mxu0 %v1787_v6 }
 0x400   : > { %1665 = vmatpush3.bf16.msra.mxu0 %v1760_v4 }
 0x4c6   : > { %v1105_v5 = vpop.f32.mrb[2].mxu0 }
 0x4c7   : > { %v1109_v7 = vmul.f32 0.0625, %v1105_v5  ;;  %v1645_v8 = vpop.f32.mrb[3].mxu0 }
 0x4c9   : > { %v1110_v9 = vadd.f32 1e-06, %v1109_v7 }
 0x4cb   : > { %1771 = vrsqrt.f32 %v1110_v9 }
 0x4d5   : > { %v1772_v11 = vpop.eup %1771 }
 0x4d6   : > { %v1112_v13 = vmul.f32 %v1772_v11, %v940_v10 }
 0x4d8   : > { %v1116_v14 = vrot.slane %v1112_v13, %v1932_v24  ;;  %v1762_v24 = vld [vmem:[%s2142_s13 + $0x8] sm:$0xff]  }
 0x4da   : > { %v1117_v16 = vmul.f32 %v1116_v14, %v1027_v51 }
 0x4dc   : > { %v1124_v17 = vadd.f32 %v1449_v15, %v1117_v16 }
 0x4de   : > { %v1125_v18 = vsub.f32 0.0, %v1124_v17 }
 0x4e0   : > { %v1126_v19 = vmul.f32 1.442695, %v1125_v18 }
 0x4e2   : > { %1773 = vpow2.f32 %v1126_v19 }
 0x4ec   : > { %v1774_v20 = vpop.eup %1773 }
 0x4ed   : > { %v1128_v21 = vadd.f32 1.0, %v1774_v20 }
 0x4ef   : > { %1775 = vrcp.f32 %v1128_v21 }
 0x4f9   : > { %v1776_v22 = vpop.eup %1775 }
 0x4fa   : > { %v1131_v25 = vmul.f32 %v1776_v22, %v1124_v17 }
 0x4fc   : > { %v1132_v27 = vpack.c.bf16 %v1131_v25, %v1131_v25 }
 0x4fe   : > { %1655 = vmatmul.mubr.msk.bf16.vlgmr.msra.gmra.mrb[8].mxu1 %vm502_vm1, %v1132_v27  ;;  %1667 = vmatmul.mubr.msk.bf16.vlgmr.msra.gmra.mrb[12].mxu0 %vm502_vm1, %v1132_v27 }
 0x4ff   : > { %1671 = vmatpush3.bf16.msra.mxu1 %v1761_v26  ;;  %1678 = vmatprep.mubr.msk.bf16.mxu1 %vm1786_vm0, %v1787_v6 }
 0x500   : > { %1672 = vmatprep.subr.bf16.mxu1 %v1787_v6 }
 0x503   : > { %1673 = vmatpush3.bf16.msra.mxu1 %v1762_v24 }
 0x504   : > { %1674 = vmatprep.subr.bf16.mxu1 %v1787_v6 }
 0x507   : > { %1675 = vmatpush3.bf16.msra.mxu1 %v1763_v28 }
 0x508   : > { %1676 = vmatprep.subr.bf16.mxu1 %v1787_v6 }
 0x50b   : > { %1677 = vmatpush3.bf16.msra.mxu1 %v1764_v3 }
 0x50e   : > { %1679 = vmatmul.mubr.msk.bf16.vlgmr.msra.gmra.mrb[12].mxu1 %vm502_vm1, %v1132_v27 }
 0x5d1   : > { %v1202_v29 = vpop.f32.mrb[8].mxu1  ;;  %v1274_v30 = vpop.f32.mrb[12].mxu0 }
 0x5d2   : > { %v1352_v31 = vrot.slane %v1202_v29, 7  ;;  %v1656_v32 = vpop.f32.mrb[9].mxu1  ;;  %v1668_v33 = vpop.f32.mrb[13].mxu0 }
 0x5d3   : > { %v1205_v34 = vpop.f32.mrb[10].mxu1  ;;  %v1277_v35 = vpop.f32.mrb[14].mxu0 }
 0x5d4   : > { %v1353_v36 = vsel %vm916_vm2, %v1352_v31, 0.0  ;;  %v1657_v37 = vpop.f32.mrb[11].mxu1  ;;  %v1669_v38 = vpop.f32.mrb[15].mxu0 }
 0x5d5   : > { %v1354_v39 = vadd.f32 %v1353_v36, %v1274_v30 }
 0x5e1   : > { %v1346_v40 = vpop.f32.mrb[12].mxu1 }
 0x5e2   : > { %v1355_v41 = vrot.slane %v1346_v40, 1  ;;  %v1680_v6 = vpop.f32.mrb[13].mxu1 }
 0x5e3   : > { %v1349_v42 = vpop.f32.mrb[14].mxu1 }
 0x5e4   : > { %v1356_v43 = vsel %vm920_vm3, %v1355_v41, 0.0  ;;  %v1681_v45 = vpop.f32.mrb[15].mxu1 }
 0x5e5   : > { %v1357_v46 = vadd.f32 %v1356_v43, %v1354_v39 }
 0x5e7   : > { %v1365_v47 = vadd.f32 %v1465_v44, %v1357_v46 }
 0x5e9   : > { %v1366_v48 = vadd.f32 %v1365_v47, %v1913_v12 }
 0x5eb   : > { %1367 = vst.msk [vmem:[%s489_s21] sm:$0xff] %vm502_vm1, %v1366_v48 }
 0x5ec PF: > { %s25_s18 = sadd.s32 1, %s1783_s18  }
 0x5ed   : > { %p22_p4 = scmp.ge.s32.totalorder %s25_s18, 4  }
 0x5ef   :  { %24 = sbr.rel (!%p22_p4) target bundleno = 1 (0x1), region = 110 }

// kernel: _lambda_.13
= control target key start
LH: loop header
LB: loop body
LE: loop exit
PB: predicated region body
PF: predicated region fallthrough
CT: control target
= control target key end

     0   :  { %s2745_s0 = inlined_call_operand.vmem [shape: f32[2,8,64], index: 0, kind: input, shape index: {}]   ;;  %s2746_s1 = inlined_call_operand.vmem [shape: f32[64,64], index: 1, kind: input, shape index: {}]   ;;  %s2747_s2 = inlined_call_operand.vmem [shape: f32[1,64], index: 2, kind: input, shape index: {}]   ;;  %s2748_s3 = inlined_call_operand.vmem [shape: f32[1,64], index: 3, kind: input, shape index: {}]   ;;  %s2749_s4 = inlined_call_operand.hbm [shape: bf16[64,64], index: 4, kind: input, shape index: {}]   ;;  %s2750_s5 = inlined_call_operand.hbm [shape: bf16[64,64], index: 5, kind: input, shape index: {}]   ;;  %s2751_s6 = inlined_call_operand.hbm [shape: bf16[64,64], index: 6, kind: input, shape index: {}]   ;;  %s2752_s7 = inlined_call_operand.hbm [shape: f32[1,64], index: 7, kind: input, shape index: {}]   ;;  %s2753_s8 = inlined_call_operand.vmem [shape: f32[64,64], index: 8, kind: input, shape index: {}]   ;;  %s2754_s9 = inlined_call_operand.vmem [shape: f32[1,64], index: 9, kind: input, shape index: {}]   ;;  %s2755_s10 = inlined_call_operand.vmem [shape: f32[1,64], index: 10, kind: input, shape index: {}]   ;;  %s2756_s11 = inlined_call_operand.hbm [shape: bf16[64,64], index: 11, kind: input, shape index: {}]   ;;  %s2757_s12 = inlined_call_operand.hbm [shape: bf16[64,64], index: 12, kind: input, shape index: {}]   ;;  %s2758_s13 = inlined_call_operand.vmem [shape: bf16[64,64], index: 13, kind: input, shape index: {}]   ;;  %s2759_s14 = inlined_call_operand.hbm [shape: f32[1,64], index: 14, kind: input, shape index: {}]   ;;  %s2760_s15 = inlined_call_operand.vmem [shape: f32[2,8,64], index: 15, kind: output, shape index: {}]  }
   0x1   :  { %2765 = sst [smem:[#allocation18_spill]] %s2754_s9 }
   0x2   :  { %2766 = sst [smem:[#allocation19_spill]] %s2755_s10 }
   0x3   :  { %2767 = sst [smem:[#allocation20_spill]] %s2758_s13 }
   0x4   :  { %2768 = sst [smem:[#allocation21_spill]] %s2760_s15 }
   0x5   :  { %20 = vsyncpa [#allocation3], 0 }
   0x6   :  { %21 = vsyncpa [#allocation5], 0 }
   0x7   :  { %22 = vsyncpa [#allocation8], 0 }
   0x8   :  { %23 = vsyncpa [#allocation11], 0  ;;  %s2343_s18 = smov 0  }
   0x9 LB: > { %2769 = sst [smem:[#allocation17_spill]] %s2249_s18  ;;  %s2349_s19 = sadd.s32 4294967295, %s2249_s18   ;;  %s2249_s18 = sphi %s2343_s18, %s29_s18  }
   0xa   : > { %p1590_p0 = scmp.ge.s32.totalorder %s2249_s18, 1  ;;  %p380_p1 = scmp.lt.s32.totalorder %s2249_s18, 3 }
   0xb   : > { %p2763_p2 = scmp.eq.s32.totalorder %s2349_s19, 0  ;;  %s2251_s21 = smov [#allocation4]  }
   0xc   : > { %p2354_p3 = pnand %p1590_p0, %p380_p1  ;;  %s414_s22 = sshll.u32 %s2251_s21, 4  ;;  %s2358_s22 = int_to_ptr.vmem [resolvable:$true] %s414_s22 }
   0xd   : > { %s2252_s23 = smov [#allocation7]   ;;  %s2253_s26 = smov [#allocation10]  }
   0xe   : > { %s2770_s20 = scalar_select %p2354_p3, 1, 0 }
   0xf   : > { %p1939_p4 = pneg %p2354_p3  ;;  %s441_s24 = sshll.u32 %s2252_s23, 4  ;;  %s2362_s24 = int_to_ptr.vmem [resolvable:$true] %s441_s24 }
  0x10   : > { %s473_s27 = sshll.u32 %s2253_s26, 4  ;;  %s2254_s28 = smov [#allocation2]   ;;  %s2370_s27 = int_to_ptr.vmem [resolvable:$true] %s473_s27 }
  0x11   : > { %p2366_p5 = pnand %p2763_p2, %p1939_p4  ;;  %s2372_s29 = sshll.u32 %s2254_s28, 4  ;;  %s402_s29 = int_to_ptr.vmem [resolvable:$true] %s2372_s29 }
  0x12   : > { %s2031_s17 = scalar_lea.hbm %s2750_s5, 512 }
  0x13   : > { %p2032_p6 = scmp.ne.s32.totalorder %s2750_s5, %s2031_s17  ;;  %p2382_p7 = pneg %p2366_p5 }
  0x14   : > { %p2038_p10 = scmp.lt.u32.totalorder %s2031_s17, %s2750_s5 }
  0x15   : > { %p2034_p8 = pnand %p2382_p7, %p2032_p6 }
  0x17   : > { %p2035_p9 = pneg %p2034_p8 }
  0x19   : > { %p2040_p11 = pnand %p2038_p10, %p2035_p9 }
  0x1b   : > { %2043 = shalt.err (!%p2040_p11)
}
  0x1c   : > { %s2044_s30 = scalar_lea.vmem %s2358_s22, 512  ;;  %p2052_p1 = scmp.lt.s32.totalorder %s2358_s22, %s2358_s22 }
  0x1d   : > { %p2045_p12 = scmp.ne.s32.totalorder %s2358_s22, %s2044_s30  ;;  %p2053_p4 = scmp.lt.s32.totalorder %s2044_s30, %s2044_s30 }
  0x1f   : > { %p2047_p13 = pnand %p2045_p12, %p2382_p7  ;;  %p2054_p6 = por %p2053_p4, %p2052_p1 }
  0x21   : > { %p2048_p0 = pneg %p2047_p13 }
  0x23   : > { %p2055_p8 = pnand %p2054_p6, %p2048_p0 }
  0x25   : > { %2058 = shalt.err (!%p2055_p8)
}
  0x26   : > { %s2255_s16 = smov 64   ;;  %s2256_s17 = smov 4  }
  0x27   : > { %1945 = dma.hbm_to_vmem [thread:$0]  (!%p2366_p5), %s2750_s5, 512, %s2358_s22, [#allocation5], %s2255_s16, %s2255_s16, %s2256_s17  }
  0x28   : > { %s2059_s30 = scalar_lea.hbm %s2752_s7, 16 }
  0x29   : > { %p2060_p9 = scmp.ne.s32.totalorder %s2752_s7, %s2059_s30  ;;  %p2066_p12 = scmp.lt.u32.totalorder %s2059_s30, %s2752_s7 }
  0x2b   : > { %p2062_p10 = pnand %p2060_p9, %p2382_p7 }
  0x2d   : > { %p2063_p11 = pneg %p2062_p10 }
  0x2f   : > { %p2068_p13 = pnand %p2066_p12, %p2063_p11 }
  0x31   : > { %2071 = shalt.err (!%p2068_p13)
}
  0x32   : > { %s2072_s22 = scalar_lea.vmem %s2362_s24, 16  ;;  %s2079_s13 = scalar_lea.vmem %s2362_s24, 32 }
  0x33   : > { %p2073_p0 = scmp.ne.s32.totalorder %s2362_s24, %s2072_s22  ;;  %p2080_p6 = scmp.lt.s32.totalorder %s2362_s24, %s2362_s24 }
  0x34   : > { %p2081_p8 = scmp.lt.s32.totalorder %s2079_s13, %s2072_s22 }
  0x35   : > { %p2075_p1 = pnand %p2073_p0, %p2382_p7 }
  0x36   : > { %p2082_p9 = por %p2081_p8, %p2080_p6 }
  0x37   : > { %p2076_p4 = pneg %p2075_p1 }
  0x39   : > { %p2083_p10 = pnand %p2082_p9, %p2076_p4 }
  0x3b   : > { %2086 = shalt.err (!%p2083_p10)
}
  0x3c   : > { %1951 = dma.hbm_to_vmem [thread:$0]  (!%p2366_p5), %s2752_s7, 16, %s2362_s24, [#allocation8]  }
  0x3d   : > { %s2087_s23 = scalar_lea.hbm %s2757_s12, 512 }
  0x3e   : > { %p2088_p11 = scmp.ne.s32.totalorder %s2757_s12, %s2087_s23  ;;  %p2094_p0 = scmp.lt.u32.totalorder %s2087_s23, %s2757_s12 }
  0x40   : > { %p2090_p12 = pnand %p2088_p11, %p2382_p7 }
  0x42   : > { %p2091_p13 = pneg %p2090_p12 }
  0x44   : > { %p2096_p1 = pnand %p2094_p0, %p2091_p13 }
  0x46   : > { %2099 = shalt.err (!%p2096_p1)
}
  0x47   : > { %s2100_s24 = scalar_lea.vmem %s2370_s27, 512  ;;  %p2108_p9 = scmp.lt.s32.totalorder %s2370_s27, %s2370_s27 }
  0x48   : > { %p2101_p4 = scmp.ne.s32.totalorder %s2370_s27, %s2100_s24  ;;  %p2109_p10 = scmp.lt.s32.totalorder %s2100_s24, %s2100_s24 }
  0x4a   : > { %p2103_p6 = pnand %p2101_p4, %p2382_p7  ;;  %p2110_p11 = por %p2109_p10, %p2108_p9 }
  0x4c   : > { %p2104_p8 = pneg %p2103_p6 }
  0x4e   : > { %p2111_p12 = pnand %p2110_p11, %p2104_p8 }
  0x50   : > { %2114 = shalt.err (!%p2111_p12)
}
  0x51   : > { %1957 = dma.hbm_to_vmem [thread:$0]  (!%p2366_p5), %s2757_s12, 512, %s2370_s27, [#allocation11], %s2255_s16, %s2255_s16, %s2256_s17  }
  0x52   : > { %s2115_s21 = scalar_lea.hbm %s2749_s4, 512 }
  0x53   : > { %p2116_p13 = scmp.ne.s32.totalorder %s2749_s4, %s2115_s21  ;;  %p2122_p4 = scmp.lt.u32.totalorder %s2115_s21, %s2749_s4 }
  0x55   : > { %p2118_p0 = pnand %p2116_p13, %p2382_p7 }
  0x57   : > { %p2119_p1 = pneg %p2118_p0 }
  0x59   : > { %p2124_p6 = pnand %p2122_p4, %p2119_p1 }
  0x5b   : > { %2127 = shalt.err (!%p2124_p6)
}
  0x5c   : > { %s2128_s22 = scalar_lea.vmem %s402_s29, 512  ;;  %p2136_p11 = scmp.lt.s32.totalorder %s402_s29, %s402_s29 }
  0x5d   : > { %p2129_p8 = scmp.ne.s32.totalorder %s402_s29, %s2128_s22  ;;  %p2137_p12 = scmp.lt.s32.totalorder %s2128_s22, %s2128_s22 }
  0x5f   : > { %p2131_p9 = pnand %p2129_p8, %p2382_p7  ;;  %p2138_p2 = por %p2137_p12, %p2136_p11 }
  0x61   : > { %p2132_p10 = pneg %p2131_p9 }
  0x63   : > { %p2139_p3 = pnand %p2138_p2, %p2132_p10 }
  0x65   : > { %2142 = shalt.err (!%p2139_p3)
}
  0x66   : > { %1942 = dma.hbm_to_vmem [thread:$0]  (!%p2366_p5), %s2749_s4, 512, %s402_s29, [#allocation3], %s2255_s16, %s2255_s16, %s2256_s17  }
  0x67   : > { %s2257_s13 = smov [#allocation6]   ;;  %s2258_s10 = smov [#allocation9]  }
  0x68   : > { %s427_s9 = sshll.u32 %s2257_s13, 4  ;;  %s460_s15 = sshll.u32 %s2258_s10, 4  ;;  %s428_s9 = int_to_ptr.vmem [resolvable:$true] %s427_s9  ;;  %s461_s15 = int_to_ptr.vmem [resolvable:$true] %s460_s15 }
  0x69   : > { %s2143_s26 = scalar_lea.hbm %s2751_s6, 512 }
  0x6a   : > { %p2144_p2 = scmp.ne.s32.totalorder %s2751_s6, %s2143_s26  ;;  %p2150_p0 = scmp.lt.u32.totalorder %s2143_s26, %s2751_s6 }
  0x6c   : > { %p2146_p3 = pnand %p2144_p2, %p2382_p7 }
  0x6e   : > { %p2147_p13 = pneg %p2146_p3 }
  0x70   : > { %p2152_p1 = pnand %p2150_p0, %p2147_p13 }
  0x72   : > { %2155 = shalt.err (!%p2152_p1)
}
  0x73   : > { %s2156_s29 = scalar_lea.vmem %s428_s9, 512  ;;  %p2164_p9 = scmp.lt.s32.totalorder %s428_s9, %s428_s9 }
  0x74   : > { %p2157_p4 = scmp.ne.s32.totalorder %s428_s9, %s2156_s29  ;;  %p2165_p10 = scmp.lt.s32.totalorder %s2156_s29, %s2156_s29 }
  0x76   : > { %p2159_p6 = pnand %p2157_p4, %p2382_p7  ;;  %p2166_p11 = por %p2165_p10, %p2164_p9 }
  0x78   : > { %p2160_p8 = pneg %p2159_p6 }
  0x7a   : > { %p2167_p12 = pnand %p2166_p11, %p2160_p8 }
  0x7c   : > { %2170 = shalt.err (!%p2167_p12)
}
  0x7d   : > { %1948 = dma.hbm_to_vmem [thread:$0]  (!%p2366_p5), %s2751_s6, 512, %s428_s9, [#allocation5], %s2255_s16, %s2255_s16, %s2256_s17  }
  0x7e   : > { %s2171_s23 = scalar_lea.hbm %s2756_s11, 512 }
  0x7f   : > { %p2172_p2 = scmp.ne.s32.totalorder %s2756_s11, %s2171_s23  ;;  %p2178_p0 = scmp.lt.u32.totalorder %s2171_s23, %s2756_s11 }
  0x81   : > { %p2174_p3 = pnand %p2172_p2, %p2382_p7 }
  0x83   : > { %p2175_p13 = pneg %p2174_p3 }
  0x85   : > { %p2180_p1 = pnand %p2178_p0, %p2175_p13 }
  0x87   : > { %2183 = shalt.err (!%p2180_p1)
}
  0x88   : > { %s2184_s27 = scalar_lea.vmem %s461_s15, 512  ;;  %p2192_p9 = scmp.lt.s32.totalorder %s461_s15, %s461_s15 }
  0x89   : > { %p2185_p4 = scmp.ne.s32.totalorder %s461_s15, %s2184_s27  ;;  %p2193_p10 = scmp.lt.s32.totalorder %s2184_s27, %s2184_s27 }
  0x8b   : > { %p2187_p6 = pnand %p2185_p4, %p2382_p7  ;;  %p2194_p11 = por %p2193_p10, %p2192_p9 }
  0x8d   : > { %p2188_p8 = pneg %p2187_p6 }
  0x8f   : > { %p2195_p12 = pnand %p2194_p11, %p2188_p8 }
  0x91   : > { %2198 = shalt.err (!%p2195_p12)
}
  0x92   : > { %1954 = dma.hbm_to_vmem [thread:$0]  (!%p2366_p5), %s2756_s11, 512, %s461_s15, [#allocation8], %s2255_s16, %s2255_s16, %s2256_s17  }
  0x93   : > { %s2259_s24 = smov [#allocation12]   ;;  %s2199_s23 = scalar_lea.hbm %s2759_s14, 16 }
  0x94   : > { %s490_s13 = sshll.u32 %s2259_s24, 4  ;;  %p2200_p2 = scmp.ne.s32.totalorder %s2759_s14, %s2199_s23  ;;  %s491_s13 = int_to_ptr.vmem [resolvable:$true] %s490_s13 }
  0x95   : > { %p2206_p0 = scmp.lt.u32.totalorder %s2199_s23, %s2759_s14 }
  0x96   : > { %p2202_p3 = pnand %p2200_p2, %p2382_p7 }
  0x98   : > { %p2203_p13 = pneg %p2202_p3 }
  0x9a   : > { %p2208_p1 = pnand %p2206_p0, %p2203_p13 }
  0x9c   : > { %2211 = shalt.err (!%p2208_p1)
}
  0x9d   : > { %s2212_s16 = scalar_lea.vmem %s491_s13, 16  ;;  %s2219_s17 = scalar_lea.vmem %s491_s13, 32 }
  0x9e   : > { %p2213_p4 = scmp.ne.s32.totalorder %s491_s13, %s2212_s16  ;;  %p2220_p9 = scmp.lt.s32.totalorder %s491_s13, %s491_s13 }
  0x9f   : > { %p2221_p10 = scmp.lt.s32.totalorder %s2219_s17, %s2212_s16 }
  0xa0   : > { %p2215_p6 = pnand %p2213_p4, %p2382_p7 }
  0xa1   : > { %p2222_p11 = por %p2221_p10, %p2220_p9 }
  0xa2   : > { %p2216_p8 = pneg %p2215_p6 }
  0xa4   : > { %p2223_p12 = pnand %p2222_p11, %p2216_p8 }
  0xa6   : > { %2226 = shalt.err (!%p2223_p12)
}
  0xa7   : > { %1960 = dma.hbm_to_vmem [thread:$0]  (!%p2366_p5), %s2759_s14, 16, %s491_s13, [#allocation11]  }
  0xa8   : > { %p2773_p2 = scmp.ne.s32.totalorder %s2770_s20, 0 }
  0xa9   : > { %p2774_p3 = scmp.eq.s32.totalorder (!%p2773_p2), %s2349_s19, 0 }
  0xaa   : > { %510 = sbr.rel (%p2773_p2) target bundleno = 1693 (0x69d), region = 80 }
  0xb1   : > { %2232 = dma.done.wait (%p2774_p3), [#allocation3], 512   ;;  %p2775_p7 = pmov %p2774_p3 }
  0xb2   : > { %p2776_p13 = pmov %p2774_p3 }
  0xb3   : > { %2234 = vsyncadd (%p2775_p7), [#allocation3], 4294966784 }
  0xb4   : > { %2236 = dma.done.wait (%p2776_p13), [#allocation5], 1024   ;;  %p2777_p0 = pmov %p2774_p3 }
  0xb6   : > { %2238 = vsyncadd (%p2777_p0), [#allocation5], 4294966272  ;;  %p2778_p1 = pmov %p2777_p0 }
  0xb7   : > { %p2779_p5 = pmov %p2777_p0 }
  0xb8   : > { %2240 = dma.done.wait (%p2778_p1), [#allocation8], 528  }
  0xb9   : > { %2242 = vsyncadd (%p2779_p5), [#allocation8], 4294966768  ;;  %p2780_p4 = pmov %p2777_p0 }
  0xba   : > { %p2781_p6 = pmov %p2777_p0 }
  0xbb   : > { %2244 = dma.done.wait (%p2780_p4), [#allocation11], 528  }
  0xbc   : > { %2246 = vsyncadd (%p2781_p6), [#allocation11], 4294966768  ;;  %p580_p8 = scmp.lt.s32.totalorder %s2349_s19, 1  ;;  %v2260_v0 = vmov 0.0|0.0   ;;  %vm2261_vm0 = vmmov 0   ;;  %v2262_v1 = vmov 0.0   ;;  %v683_v22 = vlaneseq }
  0xbd   : > { %1863 = vmatprep.subr.bf16.mxu0 %v2260_v0  ;;  %1731 = vmatprep.mubr.msk.f32.mxu0 %vm2261_vm0, %v2262_v1  ;;  %v590_v2 = vld [vmem:[%s2746_s1] sm:$0xff]  ;;  %v591_v3 = vld [vmem:[%s2746_s1 + $0x8] sm:$0xff]  ;;  %v592_v4 = vld [vmem:[%s2746_s1 + $0x10] sm:$0xff]  ;;  %vm600_vm1 = vcmask 523264   ;;  %s2782_s21 = sld [smem:[#allocation18_spill]]  ;;  %s2783_s28 = sld [smem:[#allocation19_spill]] }
  0xbe   : > { %s2788_s19 = smov (!%p580_p8, %s2349_s19), 1  ;;  %1875 = vmatprep.subr.bf16.mxu1 %v2260_v0  ;;  %1750 = vmatprep.mubr.msk.f32.mxu1 %vm2261_vm0, %v2262_v1  ;;  %v1864_v5 = vpack.c.bf16 %v591_v3, %v590_v2  ;;  %v593_v6 = vld [vmem:[%s2746_s1 + $0x18] sm:$0xff]  ;;  %v594_v9 = vld [vmem:[%s2746_s1 + $0x20] sm:$0xff]  ;;  %v595_v11 = vld [vmem:[%s2746_s1 + $0x28] sm:$0xff]  ;;  %v2611_v23 = vshrl.u32 %v683_v22, 7  ;;  %s2784_s16 = sld [smem:[#allocation20_spill]] }
  0xbf   : > { %s1607_s18 = sshll.u32 %s2788_s19, 3  ;;  %v1867_v8 = vpack.c.bf16 %v593_v6, %v592_v4  ;;  %v596_v13 = vld [vmem:[%s2746_s1 + $0x30] sm:$0xff]  ;;  %v1870_v15 = vpack.c.bf16 %v595_v11, %v594_v9  ;;  %v597_v16 = vld [vmem:[%s2746_s1 + $0x38] sm:$0xff]  ;;  %v1995_v38 = vld [vmem:[#allocation2] sm:$0xff]   ;;  %s2785_s13 = sld [smem:[#allocation21_spill]] }
  0xc0   : > { %s583_s9 = scalar_lea.vmem %s2745_s0, %s1607_s18  ;;  %1865 = vmatpush3.bf16.msra.mxu0 %v1864_v5  ;;  %1877 = vmatpush3.bf16.msra.mxu1 %v1864_v5  ;;  %v1873_v19 = vpack.c.bf16 %v597_v16, %v596_v13  ;;  %v2614_v24 = vsub.s32 0, %v2611_v23  ;;  %v1996_v39 = vld [vmem:[#allocation4] sm:$0xff]   ;;  %v1997_v40 = vld [vmem:[#allocation2 + $0x8] sm:$0xff]   ;;  %v1999_v42 = vld [vmem:[#allocation2 + $0x10] sm:$0xff]   ;;  %vm1014_vm2 = vcmp.gt.s32.totalorder %v2611_v23, 0  ;;  %vm1018_vm3 = vcmp.lt.s32.totalorder %v2611_v23, 7 }
  0xc1   : > { %v2584_v7 = vld [vmem:[%s583_s9] sm:$0xff]  ;;  %1866 = vmatprep.subr.bf16.mxu0 %v2260_v0  ;;  %1878 = vmatprep.subr.bf16.mxu1 %v2260_v0  ;;  %v1998_v41 = vld [vmem:[#allocation4 + $0x8] sm:$0xff]   ;;  %v2000_v43 = vld [vmem:[#allocation4 + $0x10] sm:$0xff]  }
  0xc2   : > { %v601_v10 = vsel %vm600_vm1, %v2584_v7, 0.0  ;;  %v2001_v44 = vld [vmem:[#allocation2 + $0x18] sm:$0xff]   ;;  %v598_v50 = vld [vmem:[%s2747_s2] sm:$0x1]  ;;  %v2004_v3 = vld [vmem:[#allocation6 + $0x8] sm:$0xff]  }
  0xc3   : > { %v602_v12 = vrot.slane %v601_v10, 4  ;;  %v2002_v45 = vld [vmem:[#allocation4 + $0x18] sm:$0xff]   ;;  %v1611_v54 = vld [vmem:[%s2748_s3] ss:$0 sm:$0xff]  ;;  %v2005_v4 = vld [vmem:[#allocation6 + $0x10] sm:$0xff]  }
  0xc4   : > { %1868 = vmatpush3.bf16.msra.mxu0 %v1867_v8  ;;  %1880 = vmatpush3.bf16.msra.mxu1 %v1867_v8  ;;  %v2003_v63 = vld [vmem:[#allocation6] sm:$0xff]   ;;  %v2006_v5 = vld [vmem:[#allocation6 + $0x18] sm:$0xff]   ;;  %v1031_v8 = vld [vmem:[%s2753_s8 + $0x8] sm:$0xff] }
  0xc5   : > { %v603_v14 = vadd.f32 %v602_v12, %v601_v10  ;;  %1869 = vmatprep.subr.bf16.mxu0 %v2260_v0  ;;  %1881 = vmatprep.subr.bf16.mxu1 %v2260_v0  ;;  %v1030_v6 = vld [vmem:[%s2753_s8] sm:$0xff]  ;;  %v1032_v10 = vld [vmem:[%s2753_s8 + $0x10] sm:$0xff]  ;;  %v1033_v11 = vld [vmem:[%s2753_s8 + $0x18] sm:$0xff]  ;;  %s587_s10 = scalar_lea.vmem %s2785_s13, %s1607_s18 }
  0xc6   : > { %v1888_v9 = vpack.c.bf16 %v1031_v8, %v1030_v6  ;;  %v1891_v12 = vpack.c.bf16 %v1033_v11, %v1032_v10  ;;  %v1034_v13 = vld [vmem:[%s2753_s8 + $0x20] sm:$0xff]  ;;  %v1036_v16 = vld [vmem:[%s2753_s8 + $0x30] sm:$0xff] }
  0xc7   : > { %v604_v17 = vrot.slane %v603_v14, 2  ;;  %v1038_v11 = vld [vmem:[%s2782_s21] sm:$0x1] }
  0xc8   : > { %1871 = vmatpush3.bf16.msra.mxu0 %v1870_v15  ;;  %1883 = vmatpush3.bf16.msra.mxu1 %v1870_v15 }
  0xc9   : > { %v605_v18 = vadd.f32 %v604_v17, %v603_v14  ;;  %1872 = vmatprep.subr.bf16.mxu0 %v2260_v0  ;;  %1884 = vmatprep.subr.bf16.mxu1 %v2260_v0  ;;  %v1035_v14 = vld [vmem:[%s2753_s8 + $0x28] sm:$0xff]  ;;  %v1037_v17 = vld [vmem:[%s2753_s8 + $0x38] sm:$0xff] }
  0xca   : > { %v1894_v15 = vpack.c.bf16 %v1035_v14, %v1034_v13 }
  0xcb   : > { %v606_v20 = vrot.slane %v605_v18, 1 }
  0xcc   : > { %1874 = vmatpush3.bf16.msra.mxu0 %v1873_v19  ;;  %1886 = vmatpush3.bf16.msra.mxu1 %v1873_v19 }
  0xcd   : > { %v607_v21 = vadd.f32 %v606_v20, %v605_v18  ;;  %1753 = vmatprep.subr.bf16.mxu0 %v2262_v1  ;;  %1765 = vmatprep.subr.bf16.mxu1 %v2262_v1  ;;  %v1897_v18 = vpack.c.bf16 %v1037_v17, %v1036_v16 }
  0xcf   : > { %1732 = vmatmul.mubr.msk.f32.vlgmr.msra.gmra.mrb[0].mxu0 %vm600_vm1, %v607_v21 }
  0xd0   : > { %1761 = vmatprep.mubr.msk.bf16.mxu0 %vm2261_vm0, %v2262_v1  ;;  %1754 = vmatpush3.bf16.msra.mxu0 %v1995_v38 }
  0xd1   : > { %1755 = vmatprep.subr.bf16.mxu0 %v2262_v1 }
  0xd4   : > { %1756 = vmatpush3.bf16.msra.mxu0 %v1997_v40 }
  0xd5   : > { %1757 = vmatprep.subr.bf16.mxu0 %v2262_v1 }
  0xd8   : > { %1758 = vmatpush3.bf16.msra.mxu0 %v1999_v42 }
  0xd9   : > { %1759 = vmatprep.subr.bf16.mxu0 %v2262_v1 }
  0xdc   : > { %1760 = vmatpush3.bf16.msra.mxu0 %v2001_v44 }
  0xdd   : > { %1777 = vmatprep.subr.bf16.mxu0 %v2262_v1 }
 0x1a2   : > { %v677_v25 = vpop.f32.mrb[0].mxu0 }
 0x1a3   : > { %v682_v26 = vmul.f32 0.0625, %v677_v25  ;;  %v1733_v27 = vpop.f32.mrb[1].mxu0 }
 0x1a5   : > { %v686_v28 = vrot.slane %v682_v26, %v2614_v24 }
 0x1a7   : > { %v687_v29 = vsub.f32 %v2584_v7, %v686_v28 }
 0x1a9   : > { %v688_v30 = vmul.f32 %v687_v29, %v687_v29 }
 0x1ab   : > { %v689_v31 = vsel %vm600_vm1, %v688_v30, 0.0 }
 0x1ac   : > { %v690_v32 = vrot.slane %v689_v31, 4 }
 0x1ae   : > { %v691_v33 = vadd.f32 %v690_v32, %v689_v31 }
 0x1b0   : > { %v692_v34 = vrot.slane %v691_v33, 2 }
 0x1b2   : > { %v693_v35 = vadd.f32 %v692_v34, %v691_v33 }
 0x1b4   : > { %v694_v36 = vrot.slane %v693_v35, 1 }
 0x1b6   : > { %v695_v37 = vadd.f32 %v694_v36, %v693_v35  ;;  %v1627_v36 = vld [vmem:[#allocation7] ss:$0 sm:$0xff] }
 0x1b8   : > { %1751 = vmatmul.mubr.msk.f32.vlgmr.msra.gmra.mrb[0].mxu1 %vm600_vm1, %v695_v37 }
 0x1b9   : > { %1773 = vmatprep.mubr.msk.bf16.mxu1 %vm2261_vm0, %v2262_v1  ;;  %1766 = vmatpush3.bf16.msra.mxu1 %v1996_v39 }
 0x1ba   : > { %1767 = vmatprep.subr.bf16.mxu1 %v2262_v1 }
 0x1bd   : > { %1768 = vmatpush3.bf16.msra.mxu1 %v1998_v41 }
 0x1be   : > { %1769 = vmatprep.subr.bf16.mxu1 %v2262_v1 }
 0x1c1   : > { %1770 = vmatpush3.bf16.msra.mxu1 %v2000_v43 }
 0x1c2   : > { %1771 = vmatprep.subr.bf16.mxu1 %v2262_v1 }
 0x1c5   : > { %1772 = vmatpush3.bf16.msra.mxu1 %v2002_v45 }
 0x1c6   : > { %1887 = vmatprep.subr.bf16.mxu1 %v2260_v0 }
 0x28b   : > { %v765_v46 = vpop.f32.mrb[0].mxu1 }
 0x28c   : > { %v769_v47 = vmul.f32 0.0625, %v765_v46  ;;  %v1752_v48 = vpop.f32.mrb[1].mxu1 }
 0x28e   : > { %v770_v49 = vadd.f32 1e-06, %v769_v47 }
 0x290   : > { %2019 = vrsqrt.f32 %v770_v49 }
 0x29a   : > { %v2020_v51 = vpop.eup %2019 }
 0x29b   : > { %v772_v52 = vmul.f32 %v2020_v51, %v598_v50 }
 0x29d   : > { %v776_v53 = vrot.slane %v772_v52, %v2614_v24 }
 0x29f   : > { %v777_v55 = vmul.f32 %v776_v53, %v687_v29 }
 0x2a1   : > { %v784_v56 = vadd.f32 %v1611_v54, %v777_v55 }
 0x2a3   : > { %v785_v57 = vsub.f32 0.0, %v784_v56 }
 0x2a5   : > { %v786_v58 = vmul.f32 1.442695, %v785_v57 }
 0x2a7   : > { %2021 = vpow2.f32 %v786_v58 }
 0x2b1   : > { %v2022_v59 = vpop.eup %2021 }
 0x2b2   : > { %v788_v60 = vadd.f32 1.0, %v2022_v59 }
 0x2b4   : > { %2023 = vrcp.f32 %v788_v60  ;;  %v2007_v60 = vld [vmem:[#allocation9] sm:$0xff]  }
 0x2be   : > { %v2024_v61 = vpop.eup %2023 }
 0x2bf   : > { %v791_v62 = vmul.f32 %v2024_v61, %v784_v56  ;;  %v2008_v61 = vld [vmem:[#allocation10] sm:$0xff]  }
 0x2c1   : > { %v792_v2 = vpack.c.bf16 %v791_v62, %v791_v62  ;;  %v2009_v62 = vld [vmem:[#allocation9 + $0x8] sm:$0xff]  }
 0x2c3   : > { %1762 = vmatmul.mubr.msk.bf16.vlgmr.msra.gmra.mrb[4].mxu0 %vm600_vm1, %v792_v2  ;;  %1774 = vmatmul.mubr.msk.bf16.vlgmr.msra.gmra.mrb[4].mxu1 %vm600_vm1, %v792_v2 }
 0x2c4   : > { %1778 = vmatpush3.bf16.msra.mxu0 %v2003_v63  ;;  %1785 = vmatprep.mubr.msk.bf16.mxu0 %vm2261_vm0, %v2262_v1  ;;  %v2010_v63 = vld [vmem:[#allocation10 + $0x8] sm:$0xff]  }
 0x2c5   : > { %1779 = vmatprep.subr.bf16.mxu0 %v2262_v1  ;;  %1805 = vmatprep.mubr.msk.f32.mxu1 %vm2261_vm0, %v2262_v1 }
 0x2c6   : > { %1889 = vmatpush3.bf16.msra.mxu1 %v1888_v9 }
 0x2c7   : > { %1890 = vmatprep.subr.bf16.mxu1 %v2260_v0 }
 0x2c8   : > { %1780 = vmatpush3.bf16.msra.mxu0 %v2004_v3  ;;  %v2012_v3 = vld [vmem:[#allocation10 + $0x10] sm:$0xff]  }
 0x2c9   : > { %1781 = vmatprep.subr.bf16.mxu0 %v2262_v1 }
 0x2ca   : > { %1892 = vmatpush3.bf16.msra.mxu1 %v1891_v12 }
 0x2cb   : > { %1893 = vmatprep.subr.bf16.mxu1 %v2260_v0 }
 0x2cc   : > { %1782 = vmatpush3.bf16.msra.mxu0 %v2005_v4  ;;  %v2013_v4 = vld [vmem:[#allocation9 + $0x18] sm:$0xff]  }
 0x2cd   : > { %1783 = vmatprep.subr.bf16.mxu0 %v2262_v1 }
 0x2ce   : > { %1895 = vmatpush3.bf16.msra.mxu1 %v1894_v15 }
 0x2cf   : > { %1896 = vmatprep.subr.bf16.mxu1 %v2260_v0 }
 0x2d0   : > { %1784 = vmatpush3.bf16.msra.mxu0 %v2006_v5  ;;  %v2014_v5 = vld [vmem:[#allocation10 + $0x18] sm:$0xff]  }
 0x2d1   : > { %1899 = vmatprep.subr.bf16.mxu0 %v2260_v0 }
 0x2d2   : > { %1898 = vmatpush3.bf16.msra.mxu1 %v1897_v18 }
 0x2d3   : > { %1786 = vmatmul.mubr.msk.bf16.vlgmr.msra.gmra.mrb[8].mxu0 %vm600_vm1, %v792_v2  ;;  %1827 = vmatprep.subr.bf16.mxu1 %v2262_v1  ;;  %v2011_v2 = vld [vmem:[#allocation9 + $0x10] sm:$0xff]  }
 0x2d4   : > { %1824 = vmatprep.mubr.msk.f32.mxu0 %vm2261_vm0, %v2262_v1  ;;  %1901 = vmatpush3.bf16.msra.mxu0 %v1888_v9 }
 0x2d5   : > { %1902 = vmatprep.subr.bf16.mxu0 %v2260_v0 }
 0x2d8   : > { %1904 = vmatpush3.bf16.msra.mxu0 %v1891_v12 }
 0x2d9   : > { %1905 = vmatprep.subr.bf16.mxu0 %v2260_v0 }
 0x2dc   : > { %1907 = vmatpush3.bf16.msra.mxu0 %v1894_v15  ;;  %v1630_v15 = vld [vmem:[%s2783_s28] ss:$0 sm:$0xff] }
 0x2dd   : > { %1908 = vmatprep.subr.bf16.mxu0 %v2260_v0 }
 0x2e0   : > { %1910 = vmatpush3.bf16.msra.mxu0 %v1897_v18 }
 0x2e1   : > { %1839 = vmatprep.subr.bf16.mxu0 %v2262_v1 }
 0x396   : > { %v862_v19 = vpop.f32.mrb[4].mxu0  ;;  %v934_v20 = vpop.f32.mrb[4].mxu1 }
 0x397   : > { %v1015_v21 = vrot.slane %v862_v19, 7  ;;  %v1763_v22 = vpop.f32.mrb[5].mxu0  ;;  %v1775_v25 = vpop.f32.mrb[5].mxu1 }
 0x398   : > { %v865_v26 = vpop.f32.mrb[6].mxu0  ;;  %v937_v27 = vpop.f32.mrb[6].mxu1 }
 0x399   : > { %v1016_v28 = vsel %vm1014_vm2, %v1015_v21, 0.0  ;;  %v1764_v0 = vpop.f32.mrb[7].mxu0  ;;  %v1776_v29 = vpop.f32.mrb[7].mxu1  ;;  %v2015_v26 = vld [vmem:[%s2784_s16] sm:$0xff]  }
 0x39a   : > { %v1017_v30 = vadd.f32 %v1016_v28, %v934_v20  ;;  %v2017_v28 = vld [vmem:[%s2784_s16 + $0x10] sm:$0xff]   ;;  %v2018_v0 = vld [vmem:[%s2784_s16 + $0x18] sm:$0xff]  }
 0x3a6   : > { %v1006_v31 = vpop.f32.mrb[8].mxu0 }
 0x3a7   : > { %v1019_v32 = vrot.slane %v1006_v31, 1  ;;  %v1787_v33 = vpop.f32.mrb[9].mxu0 }
 0x3a8   : > { %v1009_v34 = vpop.f32.mrb[10].mxu0 }
 0x3a9   : > { %v1020_v35 = vsel %vm1018_vm3, %v1019_v32, 0.0  ;;  %v1788_v37 = vpop.f32.mrb[11].mxu0 }
 0x3aa   : > { %v1021_v38 = vadd.f32 %v1020_v35, %v1017_v30 }
 0x3ac   : > { %v1029_v39 = vadd.f32 %v1627_v36, %v1021_v38 }
 0x3ae   : > { %v1040_v40 = vsel %vm600_vm1, %v1029_v39, 0.0 }
 0x3af   : > { %v1041_v41 = vrot.slane %v1040_v40, 4 }
 0x3b1   : > { %v1042_v42 = vadd.f32 %v1041_v41, %v1040_v40 }
 0x3b3   : > { %v1043_v43 = vrot.slane %v1042_v42, 2 }
 0x3b5   : > { %v1044_v44 = vadd.f32 %v1043_v43, %v1042_v42 }
 0x3b7   : > { %v1045_v45 = vrot.slane %v1044_v44, 1 }
 0x3b9   : > { %v1046_v46 = vadd.f32 %v1045_v45, %v1044_v44  ;;  %v1646_v44 = vld [vmem:[#allocation12] ss:$0 sm:$0xff] }
 0x3bb   : > { %1806 = vmatmul.mubr.msk.f32.vlgmr.msra.gmra.mrb[2].mxu1 %vm600_vm1, %v1046_v46 }
 0x3bc   : > { %1835 = vmatprep.mubr.msk.bf16.mxu1 %vm2261_vm0, %v2262_v1  ;;  %1828 = vmatpush3.bf16.msra.mxu1 %v2007_v60 }
 0x3bd   : > { %1829 = vmatprep.subr.bf16.mxu1 %v2262_v1 }
 0x3c0   : > { %1830 = vmatpush3.bf16.msra.mxu1 %v2009_v62 }
 0x3c1   : > { %1831 = vmatprep.subr.bf16.mxu1 %v2262_v1 }
 0x3c4   : > { %1832 = vmatpush3.bf16.msra.mxu1 %v2011_v2 }
 0x3c5   : > { %1833 = vmatprep.subr.bf16.mxu1 %v2262_v1 }
 0x3c8   : > { %1834 = vmatpush3.bf16.msra.mxu1 %v2013_v4 }
 0x3c9   : > { %1851 = vmatprep.subr.bf16.mxu1 %v2262_v1 }
 0x48e   : > { %v1116_v47 = vpop.f32.mrb[2].mxu1 }
 0x48f   : > { %v1120_v48 = vmul.f32 0.0625, %v1116_v47  ;;  %v1807_v49 = vpop.f32.mrb[3].mxu1 }
 0x491   : > { %v1124_v50 = vrot.slane %v1120_v48, %v2614_v24 }
 0x493   : > { %v1125_v51 = vsub.f32 %v1029_v39, %v1124_v50 }
 0x495   : > { %v1126_v52 = vmul.f32 %v1125_v51, %v1125_v51 }
 0x497   : > { %v1127_v53 = vsel %vm600_vm1, %v1126_v52, 0.0 }
 0x498   : > { %v1128_v54 = vrot.slane %v1127_v53, 4 }
 0x49a   : > { %v1129_v55 = vadd.f32 %v1128_v54, %v1127_v53 }
 0x49c   : > { %v1130_v56 = vrot.slane %v1129_v55, 2 }
 0x49e   : > { %v1131_v57 = vadd.f32 %v1130_v56, %v1129_v55 }
 0x4a0   : > { %v1132_v58 = vrot.slane %v1131_v57, 1 }
 0x4a2   : > { %v1133_v59 = vadd.f32 %v1132_v58, %v1131_v57 }
 0x4a4   : > { %1825 = vmatmul.mubr.msk.f32.vlgmr.msra.gmra.mrb[2].mxu0 %vm600_vm1, %v1133_v59 }
 0x4a5   : > { %1847 = vmatprep.mubr.msk.bf16.mxu0 %vm2261_vm0, %v2262_v1  ;;  %1840 = vmatpush3.bf16.msra.mxu0 %v2008_v61 }
 0x4a6   : > { %1841 = vmatprep.subr.bf16.mxu0 %v2262_v1 }
 0x4a9   : > { %1842 = vmatpush3.bf16.msra.mxu0 %v2010_v63 }
 0x4aa   : > { %1843 = vmatprep.subr.bf16.mxu0 %v2262_v1 }
 0x4ad   : > { %1844 = vmatpush3.bf16.msra.mxu0 %v2012_v3 }
 0x4ae   : > { %1845 = vmatprep.subr.bf16.mxu0 %v2262_v1 }
 0x4b1   : > { %1846 = vmatpush3.bf16.msra.mxu0 %v2014_v5 }
 0x577   : > { %v1203_v6 = vpop.f32.mrb[2].mxu0 }
 0x578   : > { %v1207_v8 = vmul.f32 0.0625, %v1203_v6  ;;  %v1826_v9 = vpop.f32.mrb[3].mxu0 }
 0x57a   : > { %v1208_v10 = vadd.f32 1e-06, %v1207_v8 }
 0x57c   : > { %2025 = vrsqrt.f32 %v1208_v10 }
 0x586   : > { %v2026_v12 = vpop.eup %2025 }
 0x587   : > { %v1210_v13 = vmul.f32 %v2026_v12, %v1038_v11 }
 0x589   : > { %v1214_v14 = vrot.slane %v1210_v13, %v2614_v24  ;;  %v2016_v24 = vld [vmem:[%s2784_s16 + $0x8] sm:$0xff]  }
 0x58b   : > { %v1215_v16 = vmul.f32 %v1214_v14, %v1125_v51 }
 0x58d   : > { %v1222_v17 = vadd.f32 %v1630_v15, %v1215_v16 }
 0x58f   : > { %v1223_v18 = vsub.f32 0.0, %v1222_v17 }
 0x591   : > { %v1224_v19 = vmul.f32 1.442695, %v1223_v18 }
 0x593   : > { %2027 = vpow2.f32 %v1224_v19 }
 0x59d   : > { %v2028_v20 = vpop.eup %2027 }
 0x59e   : > { %v1226_v21 = vadd.f32 1.0, %v2028_v20 }
 0x5a0   : > { %2029 = vrcp.f32 %v1226_v21 }
 0x5aa   : > { %v2030_v22 = vpop.eup %2029 }
 0x5ab   : > { %v1229_v25 = vmul.f32 %v2030_v22, %v1222_v17 }
 0x5ad   : > { %v1230_v27 = vpack.c.bf16 %v1229_v25, %v1229_v25 }
 0x5af   : > { %1836 = vmatmul.mubr.msk.bf16.vlgmr.msra.gmra.mrb[8].mxu1 %vm600_vm1, %v1230_v27  ;;  %1848 = vmatmul.mubr.msk.bf16.vlgmr.msra.gmra.mrb[12].mxu0 %vm600_vm1, %v1230_v27 }
 0x5b0   : > { %1852 = vmatpush3.bf16.msra.mxu1 %v2015_v26  ;;  %1859 = vmatprep.mubr.msk.bf16.mxu1 %vm2261_vm0, %v2262_v1 }
 0x5b1   : > { %1853 = vmatprep.subr.bf16.mxu1 %v2262_v1 }
 0x5b4   : > { %1854 = vmatpush3.bf16.msra.mxu1 %v2016_v24 }
 0x5b5   : > { %1855 = vmatprep.subr.bf16.mxu1 %v2262_v1 }
 0x5b8   : > { %1856 = vmatpush3.bf16.msra.mxu1 %v2017_v28 }
 0x5b9   : > { %1857 = vmatprep.subr.bf16.mxu1 %v2262_v1 }
 0x5bc   : > { %1858 = vmatpush3.bf16.msra.mxu1 %v2018_v0 }
 0x5bf   : > { %1860 = vmatmul.mubr.msk.bf16.vlgmr.msra.gmra.mrb[12].mxu1 %vm600_vm1, %v1230_v27 }
 0x682   : > { %v1300_v29 = vpop.f32.mrb[8].mxu1  ;;  %v1372_v30 = vpop.f32.mrb[12].mxu0 }
 0x683   : > { %v1450_v31 = vrot.slane %v1300_v29, 7  ;;  %v1837_v32 = vpop.f32.mrb[9].mxu1  ;;  %v1849_v33 = vpop.f32.mrb[13].mxu0 }
 0x684   : > { %v1303_v34 = vpop.f32.mrb[10].mxu1  ;;  %v1375_v35 = vpop.f32.mrb[14].mxu0 }
 0x685   : > { %v1451_v36 = vsel %vm1014_vm2, %v1450_v31, 0.0  ;;  %v1838_v37 = vpop.f32.mrb[11].mxu1  ;;  %v1850_v38 = vpop.f32.mrb[15].mxu0 }
 0x686   : > { %v1452_v39 = vadd.f32 %v1451_v36, %v1372_v30 }
 0x692   : > { %v1444_v40 = vpop.f32.mrb[12].mxu1 }
 0x693   : > { %v1453_v41 = vrot.slane %v1444_v40, 1  ;;  %v1861_v1 = vpop.f32.mrb[13].mxu1 }
 0x694   : > { %v1447_v42 = vpop.f32.mrb[14].mxu1 }
 0x695   : > { %v1454_v43 = vsel %vm1018_vm3, %v1453_v41, 0.0  ;;  %v1862_v45 = vpop.f32.mrb[15].mxu1 }
 0x696   : > { %v1455_v46 = vadd.f32 %v1454_v43, %v1452_v39 }
 0x698   : > { %v1463_v47 = vadd.f32 %v1646_v44, %v1455_v46 }
 0x69a   : > { %v1464_v48 = vadd.f32 %v1463_v47, %v2584_v7 }
 0x69c   : > { %1465 = vst.msk [vmem:[%s587_s10] sm:$0xff] %vm600_vm1, %v1464_v48 }
 0x69d PF: > { %s2786_s21 = sld [smem:[#allocation17_spill]] }
 0x6a3   : > { %s29_s18 = sadd.s32 1, %s2786_s21  }
 0x6a4   : > { %p26_p9 = scmp.ge.s32.totalorder %s29_s18, 4  }
 0x6a6   :  { %28 = sbr.rel (!%p26_p9) target bundleno = 9 (0x9), region = 139 }
 0x6ad   :  { %1485 = vsyncpa [#allocation3], 1 }
 0x6ae   :  { %1487 = vsyncpa [#allocation3 + $0x1], 1 }
 0x6af   :  { %1488 = vsyncpa [#allocation5], 1 }
 0x6b0   :  { %1489 = vsyncpa [#allocation8], 1 }
 0x6b1   :  { %1490 = vsyncpa [#allocation11], 1 }

// kernel: _lambda_.20
= control target key start
LH: loop header
LB: loop body
LE: loop exit
PB: predicated region body
PF: predicated region fallthrough
CT: control target
= control target key end

     0   :  { %s790_s21 = smov 0   ;;  %s874_s0 = inlined_call_operand.vmem [shape: f32[2,8,64], index: 0, kind: input, shape index: {}]   ;;  %s875_s1 = inlined_call_operand.vmem [shape: bf16[64,64], index: 1, kind: input, shape index: {}]   ;;  %s876_s2 = inlined_call_operand.vmem [shape: bf16[64,64], index: 2, kind: input, shape index: {}]   ;;  %s877_s3 = inlined_call_operand.vmem [shape: bf16[64,64], index: 3, kind: input, shape index: {}]   ;;  %s878_s4 = inlined_call_operand.vmem [shape: bf16[64,64], index: 4, kind: input, shape index: {}]   ;;  %s879_s5 = inlined_call_operand.vmem [shape: f32[1,64], index: 5, kind: input, shape index: {}]   ;;  %s880_s6 = inlined_call_operand.vmem [shape: f32[2,8,128], index: 6, kind: output, shape index: {}]  }
   0x1 LB: > { %s619_s22 = sadd.s32 4294967295, %s750_s21   ;;  %p623_p0 = scmp.ge.s32.totalorder %s750_s21, 1  ;;  %s750_s21 = sphi %s790_s21, %s16_s21  }
   0x2   : > { %p211_p1 = scmp.lt.s32.totalorder %s750_s21, 3 }
   0x4   : > { %p212_p2 = pnand %p623_p0, %p211_p1 }
   0x5   : > { %v728_v0 = vld [vmem:[%s875_s1] sm:$0xff] (!%p212_p2)   ;;  %v752_v1 = vmov (!%p212_p2), 0.0   ;;  %v730_v3 = vld [vmem:[%s875_s1 + $0x8] sm:$0xff] (!%p212_p2)   ;;  %vm753_vm0 = vmmov (!%p212_p2), 0   ;;  %p239_p3 = scmp.lt.s32.totalorder (!%p212_p2), %s619_s22, 1  ;;  %v732_v5 = vld [vmem:[%s875_s1 + $0x10] sm:$0xff] (!%p212_p2)   ;;  %v478_v19 = vlaneseq (!%p212_p2) }
   0x6   : > { %215 = sbr.rel (%p212_p2) target bundleno = 374 (0x176), region = 44  ;;  %669 = vmatprep.subr.bf16.mxu0 (!%p212_p2), %v752_v1  ;;  %681 = vmatprep.subr.bf16.mxu1 (!%p212_p2), %v752_v1  ;;  %v729_v2 = vld [vmem:[%s877_s3] sm:$0xff] (!%p212_p2)   ;;  %v731_v4 = vld [vmem:[%s877_s3 + $0x8] sm:$0xff] (!%p212_p2)   ;;  %v733_v6 = vld [vmem:[%s877_s3 + $0x10] sm:$0xff] (!%p212_p2)   ;;  %vm282_vm1 = vcmask (!%p212_p2), 523264   ;;  %s754_s16 = smov (!%p212_p2), 64  }
   0x7   : > { %670 = vmatpush3.bf16.msra.mxu0 (!%p212_p2), %v728_v0  ;;  %677 = vmatprep.mubr.msk.bf16.mxu0 (!%p212_p2), %vm753_vm0, %v752_v1  ;;  %v734_v7 = vld [vmem:[%s875_s1 + $0x18] sm:$0xff] (!%p212_p2)   ;;  %v736_v11 = vld [vmem:[%s878_s4] sm:$0xff] (!%p212_p2)   ;;  %v738_v13 = vld [vmem:[%s878_s4 + $0x8] sm:$0xff] (!%p212_p2)   ;;  %v479_v20 = vshrl.u32 (!%p212_p2), %v478_v19, 7 }
   0x8   : > { %682 = vmatpush3.bf16.msra.mxu1 (!%p212_p2), %v729_v2  ;;  %671 = vmatprep.subr.bf16.mxu0 (!%p212_p2), %v752_v1  ;;  %v735_v9 = vld [vmem:[%s877_s3 + $0x18] sm:$0xff] (!%p212_p2)   ;;  %v737_v12 = vld [vmem:[%s876_s2] sm:$0xff] (!%p212_p2)   ;;  %v739_v14 = vld [vmem:[%s876_s2 + $0x8] sm:$0xff] (!%p212_p2)  }
   0x9   : > { %683 = vmatprep.subr.bf16.mxu1 (!%p212_p2), %v752_v1  ;;  %689 = vmatprep.mubr.msk.bf16.mxu1 (!%p212_p2), %vm753_vm0, %v752_v1  ;;  %v740_v15 = vld [vmem:[%s878_s4 + $0x10] sm:$0xff] (!%p212_p2)   ;;  %v742_v17 = vld [vmem:[%s878_s4 + $0x18] sm:$0xff] (!%p212_p2)   ;;  %vm480_vm2 = vcmp.gt.s32.totalorder (!%p212_p2), %v479_v20, 0  ;;  %v641_v28 = vld [vmem:[%s879_s5] ss:$0 sm:$0xff] (!%p212_p2)  ;;  %vm492_vm3 = vcmp.lt.s32.totalorder (!%p212_p2), %v479_v20, 7 }
   0xa   : > { %v741_v16 = vld [vmem:[%s876_s2 + $0x10] sm:$0xff] (!%p212_p2)   ;;  %v743_v18 = vld [vmem:[%s876_s2 + $0x18] sm:$0xff] (!%p212_p2)  }
   0xb   : > { %672 = vmatpush3.bf16.msra.mxu0 (!%p212_p2), %v730_v3 }
   0xc   : > { %684 = vmatpush3.bf16.msra.mxu1 (!%p212_p2), %v731_v4  ;;  %673 = vmatprep.subr.bf16.mxu0 (!%p212_p2), %v752_v1 }
   0xd   : > { %s882_s22 = smov (!%p239_p3, %s619_s22), 1  ;;  %685 = vmatprep.subr.bf16.mxu1 %v752_v1 }
   0xe   : > { %s624_s9 = sshll.u32 %s882_s22, 3 }
   0xf   : > { %s242_s14 = scalar_lea.vmem %s874_s0, %s624_s9  ;;  %674 = vmatpush3.bf16.msra.mxu0 %v732_v5  ;;  %s246_s19 = scalar_lea.vmem %s880_s6, %s624_s9 }
  0x10   : > { %v248_v8 = vld [vmem:[%s242_s14] sm:$0xff]  ;;  %686 = vmatpush3.bf16.msra.mxu1 %v733_v6  ;;  %675 = vmatprep.subr.bf16.mxu0 %v752_v1 }
  0x11   : > { %687 = vmatprep.subr.bf16.mxu1 %v752_v1  ;;  %v249_v10 = vpack.c.bf16 %v248_v8, %v248_v8 }
  0x13   : > { %676 = vmatpush3.bf16.msra.mxu0 %v734_v7 }
  0x14   : > { %688 = vmatpush3.bf16.msra.mxu1 %v735_v9  ;;  %693 = vmatprep.subr.bf16.mxu0 %v752_v1 }
  0x15   : > { %705 = vmatprep.subr.bf16.mxu1 %v752_v1 }
  0x16   : > { %678 = vmatmul.mubr.msk.bf16.vlgmr.msra.gmra.mrb[0].mxu0 %vm282_vm1, %v249_v10 }
  0x17   : > { %690 = vmatmul.mubr.msk.bf16.vlgmr.msra.gmra.mrb[0].mxu1 %vm282_vm1, %v249_v10  ;;  %694 = vmatpush3.bf16.msra.mxu0 %v736_v11 }
  0x18   : > { %706 = vmatpush3.bf16.msra.mxu1 %v737_v12  ;;  %695 = vmatprep.subr.bf16.mxu0 %v752_v1 }
  0x19   : > { %707 = vmatprep.subr.bf16.mxu1 %v752_v1  ;;  %701 = vmatprep.mubr.msk.bf16.mxu0 %vm753_vm0, %v752_v1 }
  0x1a   : > { %713 = vmatprep.mubr.msk.bf16.mxu1 %vm753_vm0, %v752_v1 }
  0x1b   : > { %696 = vmatpush3.bf16.msra.mxu0 %v738_v13 }
  0x1c   : > { %708 = vmatpush3.bf16.msra.mxu1 %v739_v14  ;;  %697 = vmatprep.subr.bf16.mxu0 %v752_v1 }
  0x1d   : > { %709 = vmatprep.subr.bf16.mxu1 %v752_v1 }
  0x1f   : > { %698 = vmatpush3.bf16.msra.mxu0 %v740_v15 }
  0x20   : > { %710 = vmatpush3.bf16.msra.mxu1 %v741_v16  ;;  %699 = vmatprep.subr.bf16.mxu0 %v752_v1 }
  0x21   : > { %711 = vmatprep.subr.bf16.mxu1 %v752_v1 }
  0x23   : > { %700 = vmatpush3.bf16.msra.mxu0 %v742_v17 }
  0x24   : > { %712 = vmatpush3.bf16.msra.mxu1 %v743_v18 }
  0x26   : > { %702 = vmatmul.mubr.msk.bf16.vlgmr.msra.gmra.mrb[4].mxu0 %vm282_vm1, %v249_v10 }
  0x27   : > { %714 = vmatmul.mubr.msk.bf16.vlgmr.msra.gmra.mrb[4].mxu1 %vm282_vm1, %v249_v10 }
  0xe9   : > { %v320_v21 = vpop.f32.mrb[0].mxu0 }
  0xea   : > { %v481_v22 = vrot.slane %v320_v21, 7  ;;  %v679_v23 = vpop.f32.mrb[1].mxu0  ;;  %v400_v24 = vpop.f32.mrb[0].mxu1 }
  0xeb   : > { %v323_v25 = vpop.f32.mrb[2].mxu0  ;;  %v691_v26 = vpop.f32.mrb[1].mxu1 }
  0xec   : > { %v482_v27 = vsel %vm480_vm2, %v481_v22, 0.0  ;;  %v680_v29 = vpop.f32.mrb[3].mxu0  ;;  %v403_v30 = vpop.f32.mrb[2].mxu1 }
  0xed   : > { %v483_v31 = vadd.f32 %v482_v27, %v400_v24  ;;  %v692_v32 = vpop.f32.mrb[3].mxu1 }
  0xef   : > { %v491_v33 = vadd.f32 %v641_v28, %v483_v31 }
  0xf9   : > { %v472_v34 = vpop.f32.mrb[4].mxu0 }
  0xfa   : > { %v493_v35 = vrot.slane %v472_v34, 1  ;;  %v553_v36 = vpop.f32.mrb[4].mxu1  ;;  %v703_v37 = vpop.f32.mrb[5].mxu0 }
  0xfb   : > { %v715_v38 = vpop.f32.mrb[5].mxu1  ;;  %v475_v39 = vpop.f32.mrb[6].mxu0 }
  0xfc   : > { %v494_v40 = vsel %vm492_vm3, %v493_v35, 0.0  ;;  %v556_v41 = vpop.f32.mrb[6].mxu1  ;;  %v704_v42 = vpop.f32.mrb[7].mxu0 }
  0xfd   : > { %v554_v43 = vadd.f32 %v553_v36, %v494_v40  ;;  %v716_v44 = vpop.f32.mrb[7].mxu1 }
  0xff   : > { %v559_v45 = vadd.f32 %v641_v28, %v554_v43 }
 0x101   : > { %561 = vrot.lane.b32.xlu0 %v559_v45, %s754_s16 }
 0x173   : > { %v562_v46 = vpop.permute.xlu0 %561 }
 0x174   : > { %v564_v47 = vsel %vm282_vm1, %v491_v33, %v562_v46 }
 0x175   : > { %565 = vst [vmem:[%s246_s19] sm:$0xff] %v564_v47 }
 0x176 PF: > { %s16_s21 = sadd.s32 1, %s750_s21  }
 0x177   : > { %p13_p4 = scmp.ge.s32.totalorder %s16_s21, 4  }
 0x179   :  { %15 = sbr.rel (!%p13_p4) target bundleno = 1 (0x1), region = 74 }

// kernel: _lambda_.17
= control target key start
LH: loop header
LB: loop body
LE: loop exit
PB: predicated region body
PF: predicated region fallthrough
CT: control target
= control target key end

     0   :  { %17 = vsyncpa [#allocation3], 0  ;;  %s1476_s21 = smov 0   ;;  %s1679_s0 = inlined_call_operand.vmem [shape: f32[2,8,64], index: 0, kind: input, shape index: {}]   ;;  %s1680_s1 = inlined_call_operand.vmem [shape: f32[64,64], index: 1, kind: input, shape index: {}]   ;;  %s1681_s2 = inlined_call_operand.vmem [shape: f32[1,64], index: 2, kind: input, shape index: {}]   ;;  %s1682_s3 = inlined_call_operand.vmem [shape: f32[1,64], index: 3, kind: input, shape index: {}]   ;;  %s1683_s4 = inlined_call_operand.vmem [shape: bf16[64,64], index: 4, kind: input, shape index: {}]   ;;  %s1684_s5 = inlined_call_operand.vmem [shape: f32[1,64], index: 5, kind: input, shape index: {}]   ;;  %s1685_s6 = inlined_call_operand.vmem [shape: bf16[64,64], index: 6, kind: input, shape index: {}]   ;;  %s1686_s7 = inlined_call_operand.vmem [shape: f32[1,64], index: 7, kind: input, shape index: {}]   ;;  %s1687_s8 = inlined_call_operand.vmem [shape: bf16[64,64], index: 8, kind: input, shape index: {}]   ;;  %s1688_s9 = inlined_call_operand.vmem [shape: f32[1,64], index: 9, kind: input, shape index: {}]   ;;  %s1689_s10 = inlined_call_operand.vmem [shape: bf16[64,64], index: 10, kind: input, shape index: {}]   ;;  %s1690_s11 = inlined_call_operand.hbm [shape: f32[1,64], index: 11, kind: input, shape index: {}]   ;;  %s1691_s12 = inlined_call_operand.vmem [shape: f32[2,8,64], index: 12, kind: output, shape index: {}]  }
   0x1 LB: > { %s1482_s22 = sadd.s32 4294967295, %s1405_s21   ;;  %p1121_p0 = scmp.ge.s32.totalorder %s1405_s21, 1  ;;  %s1405_s21 = sphi %s1476_s21, %s23_s21  }
   0x2   : > { %p311_p1 = scmp.lt.s32.totalorder %s1405_s21, 3  ;;  %p1692_p3 = scmp.eq.s32.totalorder %s1482_s22, 0 }
   0x3   : > { %s1407_s24 = smov [#allocation2]   ;;  %s1367_s29 = scalar_lea.hbm %s1690_s11, 16 }
   0x4   : > { %p1486_p2 = pnand %p1121_p0, %p311_p1  ;;  %s354_s25 = sshll.u32 %s1407_s24, 4  ;;  %s355_s25 = int_to_ptr.vmem [resolvable:$true] %s354_s25 }
   0x5   : > { %p1368_p6 = scmp.ne.s32.totalorder %s1690_s11, %s1367_s29  ;;  %p1374_p10 = scmp.lt.u32.totalorder %s1367_s29, %s1690_s11 }
   0x6   : > { %s1694_s23 = scalar_select %p1486_p2, 1, 0 }
   0x7   : > { %p1327_p4 = pneg %p1486_p2 }
   0x9   : > { %p1495_p5 = pnand %p1692_p3, %p1327_p4 }
   0xb   : > { %p1369_p7 = pneg %p1495_p5 }
   0xd   : > { %p1370_p8 = pnand %p1369_p7, %p1368_p6 }
   0xf   : > { %p1371_p9 = pneg %p1370_p8 }
  0x11   : > { %p1376_p11 = pnand %p1374_p10, %p1371_p9 }
  0x13   : > { %1379 = shalt.err (!%p1376_p11)
}
  0x14   : > { %s1380_s16 = scalar_lea.vmem %s355_s25, 16  ;;  %s1387_s17 = scalar_lea.vmem %s355_s25, 32 }
  0x15   : > { %p1381_p12 = scmp.ne.s32.totalorder %s355_s25, %s1380_s16  ;;  %p1388_p1 = scmp.lt.s32.totalorder %s355_s25, %s355_s25 }
  0x16   : > { %p1389_p4 = scmp.lt.s32.totalorder %s1387_s17, %s1380_s16 }
  0x17   : > { %p1383_p13 = pnand %p1381_p12, %p1369_p7 }
  0x18   : > { %p1390_p3 = por %p1389_p4, %p1388_p1 }
  0x19   : > { %p1384_p0 = pneg %p1383_p13 }
  0x1b   : > { %p1391_p2 = pnand %p1390_p3, %p1384_p0 }
  0x1d   : > { %1394 = shalt.err (!%p1391_p2)
}
  0x1e   : > { %1330 = dma.hbm_to_vmem [thread:$0]  (!%p1495_p5), %s1690_s11, 16, %s355_s25, [#allocation3]  }
  0x1f   : > { %p1696_p6 = scmp.ne.s32.totalorder %s1694_s23, 0 }
  0x20   : > { %p1697_p8 = scmp.eq.s32.totalorder (!%p1696_p6), %s1482_s22, 0 }
  0x21   : > { %374 = sbr.rel (%p1696_p6) target bundleno = 1713 (0x6b1), region = 68 }
  0x28   : > { %1400 = dma.done.wait (%p1697_p8), [#allocation3], 16   ;;  %p1698_p7 = pmov %p1697_p8 }
  0x29   : > { %p414_p9 = scmp.lt.s32.totalorder %s1482_s22, 1  ;;  %v1408_v0 = vmov 0.0|0.0   ;;  %vm1409_vm0 = vmmov 0   ;;  %v1410_v1 = vmov 0.0   ;;  %v424_v2 = vld [vmem:[%s1680_s1] sm:$0xff]  ;;  %v425_v3 = vld [vmem:[%s1680_s1 + $0x8] sm:$0xff]  ;;  %v517_v22 = vlaneseq }
  0x2a   : > { %1402 = vsyncadd (%p1698_p7), [#allocation3], 4294967280  ;;  %1299 = vmatprep.subr.bf16.mxu0 %v1408_v0  ;;  %1217 = vmatprep.mubr.msk.f32.mxu0 %vm1409_vm0, %v1410_v1  ;;  %v426_v4 = vld [vmem:[%s1680_s1 + $0x10] sm:$0xff]  ;;  %vm434_vm1 = vcmask 523264   ;;  %v1300_v5 = vpack.c.bf16 %v425_v3, %v424_v2  ;;  %v427_v6 = vld [vmem:[%s1680_s1 + $0x18] sm:$0xff]  ;;  %vm925_vm2 = vcmask 1043456  }
  0x2b   : > { %s1700_s22 = smov (!%p414_p9, %s1482_s22), 1  ;;  %1311 = vmatprep.subr.bf16.mxu1 %v1408_v0  ;;  %1236 = vmatprep.mubr.msk.f32.mxu1 %vm1409_vm0, %v1410_v1  ;;  %v1303_v8 = vpack.c.bf16 %v427_v6, %v426_v4  ;;  %v428_v9 = vld [vmem:[%s1680_s1 + $0x20] sm:$0xff]  ;;  %v429_v11 = vld [vmem:[%s1680_s1 + $0x28] sm:$0xff]  ;;  %v430_v13 = vld [vmem:[%s1680_s1 + $0x30] sm:$0xff]  ;;  %v518_v23 = vshrl.u32 %v517_v22, 7  ;;  %vm908_vm3 = vcmask 64512  }
  0x2c   : > { %s1126_s20 = sshll.u32 %s1700_s22, 3  ;;  %1301 = vmatpush3.bf16.msra.mxu0 %v1300_v5  ;;  %1313 = vmatpush3.bf16.msra.mxu1 %v1300_v5  ;;  %v1306_v15 = vpack.c.bf16 %v429_v11, %v428_v9  ;;  %v431_v16 = vld [vmem:[%s1680_s1 + $0x38] sm:$0xff]  ;;  %v1345_v38 = vld [vmem:[%s1683_s4] sm:$0xff]   ;;  %v1347_v40 = vld [vmem:[%s1683_s4 + $0x8] sm:$0xff]  }
  0x2d   : > { %s417_s25 = scalar_lea.vmem %s1679_s0, %s1126_s20  ;;  %1302 = vmatprep.subr.bf16.mxu0 %v1408_v0  ;;  %1314 = vmatprep.subr.bf16.mxu1 %v1408_v0  ;;  %v1309_v19 = vpack.c.bf16 %v431_v16, %v430_v13  ;;  %v519_v24 = vsub.s32 0, %v518_v23  ;;  %v1346_v39 = vld [vmem:[%s1685_s6] sm:$0xff]   ;;  %v1348_v41 = vld [vmem:[%s1685_s6 + $0x8] sm:$0xff]   ;;  %v1349_v42 = vld [vmem:[%s1683_s4 + $0x10] sm:$0xff]   ;;  %s421_s26 = scalar_lea.vmem %s1691_s12, %s1126_s20 }
  0x2e   : > { %v1547_v7 = vld [vmem:[%s417_s25] sm:$0xff]  ;;  %v1350_v43 = vld [vmem:[%s1685_s6 + $0x10] sm:$0xff]   ;;  %v1351_v44 = vld [vmem:[%s1683_s4 + $0x18] sm:$0xff]  }
  0x2f   : > { %v435_v10 = vsel %vm434_vm1, %v1547_v7, 0.0  ;;  %v1352_v45 = vld [vmem:[%s1685_s6 + $0x18] sm:$0xff]   ;;  %v432_v50 = vld [vmem:[%s1681_s2] sm:$0x1]  ;;  %v1354_v59 = vld [vmem:[%s1687_s8 + $0x8] sm:$0xff]  }
  0x30   : > { %v436_v12 = vrot.slane %v435_v10, 4  ;;  %1304 = vmatpush3.bf16.msra.mxu0 %v1303_v8  ;;  %1316 = vmatpush3.bf16.msra.mxu1 %v1303_v8  ;;  %v1130_v54 = vld [vmem:[%s1682_s3] ss:$0 sm:$0xff]  ;;  %v1355_v60 = vld [vmem:[%s1687_s8 + $0x10] sm:$0xff]   ;;  %v1356_v61 = vld [vmem:[%s1687_s8 + $0x18] sm:$0xff]  }
  0x31   : > { %1305 = vmatprep.subr.bf16.mxu0 %v1408_v0  ;;  %1317 = vmatprep.subr.bf16.mxu1 %v1408_v0  ;;  %v1353_v57 = vld [vmem:[%s1687_s8] sm:$0xff]  }
  0x32   : > { %v437_v14 = vadd.f32 %v436_v12, %v435_v10  ;;  %v1137_v62 = vld [vmem:[%s1686_s7] ss:$0 sm:$0xff] }
  0x33   : > { %v1131_v11 = vld [vmem:[%s1684_s5] ss:$0 sm:$0xff] }
  0x34   : > { %v438_v17 = vrot.slane %v437_v14, 2  ;;  %1307 = vmatpush3.bf16.msra.mxu0 %v1306_v15  ;;  %1319 = vmatpush3.bf16.msra.mxu1 %v1306_v15  ;;  %v1143_v15 = vld [vmem:[%s1688_s9] ss:$0 sm:$0xff] }
  0x35   : > { %1308 = vmatprep.subr.bf16.mxu0 %v1408_v0  ;;  %1320 = vmatprep.subr.bf16.mxu1 %v1408_v0 }
  0x36   : > { %v439_v18 = vadd.f32 %v438_v17, %v437_v14 }
  0x38   : > { %v440_v20 = vrot.slane %v439_v18, 1  ;;  %1310 = vmatpush3.bf16.msra.mxu0 %v1309_v19  ;;  %1322 = vmatpush3.bf16.msra.mxu1 %v1309_v19 }
  0x39   : > { %1239 = vmatprep.subr.bf16.mxu0 %v1410_v1  ;;  %1251 = vmatprep.subr.bf16.mxu1 %v1410_v1 }
  0x3a   : > { %v441_v21 = vadd.f32 %v440_v20, %v439_v18 }
  0x3c   : > { %1218 = vmatmul.mubr.msk.f32.vlgmr.msra.gmra.mrb[0].mxu0 %vm434_vm1, %v441_v21 }
  0x3d   : > { %1247 = vmatprep.mubr.msk.bf16.mxu0 %vm1409_vm0, %v1410_v1  ;;  %1240 = vmatpush3.bf16.msra.mxu0 %v1345_v38 }
  0x3e   : > { %1241 = vmatprep.subr.bf16.mxu0 %v1410_v1 }
  0x41   : > { %1242 = vmatpush3.bf16.msra.mxu0 %v1347_v40  ;;  %v1360_v40 = vld [vmem:[%s1689_s10 + $0x18] sm:$0xff]  }
  0x42   : > { %1243 = vmatprep.subr.bf16.mxu0 %v1410_v1 }
  0x45   : > { %1244 = vmatpush3.bf16.msra.mxu0 %v1349_v42 }
  0x46   : > { %1245 = vmatprep.subr.bf16.mxu0 %v1410_v1 }
  0x49   : > { %1246 = vmatpush3.bf16.msra.mxu0 %v1351_v44 }
  0x4a   : > { %1263 = vmatprep.subr.bf16.mxu0 %v1410_v1 }
 0x10f   : > { %v511_v25 = vpop.f32.mrb[0].mxu0 }
 0x110   : > { %v516_v26 = vmul.f32 0.0625, %v511_v25  ;;  %v1219_v27 = vpop.f32.mrb[1].mxu0 }
 0x112   : > { %v520_v28 = vrot.slane %v516_v26, %v519_v24 }
 0x114   : > { %v521_v29 = vsub.f32 %v1547_v7, %v520_v28 }
 0x116   : > { %v522_v30 = vmul.f32 %v521_v29, %v521_v29 }
 0x118   : > { %v523_v31 = vsel %vm434_vm1, %v522_v30, 0.0 }
 0x119   : > { %v524_v32 = vrot.slane %v523_v31, 4 }
 0x11b   : > { %v525_v33 = vadd.f32 %v524_v32, %v523_v31 }
 0x11d   : > { %v526_v34 = vrot.slane %v525_v33, 2 }
 0x11f   : > { %v527_v35 = vadd.f32 %v526_v34, %v525_v33  ;;  %v1357_v33 = vld [vmem:[%s1689_s10] sm:$0xff]   ;;  %v1358_v34 = vld [vmem:[%s1689_s10 + $0x8] sm:$0xff]  }
 0x121   : > { %v528_v36 = vrot.slane %v527_v35, 1 }
 0x123   : > { %v529_v37 = vadd.f32 %v528_v36, %v527_v35  ;;  %v1359_v35 = vld [vmem:[%s1689_s10 + $0x10] sm:$0xff]  }
 0x125   : > { %1237 = vmatmul.mubr.msk.f32.vlgmr.msra.gmra.mrb[0].mxu1 %vm434_vm1, %v529_v37 }
 0x126   : > { %1259 = vmatprep.mubr.msk.bf16.mxu1 %vm1409_vm0, %v1410_v1  ;;  %1252 = vmatpush3.bf16.msra.mxu1 %v1346_v39 }
 0x127   : > { %1253 = vmatprep.subr.bf16.mxu1 %v1410_v1 }
 0x12a   : > { %1254 = vmatpush3.bf16.msra.mxu1 %v1348_v41 }
 0x12b   : > { %1255 = vmatprep.subr.bf16.mxu1 %v1410_v1 }
 0x12e   : > { %1256 = vmatpush3.bf16.msra.mxu1 %v1350_v43 }
 0x12f   : > { %1257 = vmatprep.subr.bf16.mxu1 %v1410_v1 }
 0x132   : > { %1258 = vmatpush3.bf16.msra.mxu1 %v1352_v45 }
 0x133   : > { %1275 = vmatprep.subr.bf16.mxu1 %v1410_v1 }
 0x1f8   : > { %v599_v46 = vpop.f32.mrb[0].mxu1 }
 0x1f9   : > { %v603_v47 = vmul.f32 0.0625, %v599_v46  ;;  %v1238_v48 = vpop.f32.mrb[1].mxu1 }
 0x1fb   : > { %v604_v49 = vadd.f32 1e-06, %v603_v47 }
 0x1fd   : > { %1361 = vrsqrt.f32 %v604_v49 }
 0x207   : > { %v1362_v51 = vpop.eup %1361 }
 0x208   : > { %v606_v52 = vmul.f32 %v1362_v51, %v432_v50 }
 0x20a   : > { %v610_v53 = vrot.slane %v606_v52, %v519_v24 }
 0x20c   : > { %v611_v55 = vmul.f32 %v610_v53, %v521_v29 }
 0x20e   : > { %v618_v56 = vadd.f32 %v1130_v54, %v611_v55 }
 0x210   : > { %v619_v58 = vpack.c.bf16 %v618_v56, %v618_v56 }
 0x212   : > { %1248 = vmatmul.mubr.msk.bf16.vlgmr.msra.gmra.mrb[4].mxu0 %vm434_vm1, %v619_v58  ;;  %1260 = vmatmul.mubr.msk.bf16.vlgmr.msra.gmra.mrb[4].mxu1 %vm434_vm1, %v619_v58 }
 0x213   : > { %1264 = vmatpush3.bf16.msra.mxu0 %v1353_v57  ;;  %1271 = vmatprep.mubr.msk.bf16.mxu0 %vm1409_vm0, %v1410_v1 }
 0x214   : > { %1265 = vmatprep.subr.bf16.mxu0 %v1410_v1  ;;  %1277 = vmatprep.mubr.msk.bf16.mxu1 %vm1409_vm0, %v1410_v1 }
 0x217   : > { %1266 = vmatpush3.bf16.msra.mxu0 %v1354_v59 }
 0x218   : > { %1267 = vmatprep.subr.bf16.mxu0 %v1410_v1 }
 0x21b   : > { %1268 = vmatpush3.bf16.msra.mxu0 %v1355_v60 }
 0x21c   : > { %1269 = vmatprep.subr.bf16.mxu0 %v1410_v1 }
 0x21f   : > { %1270 = vmatpush3.bf16.msra.mxu0 %v1356_v61 }
 0x220   : > { %1287 = vmatprep.subr.bf16.mxu0 %v1410_v1 }
 0x222   : > { %1272 = vmatmul.mubr.msk.bf16.vlgmr.msra.gmra.mrb[8].mxu0 %vm434_vm1, %v619_v58 }
 0x223   : > { %1295 = vmatprep.mubr.msk.bf16.mxu0 %vm1409_vm0, %v1410_v1  ;;  %1288 = vmatpush3.bf16.msra.mxu0 %v1357_v33 }
 0x224   : > { %1289 = vmatprep.subr.bf16.mxu0 %v1410_v1 }
 0x227   : > { %1290 = vmatpush3.bf16.msra.mxu0 %v1358_v34 }
 0x228   : > { %1291 = vmatprep.subr.bf16.mxu0 %v1410_v1 }
 0x22b   : > { %1292 = vmatpush3.bf16.msra.mxu0 %v1359_v35 }
 0x22c   : > { %1293 = vmatprep.subr.bf16.mxu0 %v1410_v1 }
 0x22f   : > { %1294 = vmatpush3.bf16.msra.mxu0 %v1360_v40 }
 0x2e5   : > { %v696_v63 = vpop.f32.mrb[4].mxu0  ;;  %v775_v0 = vpop.f32.mrb[4].mxu1 }
 0x2e6   : > { %v776_v2 = vadd.f32 %v1137_v62, %v775_v0  ;;  %v1249_v3 = vpop.f32.mrb[5].mxu0  ;;  %v1261_v4 = vpop.f32.mrb[5].mxu1  ;;  %v697_v13 = vadd.f32 %v1131_v11, %v696_v63 }
 0x2e7   : > { %v699_v5 = vpop.f32.mrb[6].mxu0  ;;  %v778_v6 = vpop.f32.mrb[6].mxu1 }
 0x2e8   : > { %v861_v8 = vpack.c.bf16 %v776_v2, %v776_v2  ;;  %v1250_v9 = vpop.f32.mrb[7].mxu0  ;;  %v1262_v10 = vpop.f32.mrb[7].mxu1  ;;  %v860_v14 = vpack.c.bf16 %v697_v13, %v697_v13 }
 0x2ea   : > { %v866_v12 = vsel %vm434_vm1, %v861_v8, 0 }
 0x2eb   : > { %1276 = vmatpush3.bf16.xpose.msra.mxu1 %v866_v12 }
 0x2ec   : > { %1281 = vmatprep.subr.bf16.mxu1 %v1410_v1 }
 0x2f2   : > { %1278 = vmatmul.mubr.msk.bf16.vlgmr.msra.gmra.mrb[8].mxu1 %vm434_vm1, %v860_v14 }
 0x2f3   : > { %1283 = vmatprep.mubr.msk.bf16.mxu1 %vm1409_vm0, %v1410_v1  ;;  %v1151_v1 = vld [vmem:[#allocation2] ss:$0 sm:$0xff] }
 0x2f5   : > { %v854_v16 = vpop.f32.mrb[8].mxu0 }
 0x2f6   : > { %v855_v17 = vadd.f32 %v1143_v15, %v854_v16  ;;  %v1273_v18 = vpop.f32.mrb[9].mxu0 }
 0x2f7   : > { %v857_v19 = vpop.f32.mrb[10].mxu0 }
 0x2f8   : > { %v921_v20 = vpack.c.bf16 %v855_v17, %v855_v17  ;;  %v1274_v21 = vpop.f32.mrb[11].mxu0 }
 0x2fa   : > { %v927_v22 = vsel %vm925_vm2, %v921_v20, 0 }
 0x2fb   : > { %1282 = vmatpush3.bf16.msra.mxu1 %v927_v22 }
 0x3c5   : > { %v902_v23 = vpop.f32.mrb[8].mxu1 }
 0x3c6   : > { %v1279_v24 = vpop.f32.mrb[9].mxu1  ;;  %v909_v25 = vsel %vm908_vm3, %v902_v23, -inf }
 0x3c7   : > { %910 = vmax.xlane.f32.xlu0 %v909_v25  ;;  %v905_v26 = vpop.f32.mrb[10].mxu1 }
 0x3c8   : > { %v1280_v27 = vpop.f32.mrb[11].mxu1 }
 0x454   : > { %v911_v28 = vpop.xlane.xlu0 %910 }
 0x455   : > { %v912_v29 = vsub.f32 %v902_v23, %v911_v28 }
 0x457   : > { %v913_v30 = vmul.f32 1.442695, %v912_v29 }
 0x459   : > { %1363 = vpow2.f32 %v913_v30 }
 0x463   : > { %v1364_v31 = vpop.eup %1363 }
 0x464   : > { %v915_v32 = vsel %vm908_vm3, %v1364_v31, 0.0 }
 0x465   : > { %916 = vadd.xlane.f32.xlu0 %v915_v32 }
 0x4f2   : > { %v917_v36 = vpop.xlane.xlu0 %916 }
 0x4f3   : > { %1365 = vrcp.f32 %v917_v36 }
 0x4fd   : > { %v1366_v37 = vpop.eup %1365 }
 0x4fe   : > { %v919_v38 = vmul.f32 %v1366_v37, %v1364_v31 }
 0x500   : > { %v920_v39 = vpack.c.bf16 %v919_v38, %v919_v38 }
 0x502   : > { %1284 = vmatmul.mubr.msk.bf16.vlgmr.msra.gmra.mrb[12].mxu1 %vm908_vm3, %v920_v39 }
 0x5d5   : > { %v963_v41 = vpop.f32.mrb[12].mxu1 }
 0x5d6   : > { %v969_v42 = vpack.c.bf16 %v963_v41, %v963_v41  ;;  %v1285_v43 = vpop.f32.mrb[13].mxu1 }
 0x5d7   : > { %v966_v44 = vpop.f32.mrb[14].mxu1 }
 0x5d8   : > { %v1286_v45 = vpop.f32.mrb[15].mxu1  ;;  %1296 = vmatmul.mubr.msk.bf16.vlgmr.msra.gmra.mrb[12].mxu0 %vm434_vm1, %v969_v42 }
 0x6ab   : > { %v1046_v46 = vpop.f32.mrb[12].mxu0 }
 0x6ac   : > { %v1047_v47 = vadd.f32 %v1151_v1, %v1046_v46  ;;  %v1297_v48 = vpop.f32.mrb[13].mxu0 }
 0x6ad   : > { %v1049_v49 = vpop.f32.mrb[14].mxu0 }
 0x6ae   : > { %v1052_v50 = vadd.f32 %v1047_v47, %v1547_v7  ;;  %v1298_v51 = vpop.f32.mrb[15].mxu0 }
 0x6b0   : > { %1053 = vst.msk [vmem:[%s421_s26] sm:$0xff] %vm434_vm1, %v1052_v50 }
 0x6b1 PF: > { %s23_s21 = sadd.s32 1, %s1405_s21  }
 0x6b2   : > { %p20_p2 = scmp.ge.s32.totalorder %s23_s21, 4  }
 0x6b4   :  { %22 = sbr.rel (!%p20_p2) target bundleno = 1 (0x1), region = 103 }
 0x6bb   :  { %1073 = vsyncpa [#allocation3], 1 }
 0x6bc   :  { %1075 = vsyncpa [#allocation3 + $0x1], 1 }

// kernel: _lambda_.16
= control target key start
LH: loop header
LB: loop body
LE: loop exit
PB: predicated region body
PF: predicated region fallthrough
CT: control target
= control target key end

     0   :  { %s2691_s0 = inlined_call_operand.vmem [shape: f32[2,8,64], index: 0, kind: input, shape index: {}]   ;;  %s2692_s1 = inlined_call_operand.vmem [shape: f32[64,64], index: 1, kind: input, shape index: {}]   ;;  %s2693_s2 = inlined_call_operand.hbm [shape: f32[1,64], index: 2, kind: input, shape index: {}]   ;;  %s2694_s3 = inlined_call_operand.hbm [shape: f32[1,64], index: 3, kind: input, shape index: {}]   ;;  %s2695_s4 = inlined_call_operand.vmem [shape: bf16[64,64], index: 4, kind: input, shape index: {}]   ;;  %s2696_s5 = inlined_call_operand.vmem [shape: bf16[64,64], index: 5, kind: input, shape index: {}]   ;;  %s2697_s6 = inlined_call_operand.vmem [shape: bf16[64,64], index: 6, kind: input, shape index: {}]   ;;  %s2698_s7 = inlined_call_operand.hbm [shape: f32[1,64], index: 7, kind: input, shape index: {}]   ;;  %s2699_s8 = inlined_call_operand.vmem [shape: f32[64,64], index: 8, kind: input, shape index: {}]   ;;  %s2700_s9 = inlined_call_operand.hbm [shape: f32[1,64], index: 9, kind: input, shape index: {}]   ;;  %s2701_s10 = inlined_call_operand.hbm [shape: f32[1,64], index: 10, kind: input, shape index: {}]   ;;  %s2702_s11 = inlined_call_operand.vmem [shape: bf16[64,64], index: 11, kind: input, shape index: {}]   ;;  %s2703_s12 = inlined_call_operand.vmem [shape: bf16[64,64], index: 12, kind: input, shape index: {}]   ;;  %s2704_s13 = inlined_call_operand.vmem [shape: bf16[64,64], index: 13, kind: input, shape index: {}]   ;;  %s2705_s14 = inlined_call_operand.hbm [shape: f32[1,64], index: 14, kind: input, shape index: {}]   ;;  %s2706_s15 = inlined_call_operand.vmem [shape: f32[2,8,64], index: 15, kind: output, shape index: {}]  }
   0x1   :  { %2711 = sst [smem:[#allocation17_spill]] %s2704_s13 }
   0x2   :  { %2712 = sst [smem:[#allocation18_spill]] %s2706_s15 }
   0x3   :  { %20 = vsyncpa [#allocation3], 0 }
   0x4   :  { %21 = vsyncpa [#allocation5], 0 }
   0x5   :  { %22 = vsyncpa [#allocation8], 0 }
   0x6   :  { %23 = vsyncpa [#allocation11], 0  ;;  %s2267_s18 = smov 0  }
   0x7 LB: > { %2713 = sst [smem:[#allocation16_spill]] %s2176_s18  ;;  %s2178_s19 = smov [#allocation4]   ;;  %s2176_s18 = sphi %s2267_s18, %s29_s18  }
   0x8   : > { %s407_s20 = sshll.u32 %s2178_s19, 4  ;;  %s2273_s21 = sadd.s32 4294967295, %s2176_s18   ;;  %s2278_s20 = int_to_ptr.vmem [resolvable:$true] %s407_s20 }
   0x9   : > { %p1559_p0 = scmp.ge.s32.totalorder %s2176_s18, 1  ;;  %p380_p1 = scmp.lt.s32.totalorder %s2176_s18, 3 }
   0xa   : > { %p2709_p2 = scmp.eq.s32.totalorder %s2273_s21, 0  ;;  %s2179_s23 = smov [#allocation7]  }
   0xb   : > { %p2280_p3 = pnand %p1559_p0, %p380_p1  ;;  %s441_s24 = sshll.u32 %s2179_s23, 4  ;;  %s2286_s24 = int_to_ptr.vmem [resolvable:$true] %s441_s24 }
   0xc   : > { %s2180_s25 = smov [#allocation2]   ;;  %s2181_s28 = smov [#allocation6]  }
   0xd   : > { %s2714_s22 = scalar_select %p2280_p3, 1, 0 }
   0xe   : > { %p1902_p4 = pneg %p2280_p3  ;;  %s396_s26 = sshll.u32 %s2180_s25, 4  ;;  %s2294_s26 = int_to_ptr.vmem [resolvable:$true] %s396_s26 }
   0xf   : > { %s427_s29 = sshll.u32 %s2181_s28, 4  ;;  %s1986_s17 = scalar_lea.hbm %s2694_s3, 16  ;;  %s2296_s29 = int_to_ptr.vmem [resolvable:$true] %s427_s29 }
  0x10   : > { %p2290_p5 = pnand %p2709_p2, %p1902_p4  ;;  %p1987_p6 = scmp.ne.s32.totalorder %s2694_s3, %s1986_s17 }
  0x11   : > { %p1993_p10 = scmp.lt.u32.totalorder %s1986_s17, %s2694_s3 }
  0x12   : > { %p2306_p7 = pneg %p2290_p5 }
  0x14   : > { %p1989_p8 = pnand %p2306_p7, %p1987_p6 }
  0x16   : > { %p1990_p9 = pneg %p1989_p8 }
  0x18   : > { %p1995_p11 = pnand %p1993_p10, %p1990_p9 }
  0x1a   : > { %1998 = shalt.err (!%p1995_p11)
}
  0x1b   : > { %s1999_s30 = scalar_lea.vmem %s2278_s20, 16  ;;  %s2006_s16 = scalar_lea.vmem %s2278_s20, 32 }
  0x1c   : > { %p2000_p12 = scmp.ne.s32.totalorder %s2278_s20, %s1999_s30  ;;  %p2007_p1 = scmp.lt.s32.totalorder %s2278_s20, %s2278_s20 }
  0x1d   : > { %p2008_p4 = scmp.lt.s32.totalorder %s2006_s16, %s1999_s30 }
  0x1e   : > { %p2002_p13 = pnand %p2000_p12, %p2306_p7 }
  0x1f   : > { %p2009_p6 = por %p2008_p4, %p2007_p1 }
  0x20   : > { %p2003_p0 = pneg %p2002_p13 }
  0x22   : > { %p2010_p8 = pnand %p2009_p6, %p2003_p0 }
  0x24   : > { %2013 = shalt.err (!%p2010_p8)
}
  0x25   : > { %1908 = dma.hbm_to_vmem [thread:$0]  (!%p2290_p5), %s2694_s3, 16, %s2278_s20, [#allocation5]  }
  0x26   : > { %s2014_s28 = scalar_lea.hbm %s2700_s9, 16 }
  0x27   : > { %p2015_p9 = scmp.ne.s32.totalorder %s2700_s9, %s2014_s28  ;;  %p2021_p12 = scmp.lt.u32.totalorder %s2014_s28, %s2700_s9 }
  0x29   : > { %p2017_p10 = pnand %p2015_p9, %p2306_p7 }
  0x2b   : > { %p2018_p11 = pneg %p2017_p10 }
  0x2d   : > { %p2023_p13 = pnand %p2021_p12, %p2018_p11 }
  0x2f   : > { %2026 = shalt.err (!%p2023_p13)
}
  0x30   : > { %s2027_s20 = scalar_lea.vmem %s2286_s24, 16  ;;  %s2034_s13 = scalar_lea.vmem %s2286_s24, 32 }
  0x31   : > { %p2028_p0 = scmp.ne.s32.totalorder %s2286_s24, %s2027_s20  ;;  %p2035_p6 = scmp.lt.s32.totalorder %s2286_s24, %s2286_s24 }
  0x32   : > { %p2036_p8 = scmp.lt.s32.totalorder %s2034_s13, %s2027_s20 }
  0x33   : > { %p2030_p1 = pnand %p2028_p0, %p2306_p7 }
  0x34   : > { %p2037_p9 = por %p2036_p8, %p2035_p6 }
  0x35   : > { %p2031_p4 = pneg %p2030_p1 }
  0x37   : > { %p2038_p10 = pnand %p2037_p9, %p2031_p4 }
  0x39   : > { %2041 = shalt.err (!%p2038_p10)
}
  0x3a   : > { %1914 = dma.hbm_to_vmem [thread:$0]  (!%p2290_p5), %s2700_s9, 16, %s2286_s24, [#allocation8]  }
  0x3b   : > { %s2042_s23 = scalar_lea.hbm %s2693_s2, 16 }
  0x3c   : > { %p2043_p11 = scmp.ne.s32.totalorder %s2693_s2, %s2042_s23  ;;  %p2049_p0 = scmp.lt.u32.totalorder %s2042_s23, %s2693_s2 }
  0x3e   : > { %p2045_p12 = pnand %p2043_p11, %p2306_p7 }
  0x40   : > { %p2046_p13 = pneg %p2045_p12 }
  0x42   : > { %p2051_p1 = pnand %p2049_p0, %p2046_p13 }
  0x44   : > { %2054 = shalt.err (!%p2051_p1)
}
  0x45   : > { %s2055_s24 = scalar_lea.vmem %s2294_s26, 16  ;;  %s2062_s13 = scalar_lea.vmem %s2294_s26, 32 }
  0x46   : > { %p2056_p4 = scmp.ne.s32.totalorder %s2294_s26, %s2055_s24  ;;  %p2063_p9 = scmp.lt.s32.totalorder %s2294_s26, %s2294_s26 }
  0x47   : > { %p2064_p10 = scmp.lt.s32.totalorder %s2062_s13, %s2055_s24 }
  0x48   : > { %p2058_p6 = pnand %p2056_p4, %p2306_p7 }
  0x49   : > { %p2065_p11 = por %p2064_p10, %p2063_p9 }
  0x4a   : > { %p2059_p8 = pneg %p2058_p6 }
  0x4c   : > { %p2066_p12 = pnand %p2065_p11, %p2059_p8 }
  0x4e   : > { %2069 = shalt.err (!%p2066_p12)
}
  0x4f   : > { %1905 = dma.hbm_to_vmem [thread:$0]  (!%p2290_p5), %s2693_s2, 16, %s2294_s26, [#allocation3]  }
  0x50   : > { %s2070_s23 = scalar_lea.hbm %s2698_s7, 16 }
  0x51   : > { %p2071_p13 = scmp.ne.s32.totalorder %s2698_s7, %s2070_s23  ;;  %p2077_p4 = scmp.lt.u32.totalorder %s2070_s23, %s2698_s7 }
  0x53   : > { %p2073_p0 = pnand %p2071_p13, %p2306_p7 }
  0x55   : > { %p2074_p1 = pneg %p2073_p0 }
  0x57   : > { %p2079_p6 = pnand %p2077_p4, %p2074_p1 }
  0x59   : > { %2082 = shalt.err (!%p2079_p6)
}
  0x5a   : > { %s2083_s26 = scalar_lea.vmem %s2296_s29, 16  ;;  %s2090_s24 = scalar_lea.vmem %s2296_s29, 32 }
  0x5b   : > { %p2084_p8 = scmp.ne.s32.totalorder %s2296_s29, %s2083_s26  ;;  %p2091_p11 = scmp.lt.s32.totalorder %s2296_s29, %s2296_s29 }
  0x5c   : > { %p2092_p12 = scmp.lt.s32.totalorder %s2090_s24, %s2083_s26 }
  0x5d   : > { %p2086_p9 = pnand %p2084_p8, %p2306_p7 }
  0x5e   : > { %p2093_p13 = por %p2092_p12, %p2091_p11 }
  0x5f   : > { %p2087_p10 = pneg %p2086_p9 }
  0x61   : > { %p2094_p0 = pnand %p2093_p13, %p2087_p10 }
  0x63   : > { %2097 = shalt.err (!%p2094_p0)
}
  0x64   : > { %1911 = dma.hbm_to_vmem [thread:$0]  (!%p2290_p5), %s2698_s7, 16, %s2296_s29, [#allocation5]  }
  0x65   : > { %s2182_s18 = smov [#allocation9]   ;;  %s2183_s19 = smov [#allocation10]  }
  0x66   : > { %s452_s17 = sshll.u32 %s2182_s18, 4  ;;  %s472_s23 = sshll.u32 %s2183_s19, 4  ;;  %s453_s17 = int_to_ptr.vmem [resolvable:$true] %s452_s17  ;;  %s473_s23 = int_to_ptr.vmem [resolvable:$true] %s472_s23 }
  0x67   : > { %s2098_s16 = scalar_lea.hbm %s2701_s10, 16 }
  0x68   : > { %p2099_p1 = scmp.ne.s32.totalorder %s2701_s10, %s2098_s16  ;;  %p2105_p8 = scmp.lt.u32.totalorder %s2098_s16, %s2701_s10 }
  0x6a   : > { %p2101_p4 = pnand %p2099_p1, %p2306_p7 }
  0x6c   : > { %p2102_p6 = pneg %p2101_p4 }
  0x6e   : > { %p2107_p9 = pnand %p2105_p8, %p2102_p6 }
  0x70   : > { %2110 = shalt.err (!%p2107_p9)
}
  0x71   : > { %s2111_s29 = scalar_lea.vmem %s453_s17, 16  ;;  %s2118_s15 = scalar_lea.vmem %s453_s17, 32 }
  0x72   : > { %p2112_p10 = scmp.ne.s32.totalorder %s453_s17, %s2111_s29  ;;  %p2119_p13 = scmp.lt.s32.totalorder %s453_s17, %s453_s17 }
  0x73   : > { %p2120_p0 = scmp.lt.s32.totalorder %s2118_s15, %s2111_s29 }
  0x74   : > { %p2114_p11 = pnand %p2112_p10, %p2306_p7 }
  0x75   : > { %p2121_p2 = por %p2120_p0, %p2119_p13 }
  0x76   : > { %p2115_p12 = pneg %p2114_p11 }
  0x78   : > { %p2122_p3 = pnand %p2121_p2, %p2115_p12 }
  0x7a   : > { %2125 = shalt.err (!%p2122_p3)
}
  0x7b   : > { %1917 = dma.hbm_to_vmem [thread:$0]  (!%p2290_p5), %s2701_s10, 16, %s453_s17, [#allocation8]  }
  0x7c   : > { %s2126_s16 = scalar_lea.hbm %s2705_s14, 16 }
  0x7d   : > { %p2127_p1 = scmp.ne.s32.totalorder %s2705_s14, %s2126_s16  ;;  %p2133_p3 = scmp.lt.u32.totalorder %s2126_s16, %s2705_s14 }
  0x7f   : > { %p2129_p4 = pnand %p2127_p1, %p2306_p7 }
  0x81   : > { %p2130_p2 = pneg %p2129_p4 }
  0x83   : > { %p2135_p6 = pnand %p2133_p3, %p2130_p2 }
  0x85   : > { %2138 = shalt.err (!%p2135_p6)
}
  0x86   : > { %s2139_s29 = scalar_lea.vmem %s473_s23, 16  ;;  %s2146_s17 = scalar_lea.vmem %s473_s23, 32 }
  0x87   : > { %p2140_p8 = scmp.ne.s32.totalorder %s473_s23, %s2139_s29  ;;  %p2147_p11 = scmp.lt.s32.totalorder %s473_s23, %s473_s23 }
  0x88   : > { %p2148_p12 = scmp.lt.s32.totalorder %s2146_s17, %s2139_s29 }
  0x89   : > { %p2142_p9 = pnand %p2140_p8, %p2306_p7 }
  0x8a   : > { %p2149_p13 = por %p2148_p12, %p2147_p11 }
  0x8b   : > { %p2143_p10 = pneg %p2142_p9 }
  0x8d   : > { %p2150_p0 = pnand %p2149_p13, %p2143_p10 }
  0x8f   : > { %2153 = shalt.err (!%p2150_p0)
}
  0x90   : > { %1920 = dma.hbm_to_vmem [thread:$0]  (!%p2290_p5), %s2705_s14, 16, %s473_s23, [#allocation11]  }
  0x91   : > { %p2717_p1 = scmp.ne.s32.totalorder %s2714_s22, 0 }
  0x92   : > { %p2718_p4 = scmp.eq.s32.totalorder (!%p2717_p1), %s2273_s21, 0 }
  0x93   : > { %492 = sbr.rel (%p2717_p1) target bundleno = 1669 (0x685), region = 80 }
  0x9a   : > { %2159 = dma.done.wait (%p2718_p4), [#allocation3], 16   ;;  %p2719_p7 = pmov %p2718_p4 }
  0x9b   : > { %p2720_p2 = pmov %p2718_p4 }
  0x9c   : > { %2161 = vsyncadd (%p2719_p7), [#allocation3], 4294967280 }
  0x9d   : > { %2163 = dma.done.wait (%p2720_p2), [#allocation5], 32   ;;  %p2721_p3 = pmov %p2720_p2 }
  0x9e   : > { %p2722_p6 = pmov %p2720_p2 }
  0x9f   : > { %2165 = vsyncadd (%p2721_p3), [#allocation5], 4294967264 }
  0xa0   : > { %2167 = dma.done.wait (%p2722_p6), [#allocation8], 32   ;;  %p2723_p5 = pmov %p2720_p2 }
  0xa1   : > { %p2724_p8 = pmov %p2720_p2 }
  0xa2   : > { %2169 = vsyncadd (%p2723_p5), [#allocation8], 4294967264 }
  0xa3   : > { %2171 = dma.done.wait (%p2724_p8), [#allocation11], 16   ;;  %p2725_p9 = pmov %p2720_p2 }
  0xa4   : > { %p558_p10 = scmp.lt.s32.totalorder %s2273_s21, 1  ;;  %v2184_v0 = vmov 0.0|0.0   ;;  %vm2185_vm0 = vmmov 0   ;;  %v2186_v1 = vmov 0.0   ;;  %v568_v2 = vld [vmem:[%s2692_s1] sm:$0xff]  ;;  %v569_v3 = vld [vmem:[%s2692_s1 + $0x8] sm:$0xff]  ;;  %v661_v22 = vlaneseq }
  0xa5   : > { %2173 = vsyncadd (%p2725_p9), [#allocation11], 4294967280  ;;  %1830 = vmatprep.subr.bf16.mxu0 %v2184_v0  ;;  %1698 = vmatprep.mubr.msk.f32.mxu0 %vm2185_vm0, %v2186_v1  ;;  %v570_v4 = vld [vmem:[%s2692_s1 + $0x10] sm:$0xff]  ;;  %vm578_vm1 = vcmask 523264   ;;  %v1831_v5 = vpack.c.bf16 %v569_v3, %v568_v2  ;;  %v571_v6 = vld [vmem:[%s2692_s1 + $0x18] sm:$0xff]  ;;  %s2727_s29 = sld [smem:[#allocation18_spill]] }
  0xa6   : > { %s2730_s21 = smov (!%p558_p10, %s2273_s21), 1  ;;  %1842 = vmatprep.subr.bf16.mxu1 %v2184_v0  ;;  %1717 = vmatprep.mubr.msk.f32.mxu1 %vm2185_vm0, %v2186_v1  ;;  %v1834_v8 = vpack.c.bf16 %v571_v6, %v570_v4  ;;  %v572_v9 = vld [vmem:[%s2692_s1 + $0x20] sm:$0xff]  ;;  %v573_v11 = vld [vmem:[%s2692_s1 + $0x28] sm:$0xff]  ;;  %v574_v13 = vld [vmem:[%s2692_s1 + $0x30] sm:$0xff]  ;;  %v2509_v23 = vshrl.u32 %v661_v22, 7 }
  0xa7   : > { %s1574_s22 = sshll.u32 %s2730_s21, 3  ;;  %1832 = vmatpush3.bf16.msra.mxu0 %v1831_v5  ;;  %1844 = vmatpush3.bf16.msra.mxu1 %v1831_v5  ;;  %v1837_v15 = vpack.c.bf16 %v573_v11, %v572_v9  ;;  %v575_v16 = vld [vmem:[%s2692_s1 + $0x38] sm:$0xff]  ;;  %v1950_v38 = vld [vmem:[%s2695_s4] sm:$0xff]   ;;  %v1952_v40 = vld [vmem:[%s2695_s4 + $0x8] sm:$0xff]  }
  0xa8   : > { %s561_s23 = scalar_lea.vmem %s2691_s0, %s1574_s22  ;;  %1833 = vmatprep.subr.bf16.mxu0 %v2184_v0  ;;  %1845 = vmatprep.subr.bf16.mxu1 %v2184_v0  ;;  %v1840_v19 = vpack.c.bf16 %v575_v16, %v574_v13  ;;  %v2512_v24 = vsub.s32 0, %v2509_v23  ;;  %v1951_v39 = vld [vmem:[%s2696_s5] sm:$0xff]   ;;  %v1953_v41 = vld [vmem:[%s2696_s5 + $0x8] sm:$0xff]   ;;  %v1954_v42 = vld [vmem:[%s2695_s4 + $0x10] sm:$0xff]   ;;  %vm992_vm2 = vcmp.gt.s32.totalorder %v2509_v23, 0  ;;  %vm996_vm3 = vcmp.lt.s32.totalorder %v2509_v23, 7 }
  0xa9   : > { %v2482_v7 = vld [vmem:[%s561_s23] sm:$0xff]  ;;  %v1955_v43 = vld [vmem:[%s2696_s5 + $0x10] sm:$0xff]   ;;  %v1956_v44 = vld [vmem:[%s2695_s4 + $0x18] sm:$0xff]   ;;  %s2726_s23 = sld [smem:[#allocation17_spill]] }
  0xaa   : > { %v579_v10 = vsel %vm578_vm1, %v2482_v7, 0.0  ;;  %v1957_v45 = vld [vmem:[%s2696_s5 + $0x18] sm:$0xff]   ;;  %v576_v50 = vld [vmem:[#allocation2] sm:$0x1]  ;;  %v1578_v54 = vld [vmem:[#allocation4] ss:$0 sm:$0xff] }
  0xab   : > { %v580_v12 = vrot.slane %v579_v10, 4  ;;  %1835 = vmatpush3.bf16.msra.mxu0 %v1834_v8  ;;  %1847 = vmatpush3.bf16.msra.mxu1 %v1834_v8  ;;  %v1958_v63 = vld [vmem:[%s2697_s6] sm:$0xff]   ;;  %v1959_v3 = vld [vmem:[%s2697_s6 + $0x8] sm:$0xff]   ;;  %v1960_v4 = vld [vmem:[%s2697_s6 + $0x10] sm:$0xff]   ;;  %s565_s17 = scalar_lea.vmem %s2727_s29, %s1574_s22 }
  0xac   : > { %1836 = vmatprep.subr.bf16.mxu0 %v2184_v0  ;;  %1848 = vmatprep.subr.bf16.mxu1 %v2184_v0  ;;  %v1961_v5 = vld [vmem:[%s2697_s6 + $0x18] sm:$0xff]   ;;  %v1008_v6 = vld [vmem:[%s2699_s8] sm:$0xff]  ;;  %v1009_v8 = vld [vmem:[%s2699_s8 + $0x8] sm:$0xff] }
  0xad   : > { %v581_v14 = vadd.f32 %v580_v12, %v579_v10  ;;  %v1855_v9 = vpack.c.bf16 %v1009_v8, %v1008_v6  ;;  %v1010_v10 = vld [vmem:[%s2699_s8 + $0x10] sm:$0xff]  ;;  %v1011_v11 = vld [vmem:[%s2699_s8 + $0x18] sm:$0xff]  ;;  %v1012_v13 = vld [vmem:[%s2699_s8 + $0x20] sm:$0xff] }
  0xae   : > { %v1858_v12 = vpack.c.bf16 %v1011_v11, %v1010_v10  ;;  %v1014_v16 = vld [vmem:[%s2699_s8 + $0x30] sm:$0xff]  ;;  %v1016_v11 = vld [vmem:[#allocation7] sm:$0x1] }
  0xaf   : > { %v582_v17 = vrot.slane %v581_v14, 2  ;;  %1838 = vmatpush3.bf16.msra.mxu0 %v1837_v15  ;;  %1850 = vmatpush3.bf16.msra.mxu1 %v1837_v15 }
  0xb0   : > { %1839 = vmatprep.subr.bf16.mxu0 %v2184_v0  ;;  %1851 = vmatprep.subr.bf16.mxu1 %v2184_v0 }
  0xb1   : > { %v583_v18 = vadd.f32 %v582_v17, %v581_v14  ;;  %v1013_v14 = vld [vmem:[%s2699_s8 + $0x28] sm:$0xff]  ;;  %v1015_v17 = vld [vmem:[%s2699_s8 + $0x38] sm:$0xff] }
  0xb2   : > { %v1861_v15 = vpack.c.bf16 %v1013_v14, %v1012_v13 }
  0xb3   : > { %v584_v20 = vrot.slane %v583_v18, 1  ;;  %1841 = vmatpush3.bf16.msra.mxu0 %v1840_v19  ;;  %1853 = vmatpush3.bf16.msra.mxu1 %v1840_v19 }
  0xb4   : > { %1720 = vmatprep.subr.bf16.mxu0 %v2186_v1  ;;  %1732 = vmatprep.subr.bf16.mxu1 %v2186_v1 }
  0xb5   : > { %v585_v21 = vadd.f32 %v584_v20, %v583_v18  ;;  %v1864_v18 = vpack.c.bf16 %v1015_v17, %v1014_v16 }
  0xb7   : > { %1699 = vmatmul.mubr.msk.f32.vlgmr.msra.gmra.mrb[0].mxu0 %vm578_vm1, %v585_v21 }
  0xb8   : > { %1728 = vmatprep.mubr.msk.bf16.mxu0 %vm2185_vm0, %v2186_v1  ;;  %1721 = vmatpush3.bf16.msra.mxu0 %v1950_v38 }
  0xb9   : > { %1722 = vmatprep.subr.bf16.mxu0 %v2186_v1 }
  0xbc   : > { %1723 = vmatpush3.bf16.msra.mxu0 %v1952_v40 }
  0xbd   : > { %1724 = vmatprep.subr.bf16.mxu0 %v2186_v1 }
  0xc0   : > { %1725 = vmatpush3.bf16.msra.mxu0 %v1954_v42 }
  0xc1   : > { %1726 = vmatprep.subr.bf16.mxu0 %v2186_v1 }
  0xc4   : > { %1727 = vmatpush3.bf16.msra.mxu0 %v1956_v44 }
  0xc5   : > { %1744 = vmatprep.subr.bf16.mxu0 %v2186_v1 }
 0x18a   : > { %v655_v25 = vpop.f32.mrb[0].mxu0 }
 0x18b   : > { %v660_v26 = vmul.f32 0.0625, %v655_v25  ;;  %v1700_v27 = vpop.f32.mrb[1].mxu0 }
 0x18d   : > { %v664_v28 = vrot.slane %v660_v26, %v2512_v24 }
 0x18f   : > { %v665_v29 = vsub.f32 %v2482_v7, %v664_v28 }
 0x191   : > { %v666_v30 = vmul.f32 %v665_v29, %v665_v29 }
 0x193   : > { %v667_v31 = vsel %vm578_vm1, %v666_v30, 0.0 }
 0x194   : > { %v668_v32 = vrot.slane %v667_v31, 4 }
 0x196   : > { %v669_v33 = vadd.f32 %v668_v32, %v667_v31 }
 0x198   : > { %v670_v34 = vrot.slane %v669_v33, 2 }
 0x19a   : > { %v671_v35 = vadd.f32 %v670_v34, %v669_v33 }
 0x19c   : > { %v672_v36 = vrot.slane %v671_v35, 1 }
 0x19e   : > { %v673_v37 = vadd.f32 %v672_v36, %v671_v35  ;;  %v1594_v36 = vld [vmem:[#allocation6] ss:$0 sm:$0xff] }
 0x1a0   : > { %1718 = vmatmul.mubr.msk.f32.vlgmr.msra.gmra.mrb[0].mxu1 %vm578_vm1, %v673_v37 }
 0x1a1   : > { %1740 = vmatprep.mubr.msk.bf16.mxu1 %vm2185_vm0, %v2186_v1  ;;  %1733 = vmatpush3.bf16.msra.mxu1 %v1951_v39 }
 0x1a2   : > { %1734 = vmatprep.subr.bf16.mxu1 %v2186_v1 }
 0x1a5   : > { %1735 = vmatpush3.bf16.msra.mxu1 %v1953_v41 }
 0x1a6   : > { %1736 = vmatprep.subr.bf16.mxu1 %v2186_v1 }
 0x1a9   : > { %1737 = vmatpush3.bf16.msra.mxu1 %v1955_v43 }
 0x1aa   : > { %1738 = vmatprep.subr.bf16.mxu1 %v2186_v1 }
 0x1ad   : > { %1739 = vmatpush3.bf16.msra.mxu1 %v1957_v45 }
 0x1ae   : > { %1854 = vmatprep.subr.bf16.mxu1 %v2184_v0 }
 0x273   : > { %v743_v46 = vpop.f32.mrb[0].mxu1 }
 0x274   : > { %v747_v47 = vmul.f32 0.0625, %v743_v46  ;;  %v1719_v48 = vpop.f32.mrb[1].mxu1 }
 0x276   : > { %v748_v49 = vadd.f32 1e-06, %v747_v47 }
 0x278   : > { %1974 = vrsqrt.f32 %v748_v49 }
 0x282   : > { %v1975_v51 = vpop.eup %1974 }
 0x283   : > { %v750_v52 = vmul.f32 %v1975_v51, %v576_v50 }
 0x285   : > { %v754_v53 = vrot.slane %v750_v52, %v2512_v24 }
 0x287   : > { %v755_v55 = vmul.f32 %v754_v53, %v665_v29 }
 0x289   : > { %v762_v56 = vadd.f32 %v1578_v54, %v755_v55 }
 0x28b   : > { %v763_v57 = vsub.f32 0.0, %v762_v56 }
 0x28d   : > { %v764_v58 = vmul.f32 1.442695, %v763_v57 }
 0x28f   : > { %1976 = vpow2.f32 %v764_v58 }
 0x299   : > { %v1977_v59 = vpop.eup %1976 }
 0x29a   : > { %v766_v60 = vadd.f32 1.0, %v1977_v59 }
 0x29c   : > { %1978 = vrcp.f32 %v766_v60  ;;  %v1962_v60 = vld [vmem:[%s2702_s11] sm:$0xff]  }
 0x2a6   : > { %v1979_v61 = vpop.eup %1978 }
 0x2a7   : > { %v769_v62 = vmul.f32 %v1979_v61, %v762_v56  ;;  %v1963_v61 = vld [vmem:[%s2703_s12] sm:$0xff]  }
 0x2a9   : > { %v770_v2 = vpack.c.bf16 %v769_v62, %v769_v62  ;;  %v1964_v62 = vld [vmem:[%s2702_s11 + $0x8] sm:$0xff]  }
 0x2ab   : > { %1729 = vmatmul.mubr.msk.bf16.vlgmr.msra.gmra.mrb[4].mxu0 %vm578_vm1, %v770_v2  ;;  %1741 = vmatmul.mubr.msk.bf16.vlgmr.msra.gmra.mrb[4].mxu1 %vm578_vm1, %v770_v2 }
 0x2ac   : > { %1745 = vmatpush3.bf16.msra.mxu0 %v1958_v63  ;;  %1752 = vmatprep.mubr.msk.bf16.mxu0 %vm2185_vm0, %v2186_v1  ;;  %v1965_v63 = vld [vmem:[%s2703_s12 + $0x8] sm:$0xff]  }
 0x2ad   : > { %1746 = vmatprep.subr.bf16.mxu0 %v2186_v1  ;;  %1772 = vmatprep.mubr.msk.f32.mxu1 %vm2185_vm0, %v2186_v1 }
 0x2ae   : > { %1856 = vmatpush3.bf16.msra.mxu1 %v1855_v9 }
 0x2af   : > { %1857 = vmatprep.subr.bf16.mxu1 %v2184_v0 }
 0x2b0   : > { %1747 = vmatpush3.bf16.msra.mxu0 %v1959_v3  ;;  %v1967_v3 = vld [vmem:[%s2703_s12 + $0x10] sm:$0xff]  }
 0x2b1   : > { %1748 = vmatprep.subr.bf16.mxu0 %v2186_v1 }
 0x2b2   : > { %1859 = vmatpush3.bf16.msra.mxu1 %v1858_v12 }
 0x2b3   : > { %1860 = vmatprep.subr.bf16.mxu1 %v2184_v0 }
 0x2b4   : > { %1749 = vmatpush3.bf16.msra.mxu0 %v1960_v4  ;;  %v1968_v4 = vld [vmem:[%s2702_s11 + $0x18] sm:$0xff]  }
 0x2b5   : > { %1750 = vmatprep.subr.bf16.mxu0 %v2186_v1 }
 0x2b6   : > { %1862 = vmatpush3.bf16.msra.mxu1 %v1861_v15 }
 0x2b7   : > { %1863 = vmatprep.subr.bf16.mxu1 %v2184_v0 }
 0x2b8   : > { %1751 = vmatpush3.bf16.msra.mxu0 %v1961_v5  ;;  %v1969_v5 = vld [vmem:[%s2703_s12 + $0x18] sm:$0xff]  }
 0x2b9   : > { %1866 = vmatprep.subr.bf16.mxu0 %v2184_v0 }
 0x2ba   : > { %1865 = vmatpush3.bf16.msra.mxu1 %v1864_v18 }
 0x2bb   : > { %1753 = vmatmul.mubr.msk.bf16.vlgmr.msra.gmra.mrb[8].mxu0 %vm578_vm1, %v770_v2  ;;  %1794 = vmatprep.subr.bf16.mxu1 %v2186_v1  ;;  %v1966_v2 = vld [vmem:[%s2702_s11 + $0x10] sm:$0xff]  }
 0x2bc   : > { %1791 = vmatprep.mubr.msk.f32.mxu0 %vm2185_vm0, %v2186_v1  ;;  %1868 = vmatpush3.bf16.msra.mxu0 %v1855_v9 }
 0x2bd   : > { %1869 = vmatprep.subr.bf16.mxu0 %v2184_v0 }
 0x2c0   : > { %1871 = vmatpush3.bf16.msra.mxu0 %v1858_v12 }
 0x2c1   : > { %1872 = vmatprep.subr.bf16.mxu0 %v2184_v0 }
 0x2c4   : > { %1874 = vmatpush3.bf16.msra.mxu0 %v1861_v15  ;;  %v1597_v15 = vld [vmem:[#allocation9] ss:$0 sm:$0xff] }
 0x2c5   : > { %1875 = vmatprep.subr.bf16.mxu0 %v2184_v0 }
 0x2c8   : > { %1877 = vmatpush3.bf16.msra.mxu0 %v1864_v18 }
 0x2c9   : > { %1806 = vmatprep.subr.bf16.mxu0 %v2186_v1 }
 0x37e   : > { %v840_v19 = vpop.f32.mrb[4].mxu0  ;;  %v912_v20 = vpop.f32.mrb[4].mxu1 }
 0x37f   : > { %v993_v21 = vrot.slane %v840_v19, 7  ;;  %v1730_v22 = vpop.f32.mrb[5].mxu0  ;;  %v1742_v25 = vpop.f32.mrb[5].mxu1 }
 0x380   : > { %v843_v26 = vpop.f32.mrb[6].mxu0  ;;  %v915_v27 = vpop.f32.mrb[6].mxu1 }
 0x381   : > { %v994_v28 = vsel %vm992_vm2, %v993_v21, 0.0  ;;  %v1731_v0 = vpop.f32.mrb[7].mxu0  ;;  %v1743_v29 = vpop.f32.mrb[7].mxu1  ;;  %v1970_v26 = vld [vmem:[%s2726_s23] sm:$0xff]  }
 0x382   : > { %v995_v30 = vadd.f32 %v994_v28, %v912_v20  ;;  %v1972_v28 = vld [vmem:[%s2726_s23 + $0x10] sm:$0xff]   ;;  %v1973_v0 = vld [vmem:[%s2726_s23 + $0x18] sm:$0xff]  }
 0x38e   : > { %v984_v31 = vpop.f32.mrb[8].mxu0 }
 0x38f   : > { %v997_v32 = vrot.slane %v984_v31, 1  ;;  %v1754_v33 = vpop.f32.mrb[9].mxu0 }
 0x390   : > { %v987_v34 = vpop.f32.mrb[10].mxu0 }
 0x391   : > { %v998_v35 = vsel %vm996_vm3, %v997_v32, 0.0  ;;  %v1755_v37 = vpop.f32.mrb[11].mxu0 }
 0x392   : > { %v999_v38 = vadd.f32 %v998_v35, %v995_v30 }
 0x394   : > { %v1007_v39 = vadd.f32 %v1594_v36, %v999_v38 }
 0x396   : > { %v1018_v40 = vsel %vm578_vm1, %v1007_v39, 0.0 }
 0x397   : > { %v1019_v41 = vrot.slane %v1018_v40, 4 }
 0x399   : > { %v1020_v42 = vadd.f32 %v1019_v41, %v1018_v40 }
 0x39b   : > { %v1021_v43 = vrot.slane %v1020_v42, 2 }
 0x39d   : > { %v1022_v44 = vadd.f32 %v1021_v43, %v1020_v42 }
 0x39f   : > { %v1023_v45 = vrot.slane %v1022_v44, 1 }
 0x3a1   : > { %v1024_v46 = vadd.f32 %v1023_v45, %v1022_v44  ;;  %v1613_v44 = vld [vmem:[#allocation10] ss:$0 sm:$0xff] }
 0x3a3   : > { %1773 = vmatmul.mubr.msk.f32.vlgmr.msra.gmra.mrb[2].mxu1 %vm578_vm1, %v1024_v46 }
 0x3a4   : > { %1802 = vmatprep.mubr.msk.bf16.mxu1 %vm2185_vm0, %v2186_v1  ;;  %1795 = vmatpush3.bf16.msra.mxu1 %v1962_v60 }
 0x3a5   : > { %1796 = vmatprep.subr.bf16.mxu1 %v2186_v1 }
 0x3a8   : > { %1797 = vmatpush3.bf16.msra.mxu1 %v1964_v62 }
 0x3a9   : > { %1798 = vmatprep.subr.bf16.mxu1 %v2186_v1 }
 0x3ac   : > { %1799 = vmatpush3.bf16.msra.mxu1 %v1966_v2 }
 0x3ad   : > { %1800 = vmatprep.subr.bf16.mxu1 %v2186_v1 }
 0x3b0   : > { %1801 = vmatpush3.bf16.msra.mxu1 %v1968_v4 }
 0x3b1   : > { %1818 = vmatprep.subr.bf16.mxu1 %v2186_v1 }
 0x476   : > { %v1094_v47 = vpop.f32.mrb[2].mxu1 }
 0x477   : > { %v1098_v48 = vmul.f32 0.0625, %v1094_v47  ;;  %v1774_v49 = vpop.f32.mrb[3].mxu1 }
 0x479   : > { %v1102_v50 = vrot.slane %v1098_v48, %v2512_v24 }
 0x47b   : > { %v1103_v51 = vsub.f32 %v1007_v39, %v1102_v50 }
 0x47d   : > { %v1104_v52 = vmul.f32 %v1103_v51, %v1103_v51 }
 0x47f   : > { %v1105_v53 = vsel %vm578_vm1, %v1104_v52, 0.0 }
 0x480   : > { %v1106_v54 = vrot.slane %v1105_v53, 4 }
 0x482   : > { %v1107_v55 = vadd.f32 %v1106_v54, %v1105_v53 }
 0x484   : > { %v1108_v56 = vrot.slane %v1107_v55, 2 }
 0x486   : > { %v1109_v57 = vadd.f32 %v1108_v56, %v1107_v55 }
 0x488   : > { %v1110_v58 = vrot.slane %v1109_v57, 1 }
 0x48a   : > { %v1111_v59 = vadd.f32 %v1110_v58, %v1109_v57 }
 0x48c   : > { %1792 = vmatmul.mubr.msk.f32.vlgmr.msra.gmra.mrb[2].mxu0 %vm578_vm1, %v1111_v59 }
 0x48d   : > { %1814 = vmatprep.mubr.msk.bf16.mxu0 %vm2185_vm0, %v2186_v1  ;;  %1807 = vmatpush3.bf16.msra.mxu0 %v1963_v61 }
 0x48e   : > { %1808 = vmatprep.subr.bf16.mxu0 %v2186_v1 }
 0x491   : > { %1809 = vmatpush3.bf16.msra.mxu0 %v1965_v63 }
 0x492   : > { %1810 = vmatprep.subr.bf16.mxu0 %v2186_v1 }
 0x495   : > { %1811 = vmatpush3.bf16.msra.mxu0 %v1967_v3 }
 0x496   : > { %1812 = vmatprep.subr.bf16.mxu0 %v2186_v1 }
 0x499   : > { %1813 = vmatpush3.bf16.msra.mxu0 %v1969_v5 }
 0x55f   : > { %v1181_v6 = vpop.f32.mrb[2].mxu0 }
 0x560   : > { %v1185_v8 = vmul.f32 0.0625, %v1181_v6  ;;  %v1793_v9 = vpop.f32.mrb[3].mxu0 }
 0x562   : > { %v1186_v10 = vadd.f32 1e-06, %v1185_v8 }
 0x564   : > { %1980 = vrsqrt.f32 %v1186_v10 }
 0x56e   : > { %v1981_v12 = vpop.eup %1980 }
 0x56f   : > { %v1188_v13 = vmul.f32 %v1981_v12, %v1016_v11 }
 0x571   : > { %v1192_v14 = vrot.slane %v1188_v13, %v2512_v24  ;;  %v1971_v24 = vld [vmem:[%s2726_s23 + $0x8] sm:$0xff]  }
 0x573   : > { %v1193_v16 = vmul.f32 %v1192_v14, %v1103_v51 }
 0x575   : > { %v1200_v17 = vadd.f32 %v1597_v15, %v1193_v16 }
 0x577   : > { %v1201_v18 = vsub.f32 0.0, %v1200_v17 }
 0x579   : > { %v1202_v19 = vmul.f32 1.442695, %v1201_v18 }
 0x57b   : > { %1982 = vpow2.f32 %v1202_v19 }
 0x585   : > { %v1983_v20 = vpop.eup %1982 }
 0x586   : > { %v1204_v21 = vadd.f32 1.0, %v1983_v20 }
 0x588   : > { %1984 = vrcp.f32 %v1204_v21 }
 0x592   : > { %v1985_v22 = vpop.eup %1984 }
 0x593   : > { %v1207_v25 = vmul.f32 %v1985_v22, %v1200_v17 }
 0x595   : > { %v1208_v27 = vpack.c.bf16 %v1207_v25, %v1207_v25 }
 0x597   : > { %1803 = vmatmul.mubr.msk.bf16.vlgmr.msra.gmra.mrb[8].mxu1 %vm578_vm1, %v1208_v27  ;;  %1815 = vmatmul.mubr.msk.bf16.vlgmr.msra.gmra.mrb[12].mxu0 %vm578_vm1, %v1208_v27 }
 0x598   : > { %1819 = vmatpush3.bf16.msra.mxu1 %v1970_v26  ;;  %1826 = vmatprep.mubr.msk.bf16.mxu1 %vm2185_vm0, %v2186_v1 }
 0x599   : > { %1820 = vmatprep.subr.bf16.mxu1 %v2186_v1 }
 0x59c   : > { %1821 = vmatpush3.bf16.msra.mxu1 %v1971_v24 }
 0x59d   : > { %1822 = vmatprep.subr.bf16.mxu1 %v2186_v1 }
 0x5a0   : > { %1823 = vmatpush3.bf16.msra.mxu1 %v1972_v28 }
 0x5a1   : > { %1824 = vmatprep.subr.bf16.mxu1 %v2186_v1 }
 0x5a4   : > { %1825 = vmatpush3.bf16.msra.mxu1 %v1973_v0 }
 0x5a7   : > { %1827 = vmatmul.mubr.msk.bf16.vlgmr.msra.gmra.mrb[12].mxu1 %vm578_vm1, %v1208_v27 }
 0x66a   : > { %v1278_v29 = vpop.f32.mrb[8].mxu1  ;;  %v1350_v30 = vpop.f32.mrb[12].mxu0 }
 0x66b   : > { %v1428_v31 = vrot.slane %v1278_v29, 7  ;;  %v1804_v32 = vpop.f32.mrb[9].mxu1  ;;  %v1816_v33 = vpop.f32.mrb[13].mxu0 }
 0x66c   : > { %v1281_v34 = vpop.f32.mrb[10].mxu1  ;;  %v1353_v35 = vpop.f32.mrb[14].mxu0 }
 0x66d   : > { %v1429_v36 = vsel %vm992_vm2, %v1428_v31, 0.0  ;;  %v1805_v37 = vpop.f32.mrb[11].mxu1  ;;  %v1817_v38 = vpop.f32.mrb[15].mxu0 }
 0x66e   : > { %v1430_v39 = vadd.f32 %v1429_v36, %v1350_v30 }
 0x67a   : > { %v1422_v40 = vpop.f32.mrb[12].mxu1 }
 0x67b   : > { %v1431_v41 = vrot.slane %v1422_v40, 1  ;;  %v1828_v1 = vpop.f32.mrb[13].mxu1 }
 0x67c   : > { %v1425_v42 = vpop.f32.mrb[14].mxu1 }
 0x67d   : > { %v1432_v43 = vsel %vm996_vm3, %v1431_v41, 0.0  ;;  %v1829_v45 = vpop.f32.mrb[15].mxu1 }
 0x67e   : > { %v1433_v46 = vadd.f32 %v1432_v43, %v1430_v39 }
 0x680   : > { %v1441_v47 = vadd.f32 %v1613_v44, %v1433_v46 }
 0x682   : > { %v1442_v48 = vadd.f32 %v1441_v47, %v2482_v7 }
 0x684   : > { %1443 = vst.msk [vmem:[%s565_s17] sm:$0xff] %vm578_vm1, %v1442_v48 }
 0x685 PF: > { %s2728_s15 = sld [smem:[#allocation16_spill]] }
 0x68b   : > { %s29_s18 = sadd.s32 1, %s2728_s15  }
 0x68c   : > { %p26_p11 = scmp.ge.s32.totalorder %s29_s18, 4  }
 0x68e   :  { %28 = sbr.rel (!%p26_p11) target bundleno = 7 (0x7), region = 135 }
 0x695   :  { %1463 = vsyncpa [#allocation3], 1 }
 0x696   :  { %1465 = vsyncpa [#allocation3 + $0x1], 1 }
 0x697   :  { %1466 = vsyncpa [#allocation5], 1 }
 0x698   :  { %1467 = vsyncpa [#allocation8], 1 }
 0x699   :  { %1468 = vsyncpa [#allocation11], 1 }

// kernel: _lambda_.21
= control target key start
LH: loop header
LB: loop body
LE: loop exit
PB: predicated region body
PF: predicated region fallthrough
CT: control target
= control target key end

     0   :  { %s2024_s24 = smov 0   ;;  %s2298_s0 = inlined_call_operand.vmem [shape: f32[2,16,64], index: 0, kind: input, shape index: {}]   ;;  %s2299_s1 = inlined_call_operand.vmem [shape: f32[64,64], index: 1, kind: input, shape index: {}]   ;;  %s2300_s2 = inlined_call_operand.vmem [shape: f32[1,64], index: 2, kind: input, shape index: {}]   ;;  %s2301_s3 = inlined_call_operand.vmem [shape: f32[1,64], index: 3, kind: input, shape index: {}]   ;;  %s2302_s4 = inlined_call_operand.vmem [shape: bf16[64,32], index: 4, kind: input, shape index: {}]   ;;  %s2303_s5 = inlined_call_operand.vmem [shape: bf16[64,32], index: 5, kind: input, shape index: {}]   ;;  %s2304_s6 = inlined_call_operand.vmem [shape: bf16[64,32], index: 6, kind: input, shape index: {}]   ;;  %s2305_s7 = inlined_call_operand.vmem [shape: f32[1,32], index: 7, kind: input, shape index: {}]   ;;  %s2306_s8 = inlined_call_operand.vmem [shape: f32[32,32], index: 8, kind: input, shape index: {}]   ;;  %s2307_s9 = inlined_call_operand.vmem [shape: f32[1,32], index: 9, kind: input, shape index: {}]   ;;  %s2308_s10 = inlined_call_operand.vmem [shape: f32[1,32], index: 10, kind: input, shape index: {}]   ;;  %s2309_s11 = inlined_call_operand.vmem [shape: bf16[32,32], index: 11, kind: input, shape index: {}]   ;;  %s2310_s12 = inlined_call_operand.vmem [shape: bf16[32,32], index: 12, kind: input, shape index: {}]   ;;  %s2311_s13 = inlined_call_operand.vmem [shape: bf16[32,32], index: 13, kind: input, shape index: {}]   ;;  %s2312_s14 = inlined_call_operand.vmem [shape: f32[1,32], index: 14, kind: input, shape index: {}]   ;;  %s2313_s15 = inlined_call_operand.vmem [shape: bf16[64,32], index: 15, kind: input, shape index: {}]   ;;  %s2314_s16 = inlined_call_operand.vmem [shape: f32[1,32], index: 16, kind: input, shape index: {}]   ;;  %s2315_s17 = inlined_call_operand.vmem [shape: f32[2,16,32], index: 17, kind: output, shape index: {}]  }
   0x1   :  { %2317 = sst [smem:[#allocation2_spill]] %s2298_s0 }
   0x2   :  { %2318 = sst [smem:[#allocation3_spill]] %s2299_s1 }
   0x3 LB: > { %s1582_s25 = sadd.s32 4294967295, %s1929_s24   ;;  %p1586_p0 = scmp.ge.s32.totalorder %s1929_s24, 1  ;;  %s1929_s24 = sphi %s2024_s24, %s27_s24  }
   0x4   : > { %p487_p1 = scmp.lt.s32.totalorder %s1929_s24, 3 }
   0x6   : > { %p488_p2 = pnand %p1586_p0, %p487_p1 }
   0x7   : > { %s2319_s28 = sld [smem:[#allocation3_spill]] (!%p488_p2)  ;;  %v1931_v3 = vmov (!%p488_p2), 0.0|0.0   ;;  %vm1932_vm0 = vmmov (!%p488_p2), 0   ;;  %v1933_v6 = vmov (!%p488_p2), 0.0   ;;  %p539_p3 = scmp.lt.s32.totalorder (!%p488_p2), %s1582_s25, 1  ;;  %vm562_vm1 = vcmask (!%p488_p2), 523264  }
   0x8   : > { %491 = sbr.rel (%p488_p2) target bundleno = 1528 (0x5f8), region = 88  ;;  %1822 = vmatprep.subr.bf16.mxu0 (!%p488_p2), %v1931_v3  ;;  %1706 = vmatprep.mubr.msk.f32.mxu0 (!%p488_p2), %vm1932_vm0, %v1933_v6  ;;  %s2320_s1 = sld [smem:[#allocation2_spill]] (!%p488_p2)  ;;  %v647_v25 = vlaneseq (!%p488_p2)  ;;  %v1881_v45 = vld [vmem:[%s2302_s4] sm:$0xff] (!%p488_p2)   ;;  %v1883_v47 = vld [vmem:[%s2302_s4 + $0x8] sm:$0xff] (!%p488_p2)   ;;  %v1885_v49 = vld [vmem:[%s2302_s4 + $0x10] sm:$0xff] (!%p488_p2)   ;;  %vm1032_vm6 = vcmask (!%p488_p2), 261120  }
   0x9   : > { %1834 = vmatprep.subr.bf16.mxu1 (!%p488_p2), %v1931_v3  ;;  %1725 = vmatprep.mubr.msk.f32.mxu1 (!%p488_p2), %vm1932_vm0, %v1933_v6  ;;  %v1882_v46 = vld [vmem:[%s2303_s5] sm:$0xff] (!%p488_p2)   ;;  %v1884_v48 = vld [vmem:[%s2303_s5 + $0x8] sm:$0xff] (!%p488_p2)   ;;  %v1886_v50 = vld [vmem:[%s2303_s5 + $0x10] sm:$0xff] (!%p488_p2)  }
   0xa   : > { %v2089_v26 = vshrl.u32 (!%p488_p2), %v647_v25, 7  ;;  %v1887_v51 = vld [vmem:[%s2302_s4 + $0x18] sm:$0xff] (!%p488_p2)   ;;  %v560_v57 = vld [vmem:[%s2300_s2] sm:$0x1] (!%p488_p2) }
   0xb   : > { %v1888_v52 = vld [vmem:[%s2303_s5 + $0x18] sm:$0xff] (!%p488_p2)   ;;  %v1593_v61 = vld [vmem:[%s2301_s3] ss:$0 sm:$0xff] (!%p488_p2) }
   0xc   : > { %v2092_v27 = vsub.s32 (!%p488_p2), 0, %v2089_v26  ;;  %vm999_vm2 = vcmp.lt.s32.totalorder (!%p488_p2), %v2089_v26, 1  ;;  %vm995_vm3 = vcmp.gt.s32.totalorder (!%p488_p2), %v2089_v26, 0  ;;  %vm1010_vm4 = vcmp.lt.s32.totalorder (!%p488_p2), %v2089_v26, 7 }
   0xd   : > { %v552_v0 = vld [vmem:[%s2319_s28] sm:$0xff] (!%p488_p2)  ;;  %v553_v1 = vld [vmem:[%s2319_s28 + $0x8] sm:$0xff] (!%p488_p2)  ;;  %v554_v2 = vld [vmem:[%s2319_s28 + $0x10] sm:$0xff] (!%p488_p2) }
   0xe   : > { %v1823_v4 = vpack.c.bf16 (!%p488_p2), %v553_v1, %v552_v0  ;;  %v555_v5 = vld [vmem:[%s2319_s28 + $0x18] sm:$0xff] (!%p488_p2)  ;;  %v556_v7 = vld [vmem:[%s2319_s28 + $0x20] sm:$0xff] (!%p488_p2)  ;;  %v557_v9 = vld [vmem:[%s2319_s28 + $0x28] sm:$0xff] (!%p488_p2) }
   0xf   : > { %v1826_v8 = vpack.c.bf16 %v555_v5, %v554_v2  ;;  %s2322_s25 = smov (!%p539_p3, %s1582_s25), 1  ;;  %v558_v10 = vld [vmem:[%s2319_s28 + $0x30] sm:$0xff]  ;;  %v559_v11 = vld [vmem:[%s2319_s28 + $0x38] sm:$0xff]  ;;  %v1829_v12 = vpack.c.bf16 %v557_v9, %v556_v7 }
  0x10   : > { %1824 = vmatpush3.bf16.msra.mxu0 %v1823_v4  ;;  %1836 = vmatpush3.bf16.msra.mxu1 %v1823_v4  ;;  %s1631_s26 = sshll.u32 %s2322_s25, 4  ;;  %v1832_v18 = vpack.c.bf16 %v559_v11, %v558_v10 }
  0x11   : > { %1825 = vmatprep.subr.bf16.mxu0 %v1931_v3  ;;  %1837 = vmatprep.subr.bf16.mxu1 %v1931_v3  ;;  %s543_s20 = scalar_lea.vmem %s2320_s1, %s1631_s26  ;;  %s548_s23 = scalar_lea.vmem %s2315_s17, %s1631_s26 }
  0x12   : > { %v2072_v13 = vld [vmem:[%s543_s20] sm:$0xff]  ;;  %v2074_v14 = vld [vmem:[%s543_s20 + $0x8] sm:$0xff] }
  0x13   : > { %v563_v15 = vsel %vm562_vm1, %v2072_v13, 0.0  ;;  %v564_v16 = vsel %vm562_vm1, %v2074_v14, 0.0 }
  0x14   : > { %1827 = vmatpush3.bf16.msra.mxu0 %v1826_v8  ;;  %1839 = vmatpush3.bf16.msra.mxu1 %v1826_v8  ;;  %v565_v17 = vadd.f32 %v564_v16, %v563_v15 }
  0x15   : > { %1828 = vmatprep.subr.bf16.mxu0 %v1931_v3  ;;  %1840 = vmatprep.subr.bf16.mxu1 %v1931_v3 }
  0x16   : > { %v566_v19 = vrot.slane %v565_v17, 4 }
  0x18   : > { %1830 = vmatpush3.bf16.msra.mxu0 %v1829_v12  ;;  %1842 = vmatpush3.bf16.msra.mxu1 %v1829_v12  ;;  %v567_v20 = vadd.f32 %v566_v19, %v565_v17 }
  0x19   : > { %1831 = vmatprep.subr.bf16.mxu0 %v1931_v3  ;;  %1843 = vmatprep.subr.bf16.mxu1 %v1931_v3 }
  0x1a   : > { %v568_v21 = vrot.slane %v567_v20, 2 }
  0x1c   : > { %1833 = vmatpush3.bf16.msra.mxu0 %v1832_v18  ;;  %1845 = vmatpush3.bf16.msra.mxu1 %v1832_v18  ;;  %v569_v22 = vadd.f32 %v568_v21, %v567_v20  ;;  %v1889_v18 = vld [vmem:[%s2304_s6] sm:$0xff]   ;;  %v1890_v20 = vld [vmem:[%s2304_s6 + $0x8] sm:$0xff]   ;;  %v1891_v21 = vld [vmem:[%s2304_s6 + $0x10] sm:$0xff]  }
  0x1d   : > { %1728 = vmatprep.subr.bf16.mxu0 %v1933_v6  ;;  %1740 = vmatprep.subr.bf16.mxu1 %v1933_v6 }
  0x1e   : > { %v570_v23 = vrot.slane %v569_v22, 1 }
  0x20   : > { %v571_v24 = vadd.f32 %v570_v23, %v569_v22  ;;  %v1892_v22 = vld [vmem:[%s2304_s6 + $0x18] sm:$0xff]   ;;  %v1026_v23 = vld [vmem:[%s2306_s8] sm:$0xff] }
  0x22   : > { %1707 = vmatmul.mubr.msk.f32.vlgmr.msra.gmra.mrb[0].mxu0 %vm562_vm1, %v571_v24  ;;  %v1027_v24 = vld [vmem:[%s2306_s8 + $0x8] sm:$0xff] }
  0x23   : > { %1736 = vmatprep.mubr.msk.bf16.mxu0 %vm1932_vm0, %v1933_v6  ;;  %1729 = vmatpush3.bf16.msra.mxu0 %v1881_v45  ;;  %v1847_v25 = vpack.c.bf16 %v1027_v24, %v1026_v23 }
  0x24   : > { %1730 = vmatprep.subr.bf16.mxu0 %v1933_v6 }
  0x27   : > { %1731 = vmatpush3.bf16.msra.mxu0 %v1883_v47 }
  0x28   : > { %1732 = vmatprep.subr.bf16.mxu0 %v1933_v6 }
  0x2b   : > { %1733 = vmatpush3.bf16.msra.mxu0 %v1885_v49 }
  0x2c   : > { %1734 = vmatprep.subr.bf16.mxu0 %v1933_v6 }
  0x2f   : > { %1735 = vmatpush3.bf16.msra.mxu0 %v1887_v51 }
  0x30   : > { %1752 = vmatprep.subr.bf16.mxu0 %v1933_v6 }
  0xf5   : > { %v641_v28 = vpop.f32.mrb[0].mxu0 }
  0xf6   : > { %v646_v29 = vmul.f32 0.03125, %v641_v28  ;;  %v1708_v30 = vpop.f32.mrb[1].mxu0  ;;  %v1028_v28 = vld [vmem:[%s2306_s8 + $0x10] sm:$0xff] }
  0xf8   : > { %v650_v31 = vrot.slane %v646_v29, %v2092_v27  ;;  %v1029_v29 = vld [vmem:[%s2306_s8 + $0x18] sm:$0xff] }
  0xf9   : > { %v1850_v30 = vpack.c.bf16 %v1029_v29, %v1028_v28  ;;  %v1893_v28 = vld [vmem:[%s2309_s11] sm:$0xff]  }
  0xfa   : > { %v651_v32 = vsub.f32 %v2072_v13, %v650_v31  ;;  %v652_v33 = vsub.f32 %v2074_v14, %v650_v31  ;;  %v1894_v29 = vld [vmem:[%s2310_s12] sm:$0xff]  }
  0xfc   : > { %v653_v34 = vmul.f32 %v651_v32, %v651_v32  ;;  %v654_v35 = vmul.f32 %v652_v33, %v652_v33 }
  0xfe   : > { %v655_v36 = vsel %vm562_vm1, %v653_v34, 0.0  ;;  %v656_v37 = vsel %vm562_vm1, %v654_v35, 0.0 }
  0xff   : > { %v657_v38 = vadd.f32 %v656_v37, %v655_v36 }
 0x101   : > { %v658_v39 = vrot.slane %v657_v38, 4 }
 0x103   : > { %v659_v40 = vadd.f32 %v658_v39, %v657_v38 }
 0x105   : > { %v660_v41 = vrot.slane %v659_v40, 2 }
 0x107   : > { %v661_v42 = vadd.f32 %v660_v41, %v659_v40 }
 0x109   : > { %v662_v43 = vrot.slane %v661_v42, 1 }
 0x10b   : > { %v663_v44 = vadd.f32 %v662_v43, %v661_v42 }
 0x10d   : > { %1726 = vmatmul.mubr.msk.f32.vlgmr.msra.gmra.mrb[0].mxu1 %vm562_vm1, %v663_v44 }
 0x10e   : > { %1748 = vmatprep.mubr.msk.bf16.mxu1 %vm1932_vm0, %v1933_v6  ;;  %1741 = vmatpush3.bf16.msra.mxu1 %v1882_v46  ;;  %v2189_v46 = vadd.s32 8, %v2089_v26 }
 0x10f   : > { %1742 = vmatprep.subr.bf16.mxu1 %v1933_v6 }
 0x110   : > { %vm1007_vm5 = vcmp.lt.s32.totalorder %v2189_v46, 15 }
 0x112   : > { %1743 = vmatpush3.bf16.msra.mxu1 %v1884_v48 }
 0x113   : > { %1744 = vmatprep.subr.bf16.mxu1 %v1933_v6 }
 0x116   : > { %1745 = vmatpush3.bf16.msra.mxu1 %v1886_v50 }
 0x117   : > { %1746 = vmatprep.subr.bf16.mxu1 %v1933_v6 }
 0x11a   : > { %1747 = vmatpush3.bf16.msra.mxu1 %v1888_v52 }
 0x11b   : > { %1846 = vmatprep.subr.bf16.mxu1 %v1931_v3 }
 0x1e0   : > { %v733_v53 = vpop.f32.mrb[0].mxu1 }
 0x1e1   : > { %v737_v54 = vmul.f32 0.03125, %v733_v53  ;;  %v1727_v55 = vpop.f32.mrb[1].mxu1 }
 0x1e2   : > { %v1609_v55 = vld [vmem:[%s2305_s7] ss:$0 sm:$0xff] }
 0x1e3   : > { %v738_v56 = vadd.f32 1e-06, %v737_v54 }
 0x1e5   : > { %1903 = vrsqrt.f32 %v738_v56 }
 0x1ef   : > { %v1904_v58 = vpop.eup %1903 }
 0x1f0   : > { %v740_v59 = vmul.f32 %v1904_v58, %v560_v57 }
 0x1f2   : > { %v744_v60 = vrot.slane %v740_v59, %v2092_v27 }
 0x1f4   : > { %v745_v62 = vmul.f32 %v744_v60, %v651_v32  ;;  %v746_v63 = vmul.f32 %v744_v60, %v652_v33 }
 0x1f6   : > { %v753_v0 = vadd.f32 %v1593_v61, %v745_v62  ;;  %v754_v1 = vadd.f32 %v1593_v61, %v746_v63 }
 0x1f8   : > { %v755_v2 = vsub.f32 0.0, %v753_v0  ;;  %v756_v4 = vsub.f32 0.0, %v754_v1 }
 0x1fa   : > { %v757_v5 = vmul.f32 1.442695, %v755_v2  ;;  %v759_v7 = vmul.f32 1.442695, %v756_v4 }
 0x1fc   : > { %1905 = vpow2.f32 %v757_v5 }
 0x1fd   : > { %1907 = vpow2.f32 %v759_v7 }
 0x206   : > { %v1906_v8 = vpop.eup %1905 }
 0x207   : > { %v1908_v9 = vpop.eup %1907  ;;  %v761_v10 = vadd.f32 1.0, %v1906_v8 }
 0x208   : > { %v762_v11 = vadd.f32 1.0, %v1908_v9 }
 0x209   : > { %1909 = vrcp.f32 %v761_v10 }
 0x20a   : > { %1911 = vrcp.f32 %v762_v11 }
 0x213   : > { %v1910_v12 = vpop.eup %1909 }
 0x214   : > { %v1912_v15 = vpop.eup %1911  ;;  %v767_v16 = vmul.f32 %v1910_v12, %v753_v0 }
 0x215   : > { %v768_v17 = vmul.f32 %v1912_v15, %v754_v1 }
 0x217   : > { %v769_v19 = vpack.c.bf16 %v768_v17, %v767_v16 }
 0x219   : > { %1737 = vmatmul.mubr.msk.bf16.vlgmr.msra.gmra.mrb[4].mxu0 %vm562_vm1, %v769_v19  ;;  %1749 = vmatmul.mubr.msk.bf16.vlgmr.msra.gmra.mrb[4].mxu1 %vm562_vm1, %v769_v19 }
 0x21a   : > { %1753 = vmatpush3.bf16.msra.mxu0 %v1889_v18  ;;  %1760 = vmatprep.mubr.msk.bf16.mxu0 %vm1932_vm0, %v1933_v6 }
 0x21b   : > { %1754 = vmatprep.subr.bf16.mxu0 %v1933_v6  ;;  %1772 = vmatprep.mubr.msk.f32.mxu1 %vm1932_vm0, %v1933_v6 }
 0x21c   : > { %1848 = vmatpush3.bf16.msra.mxu1 %v1847_v25 }
 0x21d   : > { %1849 = vmatprep.subr.bf16.mxu1 %v1931_v3 }
 0x21e   : > { %1755 = vmatpush3.bf16.msra.mxu0 %v1890_v20 }
 0x21f   : > { %1756 = vmatprep.subr.bf16.mxu0 %v1933_v6 }
 0x220   : > { %1851 = vmatpush3.bf16.msra.mxu1 %v1850_v30 }
 0x221   : > { %1852 = vmatprep.subr.bf16.mxu1 %v1931_v3 }
 0x222   : > { %1757 = vmatpush3.bf16.msra.mxu0 %v1891_v21 }
 0x223   : > { %1758 = vmatprep.subr.bf16.mxu0 %v1933_v6 }
 0x226   : > { %1759 = vmatpush3.bf16.msra.mxu0 %v1892_v22 }
 0x227   : > { %1786 = vmatprep.subr.bf16.mxu0 %v1933_v6 }
 0x229   : > { %1761 = vmatmul.mubr.msk.bf16.vlgmr.msra.gmra.mrb[8].mxu0 %vm562_vm1, %v769_v19 }
 0x22a   : > { %1790 = vmatprep.mubr.msk.bf16.mxu0 %vm1932_vm0, %v1933_v6  ;;  %1787 = vmatpush3.bf16.msra.mxu0 %v1893_v28 }
 0x22b   : > { %1788 = vmatprep.subr.bf16.mxu0 %v1933_v6 }
 0x2ec   : > { %v839_v31 = vpop.f32.mrb[4].mxu0  ;;  %v912_v32 = vpop.f32.mrb[4].mxu1 }
 0x2ed   : > { %v1738_v33 = vpop.f32.mrb[5].mxu0  ;;  %v1750_v34 = vpop.f32.mrb[5].mxu1  ;;  %v997_v37 = vrot.slane %v839_v31, 7  ;;  %v1896_v31 = vld [vmem:[%s2310_s12 + $0x8] sm:$0xff]  }
 0x2ee   : > { %v842_v35 = vpop.f32.mrb[6].mxu0  ;;  %v915_v36 = vpop.f32.mrb[6].mxu1 }
 0x2ef   : > { %v998_v38 = vrot.slane %v842_v35, 7  ;;  %v1739_v39 = vpop.f32.mrb[7].mxu0  ;;  %v1751_v40 = vpop.f32.mrb[7].mxu1 }
 0x2f0   : > { %v1612_v40 = vld [vmem:[%s2308_s10] ss:$0 sm:$0xff] }
 0x2f1   : > { %v1001_v41 = vsel %vm999_vm2, %v998_v38, %v997_v37  ;;  %v1000_v42 = vsel %vm999_vm2, %v997_v37, %v998_v38 }
 0x2f2   : > { %v1002_v43 = vsel %vm995_vm3, %v1001_v41, 0.0  ;;  %v1005_v44 = vadd.f32 %v1000_v42, %v915_v36  ;;  %v1030_v36 = vld [vmem:[%s2307_s9] sm:$0x1] }
 0x2f3   : > { %v1004_v45 = vadd.f32 %v1002_v43, %v912_v32 }
 0x2fc   : > { %v985_v47 = vpop.f32.mrb[8].mxu0 }
 0x2fd   : > { %v1762_v48 = vpop.f32.mrb[9].mxu0  ;;  %v1008_v50 = vrot.slane %v985_v47, 1 }
 0x2fe   : > { %v988_v49 = vpop.f32.mrb[10].mxu0 }
 0x2ff   : > { %v1009_v51 = vrot.slane %v988_v49, 1  ;;  %v1763_v52 = vpop.f32.mrb[11].mxu0 }
 0x301   : > { %v1011_v53 = vsel %vm1010_vm4, %v1008_v50, %v1009_v51  ;;  %v1012_v54 = vsel %vm1010_vm4, %v1009_v51, %v1008_v50 }
 0x302   : > { %v1014_v56 = vsel %vm1007_vm5, %v1012_v54, 0.0  ;;  %v1015_v57 = vadd.f32 %v1011_v53, %v1004_v45 }
 0x303   : > { %v1016_v58 = vadd.f32 %v1014_v56, %v1005_v44 }
 0x304   : > { %v1024_v59 = vadd.f32 %v1609_v55, %v1015_v57  ;;  %v1897_v57 = vld [vmem:[%s2311_s13] sm:$0xff]  }
 0x305   : > { %v1025_v60 = vadd.f32 %v1609_v55, %v1016_v58  ;;  %v1898_v58 = vld [vmem:[%s2313_s15] sm:$0xff]  }
 0x306   : > { %v1033_v61 = vsel %vm1032_vm6, %v1024_v59, 0.0 }
 0x307   : > { %v1034_v62 = vsel %vm1032_vm6, %v1025_v60, 0.0 }
 0x308   : > { %v1035_v63 = vadd.f32 %v1034_v62, %v1033_v61  ;;  %v1900_v61 = vld [vmem:[%s2313_s15 + $0x8] sm:$0xff]   ;;  %v1901_v62 = vld [vmem:[%s2313_s15 + $0x10] sm:$0xff]  }
 0x30a   : > { %v1036_v0 = vrot.slane %v1035_v63, 4 }
 0x30c   : > { %v1037_v1 = vadd.f32 %v1036_v0, %v1035_v63  ;;  %v1902_v63 = vld [vmem:[%s2313_s15 + $0x18] sm:$0xff]   ;;  %v1439_v0 = vpack.c.bf16 %v2074_v14, %v2072_v13 }
 0x30e   : > { %v1038_v2 = vrot.slane %v1037_v1, 2 }
 0x310   : > { %v1039_v4 = vadd.f32 %v1038_v2, %v1037_v1 }
 0x312   : > { %v1040_v5 = vrot.slane %v1039_v4, 1 }
 0x314   : > { %v1041_v7 = vadd.f32 %v1040_v5, %v1039_v4 }
 0x316   : > { %1773 = vmatmul.mubr.msk.f32.vlgmr.msra.gmra.mrb[2].mxu1 %vm1032_vm6, %v1041_v7 }
 0x317   : > { %1854 = vmatpush3.bf16.msra.mxu1 %v1847_v25  ;;  %1783 = vmatprep.mubr.msk.f32.mxu1 %vm1932_vm0, %v1933_v6 }
 0x318   : > { %1855 = vmatprep.subr.bf16.mxu1 %v1931_v3 }
 0x31b   : > { %1857 = vmatpush3.bf16.msra.mxu1 %v1850_v30  ;;  %v1895_v30 = vld [vmem:[%s2309_s11 + $0x8] sm:$0xff]  }
 0x31c   : > { %1794 = vmatprep.subr.bf16.mxu1 %v1933_v6  ;;  %1789 = vmatpush3.bf16.msra.mxu0 %v1895_v30 }
 0x31d   : > { %1802 = vmatprep.subr.bf16.mxu0 %v1933_v6 }
 0x3e9   : > { %v1111_v8 = vpop.f32.mrb[2].mxu1 }
 0x3ea   : > { %v1116_v9 = vmul.f32 0.0625, %v1111_v8  ;;  %v1774_v10 = vpop.f32.mrb[3].mxu1 }
 0x3ec   : > { %v1120_v11 = vrot.slane %v1116_v9, %v2092_v27 }
 0x3ee   : > { %v1121_v12 = vsub.f32 %v1024_v59, %v1120_v11  ;;  %v1122_v15 = vsub.f32 %v1025_v60, %v1120_v11  ;;  %v1899_v60 = vld [vmem:[%s2311_s13 + $0x8] sm:$0xff]  }
 0x3f0   : > { %v1123_v16 = vmul.f32 %v1121_v12, %v1121_v12  ;;  %v1124_v17 = vmul.f32 %v1122_v15, %v1122_v15 }
 0x3f2   : > { %v1125_v18 = vsel %vm1032_vm6, %v1123_v16, 0.0  ;;  %v1126_v19 = vsel %vm1032_vm6, %v1124_v17, 0.0 }
 0x3f3   : > { %v1127_v20 = vadd.f32 %v1126_v19, %v1125_v18  ;;  %v1622_v19 = vld [vmem:[%s2312_s14] ss:$0 sm:$0xff] }
 0x3f5   : > { %v1128_v21 = vrot.slane %v1127_v20, 4 }
 0x3f7   : > { %v1129_v22 = vadd.f32 %v1128_v21, %v1127_v20 }
 0x3f9   : > { %v1130_v3 = vrot.slane %v1129_v22, 2 }
 0x3fb   : > { %v1131_v23 = vadd.f32 %v1130_v3, %v1129_v22  ;;  %v1623_v22 = vld [vmem:[%s2314_s16] ss:$0 sm:$0xff] }
 0x3fd   : > { %v1132_v24 = vrot.slane %v1131_v23, 1 }
 0x3ff   : > { %v1133_v25 = vadd.f32 %v1132_v24, %v1131_v23 }
 0x401   : > { %1784 = vmatmul.mubr.msk.f32.vlgmr.msra.gmra.mrb[8].mxu1 %vm1032_vm6, %v1133_v25 }
 0x402   : > { %1798 = vmatprep.mubr.msk.bf16.mxu1 %vm1932_vm0, %v1933_v6  ;;  %1795 = vmatpush3.bf16.msra.mxu1 %v1894_v29 }
 0x403   : > { %1796 = vmatprep.subr.bf16.mxu1 %v1933_v6 }
 0x406   : > { %1797 = vmatpush3.bf16.msra.mxu1 %v1896_v31 }
 0x407   : > { %1810 = vmatprep.subr.bf16.mxu1 %v1933_v6 }
 0x4d4   : > { %v1203_v32 = vpop.f32.mrb[8].mxu1 }
 0x4d5   : > { %v1207_v33 = vmul.f32 0.0625, %v1203_v32  ;;  %v1785_v34 = vpop.f32.mrb[9].mxu1 }
 0x4d7   : > { %v1208_v35 = vadd.f32 1e-06, %v1207_v33 }
 0x4d9   : > { %1913 = vrsqrt.f32 %v1208_v35 }
 0x4e3   : > { %v1914_v37 = vpop.eup %1913 }
 0x4e4   : > { %v1210_v38 = vmul.f32 %v1914_v37, %v1030_v36 }
 0x4e6   : > { %v1214_v39 = vrot.slane %v1210_v38, %v2092_v27 }
 0x4e8   : > { %v1215_v41 = vmul.f32 %v1214_v39, %v1121_v12  ;;  %v1216_v42 = vmul.f32 %v1214_v39, %v1122_v15 }
 0x4ea   : > { %v1223_v43 = vadd.f32 %v1612_v40, %v1215_v41  ;;  %v1224_v44 = vadd.f32 %v1612_v40, %v1216_v42 }
 0x4ec   : > { %v1225_v45 = vsub.f32 0.0, %v1223_v43  ;;  %v1226_v47 = vsub.f32 0.0, %v1224_v44 }
 0x4ee   : > { %v1227_v48 = vmul.f32 1.442695, %v1225_v45  ;;  %v1229_v49 = vmul.f32 1.442695, %v1226_v47 }
 0x4f0   : > { %1915 = vpow2.f32 %v1227_v48 }
 0x4f1   : > { %1917 = vpow2.f32 %v1229_v49 }
 0x4fa   : > { %v1916_v50 = vpop.eup %1915 }
 0x4fb   : > { %v1918_v51 = vpop.eup %1917  ;;  %v1231_v52 = vadd.f32 1.0, %v1916_v50 }
 0x4fc   : > { %v1232_v53 = vadd.f32 1.0, %v1918_v51 }
 0x4fd   : > { %1919 = vrcp.f32 %v1231_v52 }
 0x4fe   : > { %1921 = vrcp.f32 %v1232_v53 }
 0x507   : > { %v1920_v27 = vpop.eup %1919 }
 0x508   : > { %v1922_v54 = vpop.eup %1921  ;;  %v1237_v55 = vmul.f32 %v1920_v27, %v1223_v43 }
 0x509   : > { %v1238_v56 = vmul.f32 %v1922_v54, %v1224_v44 }
 0x50b   : > { %v1239_v59 = vpack.c.bf16 %v1238_v56, %v1237_v55 }
 0x50d   : > { %1791 = vmatmul.mubr.msk.bf16.vlgmr.msra.gmra.mrb[12].mxu0 %vm1032_vm6, %v1239_v59  ;;  %1799 = vmatmul.mubr.msk.bf16.vlgmr.msra.gmra.mrb[12].mxu1 %vm1032_vm6, %v1239_v59 }
 0x50e   : > { %1803 = vmatpush3.bf16.msra.mxu0 %v1897_v57  ;;  %1811 = vmatpush3.bf16.msra.mxu1 %v1898_v58 }
 0x50f   : > { %1804 = vmatprep.subr.bf16.mxu0 %v1933_v6  ;;  %1812 = vmatprep.subr.bf16.mxu1 %v1933_v6 }
 0x510   : > { %1806 = vmatprep.mubr.msk.bf16.mxu0 %vm1932_vm0, %v1933_v6  ;;  %1818 = vmatprep.mubr.msk.bf16.mxu1 %vm1932_vm0, %v1933_v6 }
 0x512   : > { %1805 = vmatpush3.bf16.msra.mxu0 %v1899_v60  ;;  %1813 = vmatpush3.bf16.msra.mxu1 %v1900_v61 }
 0x513   : > { %1814 = vmatprep.subr.bf16.mxu1 %v1933_v6 }
 0x515   : > { %1807 = vmatmul.mubr.msk.bf16.vlgmr.msra.gmra.mrb[16].mxu0 %vm1032_vm6, %v1239_v59 }
 0x516   : > { %1815 = vmatpush3.bf16.msra.mxu1 %v1901_v62 }
 0x517   : > { %1816 = vmatprep.subr.bf16.mxu1 %v1933_v6 }
 0x51a   : > { %1817 = vmatpush3.bf16.msra.mxu1 %v1902_v63 }
 0x51d   : > { %1819 = vmatmul.mubr.msk.bf16.vlgmr.msra.gmra.mrb[12].mxu1 %vm562_vm1, %v1439_v0 }
 0x5e0   : > { %v1293_v1 = vpop.f32.mrb[12].mxu0 }
 0x5e1   : > { %v1792_v2 = vpop.f32.mrb[13].mxu0  ;;  %v1414_v5 = vrot.slane %v1293_v1, 7 }
 0x5e2   : > { %v1296_v4 = vpop.f32.mrb[14].mxu0 }
 0x5e3   : > { %v1415_v7 = vrot.slane %v1296_v4, 7  ;;  %v1793_v8 = vpop.f32.mrb[15].mxu0 }
 0x5e5   : > { %v1416_v9 = vsel %vm999_vm2, %v1414_v5, %v1415_v7  ;;  %v1417_v10 = vsel %vm999_vm2, %v1415_v7, %v1414_v5 }
 0x5e6   : > { %v1418_v16 = vsel %vm995_vm3, %v1417_v10, 0.0 }
 0x5e8   : > { %v1407_v11 = vpop.f32.mrb[16].mxu0 }
 0x5e9   : > { %v1808_v6 = vpop.f32.mrb[17].mxu0  ;;  %v1422_v15 = vrot.slane %v1407_v11, 1 }
 0x5ea   : > { %v1410_v12 = vpop.f32.mrb[18].mxu0 }
 0x5eb   : > { %v1423_v13 = vrot.slane %v1410_v12, 1  ;;  %v1809_v14 = vpop.f32.mrb[19].mxu0 }
 0x5ed   : > { %v1424_v17 = vsel %vm1010_vm4, %v1422_v15, %v1423_v13  ;;  %v1425_v18 = vsel %vm1010_vm4, %v1423_v13, %v1422_v15 }
 0x5ee   : > { %v1427_v20 = vsel %vm1007_vm5, %v1425_v18, 0.0  ;;  %v1858_v21 = vadd.f32 %v1424_v17, %v1418_v16 }
 0x5ef   : > { %v1862_v3 = vadd.f32 %v1427_v20, %v1416_v9 }
 0x5f0   : > { %v1516_v23 = vpop.f32.mrb[12].mxu1  ;;  %v1859_v24 = vadd.f32 %v1858_v21, %v1622_v19 }
 0x5f1   : > { %v1820_v25 = vpop.f32.mrb[13].mxu1  ;;  %v1863_v28 = vadd.f32 %v1862_v3, %v1622_v19 }
 0x5f2   : > { %v1860_v29 = vadd.f32 %v1859_v24, %v1623_v22  ;;  %v1519_v26 = vpop.f32.mrb[14].mxu1 }
 0x5f3   : > { %v1864_v30 = vadd.f32 %v1863_v28, %v1623_v22  ;;  %v1821_v46 = vpop.f32.mrb[15].mxu1 }
 0x5f4   : > { %v1861_v31 = vadd.f32 %v1860_v29, %v1516_v23 }
 0x5f5   : > { %v1865_v32 = vadd.f32 %v1864_v30, %v1519_v26 }
 0x5f6   : > { %1525 = vst.msk [vmem:[%s548_s23] sm:$0xff] %vm1032_vm6, %v1861_v31 }
 0x5f7   : > { %1526 = vst.msk [vmem:[%s548_s23 + $0x8] sm:$0xff] %vm1032_vm6, %v1865_v32 }
 0x5f8 PF: > { %s27_s24 = sadd.s32 1, %s1929_s24  }
 0x5f9   : > { %p24_p4 = scmp.ge.s32.totalorder %s27_s24, 4  }
 0x5fb   :  { %26 = sbr.rel (!%p24_p4) target bundleno = 3 (0x3), region = 118 }

// kernel: _lambda_.22
= control target key start
LH: loop header
LB: loop body
LE: loop exit
PB: predicated region body
PF: predicated region fallthrough
CT: control target
= control target key end

     0   :  { %s1717_s18 = smov 0   ;;  %s1929_s0 = inlined_call_operand.vmem [shape: f32[2,16,32], index: 0, kind: input, shape index: {}]   ;;  %s1930_s1 = inlined_call_operand.vmem [shape: f32[32,32], index: 1, kind: input, shape index: {}]   ;;  %s1931_s2 = inlined_call_operand.vmem [shape: f32[1,32], index: 2, kind: input, shape index: {}]   ;;  %s1932_s3 = inlined_call_operand.vmem [shape: f32[1,32], index: 3, kind: input, shape index: {}]   ;;  %s1933_s4 = inlined_call_operand.vmem [shape: bf16[32,32], index: 4, kind: input, shape index: {}]   ;;  %s1934_s5 = inlined_call_operand.vmem [shape: bf16[32,32], index: 5, kind: input, shape index: {}]   ;;  %s1935_s6 = inlined_call_operand.vmem [shape: bf16[32,32], index: 6, kind: input, shape index: {}]   ;;  %s1936_s7 = inlined_call_operand.vmem [shape: f32[1,32], index: 7, kind: input, shape index: {}]   ;;  %s1937_s8 = inlined_call_operand.vmem [shape: f32[32,32], index: 8, kind: input, shape index: {}]   ;;  %s1938_s9 = inlined_call_operand.vmem [shape: f32[1,32], index: 9, kind: input, shape index: {}]   ;;  %s1939_s10 = inlined_call_operand.vmem [shape: f32[1,32], index: 10, kind: input, shape index: {}]   ;;  %s1940_s11 = inlined_call_operand.vmem [shape: bf16[32,32], index: 11, kind: input, shape index: {}]   ;;  %s1941_s12 = inlined_call_operand.vmem [shape: bf16[32,32], index: 12, kind: input, shape index: {}]   ;;  %s1942_s13 = inlined_call_operand.vmem [shape: bf16[32,32], index: 13, kind: input, shape index: {}]   ;;  %s1943_s14 = inlined_call_operand.vmem [shape: f32[1,32], index: 14, kind: input, shape index: {}]   ;;  %s1944_s15 = inlined_call_operand.vmem [shape: f32[2,16,32], index: 15, kind: output, shape index: {}]  }
   0x1 LB: > { %s1390_s19 = sadd.s32 4294967295, %s1632_s18   ;;  %p1394_p0 = scmp.ge.s32.totalorder %s1632_s18, 1  ;;  %s1632_s18 = sphi %s1717_s18, %s25_s18  }
   0x2   : > { %p437_p1 = scmp.lt.s32.totalorder %s1632_s18, 3 }
   0x4   : > { %p438_p2 = pnand %p1394_p0, %p437_p1 }
   0x5   : > { %v498_v0 = vld [vmem:[%s1930_s1] sm:$0xff] (!%p438_p2)  ;;  %v499_v1 = vld [vmem:[%s1930_s1 + $0x8] sm:$0xff] (!%p438_p2)  ;;  %v500_v2 = vld [vmem:[%s1930_s1 + $0x10] sm:$0xff] (!%p438_p2)  ;;  %v1634_v3 = vmov (!%p438_p2), 0.0|0.0   ;;  %vm1635_vm0 = vmmov (!%p438_p2), 0   ;;  %v1636_v6 = vmov (!%p438_p2), 0.0   ;;  %v589_v19 = vlaneseq (!%p438_p2) }
   0x6   : > { %441 = sbr.rel (%p438_p2) target bundleno = 1516 (0x5ec), region = 80  ;;  %1559 = vmatprep.subr.bf16.mxu0 (!%p438_p2), %v1634_v3  ;;  %v1560_v4 = vpack.c.bf16 (!%p438_p2), %v499_v1, %v498_v0  ;;  %v501_v5 = vld [vmem:[%s1930_s1 + $0x18] sm:$0xff] (!%p438_p2)  ;;  %1475 = vmatprep.mubr.msk.f32.mxu0 (!%p438_p2), %vm1635_vm0, %v1636_v6  ;;  %p485_p3 = scmp.lt.s32.totalorder (!%p438_p2), %s1390_s19, 1  ;;  %vm504_vm1 = vcmask (!%p438_p2), 261120   ;;  %v1594_v39 = vld [vmem:[%s1933_s4] sm:$0xff] (!%p438_p2)   ;;  %v1596_v41 = vld [vmem:[%s1933_s4 + $0x8] sm:$0xff] (!%p438_p2)  }
   0x7   : > { %1565 = vmatprep.subr.bf16.mxu1 (!%p438_p2), %v1634_v3  ;;  %1486 = vmatprep.mubr.msk.f32.mxu1 (!%p438_p2), %vm1635_vm0, %v1636_v6  ;;  %v1563_v7 = vpack.c.bf16 (!%p438_p2), %v501_v5, %v500_v2  ;;  %v1766_v20 = vshrl.u32 (!%p438_p2), %v589_v19, 7  ;;  %v1595_v40 = vld [vmem:[%s1934_s5] sm:$0xff] (!%p438_p2)   ;;  %v1597_v42 = vld [vmem:[%s1934_s5 + $0x8] sm:$0xff] (!%p438_p2)  }
   0x8   : > { %1561 = vmatpush3.bf16.msra.mxu0 (!%p438_p2), %v1560_v4  ;;  %1567 = vmatpush3.bf16.msra.mxu1 (!%p438_p2), %v1560_v4  ;;  %v502_v47 = vld [vmem:[%s1931_s2] sm:$0x1] (!%p438_p2) }
   0x9   : > { %1562 = vmatprep.subr.bf16.mxu0 (!%p438_p2), %v1634_v3  ;;  %1568 = vmatprep.subr.bf16.mxu1 (!%p438_p2), %v1634_v3  ;;  %v1769_v21 = vsub.s32 (!%p438_p2), 0, %v1766_v20  ;;  %v1401_v51 = vld [vmem:[%s1932_s3] ss:$0 sm:$0xff] (!%p438_p2)  ;;  %vm893_vm2 = vcmp.lt.s32.totalorder (!%p438_p2), %v1766_v20, 1  ;;  %vm889_vm3 = vcmp.gt.s32.totalorder (!%p438_p2), %v1766_v20, 0  ;;  %vm904_vm4 = vcmp.lt.s32.totalorder (!%p438_p2), %v1766_v20, 7 }
   0xa   : > { %v1598_v5 = vld [vmem:[%s1935_s6] sm:$0xff] (!%p438_p2)  }
   0xc   : > { %1564 = vmatpush3.bf16.msra.mxu0 (!%p438_p2), %v1563_v7  ;;  %1570 = vmatpush3.bf16.msra.mxu1 (!%p438_p2), %v1563_v7 }
   0xd   : > { %s1946_s19 = smov (!%p485_p3, %s1390_s19), 1  ;;  %1489 = vmatprep.subr.bf16.mxu0 %v1636_v6  ;;  %1497 = vmatprep.subr.bf16.mxu1 %v1636_v6 }
   0xe   : > { %s1427_s28 = sshll.u32 %s1946_s19, 4 }
   0xf   : > { %s489_s16 = scalar_lea.vmem %s1929_s0, %s1427_s28  ;;  %s494_s30 = scalar_lea.vmem %s1944_s15, %s1427_s28 }
  0x10   : > { %v1753_v8 = vld [vmem:[%s489_s16] sm:$0xff]  ;;  %v1755_v9 = vld [vmem:[%s489_s16 + $0x8] sm:$0xff] }
  0x11   : > { %v505_v10 = vsel %vm504_vm1, %v1753_v8, 0.0  ;;  %v506_v11 = vsel %vm504_vm1, %v1755_v9, 0.0 }
  0x12   : > { %v507_v12 = vadd.f32 %v506_v11, %v505_v10  ;;  %v1599_v10 = vld [vmem:[%s1935_s6 + $0x8] sm:$0xff]   ;;  %v920_v11 = vld [vmem:[%s1937_s8] sm:$0xff] }
  0x14   : > { %v508_v13 = vrot.slane %v507_v12, 4 }
  0x16   : > { %v509_v14 = vadd.f32 %v508_v13, %v507_v12  ;;  %v921_v12 = vld [vmem:[%s1937_s8 + $0x8] sm:$0xff] }
  0x17   : > { %v1572_v13 = vpack.c.bf16 %v921_v12, %v920_v11 }
  0x18   : > { %v510_v15 = vrot.slane %v509_v14, 2 }
  0x1a   : > { %v511_v16 = vadd.f32 %v510_v15, %v509_v14  ;;  %v922_v14 = vld [vmem:[%s1937_s8 + $0x10] sm:$0xff]  ;;  %v923_v15 = vld [vmem:[%s1937_s8 + $0x18] sm:$0xff] }
  0x1c   : > { %v512_v17 = vrot.slane %v511_v16, 1 }
  0x1e   : > { %v513_v18 = vadd.f32 %v512_v17, %v511_v16  ;;  %v1575_v16 = vpack.c.bf16 %v923_v15, %v922_v14  ;;  %v1600_v14 = vld [vmem:[%s1940_s11] sm:$0xff]  }
  0x1f   : > { %v1601_v15 = vld [vmem:[%s1941_s12] sm:$0xff]  }
  0x20   : > { %1476 = vmatmul.mubr.msk.f32.vlgmr.msra.gmra.mrb[0].mxu0 %vm504_vm1, %v513_v18 }
  0x21   : > { %1493 = vmatprep.mubr.msk.bf16.mxu0 %vm1635_vm0, %v1636_v6  ;;  %1490 = vmatpush3.bf16.msra.mxu0 %v1594_v39 }
  0x22   : > { %1491 = vmatprep.subr.bf16.mxu0 %v1636_v6 }
  0x25   : > { %1492 = vmatpush3.bf16.msra.mxu0 %v1596_v41 }
  0x26   : > { %1505 = vmatprep.subr.bf16.mxu0 %v1636_v6 }
  0xf3   : > { %v583_v22 = vpop.f32.mrb[0].mxu0 }
  0xf4   : > { %v588_v23 = vmul.f32 0.0625, %v583_v22  ;;  %v1477_v24 = vpop.f32.mrb[1].mxu0 }
  0xf6   : > { %v592_v25 = vrot.slane %v588_v23, %v1769_v21 }
  0xf8   : > { %v593_v26 = vsub.f32 %v1753_v8, %v592_v25  ;;  %v594_v27 = vsub.f32 %v1755_v9, %v592_v25 }
  0xfa   : > { %v595_v28 = vmul.f32 %v593_v26, %v593_v26  ;;  %v596_v29 = vmul.f32 %v594_v27, %v594_v27 }
  0xfc   : > { %v597_v30 = vsel %vm504_vm1, %v595_v28, 0.0  ;;  %v598_v31 = vsel %vm504_vm1, %v596_v29, 0.0 }
  0xfd   : > { %v599_v32 = vadd.f32 %v598_v31, %v597_v30 }
  0xff   : > { %v600_v33 = vrot.slane %v599_v32, 4 }
 0x101   : > { %v601_v34 = vadd.f32 %v600_v33, %v599_v32  ;;  %v1844_v33 = vadd.s32 8, %v1766_v20 }
 0x103   : > { %v602_v35 = vrot.slane %v601_v34, 2  ;;  %vm901_vm5 = vcmp.lt.s32.totalorder %v1844_v33, 15 }
 0x105   : > { %v603_v36 = vadd.f32 %v602_v35, %v601_v34 }
 0x107   : > { %v604_v37 = vrot.slane %v603_v36, 1 }
 0x109   : > { %v605_v38 = vadd.f32 %v604_v37, %v603_v36 }
 0x10b   : > { %1487 = vmatmul.mubr.msk.f32.vlgmr.msra.gmra.mrb[0].mxu1 %vm504_vm1, %v605_v38 }
 0x10c   : > { %1501 = vmatprep.mubr.msk.bf16.mxu1 %vm1635_vm0, %v1636_v6  ;;  %1498 = vmatpush3.bf16.msra.mxu1 %v1595_v40 }
 0x10d   : > { %1499 = vmatprep.subr.bf16.mxu1 %v1636_v6 }
 0x110   : > { %1500 = vmatpush3.bf16.msra.mxu1 %v1597_v42  ;;  %v1411_v42 = vld [vmem:[%s1936_s7] ss:$0 sm:$0xff] }
 0x111   : > { %1571 = vmatprep.subr.bf16.mxu1 %v1634_v3 }
 0x1de   : > { %v675_v43 = vpop.f32.mrb[0].mxu1 }
 0x1df   : > { %v679_v44 = vmul.f32 0.0625, %v675_v43  ;;  %v1488_v45 = vpop.f32.mrb[1].mxu1 }
 0x1e1   : > { %v680_v46 = vadd.f32 1e-06, %v679_v44 }
 0x1e3   : > { %1606 = vrsqrt.f32 %v680_v46 }
 0x1ed   : > { %v1607_v48 = vpop.eup %1606 }
 0x1ee   : > { %v682_v49 = vmul.f32 %v1607_v48, %v502_v47 }
 0x1f0   : > { %v686_v50 = vrot.slane %v682_v49, %v1769_v21 }
 0x1f2   : > { %v687_v52 = vmul.f32 %v686_v50, %v593_v26  ;;  %v688_v53 = vmul.f32 %v686_v50, %v594_v27 }
 0x1f4   : > { %v695_v54 = vadd.f32 %v1401_v51, %v687_v52  ;;  %v696_v55 = vadd.f32 %v1401_v51, %v688_v53 }
 0x1f6   : > { %v697_v56 = vsub.f32 0.0, %v695_v54  ;;  %v698_v57 = vsub.f32 0.0, %v696_v55 }
 0x1f8   : > { %v699_v58 = vmul.f32 1.442695, %v697_v56  ;;  %v701_v59 = vmul.f32 1.442695, %v698_v57 }
 0x1fa   : > { %1608 = vpow2.f32 %v699_v58 }
 0x1fb   : > { %1610 = vpow2.f32 %v701_v59 }
 0x204   : > { %v1609_v60 = vpop.eup %1608 }
 0x205   : > { %v1611_v61 = vpop.eup %1610  ;;  %v703_v62 = vadd.f32 1.0, %v1609_v60 }
 0x206   : > { %v704_v63 = vadd.f32 1.0, %v1611_v61 }
 0x207   : > { %1612 = vrcp.f32 %v703_v62 }
 0x208   : > { %1614 = vrcp.f32 %v704_v63 }
 0x211   : > { %v1613_v0 = vpop.eup %1612 }
 0x212   : > { %v1615_v1 = vpop.eup %1614  ;;  %v709_v2 = vmul.f32 %v1613_v0, %v695_v54 }
 0x213   : > { %v710_v4 = vmul.f32 %v1615_v1, %v696_v55 }
 0x215   : > { %v711_v7 = vpack.c.bf16 %v710_v4, %v709_v2 }
 0x217   : > { %1494 = vmatmul.mubr.msk.bf16.vlgmr.msra.gmra.mrb[4].mxu0 %vm504_vm1, %v711_v7  ;;  %1502 = vmatmul.mubr.msk.bf16.vlgmr.msra.gmra.mrb[4].mxu1 %vm504_vm1, %v711_v7 }
 0x218   : > { %1506 = vmatpush3.bf16.msra.mxu0 %v1598_v5  ;;  %1509 = vmatprep.mubr.msk.bf16.mxu0 %vm1635_vm0, %v1636_v6 }
 0x219   : > { %1507 = vmatprep.subr.bf16.mxu0 %v1636_v6  ;;  %1521 = vmatprep.mubr.msk.f32.mxu1 %vm1635_vm0, %v1636_v6 }
 0x21a   : > { %1573 = vmatpush3.bf16.msra.mxu1 %v1572_v13 }
 0x21b   : > { %1574 = vmatprep.subr.bf16.mxu1 %v1634_v3 }
 0x21c   : > { %1508 = vmatpush3.bf16.msra.mxu0 %v1599_v10 }
 0x21d   : > { %1577 = vmatprep.subr.bf16.mxu0 %v1634_v3 }
 0x21e   : > { %1576 = vmatpush3.bf16.msra.mxu1 %v1575_v16 }
 0x21f   : > { %1510 = vmatmul.mubr.msk.bf16.vlgmr.msra.gmra.mrb[8].mxu0 %vm504_vm1, %v711_v7  ;;  %1535 = vmatprep.subr.bf16.mxu1 %v1636_v6 }
 0x220   : > { %1532 = vmatprep.mubr.msk.f32.mxu0 %vm1635_vm0, %v1636_v6  ;;  %1579 = vmatpush3.bf16.msra.mxu0 %v1572_v13 }
 0x221   : > { %1580 = vmatprep.subr.bf16.mxu0 %v1634_v3 }
 0x224   : > { %1582 = vmatpush3.bf16.msra.mxu0 %v1575_v16  ;;  %v1602_v16 = vld [vmem:[%s1940_s11 + $0x8] sm:$0xff]  }
 0x225   : > { %1543 = vmatprep.subr.bf16.mxu0 %v1636_v6 }
 0x2ea   : > { %v765_v17 = vpop.f32.mrb[4].mxu0  ;;  %v822_v18 = vpop.f32.mrb[4].mxu1 }
 0x2eb   : > { %v1495_v19 = vpop.f32.mrb[5].mxu0  ;;  %v1503_v22 = vpop.f32.mrb[5].mxu1  ;;  %v891_v25 = vrot.slane %v765_v17, 7  ;;  %v1603_v17 = vld [vmem:[%s1941_s12 + $0x8] sm:$0xff]  }
 0x2ec   : > { %v768_v23 = vpop.f32.mrb[6].mxu0  ;;  %v825_v24 = vpop.f32.mrb[6].mxu1 }
 0x2ed   : > { %v892_v26 = vrot.slane %v768_v23, 7  ;;  %v1496_v27 = vpop.f32.mrb[7].mxu0  ;;  %v1504_v3 = vpop.f32.mrb[7].mxu1 }
 0x2ee   : > { %v1414_v3 = vld [vmem:[%s1939_s10] ss:$0 sm:$0xff] }
 0x2ef   : > { %v895_v28 = vsel %vm893_vm2, %v892_v26, %v891_v25  ;;  %v894_v29 = vsel %vm893_vm2, %v891_v25, %v892_v26 }
 0x2f0   : > { %v896_v30 = vsel %vm889_vm3, %v895_v28, 0.0  ;;  %v899_v31 = vadd.f32 %v894_v29, %v825_v24  ;;  %v924_v24 = vld [vmem:[%s1938_s9] sm:$0x1] }
 0x2f1   : > { %v898_v32 = vadd.f32 %v896_v30, %v822_v18 }
 0x2f2   : > { %v879_v34 = vpop.f32.mrb[8].mxu0 }
 0x2f3   : > { %v1511_v35 = vpop.f32.mrb[9].mxu0  ;;  %v902_v37 = vrot.slane %v879_v34, 1 }
 0x2f4   : > { %v882_v36 = vpop.f32.mrb[10].mxu0 }
 0x2f5   : > { %v903_v38 = vrot.slane %v882_v36, 1  ;;  %v1512_v39 = vpop.f32.mrb[11].mxu0 }
 0x2f7   : > { %v905_v40 = vsel %vm904_vm4, %v902_v37, %v903_v38  ;;  %v906_v41 = vsel %vm904_vm4, %v903_v38, %v902_v37 }
 0x2f8   : > { %v908_v43 = vsel %vm901_vm5, %v906_v41, 0.0  ;;  %v909_v44 = vadd.f32 %v905_v40, %v898_v32 }
 0x2f9   : > { %v910_v45 = vadd.f32 %v908_v43, %v899_v31 }
 0x2fa   : > { %v918_v46 = vadd.f32 %v1411_v42, %v909_v44  ;;  %v1604_v44 = vld [vmem:[%s1942_s13] sm:$0xff]  }
 0x2fb   : > { %v919_v47 = vadd.f32 %v1411_v42, %v910_v45 }
 0x2fc   : > { %v926_v48 = vsel %vm504_vm1, %v918_v46, 0.0 }
 0x2fd   : > { %v927_v49 = vsel %vm504_vm1, %v919_v47, 0.0 }
 0x2fe   : > { %v928_v50 = vadd.f32 %v927_v49, %v926_v48 }
 0x300   : > { %v929_v51 = vrot.slane %v928_v50, 4 }
 0x302   : > { %v930_v52 = vadd.f32 %v929_v51, %v928_v50 }
 0x304   : > { %v931_v53 = vrot.slane %v930_v52, 2 }
 0x306   : > { %v932_v54 = vadd.f32 %v931_v53, %v930_v52 }
 0x308   : > { %v933_v55 = vrot.slane %v932_v54, 1 }
 0x30a   : > { %v934_v56 = vadd.f32 %v933_v55, %v932_v54 }
 0x30c   : > { %1522 = vmatmul.mubr.msk.f32.vlgmr.msra.gmra.mrb[2].mxu1 %vm504_vm1, %v934_v56 }
 0x30d   : > { %1539 = vmatprep.mubr.msk.bf16.mxu1 %vm1635_vm0, %v1636_v6  ;;  %1536 = vmatpush3.bf16.msra.mxu1 %v1600_v14 }
 0x30e   : > { %1537 = vmatprep.subr.bf16.mxu1 %v1636_v6 }
 0x311   : > { %1538 = vmatpush3.bf16.msra.mxu1 %v1602_v16 }
 0x312   : > { %1551 = vmatprep.subr.bf16.mxu1 %v1636_v6 }
 0x3df   : > { %v1004_v57 = vpop.f32.mrb[2].mxu1 }
 0x3e0   : > { %v1008_v58 = vmul.f32 0.0625, %v1004_v57  ;;  %v1523_v59 = vpop.f32.mrb[3].mxu1 }
 0x3e2   : > { %v1012_v60 = vrot.slane %v1008_v58, %v1769_v21 }
 0x3e4   : > { %v1013_v61 = vsub.f32 %v918_v46, %v1012_v60  ;;  %v1014_v62 = vsub.f32 %v919_v47, %v1012_v60  ;;  %v1605_v46 = vld [vmem:[%s1942_s13 + $0x8] sm:$0xff]  }
 0x3e6   : > { %v1015_v63 = vmul.f32 %v1013_v61, %v1013_v61  ;;  %v1016_v0 = vmul.f32 %v1014_v62, %v1014_v62 }
 0x3e8   : > { %v1017_v1 = vsel %vm504_vm1, %v1015_v63, 0.0  ;;  %v1018_v2 = vsel %vm504_vm1, %v1016_v0, 0.0 }
 0x3e9   : > { %v1019_v4 = vadd.f32 %v1018_v2, %v1017_v1 }
 0x3eb   : > { %v1020_v5 = vrot.slane %v1019_v4, 4 }
 0x3ed   : > { %v1021_v7 = vadd.f32 %v1020_v5, %v1019_v4 }
 0x3ef   : > { %v1022_v10 = vrot.slane %v1021_v7, 2 }
 0x3f1   : > { %v1023_v11 = vadd.f32 %v1022_v10, %v1021_v7  ;;  %v1424_v7 = vld [vmem:[%s1943_s14] ss:$0 sm:$0xff] }
 0x3f3   : > { %v1024_v12 = vrot.slane %v1023_v11, 1 }
 0x3f5   : > { %v1025_v13 = vadd.f32 %v1024_v12, %v1023_v11 }
 0x3f7   : > { %1533 = vmatmul.mubr.msk.f32.vlgmr.msra.gmra.mrb[2].mxu0 %vm504_vm1, %v1025_v13 }
 0x3f8   : > { %1547 = vmatprep.mubr.msk.bf16.mxu0 %vm1635_vm0, %v1636_v6  ;;  %1544 = vmatpush3.bf16.msra.mxu0 %v1601_v15 }
 0x3f9   : > { %1545 = vmatprep.subr.bf16.mxu0 %v1636_v6 }
 0x3fc   : > { %1546 = vmatpush3.bf16.msra.mxu0 %v1603_v17 }
 0x4ca   : > { %v1095_v18 = vpop.f32.mrb[2].mxu0 }
 0x4cb   : > { %v1099_v19 = vmul.f32 0.0625, %v1095_v18  ;;  %v1534_v22 = vpop.f32.mrb[3].mxu0 }
 0x4cd   : > { %v1100_v23 = vadd.f32 1e-06, %v1099_v19 }
 0x4cf   : > { %1616 = vrsqrt.f32 %v1100_v23 }
 0x4d9   : > { %v1617_v25 = vpop.eup %1616 }
 0x4da   : > { %v1102_v26 = vmul.f32 %v1617_v25, %v924_v24 }
 0x4dc   : > { %v1106_v27 = vrot.slane %v1102_v26, %v1769_v21 }
 0x4de   : > { %v1107_v28 = vmul.f32 %v1106_v27, %v1013_v61  ;;  %v1108_v29 = vmul.f32 %v1106_v27, %v1014_v62 }
 0x4e0   : > { %v1115_v30 = vadd.f32 %v1414_v3, %v1107_v28  ;;  %v1116_v31 = vadd.f32 %v1414_v3, %v1108_v29 }
 0x4e2   : > { %v1117_v32 = vsub.f32 0.0, %v1115_v30  ;;  %v1118_v34 = vsub.f32 0.0, %v1116_v31 }
 0x4e4   : > { %v1119_v35 = vmul.f32 1.442695, %v1117_v32  ;;  %v1121_v36 = vmul.f32 1.442695, %v1118_v34 }
 0x4e6   : > { %1618 = vpow2.f32 %v1119_v35 }
 0x4e7   : > { %1620 = vpow2.f32 %v1121_v36 }
 0x4f0   : > { %v1619_v37 = vpop.eup %1618 }
 0x4f1   : > { %v1621_v38 = vpop.eup %1620  ;;  %v1123_v39 = vadd.f32 1.0, %v1619_v37 }
 0x4f2   : > { %v1124_v40 = vadd.f32 1.0, %v1621_v38 }
 0x4f3   : > { %1622 = vrcp.f32 %v1123_v39 }
 0x4f4   : > { %1624 = vrcp.f32 %v1124_v40 }
 0x4fd   : > { %v1623_v21 = vpop.eup %1622 }
 0x4fe   : > { %v1625_v41 = vpop.eup %1624  ;;  %v1129_v42 = vmul.f32 %v1623_v21, %v1115_v30 }
 0x4ff   : > { %v1130_v43 = vmul.f32 %v1625_v41, %v1116_v31 }
 0x501   : > { %v1131_v45 = vpack.c.bf16 %v1130_v43, %v1129_v42 }
 0x503   : > { %1540 = vmatmul.mubr.msk.bf16.vlgmr.msra.gmra.mrb[8].mxu1 %vm504_vm1, %v1131_v45  ;;  %1548 = vmatmul.mubr.msk.bf16.vlgmr.msra.gmra.mrb[12].mxu0 %vm504_vm1, %v1131_v45 }
 0x504   : > { %1552 = vmatpush3.bf16.msra.mxu1 %v1604_v44  ;;  %1555 = vmatprep.mubr.msk.bf16.mxu1 %vm1635_vm0, %v1636_v6 }
 0x505   : > { %1553 = vmatprep.subr.bf16.mxu1 %v1636_v6 }
 0x508   : > { %1554 = vmatpush3.bf16.msra.mxu1 %v1605_v46 }
 0x50b   : > { %1556 = vmatmul.mubr.msk.bf16.vlgmr.msra.gmra.mrb[12].mxu1 %vm504_vm1, %v1131_v45 }
 0x5d6   : > { %v1185_v47 = vpop.f32.mrb[8].mxu1  ;;  %v1242_v48 = vpop.f32.mrb[12].mxu0 }
 0x5d7   : > { %v1541_v49 = vpop.f32.mrb[9].mxu1  ;;  %v1549_v50 = vpop.f32.mrb[13].mxu0  ;;  %v1306_v53 = vrot.slane %v1185_v47, 7 }
 0x5d8   : > { %v1188_v51 = vpop.f32.mrb[10].mxu1  ;;  %v1245_v52 = vpop.f32.mrb[14].mxu0 }
 0x5d9   : > { %v1307_v54 = vrot.slane %v1188_v51, 7  ;;  %v1542_v55 = vpop.f32.mrb[11].mxu1  ;;  %v1550_v56 = vpop.f32.mrb[15].mxu0 }
 0x5db   : > { %v1309_v57 = vsel %vm893_vm2, %v1307_v54, %v1306_v53  ;;  %v1308_v58 = vsel %vm893_vm2, %v1306_v53, %v1307_v54 }
 0x5dc   : > { %v1310_v6 = vsel %vm889_vm3, %v1309_v57, 0.0  ;;  %v1313_v59 = vadd.f32 %v1308_v58, %v1245_v52 }
 0x5dd   : > { %v1312_v60 = vadd.f32 %v1310_v6, %v1242_v48 }
 0x5de   : > { %v1299_v61 = vpop.f32.mrb[12].mxu1 }
 0x5df   : > { %v1557_v62 = vpop.f32.mrb[13].mxu1  ;;  %v1314_v0 = vrot.slane %v1299_v61, 1 }
 0x5e0   : > { %v1302_v63 = vpop.f32.mrb[14].mxu1 }
 0x5e1   : > { %v1315_v1 = vrot.slane %v1302_v63, 1  ;;  %v1558_v2 = vpop.f32.mrb[15].mxu1 }
 0x5e3   : > { %v1316_v4 = vsel %vm904_vm4, %v1314_v0, %v1315_v1  ;;  %v1317_v5 = vsel %vm904_vm4, %v1315_v1, %v1314_v0 }
 0x5e4   : > { %v1319_v10 = vsel %vm901_vm5, %v1317_v5, 0.0  ;;  %v1320_v11 = vadd.f32 %v1316_v4, %v1312_v60 }
 0x5e5   : > { %v1321_v12 = vadd.f32 %v1319_v10, %v1313_v59 }
 0x5e6   : > { %v1329_v13 = vadd.f32 %v1424_v7, %v1320_v11 }
 0x5e7   : > { %v1330_v14 = vadd.f32 %v1424_v7, %v1321_v12 }
 0x5e8   : > { %v1331_v15 = vadd.f32 %v1329_v13, %v1753_v8 }
 0x5e9   : > { %v1332_v20 = vadd.f32 %v1330_v14, %v1755_v9 }
 0x5ea   : > { %1333 = vst.msk [vmem:[%s494_s30] sm:$0xff] %vm504_vm1, %v1331_v15 }
 0x5eb   : > { %1334 = vst.msk [vmem:[%s494_s30 + $0x8] sm:$0xff] %vm504_vm1, %v1332_v20 }
 0x5ec PF: > { %s25_s18 = sadd.s32 1, %s1632_s18  }
 0x5ed   : > { %p22_p4 = scmp.ge.s32.totalorder %s25_s18, 4  }
 0x5ef   :  { %24 = sbr.rel (!%p22_p4) target bundleno = 1 (0x1), region = 110 }

// kernel: _lambda_.23
= control target key start
LH: loop header
LB: loop body
LE: loop exit
PB: predicated region body
PF: predicated region fallthrough
CT: control target
= control target key end

     0   :  { %s974_s27 = smov 0   ;;  %s1069_s0 = inlined_call_operand.vmem [shape: f32[2,16,32], index: 0, kind: input, shape index: {}]   ;;  %s1070_s1 = inlined_call_operand.vmem [shape: f32[32,32], index: 1, kind: input, shape index: {}]   ;;  %s1071_s2 = inlined_call_operand.vmem [shape: f32[1,32], index: 2, kind: input, shape index: {}]   ;;  %s1072_s3 = inlined_call_operand.vmem [shape: f32[1,32], index: 3, kind: input, shape index: {}]   ;;  %s1073_s4 = inlined_call_operand.vmem [shape: bf16[32,128], index: 4, kind: input, shape index: {}]   ;;  %s1074_s5 = inlined_call_operand.vmem [shape: bf16[32,128], index: 5, kind: input, shape index: {}]   ;;  %s1075_s6 = inlined_call_operand.vmem [shape: bf16[32,128], index: 6, kind: input, shape index: {}]   ;;  %s1076_s7 = inlined_call_operand.vmem [shape: f32[1,128], index: 7, kind: input, shape index: {}]   ;;  %s1077_s8 = inlined_call_operand.vmem [shape: f32[2,16,128], index: 8, kind: output, shape index: {}]  }
   0x1 LB: > { %s788_s28 = sadd.s32 4294967295, %s924_s27   ;;  %p792_p0 = scmp.ge.s32.totalorder %s924_s27, 1  ;;  %s924_s27 = sphi %s974_s27, %s18_s27  }
   0x2   : > { %p262_p1 = scmp.lt.s32.totalorder %s924_s27, 3 }
   0x4   : > { %p263_p2 = pnand %p792_p0, %p262_p1 }
   0x5   : > { %v309_v0 = vld [vmem:[%s1070_s1] sm:$0xff] (!%p263_p2)  ;;  %v310_v1 = vld [vmem:[%s1070_s1 + $0x8] sm:$0xff] (!%p263_p2)  ;;  %v311_v2 = vld [vmem:[%s1070_s1 + $0x10] sm:$0xff] (!%p263_p2)  ;;  %v926_v3 = vmov (!%p263_p2), 0.0|0.0   ;;  %vm927_vm0 = vmmov (!%p263_p2), 0   ;;  %v928_v6 = vmov (!%p263_p2), 0.0   ;;  %v400_v19 = vlaneseq (!%p263_p2) }
   0x6   : > { %266 = sbr.rel (%p263_p2) target bundleno = 766 (0x2fe), region = 52  ;;  %879 = vmatprep.subr.bf16.mxu0 (!%p263_p2), %v926_v3  ;;  %v880_v4 = vpack.c.bf16 (!%p263_p2), %v310_v1, %v309_v0  ;;  %v312_v5 = vld [vmem:[%s1070_s1 + $0x18] sm:$0xff] (!%p263_p2)  ;;  %841 = vmatprep.mubr.msk.f32.mxu0 (!%p263_p2), %vm927_vm0, %v928_v6  ;;  %p296_p3 = scmp.lt.s32.totalorder (!%p263_p2), %s788_s28, 1  ;;  %vm315_vm1 = vcmask (!%p263_p2), 261120   ;;  %v902_v39 = vld [vmem:[%s1073_s4] sm:$0xff] (!%p263_p2)   ;;  %v904_v41 = vld [vmem:[%s1073_s4 + $0x8] sm:$0xff] (!%p263_p2)  }
   0x7   : > { %885 = vmatprep.subr.bf16.mxu1 (!%p263_p2), %v926_v3  ;;  %852 = vmatprep.mubr.msk.f32.mxu1 (!%p263_p2), %vm927_vm0, %v928_v6  ;;  %v883_v7 = vpack.c.bf16 (!%p263_p2), %v312_v5, %v311_v2  ;;  %v1013_v20 = vshrl.u32 (!%p263_p2), %v400_v19, 7  ;;  %v903_v40 = vld [vmem:[%s1074_s5] sm:$0xff] (!%p263_p2)   ;;  %v905_v42 = vld [vmem:[%s1074_s5 + $0x8] sm:$0xff] (!%p263_p2)  }
   0x8   : > { %881 = vmatpush3.bf16.msra.mxu0 (!%p263_p2), %v880_v4  ;;  %887 = vmatpush3.bf16.msra.mxu1 (!%p263_p2), %v880_v4  ;;  %v313_v47 = vld [vmem:[%s1071_s2] sm:$0x1] (!%p263_p2) }
   0x9   : > { %882 = vmatprep.subr.bf16.mxu0 (!%p263_p2), %v926_v3  ;;  %888 = vmatprep.subr.bf16.mxu1 (!%p263_p2), %v926_v3  ;;  %v402_v21 = vsub.s32 (!%p263_p2), 0, %v1013_v20  ;;  %v799_v51 = vld [vmem:[%s1072_s3] ss:$0 sm:$0xff] (!%p263_p2)  ;;  %vm704_vm2 = vcmp.lt.s32.totalorder (!%p263_p2), %v1013_v20, 1  ;;  %vm700_vm3 = vcmp.gt.s32.totalorder (!%p263_p2), %v1013_v20, 0  ;;  %vm715_vm4 = vcmp.lt.s32.totalorder (!%p263_p2), %v1013_v20, 7 }
   0xa   : > { %v906_v4 = vld [vmem:[%s1075_s6] sm:$0xff] (!%p263_p2)  }
   0xc   : > { %884 = vmatpush3.bf16.msra.mxu0 (!%p263_p2), %v883_v7  ;;  %890 = vmatpush3.bf16.msra.mxu1 (!%p263_p2), %v883_v7  ;;  %v907_v7 = vld [vmem:[%s1075_s6 + $0x8] sm:$0xff] (!%p263_p2)  }
   0xd   : > { %s1079_s28 = smov (!%p296_p3, %s788_s28), 1  ;;  %855 = vmatprep.subr.bf16.mxu0 %v928_v6  ;;  %863 = vmatprep.subr.bf16.mxu1 %v928_v6 }
   0xe   : > { %s812_s15 = sshll.u32 %s1079_s28, 4 }
   0xf   : > { %s300_s18 = scalar_lea.vmem %s1069_s0, %s812_s15  ;;  %s305_s20 = scalar_lea.vmem %s1077_s8, %s812_s15 }
  0x10   : > { %v307_v8 = vld [vmem:[%s300_s18] sm:$0xff]  ;;  %v308_v9 = vld [vmem:[%s300_s18 + $0x8] sm:$0xff] }
  0x11   : > { %v316_v10 = vsel %vm315_vm1, %v307_v8, 0.0  ;;  %v317_v11 = vsel %vm315_vm1, %v308_v9, 0.0 }
  0x12   : > { %v318_v12 = vadd.f32 %v317_v11, %v316_v10 }
  0x14   : > { %v319_v13 = vrot.slane %v318_v12, 4 }
  0x16   : > { %v320_v14 = vadd.f32 %v319_v13, %v318_v12 }
  0x18   : > { %v321_v15 = vrot.slane %v320_v14, 2 }
  0x1a   : > { %v322_v16 = vadd.f32 %v321_v15, %v320_v14 }
  0x1c   : > { %v323_v17 = vrot.slane %v322_v16, 1 }
  0x1e   : > { %v324_v18 = vadd.f32 %v323_v17, %v322_v16 }
  0x20   : > { %842 = vmatmul.mubr.msk.f32.vlgmr.msra.gmra.mrb[0].mxu0 %vm315_vm1, %v324_v18 }
  0x21   : > { %859 = vmatprep.mubr.msk.bf16.mxu0 %vm927_vm0, %v928_v6  ;;  %856 = vmatpush3.bf16.msra.mxu0 %v902_v39 }
  0x22   : > { %857 = vmatprep.subr.bf16.mxu0 %v928_v6 }
  0x25   : > { %858 = vmatpush3.bf16.msra.mxu0 %v904_v41 }
  0x26   : > { %871 = vmatprep.subr.bf16.mxu0 %v928_v6 }
  0xf3   : > { %v394_v22 = vpop.f32.mrb[0].mxu0 }
  0xf4   : > { %v399_v23 = vmul.f32 0.0625, %v394_v22  ;;  %v843_v24 = vpop.f32.mrb[1].mxu0  ;;  %v699_v22 = vadd.s32 8, %v1013_v20 }
  0xf6   : > { %v403_v25 = vrot.slane %v399_v23, %v402_v21  ;;  %vm712_vm5 = vcmp.lt.s32.totalorder %v699_v22, 15 }
  0xf8   : > { %v404_v26 = vsub.f32 %v307_v8, %v403_v25  ;;  %v405_v27 = vsub.f32 %v308_v9, %v403_v25 }
  0xfa   : > { %v406_v28 = vmul.f32 %v404_v26, %v404_v26  ;;  %v407_v29 = vmul.f32 %v405_v27, %v405_v27 }
  0xfc   : > { %v408_v30 = vsel %vm315_vm1, %v406_v28, 0.0  ;;  %v409_v31 = vsel %vm315_vm1, %v407_v29, 0.0 }
  0xfd   : > { %v410_v32 = vadd.f32 %v409_v31, %v408_v30 }
  0xff   : > { %v411_v33 = vrot.slane %v410_v32, 4 }
 0x101   : > { %v412_v34 = vadd.f32 %v411_v33, %v410_v32  ;;  %v809_v32 = vld [vmem:[%s1076_s7] ss:$0 sm:$0xff] }
 0x103   : > { %v413_v35 = vrot.slane %v412_v34, 2 }
 0x105   : > { %v414_v36 = vadd.f32 %v413_v35, %v412_v34 }
 0x107   : > { %v415_v37 = vrot.slane %v414_v36, 1 }
 0x109   : > { %v416_v38 = vadd.f32 %v415_v37, %v414_v36 }
 0x10b   : > { %853 = vmatmul.mubr.msk.f32.vlgmr.msra.gmra.mrb[0].mxu1 %vm315_vm1, %v416_v38 }
 0x10c   : > { %867 = vmatprep.mubr.msk.bf16.mxu1 %vm927_vm0, %v928_v6  ;;  %864 = vmatpush3.bf16.msra.mxu1 %v903_v40 }
 0x10d   : > { %865 = vmatprep.subr.bf16.mxu1 %v928_v6 }
 0x110   : > { %866 = vmatpush3.bf16.msra.mxu1 %v905_v42 }
 0x1de   : > { %v486_v43 = vpop.f32.mrb[0].mxu1 }
 0x1df   : > { %v490_v44 = vmul.f32 0.0625, %v486_v43  ;;  %v854_v45 = vpop.f32.mrb[1].mxu1 }
 0x1e1   : > { %v491_v46 = vadd.f32 1e-06, %v490_v44 }
 0x1e3   : > { %908 = vrsqrt.f32 %v491_v46 }
 0x1ed   : > { %v909_v48 = vpop.eup %908 }
 0x1ee   : > { %v493_v49 = vmul.f32 %v909_v48, %v313_v47 }
 0x1f0   : > { %v497_v50 = vrot.slane %v493_v49, %v402_v21 }
 0x1f2   : > { %v498_v52 = vmul.f32 %v497_v50, %v404_v26  ;;  %v499_v53 = vmul.f32 %v497_v50, %v405_v27 }
 0x1f4   : > { %v506_v54 = vadd.f32 %v799_v51, %v498_v52  ;;  %v507_v55 = vadd.f32 %v799_v51, %v499_v53 }
 0x1f6   : > { %v508_v56 = vsub.f32 0.0, %v506_v54  ;;  %v509_v57 = vsub.f32 0.0, %v507_v55 }
 0x1f8   : > { %v510_v58 = vmul.f32 1.442695, %v508_v56  ;;  %v512_v59 = vmul.f32 1.442695, %v509_v57 }
 0x1fa   : > { %910 = vpow2.f32 %v510_v58 }
 0x1fb   : > { %912 = vpow2.f32 %v512_v59 }
 0x204   : > { %v911_v60 = vpop.eup %910 }
 0x205   : > { %v913_v61 = vpop.eup %912  ;;  %v514_v62 = vadd.f32 1.0, %v911_v60 }
 0x206   : > { %v515_v63 = vadd.f32 1.0, %v913_v61 }
 0x207   : > { %914 = vrcp.f32 %v514_v62 }
 0x208   : > { %916 = vrcp.f32 %v515_v63 }
 0x211   : > { %v915_v0 = vpop.eup %914 }
 0x212   : > { %v917_v1 = vpop.eup %916  ;;  %v520_v2 = vmul.f32 %v915_v0, %v506_v54 }
 0x213   : > { %v521_v3 = vmul.f32 %v917_v1, %v507_v55 }
 0x215   : > { %v522_v5 = vpack.c.bf16 %v521_v3, %v520_v2 }
 0x217   : > { %860 = vmatmul.mubr.msk.bf16.vlgmr.msra.gmra.mrb[4].mxu0 %vm315_vm1, %v522_v5  ;;  %868 = vmatmul.mubr.msk.bf16.vlgmr.msra.gmra.mrb[4].mxu1 %vm315_vm1, %v522_v5 }
 0x218   : > { %872 = vmatpush3.bf16.msra.mxu0 %v906_v4  ;;  %875 = vmatprep.mubr.msk.bf16.mxu0 %vm927_vm0, %v928_v6 }
 0x219   : > { %873 = vmatprep.subr.bf16.mxu0 %v928_v6 }
 0x21c   : > { %874 = vmatpush3.bf16.msra.mxu0 %v907_v7 }
 0x21f   : > { %876 = vmatmul.mubr.msk.bf16.vlgmr.msra.gmra.mrb[8].mxu0 %vm315_vm1, %v522_v5 }
 0x2ea   : > { %v576_v8 = vpop.f32.mrb[4].mxu0  ;;  %v633_v9 = vpop.f32.mrb[4].mxu1 }
 0x2eb   : > { %v861_v10 = vpop.f32.mrb[5].mxu0  ;;  %v869_v11 = vpop.f32.mrb[5].mxu1  ;;  %v702_v14 = vrot.slane %v576_v8, 7 }
 0x2ec   : > { %v579_v12 = vpop.f32.mrb[6].mxu0  ;;  %v636_v13 = vpop.f32.mrb[6].mxu1 }
 0x2ed   : > { %v703_v15 = vrot.slane %v579_v12, 7  ;;  %v862_v16 = vpop.f32.mrb[7].mxu0  ;;  %v870_v17 = vpop.f32.mrb[7].mxu1 }
 0x2ef   : > { %v705_v18 = vsel %vm704_vm2, %v702_v14, %v703_v15  ;;  %v706_v19 = vsel %vm704_vm2, %v703_v15, %v702_v14 }
 0x2f0   : > { %v707_v6 = vsel %vm700_vm3, %v706_v19, 0.0  ;;  %v710_v21 = vadd.f32 %v705_v18, %v636_v13 }
 0x2f1   : > { %v709_v23 = vadd.f32 %v707_v6, %v633_v9 }
 0x2f2   : > { %v690_v24 = vpop.f32.mrb[8].mxu0 }
 0x2f3   : > { %v877_v25 = vpop.f32.mrb[9].mxu0  ;;  %v713_v27 = vrot.slane %v690_v24, 1 }
 0x2f4   : > { %v693_v26 = vpop.f32.mrb[10].mxu0 }
 0x2f5   : > { %v714_v28 = vrot.slane %v693_v26, 1  ;;  %v878_v29 = vpop.f32.mrb[11].mxu0 }
 0x2f7   : > { %v716_v30 = vsel %vm715_vm4, %v713_v27, %v714_v28  ;;  %v717_v31 = vsel %vm715_vm4, %v714_v28, %v713_v27 }
 0x2f8   : > { %v719_v33 = vsel %vm712_vm5, %v717_v31, 0.0  ;;  %v720_v34 = vadd.f32 %v716_v30, %v709_v23 }
 0x2f9   : > { %v721_v35 = vadd.f32 %v719_v33, %v710_v21 }
 0x2fa   : > { %v729_v36 = vadd.f32 %v809_v32, %v720_v34 }
 0x2fb   : > { %v730_v20 = vadd.f32 %v809_v32, %v721_v35 }
 0x2fc   : > { %731 = vst [vmem:[%s305_s20] sm:$0xff] %v729_v36 }
 0x2fd   : > { %732 = vst [vmem:[%s305_s20 + $0x8] sm:$0xff] %v730_v20 }
 0x2fe PF: > { %s18_s27 = sadd.s32 1, %s924_s27  }
 0x2ff   : > { %p15_p4 = scmp.ge.s32.totalorder %s18_s27, 4  }
 0x301   :  { %17 = sbr.rel (!%p15_p4) target bundleno = 1 (0x1), region = 82 }

</bundles_post_ra>
